<compile_context>
chip_gen: v7x
topology: tpu7x:2x2x1
jax: 0.10.0
libtpu: 0.0.40
codegen_flags: <defaults>
</compile_context>

<pallas_src>
import functools

import jax
import jax.numpy as jnp
from jax.experimental import pallas as pl
from jax.experimental.pallas import tpu as pltpu


def _round_up(x, m):
    return (x + m - 1) // m * m


# ----------------------------------------------------------------------------
# Fused (A @ W + b) [+ ReLU] Pallas kernels.
# ----------------------------------------------------------------------------
def _mm_single_kernel(a_ref, w_ref, b_ref, o_ref, *, apply_relu):
    # Whole K in one block: no accumulator scratch, no pl.when phases.
    r = jnp.dot(a_ref[...], w_ref[...], preferred_element_type=jnp.float32)
    r = r + b_ref[...]
    if apply_relu:
        r = jnp.maximum(r, 0.0)
    o_ref[...] = r.astype(o_ref.dtype)


def _mm_acc_kernel(a_ref, w_ref, b_ref, o_ref, acc_ref, *, apply_relu):
    @pl.when(pl.program_id(2) == 0)
    def _():
        acc_ref[...] = jnp.zeros_like(acc_ref)

    acc_ref[...] += jnp.dot(a_ref[...], w_ref[...],
                            preferred_element_type=jnp.float32)

    @pl.when(pl.program_id(2) == pl.num_programs(2) - 1)
    def _():
        r = acc_ref[...] + b_ref[...]
        if apply_relu:
            r = jnp.maximum(r, 0.0)
        o_ref[...] = r.astype(o_ref.dtype)


def matmul_bias_act(a, w_p, b_p, *, n_out, relu, tm, tn, tk=None,
                    out_dtype=jnp.bfloat16):
    """Computes act(a @ w_p + b_p)[:, :n_out].

    a:   (M, K)  float; cast to bf16 here (minimal padding to tile grid only).
    w_p: (Kp, Np) bf16, pre-padded outside the jit (Kp, Np multiples of tiles).
    b_p: (1, Np)  f32, pre-padded outside the jit.
    """
    M, K = a.shape
    Kp, Np = w_p.shape
    Mp = _round_up(M, tm)
    assert Np % tn == 0, (Np, tn)
    assert K <= Kp, (K, Kp)

    a = a.astype(jnp.bfloat16)
    if Mp != M or Kp != K:
        a = jnp.pad(a, ((0, Mp - M), (0, Kp - K)))

    if tk is None or tk >= Kp:
        # Single K step: 2-D grid, direct write of the output block.
        out = pl.pallas_call(
            functools.partial(_mm_single_kernel, apply_relu=relu),
            out_shape=jax.ShapeDtypeStruct((Mp, Np), out_dtype),
            grid_spec=pltpu.PrefetchScalarGridSpec(
                num_scalar_prefetch=0,
                grid=(Mp // tm, Np // tn),
                in_specs=[
                    pl.BlockSpec((tm, Kp), lambda i, j: (i, 0)),
                    pl.BlockSpec((Kp, tn), lambda i, j: (0, j)),
                    pl.BlockSpec((1, tn), lambda i, j: (0, j)),
                ],
                out_specs=pl.BlockSpec((tm, tn), lambda i, j: (i, j)),
            ),
            compiler_params=pltpu.CompilerParams(
                dimension_semantics=("parallel", "parallel")),
        )(a, w_p, b_p)
    else:
        assert Kp % tk == 0, (Kp, tk)
        out = pl.pallas_call(
            functools.partial(_mm_acc_kernel, apply_relu=relu),
            out_shape=jax.ShapeDtypeStruct((Mp, Np), out_dtype),
            grid_spec=pltpu.PrefetchScalarGridSpec(
                num_scalar_prefetch=0,
                grid=(Mp // tm, Np // tn, Kp // tk),
                in_specs=[
                    pl.BlockSpec((tm, tk), lambda i, j, k: (i, k)),
                    pl.BlockSpec((tk, tn), lambda i, j, k: (k, j)),
                    pl.BlockSpec((1, tn), lambda i, j, k: (0, j)),
                ],
                out_specs=pl.BlockSpec((tm, tn), lambda i, j, k: (i, j)),
                scratch_shapes=[pltpu.VMEM((tm, tn), jnp.float32)],
            ),
            compiler_params=pltpu.CompilerParams(
                dimension_semantics=("parallel", "parallel", "arbitrary")),
        )(a, w_p, b_p)
    return out[:M, :n_out]


# ----------------------------------------------------------------------------
# Conv2d(valid, stride) + ReLU  =  im2col (glue) + fused Pallas matmul kernel.
# ----------------------------------------------------------------------------
def conv2d_relu(x_nhwc, w_p, b_p, *, ksize, stride, c_out, tm):
    """x_nhwc: (B,H,W,Cin) bf16; w_p: (Kp, Np) bf16 pre-flattened in
    (KH,KW,Cin) order; b_p: (1, Np) f32."""
    B, H, W, C = x_nhwc.shape
    KH = KW = ksize
    OH = (H - KH) // stride + 1
    OW = (W - KW) // stride + 1

    # im2col in (KH, KW, C) order — matches the pre-permuted weight, so no
    # transpose of the (large) patch matrix is needed.
    cols = []
    for i in range(KH):
        for j in range(KW):
            cols.append(
                x_nhwc[:, i:i + stride * OH:stride, j:j + stride * OW:stride, :])
    patches = jnp.concatenate(cols, axis=-1).reshape(B * OH * OW, KH * KW * C)

    out = matmul_bias_act(patches, w_p, b_p, n_out=c_out, relu=True,
                          tm=tm, tn=128, out_dtype=jnp.bfloat16)
    return out.reshape(B, OH, OW, c_out)                    # NHWC, bf16


# ----------------------------------------------------------------------------
# One-time weight preparation (run OUTSIDE the jitted forward).
# ----------------------------------------------------------------------------
def prepare_params(params):
    def prep_w(w2d, b, k_mult=128, n_mult=128):
        K, N = w2d.shape
        Kp, Np = _round_up(K, k_mult), _round_up(N, n_mult)
        w_pad = jnp.pad(w2d.astype(jnp.bfloat16), ((0, Kp - K), (0, Np - N)))
        b_pad = jnp.pad(b.astype(jnp.float32), (0, Np - N)).reshape(1, Np)
        return w_pad, b_pad

    def conv_w2d(w_oihw):
        # OIHW -> flatten in (KH, KW, I) order (matches im2col patch order).
        c_out = w_oihw.shape[0]
        return w_oihw.transpose(0, 2, 3, 1).reshape(c_out, -1).T

    prep = {}
    prep["w1"], prep["b1"] = prep_w(conv_w2d(params["w1"]), params["b1"])
    prep["w2"], prep["b2"] = prep_w(conv_w2d(params["w2"]), params["b2"])
    prep["w3"], prep["b3"] = prep_w(conv_w2d(params["w3"]), params["b3"])

    # fc1: torch flattens conv3's NCHW output in (C,H,W) order.  Permute the
    # weight columns once to (H,W,C) so the kernel path flattens the NHWC conv
    # output directly (no per-call activation transpose), and pre-transpose to
    # (K, N) so there is no per-call 46 MB transpose inside the jit.
    C3, H3, W3 = 64, 16, 22                       # implied by in_features=22528
    wfc1 = params["wfc1"]                         # (512, 22528)
    assert wfc1.shape[1] == C3 * H3 * W3
    wfc1_hwc = (wfc1.reshape(-1, C3, H3, W3)
                .transpose(0, 2, 3, 1)
                .reshape(wfc1.shape[0], -1))
    prep["wfc1"], prep["bfc1"] = prep_w(wfc1_hwc.T, params["bfc1"])
    prep["wfc2"], prep["bfc2"] = prep_w(params["wfc2"].T, params["bfc2"])
    return prep


# ----------------------------------------------------------------------------
# PolicyNetwork forward (Pallas path).
# ----------------------------------------------------------------------------
def policy_forward(prep, x_nchw, *, action_dim):
    B = x_nchw.shape[0]
    h = x_nchw.astype(jnp.bfloat16).transpose(0, 2, 3, 1)   # NCHW -> NHWC bf16
    h = conv2d_relu(h, prep["w1"], prep["b1"], ksize=8, stride=4, c_out=32, tm=512)
    h = conv2d_relu(h, prep["w2"], prep["b2"], ksize=4, stride=2, c_out=64, tm=512)
    h = conv2d_relu(h, prep["w3"], prep["b3"], ksize=3, stride=1, c_out=64, tm=384)
    # fc1 weight rows were pre-permuted to (H,W,C) order, so the NHWC conv
    # output flattens directly and still matches torch's x.reshape(B, -1).
    h = h.reshape(B, -1)                                     # (B, 22528) bf16
    h = matmul_bias_act(h, prep["wfc1"], prep["bfc1"], n_out=512, relu=True,
                        tm=16, tn=256, tk=5632, out_dtype=jnp.bfloat16)
    logits = matmul_bias_act(h, prep["wfc2"], prep["bfc2"], n_out=action_dim,
                             relu=False, tm=16, tn=128, out_dtype=jnp.float32)
    # TODO(synk): torch.distributions.Categorical has no Pallas equivalent;
    # we return the logits that parameterize it.
    return logits


# ----------------------------------------------------------------------------
# Deterministic parameter init (PyTorch-like uniform(-1/sqrt(fan_in), ...)).
# ----------------------------------------------------------------------------
def init_params(key, action_dim):
    ks = jax.random.split(key, 10)

    def u(k, shape, fan_in):
        bound = 1.0 / jnp.sqrt(jnp.float32(fan_in))
        return jax.random.uniform(k, shape, jnp.float32, -bound, bound)

    return {
        "w1": u(ks[0], (32, 3, 8, 8), 3 * 8 * 8),
        "b1": u(ks[1], (32,), 3 * 8 * 8),
        "w2": u(ks[2], (64, 32, 4, 4), 32 * 4 * 4),
        "b2": u(ks[3], (64,), 32 * 4 * 4),
        "w3": u(ks[4], (64, 64, 3, 3), 64 * 3 * 3),
        "b3": u(ks[5], (64,), 64 * 3 * 3),
        "wfc1": u(ks[6], (512, 22528), 22528),
        "bfc1": u(ks[7], (512,), 22528),
        "wfc2": u(ks[8], (action_dim, 512), 512),
        "bfc2": u(ks[9], (action_dim,), 512),
    }


# Pure-JAX f32 reference (XLA conv/dot) for sanity checking the Pallas path.
def reference_forward(params, x):
    h = x
    for w, b, s in ((params["w1"], params["b1"], 4),
                    (params["w2"], params["b2"], 2),
                    (params["w3"], params["b3"], 1)):
        h = jax.lax.conv_general_dilated(
            h, w, (s, s), "VALID", dimension_numbers=("NCHW", "OIHW", "NCHW"))
        h = jnp.maximum(h + b[None, :, None, None], 0.0)
    h = h.reshape(h.shape[0], -1)
    h = jnp.maximum(h @ params["wfc1"].T + params["bfc1"], 0.0)
    return h @ params["wfc2"].T + params["bfc2"]


if __name__ == "__main__":
    key = jax.random.PRNGKey(0)
    kp, kx = jax.random.split(key)

    action_dim = 6  # Pong
    params = init_params(kp, action_dim)
    prep = prepare_params(params)   # one-time weight prep, outside the jit

    # Input shape implied by the forward pass (fc1 in_features = 22528 = 64*16*22):
    # NCHW = (B=2, C=3, H=156, W=204).
    x = jax.random.normal(kx, (2, 3, 156, 204), jnp.float32)

    fwd = jax.jit(functools.partial(policy_forward, action_dim=action_dim))
    logits = jax.block_until_ready(fwd(prep, x))

    ref = reference_forward(params, x)
    err = float(jnp.max(jnp.abs(logits - ref)))
    scale = float(jnp.max(jnp.abs(ref))) + 1e-6
    assert logits.shape == (2, action_dim), logits.shape
    assert bool(jnp.isfinite(logits).all())
    assert err <= 5e-2 * scale + 1e-3, f"mismatch: max|diff|={err}, scale={scale}"

    print("KERNEL_OK")
</pallas_src>

<mosaic_0001>
module attributes {stable_mosaic.version = 11 : i64} {
  func.func @_mm_single_kernel(%arg0: i32, %arg1: i32, %arg2: memref<512x256xbf16, #tpu.memory_space<vmem>>, %arg3: memref<256x128xbf16, #tpu.memory_space<vmem>>, %arg4: memref<1x128xf32, #tpu.memory_space<vmem>>, %arg5: memref<512x128xbf16, #tpu.memory_space<vmem>>) attributes {dimension_semantics = [#tpu.dimension_semantics<parallel>, #tpu.dimension_semantics<parallel>], iteration_bounds = array<i64: 8, 1>, scalar_prefetch = 0 : i64, scratch_operands = 0 : i64, tpu.core_type = #tpu.core_type<tc>, window_params = [{transform_indices = @transform_0, window_bounds = array<i64: 512, 256>}, {transform_indices = @transform_1, window_bounds = array<i64: 256, 128>}, {transform_indices = @transform_2, window_bounds = array<i64: 1, 128>}, {transform_indices = @transform_3, window_bounds = array<i64: 512, 128>}]} {
    %c0 = arith.constant 0 : index
    %c0_0 = arith.constant 0 : index
    %0 = vector.load %arg2[%c0, %c0_0] : memref<512x256xbf16, #tpu.memory_space<vmem>>, vector<512x256xbf16>
    %c0_1 = arith.constant 0 : index
    %c0_2 = arith.constant 0 : index
    %1 = vector.load %arg3[%c0_1, %c0_2] : memref<256x128xbf16, #tpu.memory_space<vmem>>, vector<256x128xbf16>
    %cst = arith.constant dense<0.000000e+00> : vector<512x128xf32>
    %2 = tpu.matmul %0, %1, %cst {dimension_numbers = #tpu.dot_dimension_numbers<[1], [0], [0], [1], [0, 0, 1, 1], [], []>} : vector<512x256xbf16>, vector<256x128xbf16>, vector<512x128xf32> -> vector<512x128xf32>
    %c0_3 = arith.constant 0 : index
    %c0_4 = arith.constant 0 : index
    %3 = vector.load %arg4[%c0_3, %c0_4] : memref<1x128xf32, #tpu.memory_space<vmem>>, vector<1x128xf32>
    %4 = vector.broadcast %3 : vector<1x128xf32> to vector<512x128xf32>
    %5 = arith.addf %2, %4 : vector<512x128xf32>
    %cst_5 = arith.constant 0.000000e+00 : f32
    %6 = vector.broadcast %cst_5 : f32 to vector<512x128xf32>
    %7 = arith.maximumf %5, %6 : vector<512x128xf32>
    %8 = arith.truncf %7 : vector<512x128xf32> to vector<512x128xbf16>
    %c0_6 = arith.constant 0 : index
    %c0_7 = arith.constant 0 : index
    %9 = vector.load %arg5[%c0_6, %c0_7] : memref<512x128xbf16, #tpu.memory_space<vmem>>, vector<512x128xbf16>
    tpu.vector_store %arg5[%c0_6, %c0_7], %8 {strides = array<i32>} : memref<512x128xbf16, #tpu.memory_space<vmem>>, vector<512x128xbf16>,
    return
  }
  func.func @transform_0(%arg0: i32, %arg1: i32) -> (i32, i32) {
    %c0_i32 = arith.constant 0 : i32
    %c0_i32_0 = arith.constant 0 : i32
    return %arg0, %c0_i32 : i32, i32
  }
  func.func @transform_1(%arg0: i32, %arg1: i32) -> (i32, i32) {
    %c0_i32 = arith.constant 0 : i32
    %c0_i32_0 = arith.constant 0 : i32
    return %c0_i32, %arg1 : i32, i32
  }
  func.func @transform_2(%arg0: i32, %arg1: i32) -> (i32, i32) {
    %c0_i32 = arith.constant 0 : i32
    %c0_i32_0 = arith.constant 0 : i32
    return %c0_i32, %arg1 : i32, i32
  }
  func.func @transform_3(%arg0: i32, %arg1: i32) -> (i32, i32) {
    %c0_i32 = arith.constant 0 : i32
    return %arg0, %arg1 : i32, i32
  }
}

module attributes {stable_mosaic.version = 11 : i64} {
  func.func @_mm_single_kernel(%arg0: i32, %arg1: i32, %arg2: memref<512x512xbf16, #tpu.memory_space<vmem>>, %arg3: memref<512x128xbf16, #tpu.memory_space<vmem>>, %arg4: memref<1x128xf32, #tpu.memory_space<vmem>>, %arg5: memref<512x128xbf16, #tpu.memory_space<vmem>>) attributes {dimension_semantics = [#tpu.dimension_semantics<parallel>, #tpu.dimension_semantics<parallel>], iteration_bounds = array<i64: 2, 1>, scalar_prefetch = 0 : i64, scratch_operands = 0 : i64, tpu.core_type = #tpu.core_type<tc>, window_params = [{transform_indices = @transform_0, window_bounds = array<i64: 512, 512>}, {transform_indices = @transform_1, window_bounds = array<i64: 512, 128>}, {transform_indices = @transform_2, window_bounds = array<i64: 1, 128>}, {transform_indices = @transform_3, window_bounds = array<i64: 512, 128>}]} {
    %c0 = arith.constant 0 : index
    %c0_0 = arith.constant 0 : index
    %0 = vector.load %arg2[%c0, %c0_0] : memref<512x512xbf16, #tpu.memory_space<vmem>>, vector<512x512xbf16>
    %c0_1 = arith.constant 0 : index
    %c0_2 = arith.constant 0 : index
    %1 = vector.load %arg3[%c0_1, %c0_2] : memref<512x128xbf16, #tpu.memory_space<vmem>>, vector<512x128xbf16>
    %cst = arith.constant dense<0.000000e+00> : vector<512x128xf32>
    %2 = tpu.matmul %0, %1, %cst {dimension_numbers = #tpu.dot_dimension_numbers<[1], [0], [0], [1], [0, 0, 1, 1], [], []>} : vector<512x512xbf16>, vector<512x128xbf16>, vector<512x128xf32> -> vector<512x128xf32>
    %c0_3 = arith.constant 0 : index
    %c0_4 = arith.constant 0 : index
    %3 = vector.load %arg4[%c0_3, %c0_4] : memref<1x128xf32, #tpu.memory_space<vmem>>, vector<1x128xf32>
    %4 = vector.broadcast %3 : vector<1x128xf32> to vector<512x128xf32>
    %5 = arith.addf %2, %4 : vector<512x128xf32>
    %cst_5 = arith.constant 0.000000e+00 : f32
    %6 = vector.broadcast %cst_5 : f32 to vector<512x128xf32>
    %7 = arith.maximumf %5, %6 : vector<512x128xf32>
    %8 = arith.truncf %7 : vector<512x128xf32> to vector<512x128xbf16>
    %c0_6 = arith.constant 0 : index
    %c0_7 = arith.constant 0 : index
    %9 = vector.load %arg5[%c0_6, %c0_7] : memref<512x128xbf16, #tpu.memory_space<vmem>>, vector<512x128xbf16>
    tpu.vector_store %arg5[%c0_6, %c0_7], %8 {strides = array<i32>} : memref<512x128xbf16, #tpu.memory_space<vmem>>, vector<512x128xbf16>,
    return
  }
  func.func @transform_0(%arg0: i32, %arg1: i32) -> (i32, i32) {
    %c0_i32 = arith.constant 0 : i32
    %c0_i32_0 = arith.constant 0 : i32
    return %arg0, %c0_i32 : i32, i32
  }
  func.func @transform_1(%arg0: i32, %arg1: i32) -> (i32, i32) {
    %c0_i32 = arith.constant 0 : i32
    %c0_i32_0 = arith.constant 0 : i32
    return %c0_i32, %arg1 : i32, i32
  }
  func.func @transform_2(%arg0: i32, %arg1: i32) -> (i32, i32) {
    %c0_i32 = arith.constant 0 : i32
    %c0_i32_0 = arith.constant 0 : i32
    return %c0_i32, %arg1 : i32, i32
  }
  func.func @transform_3(%arg0: i32, %arg1: i32) -> (i32, i32) {
    %c0_i32 = arith.constant 0 : i32
    return %arg0, %arg1 : i32, i32
  }
}

module attributes {stable_mosaic.version = 11 : i64} {
  func.func @_mm_single_kernel(%arg0: i32, %arg1: i32, %arg2: memref<384x640xbf16, #tpu.memory_space<vmem>>, %arg3: memref<640x128xbf16, #tpu.memory_space<vmem>>, %arg4: memref<1x128xf32, #tpu.memory_space<vmem>>, %arg5: memref<384x128xbf16, #tpu.memory_space<vmem>>) attributes {dimension_semantics = [#tpu.dimension_semantics<parallel>, #tpu.dimension_semantics<parallel>], iteration_bounds = array<i64: 2, 1>, scalar_prefetch = 0 : i64, scratch_operands = 0 : i64, tpu.core_type = #tpu.core_type<tc>, window_params = [{transform_indices = @transform_0, window_bounds = array<i64: 384, 640>}, {transform_indices = @transform_1, window_bounds = array<i64: 640, 128>}, {transform_indices = @transform_2, window_bounds = array<i64: 1, 128>}, {transform_indices = @transform_3, window_bounds = array<i64: 384, 128>}]} {
    %c0 = arith.constant 0 : index
    %c0_0 = arith.constant 0 : index
    %0 = vector.load %arg2[%c0, %c0_0] : memref<384x640xbf16, #tpu.memory_space<vmem>>, vector<384x640xbf16>
    %c0_1 = arith.constant 0 : index
    %c0_2 = arith.constant 0 : index
    %1 = vector.load %arg3[%c0_1, %c0_2] : memref<640x128xbf16, #tpu.memory_space<vmem>>, vector<640x128xbf16>
    %cst = arith.constant dense<0.000000e+00> : vector<384x128xf32>
    %2 = tpu.matmul %0, %1, %cst {dimension_numbers = #tpu.dot_dimension_numbers<[1], [0], [0], [1], [0, 0, 1, 1], [], []>} : vector<384x640xbf16>, vector<640x128xbf16>, vector<384x128xf32> -> vector<384x128xf32>
    %c0_3 = arith.constant 0 : index
    %c0_4 = arith.constant 0 : index
    %3 = vector.load %arg4[%c0_3, %c0_4] : memref<1x128xf32, #tpu.memory_space<vmem>>, vector<1x128xf32>
    %4 = vector.broadcast %3 : vector<1x128xf32> to vector<384x128xf32>
    %5 = arith.addf %2, %4 : vector<384x128xf32>
    %cst_5 = arith.constant 0.000000e+00 : f32
    %6 = vector.broadcast %cst_5 : f32 to vector<384x128xf32>
    %7 = arith.maximumf %5, %6 : vector<384x128xf32>
    %8 = arith.truncf %7 : vector<384x128xf32> to vector<384x128xbf16>
    %c0_6 = arith.constant 0 : index
    %c0_7 = arith.constant 0 : index
    %9 = vector.load %arg5[%c0_6, %c0_7] : memref<384x128xbf16, #tpu.memory_space<vmem>>, vector<384x128xbf16>
    tpu.vector_store %arg5[%c0_6, %c0_7], %8 {strides = array<i32>} : memref<384x128xbf16, #tpu.memory_space<vmem>>, vector<384x128xbf16>,
    return
  }
  func.func @transform_0(%arg0: i32, %arg1: i32) -> (i32, i32) {
    %c0_i32 = arith.constant 0 : i32
    %c0_i32_0 = arith.constant 0 : i32
    return %arg0, %c0_i32 : i32, i32
  }
  func.func @transform_1(%arg0: i32, %arg1: i32) -> (i32, i32) {
    %c0_i32 = arith.constant 0 : i32
    %c0_i32_0 = arith.constant 0 : i32
    return %c0_i32, %arg1 : i32, i32
  }
  func.func @transform_2(%arg0: i32, %arg1: i32) -> (i32, i32) {
    %c0_i32 = arith.constant 0 : i32
    %c0_i32_0 = arith.constant 0 : i32
    return %c0_i32, %arg1 : i32, i32
  }
  func.func @transform_3(%arg0: i32, %arg1: i32) -> (i32, i32) {
    %c0_i32 = arith.constant 0 : i32
    return %arg0, %arg1 : i32, i32
  }
}

module attributes {stable_mosaic.version = 11 : i64} {
  func.func @_mm_acc_kernel(%arg0: i32, %arg1: i32, %arg2: i32, %arg3: memref<16x5632xbf16, #tpu.memory_space<vmem>>, %arg4: memref<5632x256xbf16, #tpu.memory_space<vmem>>, %arg5: memref<1x256xf32, #tpu.memory_space<vmem>>, %arg6: memref<16x256xbf16, #tpu.memory_space<vmem>>, %arg7: memref<16x256xf32, #tpu.memory_space<vmem>>) attributes {dimension_semantics = [#tpu.dimension_semantics<parallel>, #tpu.dimension_semantics<parallel>, #tpu.dimension_semantics<arbitrary>], iteration_bounds = array<i64: 1, 2, 4>, scalar_prefetch = 0 : i64, scratch_operands = 1 : i64, tpu.core_type = #tpu.core_type<tc>, window_params = [{transform_indices = @transform_0, window_bounds = array<i64: 16, 5632>}, {transform_indices = @transform_1, window_bounds = array<i64: 5632, 256>}, {transform_indices = @transform_2, window_bounds = array<i64: 1, 256>}, {transform_indices = @transform_3, window_bounds = array<i64: 16, 256>}]} {
    %c0_i32 = arith.constant 0 : i32
    %0 = arith.cmpi eq, %arg2, %c0_i32 : i32
    %1 = arith.extui %0 : i1 to i32
    %c0_i32_0 = arith.constant 0 : i32
    %2 = arith.cmpi ne, %1, %c0_i32_0 : i32
    scf.if %2 {
      %cst_9 = arith.constant 0.000000e+00 : f32
      %12 = vector.broadcast %cst_9 : f32 to vector<16x256xf32>
      %c0_10 = arith.constant 0 : index
      %c0_11 = arith.constant 0 : index
      %13 = vector.load %arg7[%c0_10, %c0_11] : memref<16x256xf32, #tpu.memory_space<vmem>>, vector<16x256xf32>
      tpu.vector_store %arg7[%c0_10, %c0_11], %12 {strides = array<i32>} : memref<16x256xf32, #tpu.memory_space<vmem>>, vector<16x256xf32>,
    } else {
    }
    %c0 = arith.constant 0 : index
    %c0_1 = arith.constant 0 : index
    %3 = vector.load %arg7[%c0, %c0_1] : memref<16x256xf32, #tpu.memory_space<vmem>>, vector<16x256xf32>
    %c0_2 = arith.constant 0 : index
    %c0_3 = arith.constant 0 : index
    %4 = vector.load %arg3[%c0_2, %c0_3] : memref<16x5632xbf16, #tpu.memory_space<vmem>>, vector<16x5632xbf16>
    %c0_4 = arith.constant 0 : index
    %c0_5 = arith.constant 0 : index
    %5 = vector.load %arg4[%c0_4, %c0_5] : memref<5632x256xbf16, #tpu.memory_space<vmem>>, vector<5632x256xbf16>
    %cst = arith.constant dense<0.000000e+00> : vector<16x256xf32>
    %6 = tpu.matmul %4, %5, %cst {dimension_numbers = #tpu.dot_dimension_numbers<[1], [0], [0], [1], [0, 0, 1, 1], [], []>} : vector<16x5632xbf16>, vector<5632x256xbf16>, vector<16x256xf32> -> vector<16x256xf32>
    %7 = arith.addf %3, %6 : vector<16x256xf32>
    %c0_6 = arith.constant 0 : index
    %c0_7 = arith.constant 0 : index
    %8 = vector.load %arg7[%c0_6, %c0_7] : memref<16x256xf32, #tpu.memory_space<vmem>>, vector<16x256xf32>
    tpu.vector_store %arg7[%c0_6, %c0_7], %7 {strides = array<i32>} : memref<16x256xf32, #tpu.memory_space<vmem>>, vector<16x256xf32>,
    %c3_i32 = arith.constant 3 : i32
    %9 = arith.cmpi eq, %arg2, %c3_i32 : i32
    %10 = arith.extui %9 : i1 to i32
    %c0_i32_8 = arith.constant 0 : i32
    %11 = arith.cmpi ne, %10, %c0_i32_8 : i32
    scf.if %11 {
      %c0_9 = arith.constant 0 : index
      %c0_10 = arith.constant 0 : index
      %12 = vector.load %arg7[%c0_9, %c0_10] : memref<16x256xf32, #tpu.memory_space<vmem>>, vector<16x256xf32>
      %c0_11 = arith.constant 0 : index
      %c0_12 = arith.constant 0 : index
      %13 = vector.load %arg5[%c0_11, %c0_12] : memref<1x256xf32, #tpu.memory_space<vmem>>, vector<1x256xf32>
      %14 = vector.broadcast %13 : vector<1x256xf32> to vector<16x256xf32>
      %15 = arith.addf %12, %14 : vector<16x256xf32>
      %cst_13 = arith.constant 0.000000e+00 : f32
      %16 = vector.broadcast %cst_13 : f32 to vector<16x256xf32>
      %17 = arith.maximumf %15, %16 : vector<16x256xf32>
      %18 = arith.truncf %17 : vector<16x256xf32> to vector<16x256xbf16>
      %c0_14 = arith.constant 0 : index
      %c0_15 = arith.constant 0 : index
      %19 = vector.load %arg6[%c0_14, %c0_15] : memref<16x256xbf16, #tpu.memory_space<vmem>>, vector<16x256xbf16>
      tpu.vector_store %arg6[%c0_14, %c0_15], %18 {strides = array<i32>} : memref<16x256xbf16, #tpu.memory_space<vmem>>, vector<16x256xbf16>,
    } else {
    }
    return
  }
  func.func @transform_0(%arg0: i32, %arg1: i32, %arg2: i32) -> (i32, i32) {
    %c0_i32 = arith.constant 0 : i32
    return %arg0, %arg2 : i32, i32
  }
  func.func @transform_1(%arg0: i32, %arg1: i32, %arg2: i32) -> (i32, i32) {
    %c0_i32 = arith.constant 0 : i32
    return %arg2, %arg1 : i32, i32
  }
  func.func @transform_2(%arg0: i32, %arg1: i32, %arg2: i32) -> (i32, i32) {
    %c0_i32 = arith.constant 0 : i32
    %c0_i32_0 = arith.constant 0 : i32
    return %c0_i32, %arg1 : i32, i32
  }
  func.func @transform_3(%arg0: i32, %arg1: i32, %arg2: i32) -> (i32, i32) {
    %c0_i32 = arith.constant 0 : i32
    return %arg0, %arg1 : i32, i32
  }
}

module attributes {stable_mosaic.version = 11 : i64} {
  func.func @_mm_single_kernel(%arg0: i32, %arg1: i32, %arg2: memref<16x512xbf16, #tpu.memory_space<vmem>>, %arg3: memref<512x128xbf16, #tpu.memory_space<vmem>>, %arg4: memref<1x128xf32, #tpu.memory_space<vmem>>, %arg5: memref<16x128xf32, #tpu.memory_space<vmem>>) attributes {dimension_semantics = [#tpu.dimension_semantics<parallel>, #tpu.dimension_semantics<parallel>], iteration_bounds = array<i64: 1, 1>, scalar_prefetch = 0 : i64, scratch_operands = 0 : i64, tpu.core_type = #tpu.core_type<tc>, window_params = [{transform_indices = @transform_0, window_bounds = array<i64: 16, 512>}, {transform_indices = @transform_1, window_bounds = array<i64: 512, 128>}, {transform_indices = @transform_2, window_bounds = array<i64: 1, 128>}, {transform_indices = @transform_3, window_bounds = array<i64: 16, 128>}]} {
    %c0 = arith.constant 0 : index
    %c0_0 = arith.constant 0 : index
    %0 = vector.load %arg2[%c0, %c0_0] : memref<16x512xbf16, #tpu.memory_space<vmem>>, vector<16x512xbf16>
    %c0_1 = arith.constant 0 : index
    %c0_2 = arith.constant 0 : index
    %1 = vector.load %arg3[%c0_1, %c0_2] : memref<512x128xbf16, #tpu.memory_space<vmem>>, vector<512x128xbf16>
    %cst = arith.constant dense<0.000000e+00> : vector<16x128xf32>
    %2 = tpu.matmul %0, %1, %cst {dimension_numbers = #tpu.dot_dimension_numbers<[1], [0], [0], [1], [0, 0, 1, 1], [], []>} : vector<16x512xbf16>, vector<512x128xbf16>, vector<16x128xf32> -> vector<16x128xf32>
    %c0_3 = arith.constant 0 : index
    %c0_4 = arith.constant 0 : index
    %3 = vector.load %arg4[%c0_3, %c0_4] : memref<1x128xf32, #tpu.memory_space<vmem>>, vector<1x128xf32>
    %4 = vector.broadcast %3 : vector<1x128xf32> to vector<16x128xf32>
    %5 = arith.addf %2, %4 : vector<16x128xf32>
    %c0_5 = arith.constant 0 : index
    %c0_6 = arith.constant 0 : index
    %6 = vector.load %arg5[%c0_5, %c0_6] : memref<16x128xf32, #tpu.memory_space<vmem>>, vector<16x128xf32>
    tpu.vector_store %arg5[%c0_5, %c0_6], %5 {strides = array<i32>} : memref<16x128xf32, #tpu.memory_space<vmem>>, vector<16x128xf32>,
    return
  }
  func.func @transform_0(%arg0: i32, %arg1: i32) -> (i32, i32) {
    %c0_i32 = arith.constant 0 : i32
    %c0_i32_0 = arith.constant 0 : i32
    return %arg0, %c0_i32 : i32, i32
  }
  func.func @transform_1(%arg0: i32, %arg1: i32) -> (i32, i32) {
    %c0_i32 = arith.constant 0 : i32
    %c0_i32_0 = arith.constant 0 : i32
    return %c0_i32, %arg1 : i32, i32
  }
  func.func @transform_2(%arg0: i32, %arg1: i32) -> (i32, i32) {
    %c0_i32 = arith.constant 0 : i32
    %c0_i32_0 = arith.constant 0 : i32
    return %c0_i32, %arg1 : i32, i32
  }
  func.func @transform_3(%arg0: i32, %arg1: i32) -> (i32, i32) {
    %c0_i32 = arith.constant 0 : i32
    return %arg0, %arg1 : i32, i32
  }
}

</mosaic_0001>

<bundles_post_ra>
// kernel: policy_forward.5
= control target key start
LH: loop header
LB: loop body
LE: loop exit
PB: predicated region body
PF: predicated region fallthrough
CT: control target
= control target key end

     0   :  { %s2152_s12 = smov 0   ;;  %s2154_s13 = smov 0   ;;  %s2438_s0 = inlined_call_operand.vmem [shape: bf16[4096,256], index: 0, kind: input, shape index: {}]   ;;  %s2439_s1 = inlined_call_operand.vmem [shape: bf16[256,128], index: 1, kind: input, shape index: {}]   ;;  %s2440_s2 = inlined_call_operand.vmem [shape: f32[1,128], index: 2, kind: input, shape index: {}]   ;;  %s2441_s3 = inlined_call_operand.vmem [shape: bf16[4096,128], index: 3, kind: output, shape index: {}]  }
   0x1   :  { %s2156_s14 = smov 0  }
   0x2 LB: > { %s25_s15 = sadd.s32 1, %s2125_s13  ;;  %p1529_p0 = scmp.ge.s32.totalorder %s2129_s14, 1  ;;  %s2129_s14 = sphi %s2156_s14, %s13_s14   ;;  %s2125_s13 = sphi %s2154_s13, %s2443_s13   ;;  %s2121_s12 = sphi %s2152_s12, %s2442_s12  }
   0x3   : > { %p27_p1 = scmp.ge.s32.totalorder %s25_s15, 8  ;;  %p170_p2 = scmp.lt.s32.totalorder %s2129_s14, 9 }
   0x5   : > { %s2445_s15 = smov (%p27_p1, %s25_s15), 0  ;;  %p171_p3 = pnand %p1529_p0, %p170_p2 }
   0x6   : > { %v1995_v0 = vld [vmem:[%s2439_s1] sm:$0xff] (!%p171_p3)   ;;  %v2131_v1 = vmov (!%p171_p3), 0   ;;  %s1530_s18 = sshll.u32 (!%p171_p3), %s2121_s12, 6  ;;  %v1996_v2 = vld [vmem:[%s2439_s1 + $0x8] sm:$0xff] (!%p171_p3)   ;;  %v1997_v3 = vld [vmem:[%s2439_s1 + $0x10] sm:$0xff] (!%p171_p3)  }
   0x7   : > { %174 = sbr.rel (%p171_p3) target bundleno = 412 (0x19c), region = 32  ;;  %748 = vmatprep.subr.bf16.mxu0 (!%p171_p3), %v2131_v1  ;;  %1938 = vmatprep.subr.bf16.mxu1 (!%p171_p3), %v2131_v1  ;;  %p206_p4 = scmp.lt.s32.totalorder (!%p171_p3), %s1530_s18, 511  ;;  %v1998_v4 = vld [vmem:[%s2439_s1 + $0x18] sm:$0xff] (!%p171_p3)   ;;  %v1999_v5 = vld [vmem:[%s2439_s1 + $0x20] sm:$0xff] (!%p171_p3)   ;;  %v2000_v7 = vld [vmem:[%s2439_s1 + $0x28] sm:$0xff] (!%p171_p3)  }
   0x8   : > { %749 = vmatpush1.bf16.msra.mxu0 (!%p171_p3), %v1995_v0  ;;  %1954 = vmatpush1.bf16.msra.mxu1 (!%p171_p3), %v1995_v0  ;;  %v2001_v9 = vld [vmem:[%s2439_s1 + $0x30] sm:$0xff] (!%p171_p3)   ;;  %v2002_v10 = vld [vmem:[%s2439_s1 + $0x38] sm:$0xff] (!%p171_p3)   ;;  %v2003_v11 = vld [vmem:[%s2439_s1 + $0x40] sm:$0xff] (!%p171_p3)  }
   0x9   : > { %750 = vmatprep.subr.bf16.mxu0 (!%p171_p3), %v2131_v1  ;;  %1939 = vmatprep.subr.bf16.mxu1 (!%p171_p3), %v2131_v1  ;;  %v2004_v12 = vld [vmem:[%s2439_s1 + $0x48] sm:$0xff] (!%p171_p3)   ;;  %v2005_v13 = vld [vmem:[%s2439_s1 + $0x50] sm:$0xff] (!%p171_p3)   ;;  %v2006_v14 = vld [vmem:[%s2439_s1 + $0x58] sm:$0xff] (!%p171_p3)  }
   0xa   : > { %v2007_v15 = vld [vmem:[%s2439_s1 + $0x60] sm:$0xff] (!%p171_p3)   ;;  %v2008_v16 = vld [vmem:[%s2439_s1 + $0x68] sm:$0xff] (!%p171_p3)   ;;  %v2009_v17 = vld [vmem:[%s2439_s1 + $0x70] sm:$0xff] (!%p171_p3)  }
   0xb   : > { %v2010_v18 = vld [vmem:[%s2439_s1 + $0x78] sm:$0xff] (!%p171_p3)  }
   0xc   : > { %751 = vmatpush1.bf16.msra.mxu0 (!%p171_p3), %v1996_v2  ;;  %1955 = vmatpush1.bf16.msra.mxu1 (!%p171_p3), %v1996_v2 }
   0xd   : > { %752 = vmatprep.subr.bf16.mxu0 (!%p171_p3), %v2131_v1  ;;  %1940 = vmatprep.subr.bf16.mxu1 (!%p171_p3), %v2131_v1 }
   0xe   : > { %s2447_s18 = smov (!%p206_p4, %s1530_s18), 511 }
   0xf   : > { %s1682_s25 = sshll.u32 %s2447_s18, 3  ;;  %s1534_s6 = sshll.u32 %s2447_s18, 2 }
  0x10   : > { %753 = vmatpush1.bf16.msra.mxu0 %v1997_v3  ;;  %1956 = vmatpush1.bf16.msra.mxu1 %v1997_v3  ;;  %s2199_s30 = scalar_lea.vmem %s2438_s0, %s1682_s25  ;;  %s2335_s8 = scalar_lea.vmem %s2441_s3, %s1534_s6 }
  0x11   : > { %754 = vmatprep.subr.bf16.mxu0 %v2131_v1  ;;  %1941 = vmatprep.subr.bf16.mxu1 %v2131_v1  ;;  %v2013_v6 = vld [vmem:[%s2199_s30 + $0x4] ss:$8 sps:$4 sm:$0xff]   ;;  %v2011_v19 = vld [vmem:[%s2199_s30] ss:$8 sps:$4 sm:$0xff]   ;;  %v2017_v21 = vld [vmem:[%s2199_s30 + $0x14] ss:$8 sps:$4 sm:$0xff]  }
  0x12   : > { %v2016_v8 = vld [vmem:[%s2199_s30 + $0x104] ss:$8 sps:$4 sm:$0xff]   ;;  %780 = vmatprep.mubr.bf16.mxu0 %v2013_v6  ;;  %v2014_v20 = vld [vmem:[%s2199_s30 + $0x100] ss:$8 sps:$4 sm:$0xff]   ;;  %v2019_v22 = vld [vmem:[%s2199_s30 + $0x114] ss:$8 sps:$4 sm:$0xff]  }
  0x13   : > { %908 = vmatprep.mubr.bf16.mxu1 %v2016_v8  ;;  %v2021_v23 = vld [vmem:[%s2199_s30 + $0x10] ss:$8 sps:$4 sm:$0xff]   ;;  %v2023_v25 = vld [vmem:[%s2199_s30 + $0x24] ss:$8 sps:$4 sm:$0xff]   ;;  %v2027_v27 = vld [vmem:[%s2199_s30 + $0x20] ss:$8 sps:$4 sm:$0xff]  }
  0x14   : > { %755 = vmatpush1.bf16.msra.mxu0 %v1998_v4  ;;  %1957 = vmatpush1.bf16.msra.mxu1 %v1998_v4  ;;  %v2022_v24 = vld [vmem:[%s2199_s30 + $0x110] ss:$8 sps:$4 sm:$0xff]   ;;  %v2025_v26 = vld [vmem:[%s2199_s30 + $0x124] ss:$8 sps:$4 sm:$0xff]   ;;  %v2028_v28 = vld [vmem:[%s2199_s30 + $0x120] ss:$8 sps:$4 sm:$0xff]  }
  0x15   : > { %756 = vmatprep.subr.bf16.mxu0 %v2131_v1  ;;  %1942 = vmatprep.subr.bf16.mxu1 %v2131_v1  ;;  %v2029_v29 = vld [vmem:[%s2199_s30 + $0x34] ss:$8 sps:$4 sm:$0xff]   ;;  %v2033_v31 = vld [vmem:[%s2199_s30 + $0x30] ss:$8 sps:$4 sm:$0xff]   ;;  %v2035_v33 = vld [vmem:[%s2199_s30 + $0x44] ss:$8 sps:$4 sm:$0xff]  }
  0x16   : > { %v2031_v30 = vld [vmem:[%s2199_s30 + $0x134] ss:$8 sps:$4 sm:$0xff]   ;;  %v2034_v32 = vld [vmem:[%s2199_s30 + $0x130] ss:$8 sps:$4 sm:$0xff]   ;;  %v2037_v34 = vld [vmem:[%s2199_s30 + $0x144] ss:$8 sps:$4 sm:$0xff]  }
  0x17   : > { %v2039_v35 = vld [vmem:[%s2199_s30 + $0x40] ss:$8 sps:$4 sm:$0xff]   ;;  %v2041_v37 = vld [vmem:[%s2199_s30 + $0x54] ss:$8 sps:$4 sm:$0xff]   ;;  %v2045_v39 = vld [vmem:[%s2199_s30 + $0x50] ss:$8 sps:$4 sm:$0xff]  }
  0x18   : > { %757 = vmatpush1.bf16.msra.mxu0 %v1999_v5  ;;  %1958 = vmatpush1.bf16.msra.mxu1 %v1999_v5  ;;  %v2040_v36 = vld [vmem:[%s2199_s30 + $0x140] ss:$8 sps:$4 sm:$0xff]   ;;  %v2043_v38 = vld [vmem:[%s2199_s30 + $0x154] ss:$8 sps:$4 sm:$0xff]   ;;  %v2046_v40 = vld [vmem:[%s2199_s30 + $0x150] ss:$8 sps:$4 sm:$0xff]  }
  0x19   : > { %758 = vmatprep.subr.bf16.mxu0 %v2131_v1  ;;  %1943 = vmatprep.subr.bf16.mxu1 %v2131_v1  ;;  %v2047_v41 = vld [vmem:[%s2199_s30 + $0x64] ss:$8 sps:$4 sm:$0xff]   ;;  %v2051_v43 = vld [vmem:[%s2199_s30 + $0x60] ss:$8 sps:$4 sm:$0xff]   ;;  %v2053_v45 = vld [vmem:[%s2199_s30 + $0x74] ss:$8 sps:$4 sm:$0xff]  }
  0x1a   : > { %v2049_v42 = vld [vmem:[%s2199_s30 + $0x164] ss:$8 sps:$4 sm:$0xff]   ;;  %v2052_v44 = vld [vmem:[%s2199_s30 + $0x160] ss:$8 sps:$4 sm:$0xff]   ;;  %v2055_v46 = vld [vmem:[%s2199_s30 + $0x174] ss:$8 sps:$4 sm:$0xff]  }
  0x1b   : > { %v2057_v47 = vld [vmem:[%s2199_s30 + $0x70] ss:$8 sps:$4 sm:$0xff]   ;;  %v2059_v49 = vld [vmem:[%s2199_s30 + $0x84] ss:$8 sps:$4 sm:$0xff]   ;;  %v2063_v51 = vld [vmem:[%s2199_s30 + $0x80] ss:$8 sps:$4 sm:$0xff]  }
  0x1c   : > { %759 = vmatpush1.bf16.msra.mxu0 %v2000_v7  ;;  %1959 = vmatpush1.bf16.msra.mxu1 %v2000_v7  ;;  %v2058_v48 = vld [vmem:[%s2199_s30 + $0x170] ss:$8 sps:$4 sm:$0xff]   ;;  %v2061_v50 = vld [vmem:[%s2199_s30 + $0x184] ss:$8 sps:$4 sm:$0xff]   ;;  %v2064_v52 = vld [vmem:[%s2199_s30 + $0x180] ss:$8 sps:$4 sm:$0xff]  }
  0x1d   : > { %760 = vmatprep.subr.bf16.mxu0 %v2131_v1  ;;  %1944 = vmatprep.subr.bf16.mxu1 %v2131_v1  ;;  %v2065_v53 = vld [vmem:[%s2199_s30 + $0x94] ss:$8 sps:$4 sm:$0xff]   ;;  %v2069_v55 = vld [vmem:[%s2199_s30 + $0x90] ss:$8 sps:$4 sm:$0xff]   ;;  %v2071_v57 = vld [vmem:[%s2199_s30 + $0xa4] ss:$8 sps:$4 sm:$0xff]  }
  0x1e   : > { %v2067_v54 = vld [vmem:[%s2199_s30 + $0x194] ss:$8 sps:$4 sm:$0xff]   ;;  %v2070_v56 = vld [vmem:[%s2199_s30 + $0x190] ss:$8 sps:$4 sm:$0xff]   ;;  %v2073_v58 = vld [vmem:[%s2199_s30 + $0x1a4] ss:$8 sps:$4 sm:$0xff]  }
  0x1f   : > { %v2075_v59 = vld [vmem:[%s2199_s30 + $0xa0] ss:$8 sps:$4 sm:$0xff]   ;;  %v2077_v61 = vld [vmem:[%s2199_s30 + $0xb4] ss:$8 sps:$4 sm:$0xff]   ;;  %v2081_v63 = vld [vmem:[%s2199_s30 + $0xb0] ss:$8 sps:$4 sm:$0xff]  }
  0x20   : > { %761 = vmatpush1.bf16.msra.mxu0 %v2001_v9  ;;  %1960 = vmatpush1.bf16.msra.mxu1 %v2001_v9  ;;  %v2076_v60 = vld [vmem:[%s2199_s30 + $0x1a0] ss:$8 sps:$4 sm:$0xff]   ;;  %v2079_v62 = vld [vmem:[%s2199_s30 + $0x1b4] ss:$8 sps:$4 sm:$0xff]   ;;  %v2082_v0 = vld [vmem:[%s2199_s30 + $0x1b0] ss:$8 sps:$4 sm:$0xff]  }
  0x21   : > { %762 = vmatprep.subr.bf16.mxu0 %v2131_v1  ;;  %1945 = vmatprep.subr.bf16.mxu1 %v2131_v1  ;;  %v2085_v2 = vld [vmem:[%s2199_s30 + $0x1c4] ss:$8 sps:$4 sm:$0xff]   ;;  %v2087_v3 = vld [vmem:[%s2199_s30 + $0xc0] ss:$8 sps:$4 sm:$0xff]   ;;  %v2089_v5 = vld [vmem:[%s2199_s30 + $0xd4] ss:$8 sps:$4 sm:$0xff]  }
  0x22   : > { %v2088_v4 = vld [vmem:[%s2199_s30 + $0x1c0] ss:$8 sps:$4 sm:$0xff]   ;;  %v2091_v6 = vld [vmem:[%s2199_s30 + $0x1d4] ss:$8 sps:$4 sm:$0xff]   ;;  %v2093_v7 = vld [vmem:[%s2199_s30 + $0xd0] ss:$8 sps:$4 sm:$0xff]  }
  0x23   : > { %v2094_v8 = vld [vmem:[%s2199_s30 + $0x1d0] ss:$8 sps:$4 sm:$0xff]   ;;  %v2095_v9 = vld [vmem:[%s2199_s30 + $0xe4] ss:$8 sps:$4 sm:$0xff]  }
  0x24   : > { %763 = vmatpush1.bf16.msra.mxu0 %v2002_v10  ;;  %1961 = vmatpush1.bf16.msra.mxu1 %v2002_v10  ;;  %v2097_v10 = vld [vmem:[%s2199_s30 + $0x1e4] ss:$8 sps:$4 sm:$0xff]  }
  0x25   : > { %764 = vmatprep.subr.bf16.mxu0 %v2131_v1  ;;  %1946 = vmatprep.subr.bf16.mxu1 %v2131_v1 }
  0x28   : > { %765 = vmatpush1.bf16.msra.mxu0 %v2003_v11  ;;  %1962 = vmatpush1.bf16.msra.mxu1 %v2003_v11  ;;  %v2099_v11 = vld [vmem:[%s2199_s30 + $0xe0] ss:$8 sps:$4 sm:$0xff]  }
  0x29   : > { %766 = vmatprep.subr.bf16.mxu0 %v2131_v1  ;;  %1947 = vmatprep.subr.bf16.mxu1 %v2131_v1 }
  0x2c   : > { %767 = vmatpush1.bf16.msra.mxu0 %v2004_v12  ;;  %1963 = vmatpush1.bf16.msra.mxu1 %v2004_v12  ;;  %v2100_v12 = vld [vmem:[%s2199_s30 + $0x1e0] ss:$8 sps:$4 sm:$0xff]  }
  0x2d   : > { %768 = vmatprep.subr.bf16.mxu0 %v2131_v1  ;;  %1948 = vmatprep.subr.bf16.mxu1 %v2131_v1 }
  0x30   : > { %769 = vmatpush1.bf16.msra.mxu0 %v2005_v13  ;;  %1964 = vmatpush1.bf16.msra.mxu1 %v2005_v13  ;;  %v2101_v13 = vld [vmem:[%s2199_s30 + $0xf4] ss:$8 sps:$4 sm:$0xff]  }
  0x31   : > { %770 = vmatprep.subr.bf16.mxu0 %v2131_v1  ;;  %1949 = vmatprep.subr.bf16.mxu1 %v2131_v1 }
  0x34   : > { %771 = vmatpush1.bf16.msra.mxu0 %v2006_v14  ;;  %1965 = vmatpush1.bf16.msra.mxu1 %v2006_v14  ;;  %v2103_v14 = vld [vmem:[%s2199_s30 + $0x1f4] ss:$8 sps:$4 sm:$0xff]  }
  0x35   : > { %772 = vmatprep.subr.bf16.mxu0 %v2131_v1  ;;  %1950 = vmatprep.subr.bf16.mxu1 %v2131_v1 }
  0x38   : > { %773 = vmatpush1.bf16.msra.mxu0 %v2007_v15  ;;  %1966 = vmatpush1.bf16.msra.mxu1 %v2007_v15  ;;  %v2105_v15 = vld [vmem:[%s2199_s30 + $0xf0] ss:$8 sps:$4 sm:$0xff]  }
  0x39   : > { %774 = vmatprep.subr.bf16.mxu0 %v2131_v1  ;;  %1951 = vmatprep.subr.bf16.mxu1 %v2131_v1 }
  0x3c   : > { %775 = vmatpush1.bf16.msra.mxu0 %v2008_v16  ;;  %1967 = vmatpush1.bf16.msra.mxu1 %v2008_v16  ;;  %v2106_v16 = vld [vmem:[%s2199_s30 + $0x1f0] ss:$8 sps:$4 sm:$0xff]  }
  0x3d   : > { %776 = vmatprep.subr.bf16.mxu0 %v2131_v1  ;;  %1952 = vmatprep.subr.bf16.mxu1 %v2131_v1 }
  0x40   : > { %777 = vmatpush1.bf16.msra.mxu0 %v2009_v17  ;;  %1968 = vmatpush1.bf16.msra.mxu1 %v2009_v17  ;;  %v2325_v17 = vld [vmem:[%s2440_s2] ss:$0 sm:$0xff] }
  0x41   : > { %778 = vmatprep.subr.bf16.mxu0 %v2131_v1  ;;  %1953 = vmatprep.subr.bf16.mxu1 %v2131_v1  ;;  %v2083_v1 = vld [vmem:[%s2199_s30 + $0xc4] ss:$8 sps:$4 sm:$0xff]  }
  0x44   : > { %779 = vmatpush1.bf16.msra.mxu0 %v2010_v18  ;;  %1969 = vmatpush1.bf16.msra.mxu1 %v2010_v18 }
  0x47   : > { %781 = vmatmul.mubr.bf16.vlgmr.msra.gmra.mrb[0].mxu0 %v2011_v19  ;;  %909 = vmatmul.mubr.bf16.vlgmr.msra.gmra.mrb[0].mxu1 %v2014_v20 }
  0x48   : > { %788 = vmatprep.mubr.bf16.mxu0 %v2017_v21  ;;  %916 = vmatprep.mubr.bf16.mxu1 %v2019_v22 }
  0x4f   : > { %789 = vmatmul.mubr.bf16.gmra.mrb[4].mxu0 %v2021_v23  ;;  %917 = vmatmul.mubr.bf16.gmra.mrb[4].mxu1 %v2022_v24 }
  0x50   : > { %796 = vmatprep.mubr.bf16.mxu0 %v2023_v25  ;;  %924 = vmatprep.mubr.bf16.mxu1 %v2025_v26 }
  0x57   : > { %797 = vmatmul.mubr.bf16.gmra.mrb[8].mxu0 %v2027_v27  ;;  %925 = vmatmul.mubr.bf16.gmra.mrb[8].mxu1 %v2028_v28 }
  0x58   : > { %804 = vmatprep.mubr.bf16.mxu0 %v2029_v29  ;;  %932 = vmatprep.mubr.bf16.mxu1 %v2031_v30 }
  0x5f   : > { %805 = vmatmul.mubr.bf16.gmra.mrb[12].mxu0 %v2033_v31  ;;  %933 = vmatmul.mubr.bf16.gmra.mrb[12].mxu1 %v2034_v32 }
  0x60   : > { %812 = vmatprep.mubr.bf16.mxu0 %v2035_v33  ;;  %940 = vmatprep.mubr.bf16.mxu1 %v2037_v34 }
  0x67   : > { %813 = vmatmul.mubr.bf16.gmra.mrb[16].mxu0 %v2039_v35  ;;  %941 = vmatmul.mubr.bf16.gmra.mrb[16].mxu1 %v2040_v36 }
  0x68   : > { %820 = vmatprep.mubr.bf16.mxu0 %v2041_v37  ;;  %948 = vmatprep.mubr.bf16.mxu1 %v2043_v38 }
  0x6f   : > { %821 = vmatmul.mubr.bf16.gmra.mrb[20].mxu0 %v2045_v39  ;;  %949 = vmatmul.mubr.bf16.gmra.mrb[20].mxu1 %v2046_v40 }
  0x70   : > { %828 = vmatprep.mubr.bf16.mxu0 %v2047_v41  ;;  %956 = vmatprep.mubr.bf16.mxu1 %v2049_v42 }
  0x77   : > { %829 = vmatmul.mubr.bf16.gmra.mrb[24].mxu0 %v2051_v43  ;;  %957 = vmatmul.mubr.bf16.gmra.mrb[24].mxu1 %v2052_v44 }
  0x78   : > { %836 = vmatprep.mubr.bf16.mxu0 %v2053_v45  ;;  %964 = vmatprep.mubr.bf16.mxu1 %v2055_v46 }
  0x7f   : > { %837 = vmatmul.mubr.bf16.gmra.mrb[28].mxu0 %v2057_v47  ;;  %965 = vmatmul.mubr.bf16.gmra.mrb[28].mxu1 %v2058_v48 }
  0x80   : > { %844 = vmatprep.mubr.bf16.mxu0 %v2059_v49  ;;  %972 = vmatprep.mubr.bf16.mxu1 %v2061_v50 }
  0x87   : > { %845 = vmatmul.mubr.bf16.gmra.mrb[32].mxu0 %v2063_v51  ;;  %973 = vmatmul.mubr.bf16.gmra.mrb[32].mxu1 %v2064_v52 }
  0x88   : > { %852 = vmatprep.mubr.bf16.mxu0 %v2065_v53  ;;  %980 = vmatprep.mubr.bf16.mxu1 %v2067_v54 }
  0x8f   : > { %853 = vmatmul.mubr.bf16.gmra.mrb[36].mxu0 %v2069_v55  ;;  %981 = vmatmul.mubr.bf16.gmra.mrb[36].mxu1 %v2070_v56 }
  0x90   : > { %860 = vmatprep.mubr.bf16.mxu0 %v2071_v57  ;;  %988 = vmatprep.mubr.bf16.mxu1 %v2073_v58 }
  0x97   : > { %861 = vmatmul.mubr.bf16.gmra.mrb[40].mxu0 %v2075_v59  ;;  %989 = vmatmul.mubr.bf16.gmra.mrb[40].mxu1 %v2076_v60 }
  0x98   : > { %868 = vmatprep.mubr.bf16.mxu0 %v2077_v61  ;;  %996 = vmatprep.mubr.bf16.mxu1 %v2079_v62 }
  0x9f   : > { %869 = vmatmul.mubr.bf16.gmra.mrb[44].mxu0 %v2081_v63  ;;  %997 = vmatmul.mubr.bf16.gmra.mrb[44].mxu1 %v2082_v0 }
  0xa0   : > { %876 = vmatprep.mubr.bf16.mxu0 %v2083_v1  ;;  %1004 = vmatprep.mubr.bf16.mxu1 %v2085_v2 }
  0xa7   : > { %877 = vmatmul.mubr.bf16.gmra.mrb[48].mxu0 %v2087_v3  ;;  %1005 = vmatmul.mubr.bf16.gmra.mrb[48].mxu1 %v2088_v4 }
  0xa8   : > { %884 = vmatprep.mubr.bf16.mxu0 %v2089_v5  ;;  %1012 = vmatprep.mubr.bf16.mxu1 %v2091_v6 }
  0xaf   : > { %885 = vmatmul.mubr.bf16.gmra.mrb[52].mxu0 %v2093_v7  ;;  %1013 = vmatmul.mubr.bf16.gmra.mrb[52].mxu1 %v2094_v8 }
  0xb0   : > { %892 = vmatprep.mubr.bf16.mxu0 %v2095_v9  ;;  %1020 = vmatprep.mubr.bf16.mxu1 %v2097_v10 }
  0xb7   : > { %893 = vmatmul.mubr.bf16.gmra.mrb[56].mxu0 %v2099_v11  ;;  %1021 = vmatmul.mubr.bf16.gmra.mrb[56].mxu1 %v2100_v12 }
  0xb8   : > { %900 = vmatprep.mubr.bf16.mxu0 %v2101_v13  ;;  %1028 = vmatprep.mubr.bf16.mxu1 %v2103_v14 }
  0xbf   : > { %901 = vmatmul.mubr.bf16.gmra.mrb[60].mxu0 %v2105_v15  ;;  %1029 = vmatmul.mubr.bf16.gmra.mrb[60].mxu1 %v2106_v16 }
 0x11a   : > { %v782_v18 = vpop.f32.mrb[0].mxu0  ;;  %v910_v19 = vpop.f32.mrb[0].mxu1 }
 0x11b   : > { %v783_v20 = vadd.f32 %v2325_v17, %v782_v18  ;;  %v911_v21 = vadd.f32 %v2325_v17, %v910_v19  ;;  %v784_v22 = vpop.f32.mrb[1].mxu0  ;;  %v912_v23 = vpop.f32.mrb[1].mxu1 }
 0x11c   : > { %v785_v24 = vpop.f32.mrb[2].mxu0  ;;  %v913_v25 = vpop.f32.mrb[2].mxu1 }
 0x11d   : > { %v786_v26 = vadd.f32 %v2325_v17, %v785_v24  ;;  %v914_v27 = vadd.f32 %v2325_v17, %v913_v25  ;;  %v787_v28 = vpop.f32.mrb[3].mxu0  ;;  %v915_v29 = vpop.f32.mrb[3].mxu1  ;;  %v1037_v30 = vmax.f32 %v783_v20, 0.0  ;;  %v1069_v31 = vmax.f32 %v911_v21, 0.0 }
 0x11f   : > { %v1038_v32 = vmax.f32 %v786_v26, 0.0  ;;  %v1070_v33 = vmax.f32 %v914_v27, 0.0 }
 0x121   : > { %v1750_v34 = vpack.c.bf16 %v1038_v32, %v1037_v30  ;;  %v1830_v35 = vpack.c.bf16 %v1070_v33, %v1069_v31 }
 0x122   : > { %v790_v36 = vpop.f32.mrb[4].mxu0  ;;  %v918_v37 = vpop.f32.mrb[4].mxu1 }
 0x123   : > { %1751 = vst [vmem:[%s2335_s8] sm:$0xff] %v1750_v34   ;;  %1922 = vst [vmem:[%s2335_s8 + $0x80] sm:$0xff] %v1830_v35   ;;  %v791_v38 = vadd.f32 %v2325_v17, %v790_v36  ;;  %v919_v39 = vadd.f32 %v2325_v17, %v918_v37  ;;  %v792_v40 = vpop.f32.mrb[5].mxu0  ;;  %v920_v41 = vpop.f32.mrb[5].mxu1 }
 0x124   : > { %v793_v42 = vpop.f32.mrb[6].mxu0  ;;  %v921_v43 = vpop.f32.mrb[6].mxu1 }
 0x125   : > { %v794_v44 = vadd.f32 %v2325_v17, %v793_v42  ;;  %v922_v45 = vadd.f32 %v2325_v17, %v921_v43  ;;  %v795_v46 = vpop.f32.mrb[7].mxu0  ;;  %v923_v47 = vpop.f32.mrb[7].mxu1  ;;  %v1039_v48 = vmax.f32 %v791_v38, 0.0  ;;  %v1071_v49 = vmax.f32 %v919_v39, 0.0 }
 0x127   : > { %v1040_v50 = vmax.f32 %v794_v44, 0.0  ;;  %v1072_v51 = vmax.f32 %v922_v45, 0.0 }
 0x129   : > { %v1755_v52 = vpack.c.bf16 %v1040_v50, %v1039_v48  ;;  %v1835_v53 = vpack.c.bf16 %v1072_v51, %v1071_v49 }
 0x12a   : > { %v798_v54 = vpop.f32.mrb[8].mxu0  ;;  %v926_v55 = vpop.f32.mrb[8].mxu1 }
 0x12b   : > { %1907 = vst [vmem:[%s2335_s8 + $0x8] sm:$0xff] %v1755_v52   ;;  %1923 = vst [vmem:[%s2335_s8 + $0x88] sm:$0xff] %v1835_v53   ;;  %v799_v56 = vadd.f32 %v2325_v17, %v798_v54  ;;  %v927_v57 = vadd.f32 %v2325_v17, %v926_v55  ;;  %v800_v58 = vpop.f32.mrb[9].mxu0  ;;  %v928_v59 = vpop.f32.mrb[9].mxu1 }
 0x12c   : > { %v801_v60 = vpop.f32.mrb[10].mxu0  ;;  %v929_v61 = vpop.f32.mrb[10].mxu1 }
 0x12d   : > { %v802_v62 = vadd.f32 %v2325_v17, %v801_v60  ;;  %v930_v63 = vadd.f32 %v2325_v17, %v929_v61  ;;  %v803_v0 = vpop.f32.mrb[11].mxu0  ;;  %v931_v1 = vpop.f32.mrb[11].mxu1  ;;  %v1041_v2 = vmax.f32 %v799_v56, 0.0  ;;  %v1073_v3 = vmax.f32 %v927_v57, 0.0 }
 0x12f   : > { %v1042_v4 = vmax.f32 %v802_v62, 0.0  ;;  %v1074_v5 = vmax.f32 %v930_v63, 0.0 }
 0x131   : > { %v1760_v6 = vpack.c.bf16 %v1042_v4, %v1041_v2  ;;  %v1840_v7 = vpack.c.bf16 %v1074_v5, %v1073_v3 }
 0x132   : > { %v806_v8 = vpop.f32.mrb[12].mxu0  ;;  %v934_v9 = vpop.f32.mrb[12].mxu1 }
 0x133   : > { %1908 = vst [vmem:[%s2335_s8 + $0x10] sm:$0xff] %v1760_v6   ;;  %1924 = vst [vmem:[%s2335_s8 + $0x90] sm:$0xff] %v1840_v7   ;;  %v807_v10 = vadd.f32 %v2325_v17, %v806_v8  ;;  %v935_v11 = vadd.f32 %v2325_v17, %v934_v9  ;;  %v808_v12 = vpop.f32.mrb[13].mxu0  ;;  %v936_v13 = vpop.f32.mrb[13].mxu1 }
 0x134   : > { %v809_v14 = vpop.f32.mrb[14].mxu0  ;;  %v937_v15 = vpop.f32.mrb[14].mxu1 }
 0x135   : > { %v810_v16 = vadd.f32 %v2325_v17, %v809_v14  ;;  %v938_v18 = vadd.f32 %v2325_v17, %v937_v15  ;;  %v811_v19 = vpop.f32.mrb[15].mxu0  ;;  %v939_v20 = vpop.f32.mrb[15].mxu1  ;;  %v1043_v21 = vmax.f32 %v807_v10, 0.0  ;;  %v1075_v22 = vmax.f32 %v935_v11, 0.0 }
 0x137   : > { %v1044_v23 = vmax.f32 %v810_v16, 0.0  ;;  %v1076_v24 = vmax.f32 %v938_v18, 0.0 }
 0x139   : > { %v1765_v25 = vpack.c.bf16 %v1044_v23, %v1043_v21  ;;  %v1845_v26 = vpack.c.bf16 %v1076_v24, %v1075_v22 }
 0x13a   : > { %v814_v27 = vpop.f32.mrb[16].mxu0  ;;  %v942_v28 = vpop.f32.mrb[16].mxu1 }
 0x13b   : > { %1909 = vst [vmem:[%s2335_s8 + $0x18] sm:$0xff] %v1765_v25   ;;  %1925 = vst [vmem:[%s2335_s8 + $0x98] sm:$0xff] %v1845_v26   ;;  %v815_v29 = vadd.f32 %v2325_v17, %v814_v27  ;;  %v943_v30 = vadd.f32 %v2325_v17, %v942_v28  ;;  %v816_v31 = vpop.f32.mrb[17].mxu0  ;;  %v944_v32 = vpop.f32.mrb[17].mxu1 }
 0x13c   : > { %v817_v33 = vpop.f32.mrb[18].mxu0  ;;  %v945_v34 = vpop.f32.mrb[18].mxu1 }
 0x13d   : > { %v818_v35 = vadd.f32 %v2325_v17, %v817_v33  ;;  %v946_v36 = vadd.f32 %v2325_v17, %v945_v34  ;;  %v819_v37 = vpop.f32.mrb[19].mxu0  ;;  %v947_v38 = vpop.f32.mrb[19].mxu1  ;;  %v1045_v39 = vmax.f32 %v815_v29, 0.0  ;;  %v1077_v40 = vmax.f32 %v943_v30, 0.0 }
 0x13f   : > { %v1046_v41 = vmax.f32 %v818_v35, 0.0  ;;  %v1078_v42 = vmax.f32 %v946_v36, 0.0 }
 0x141   : > { %v1770_v43 = vpack.c.bf16 %v1046_v41, %v1045_v39  ;;  %v1850_v44 = vpack.c.bf16 %v1078_v42, %v1077_v40 }
 0x142   : > { %v822_v45 = vpop.f32.mrb[20].mxu0  ;;  %v950_v46 = vpop.f32.mrb[20].mxu1 }
 0x143   : > { %1910 = vst [vmem:[%s2335_s8 + $0x20] sm:$0xff] %v1770_v43   ;;  %1926 = vst [vmem:[%s2335_s8 + $0xa0] sm:$0xff] %v1850_v44   ;;  %v823_v47 = vadd.f32 %v2325_v17, %v822_v45  ;;  %v951_v48 = vadd.f32 %v2325_v17, %v950_v46  ;;  %v824_v49 = vpop.f32.mrb[21].mxu0  ;;  %v952_v50 = vpop.f32.mrb[21].mxu1 }
 0x144   : > { %v825_v51 = vpop.f32.mrb[22].mxu0  ;;  %v953_v52 = vpop.f32.mrb[22].mxu1 }
 0x145   : > { %v826_v53 = vadd.f32 %v2325_v17, %v825_v51  ;;  %v954_v54 = vadd.f32 %v2325_v17, %v953_v52  ;;  %v827_v55 = vpop.f32.mrb[23].mxu0  ;;  %v955_v56 = vpop.f32.mrb[23].mxu1  ;;  %v1047_v57 = vmax.f32 %v823_v47, 0.0  ;;  %v1079_v58 = vmax.f32 %v951_v48, 0.0 }
 0x147   : > { %v1048_v59 = vmax.f32 %v826_v53, 0.0  ;;  %v1080_v60 = vmax.f32 %v954_v54, 0.0 }
 0x149   : > { %v1775_v61 = vpack.c.bf16 %v1048_v59, %v1047_v57  ;;  %v1855_v62 = vpack.c.bf16 %v1080_v60, %v1079_v58 }
 0x14a   : > { %v830_v63 = vpop.f32.mrb[24].mxu0  ;;  %v958_v0 = vpop.f32.mrb[24].mxu1 }
 0x14b   : > { %1911 = vst [vmem:[%s2335_s8 + $0x28] sm:$0xff] %v1775_v61   ;;  %1927 = vst [vmem:[%s2335_s8 + $0xa8] sm:$0xff] %v1855_v62   ;;  %v831_v1 = vadd.f32 %v2325_v17, %v830_v63  ;;  %v959_v2 = vadd.f32 %v2325_v17, %v958_v0  ;;  %v832_v3 = vpop.f32.mrb[25].mxu0  ;;  %v960_v4 = vpop.f32.mrb[25].mxu1 }
 0x14c   : > { %v833_v5 = vpop.f32.mrb[26].mxu0  ;;  %v961_v6 = vpop.f32.mrb[26].mxu1 }
 0x14d   : > { %v834_v7 = vadd.f32 %v2325_v17, %v833_v5  ;;  %v962_v8 = vadd.f32 %v2325_v17, %v961_v6  ;;  %v835_v9 = vpop.f32.mrb[27].mxu0  ;;  %v963_v10 = vpop.f32.mrb[27].mxu1  ;;  %v1049_v11 = vmax.f32 %v831_v1, 0.0  ;;  %v1081_v12 = vmax.f32 %v959_v2, 0.0 }
 0x14f   : > { %v1050_v13 = vmax.f32 %v834_v7, 0.0  ;;  %v1082_v14 = vmax.f32 %v962_v8, 0.0 }
 0x151   : > { %v1780_v15 = vpack.c.bf16 %v1050_v13, %v1049_v11  ;;  %v1860_v16 = vpack.c.bf16 %v1082_v14, %v1081_v12 }
 0x152   : > { %v838_v18 = vpop.f32.mrb[28].mxu0  ;;  %v966_v19 = vpop.f32.mrb[28].mxu1 }
 0x153   : > { %1912 = vst [vmem:[%s2335_s8 + $0x30] sm:$0xff] %v1780_v15   ;;  %1928 = vst [vmem:[%s2335_s8 + $0xb0] sm:$0xff] %v1860_v16   ;;  %v839_v20 = vadd.f32 %v2325_v17, %v838_v18  ;;  %v967_v21 = vadd.f32 %v2325_v17, %v966_v19  ;;  %v840_v22 = vpop.f32.mrb[29].mxu0  ;;  %v968_v23 = vpop.f32.mrb[29].mxu1 }
 0x154   : > { %v841_v24 = vpop.f32.mrb[30].mxu0  ;;  %v969_v25 = vpop.f32.mrb[30].mxu1 }
 0x155   : > { %v842_v26 = vadd.f32 %v2325_v17, %v841_v24  ;;  %v970_v27 = vadd.f32 %v2325_v17, %v969_v25  ;;  %v843_v28 = vpop.f32.mrb[31].mxu0  ;;  %v971_v29 = vpop.f32.mrb[31].mxu1  ;;  %v1051_v30 = vmax.f32 %v839_v20, 0.0  ;;  %v1083_v31 = vmax.f32 %v967_v21, 0.0 }
 0x157   : > { %v1052_v32 = vmax.f32 %v842_v26, 0.0  ;;  %v1084_v33 = vmax.f32 %v970_v27, 0.0 }
 0x159   : > { %v1785_v34 = vpack.c.bf16 %v1052_v32, %v1051_v30  ;;  %v1865_v35 = vpack.c.bf16 %v1084_v33, %v1083_v31 }
 0x15a   : > { %v846_v36 = vpop.f32.mrb[32].mxu0  ;;  %v974_v37 = vpop.f32.mrb[32].mxu1 }
 0x15b   : > { %1913 = vst [vmem:[%s2335_s8 + $0x38] sm:$0xff] %v1785_v34   ;;  %1929 = vst [vmem:[%s2335_s8 + $0xb8] sm:$0xff] %v1865_v35   ;;  %v847_v38 = vadd.f32 %v2325_v17, %v846_v36  ;;  %v975_v39 = vadd.f32 %v2325_v17, %v974_v37  ;;  %v848_v40 = vpop.f32.mrb[33].mxu0  ;;  %v976_v41 = vpop.f32.mrb[33].mxu1 }
 0x15c   : > { %v849_v42 = vpop.f32.mrb[34].mxu0  ;;  %v977_v43 = vpop.f32.mrb[34].mxu1 }
 0x15d   : > { %v850_v44 = vadd.f32 %v2325_v17, %v849_v42  ;;  %v978_v45 = vadd.f32 %v2325_v17, %v977_v43  ;;  %v851_v46 = vpop.f32.mrb[35].mxu0  ;;  %v979_v47 = vpop.f32.mrb[35].mxu1  ;;  %v1053_v48 = vmax.f32 %v847_v38, 0.0  ;;  %v1085_v49 = vmax.f32 %v975_v39, 0.0 }
 0x15f   : > { %v1054_v50 = vmax.f32 %v850_v44, 0.0  ;;  %v1086_v51 = vmax.f32 %v978_v45, 0.0 }
 0x161   : > { %v1790_v52 = vpack.c.bf16 %v1054_v50, %v1053_v48  ;;  %v1870_v53 = vpack.c.bf16 %v1086_v51, %v1085_v49 }
 0x162   : > { %v854_v54 = vpop.f32.mrb[36].mxu0  ;;  %v982_v55 = vpop.f32.mrb[36].mxu1 }
 0x163   : > { %1914 = vst [vmem:[%s2335_s8 + $0x40] sm:$0xff] %v1790_v52   ;;  %1930 = vst [vmem:[%s2335_s8 + $0xc0] sm:$0xff] %v1870_v53   ;;  %v855_v56 = vadd.f32 %v2325_v17, %v854_v54  ;;  %v983_v57 = vadd.f32 %v2325_v17, %v982_v55  ;;  %v856_v58 = vpop.f32.mrb[37].mxu0  ;;  %v984_v59 = vpop.f32.mrb[37].mxu1 }
 0x164   : > { %v857_v60 = vpop.f32.mrb[38].mxu0  ;;  %v985_v61 = vpop.f32.mrb[38].mxu1 }
 0x165   : > { %v858_v62 = vadd.f32 %v2325_v17, %v857_v60  ;;  %v986_v63 = vadd.f32 %v2325_v17, %v985_v61  ;;  %v859_v0 = vpop.f32.mrb[39].mxu0  ;;  %v987_v1 = vpop.f32.mrb[39].mxu1  ;;  %v1055_v2 = vmax.f32 %v855_v56, 0.0  ;;  %v1087_v3 = vmax.f32 %v983_v57, 0.0 }
 0x167   : > { %v1056_v4 = vmax.f32 %v858_v62, 0.0  ;;  %v1088_v5 = vmax.f32 %v986_v63, 0.0 }
 0x169   : > { %v1795_v6 = vpack.c.bf16 %v1056_v4, %v1055_v2  ;;  %v1875_v7 = vpack.c.bf16 %v1088_v5, %v1087_v3 }
 0x16a   : > { %v862_v8 = vpop.f32.mrb[40].mxu0  ;;  %v990_v9 = vpop.f32.mrb[40].mxu1 }
 0x16b   : > { %1915 = vst [vmem:[%s2335_s8 + $0x48] sm:$0xff] %v1795_v6   ;;  %1931 = vst [vmem:[%s2335_s8 + $0xc8] sm:$0xff] %v1875_v7   ;;  %v863_v10 = vadd.f32 %v2325_v17, %v862_v8  ;;  %v991_v11 = vadd.f32 %v2325_v17, %v990_v9  ;;  %v864_v12 = vpop.f32.mrb[41].mxu0  ;;  %v992_v13 = vpop.f32.mrb[41].mxu1 }
 0x16c   : > { %v865_v14 = vpop.f32.mrb[42].mxu0  ;;  %v993_v15 = vpop.f32.mrb[42].mxu1 }
 0x16d   : > { %v866_v16 = vadd.f32 %v2325_v17, %v865_v14  ;;  %v994_v18 = vadd.f32 %v2325_v17, %v993_v15  ;;  %v867_v19 = vpop.f32.mrb[43].mxu0  ;;  %v995_v20 = vpop.f32.mrb[43].mxu1  ;;  %v1057_v21 = vmax.f32 %v863_v10, 0.0  ;;  %v1089_v22 = vmax.f32 %v991_v11, 0.0 }
 0x16f   : > { %v1058_v23 = vmax.f32 %v866_v16, 0.0  ;;  %v1090_v24 = vmax.f32 %v994_v18, 0.0 }
 0x171   : > { %v1800_v25 = vpack.c.bf16 %v1058_v23, %v1057_v21  ;;  %v1880_v26 = vpack.c.bf16 %v1090_v24, %v1089_v22 }
 0x172   : > { %v870_v27 = vpop.f32.mrb[44].mxu0  ;;  %v998_v28 = vpop.f32.mrb[44].mxu1 }
 0x173   : > { %1916 = vst [vmem:[%s2335_s8 + $0x50] sm:$0xff] %v1800_v25   ;;  %1932 = vst [vmem:[%s2335_s8 + $0xd0] sm:$0xff] %v1880_v26   ;;  %v871_v29 = vadd.f32 %v2325_v17, %v870_v27  ;;  %v999_v30 = vadd.f32 %v2325_v17, %v998_v28  ;;  %v872_v31 = vpop.f32.mrb[45].mxu0  ;;  %v1000_v32 = vpop.f32.mrb[45].mxu1 }
 0x174   : > { %v873_v33 = vpop.f32.mrb[46].mxu0  ;;  %v1001_v34 = vpop.f32.mrb[46].mxu1 }
 0x175   : > { %v874_v35 = vadd.f32 %v2325_v17, %v873_v33  ;;  %v1002_v36 = vadd.f32 %v2325_v17, %v1001_v34  ;;  %v875_v37 = vpop.f32.mrb[47].mxu0  ;;  %v1003_v38 = vpop.f32.mrb[47].mxu1  ;;  %v1059_v39 = vmax.f32 %v871_v29, 0.0  ;;  %v1091_v40 = vmax.f32 %v999_v30, 0.0 }
 0x177   : > { %v1060_v41 = vmax.f32 %v874_v35, 0.0  ;;  %v1092_v42 = vmax.f32 %v1002_v36, 0.0 }
 0x179   : > { %v1805_v43 = vpack.c.bf16 %v1060_v41, %v1059_v39  ;;  %v1885_v44 = vpack.c.bf16 %v1092_v42, %v1091_v40 }
 0x17a   : > { %v878_v45 = vpop.f32.mrb[48].mxu0  ;;  %v1006_v46 = vpop.f32.mrb[48].mxu1 }
 0x17b   : > { %1917 = vst [vmem:[%s2335_s8 + $0x58] sm:$0xff] %v1805_v43   ;;  %1933 = vst [vmem:[%s2335_s8 + $0xd8] sm:$0xff] %v1885_v44   ;;  %v879_v47 = vadd.f32 %v2325_v17, %v878_v45  ;;  %v1007_v48 = vadd.f32 %v2325_v17, %v1006_v46  ;;  %v880_v49 = vpop.f32.mrb[49].mxu0  ;;  %v1008_v50 = vpop.f32.mrb[49].mxu1 }
 0x17c   : > { %v881_v51 = vpop.f32.mrb[50].mxu0  ;;  %v1009_v52 = vpop.f32.mrb[50].mxu1 }
 0x17d   : > { %v882_v53 = vadd.f32 %v2325_v17, %v881_v51  ;;  %v1010_v54 = vadd.f32 %v2325_v17, %v1009_v52  ;;  %v883_v55 = vpop.f32.mrb[51].mxu0  ;;  %v1011_v56 = vpop.f32.mrb[51].mxu1  ;;  %v1061_v57 = vmax.f32 %v879_v47, 0.0  ;;  %v1093_v58 = vmax.f32 %v1007_v48, 0.0 }
 0x17f   : > { %v1062_v59 = vmax.f32 %v882_v53, 0.0  ;;  %v1094_v60 = vmax.f32 %v1010_v54, 0.0 }
 0x181   : > { %v1810_v61 = vpack.c.bf16 %v1062_v59, %v1061_v57  ;;  %v1890_v62 = vpack.c.bf16 %v1094_v60, %v1093_v58 }
 0x182   : > { %v886_v63 = vpop.f32.mrb[52].mxu0  ;;  %v1014_v0 = vpop.f32.mrb[52].mxu1 }
 0x183   : > { %1918 = vst [vmem:[%s2335_s8 + $0x60] sm:$0xff] %v1810_v61   ;;  %1934 = vst [vmem:[%s2335_s8 + $0xe0] sm:$0xff] %v1890_v62   ;;  %v887_v1 = vadd.f32 %v2325_v17, %v886_v63  ;;  %v1015_v2 = vadd.f32 %v2325_v17, %v1014_v0  ;;  %v888_v3 = vpop.f32.mrb[53].mxu0  ;;  %v1016_v4 = vpop.f32.mrb[53].mxu1 }
 0x184   : > { %v889_v5 = vpop.f32.mrb[54].mxu0  ;;  %v1017_v6 = vpop.f32.mrb[54].mxu1 }
 0x185   : > { %v890_v7 = vadd.f32 %v2325_v17, %v889_v5  ;;  %v1018_v8 = vadd.f32 %v2325_v17, %v1017_v6  ;;  %v891_v9 = vpop.f32.mrb[55].mxu0  ;;  %v1019_v10 = vpop.f32.mrb[55].mxu1  ;;  %v1063_v11 = vmax.f32 %v887_v1, 0.0  ;;  %v1095_v12 = vmax.f32 %v1015_v2, 0.0 }
 0x187   : > { %v1064_v13 = vmax.f32 %v890_v7, 0.0  ;;  %v1096_v14 = vmax.f32 %v1018_v8, 0.0 }
 0x189   : > { %v1815_v15 = vpack.c.bf16 %v1064_v13, %v1063_v11  ;;  %v1895_v16 = vpack.c.bf16 %v1096_v14, %v1095_v12 }
 0x18a   : > { %v894_v18 = vpop.f32.mrb[56].mxu0  ;;  %v1022_v19 = vpop.f32.mrb[56].mxu1 }
 0x18b   : > { %1919 = vst [vmem:[%s2335_s8 + $0x68] sm:$0xff] %v1815_v15   ;;  %1935 = vst [vmem:[%s2335_s8 + $0xe8] sm:$0xff] %v1895_v16   ;;  %v895_v20 = vadd.f32 %v2325_v17, %v894_v18  ;;  %v1023_v21 = vadd.f32 %v2325_v17, %v1022_v19  ;;  %v896_v22 = vpop.f32.mrb[57].mxu0  ;;  %v1024_v23 = vpop.f32.mrb[57].mxu1 }
 0x18c   : > { %v897_v24 = vpop.f32.mrb[58].mxu0  ;;  %v1025_v25 = vpop.f32.mrb[58].mxu1 }
 0x18d   : > { %v898_v26 = vadd.f32 %v2325_v17, %v897_v24  ;;  %v1026_v27 = vadd.f32 %v2325_v17, %v1025_v25  ;;  %v899_v28 = vpop.f32.mrb[59].mxu0  ;;  %v1027_v29 = vpop.f32.mrb[59].mxu1  ;;  %v1065_v30 = vmax.f32 %v895_v20, 0.0  ;;  %v1097_v31 = vmax.f32 %v1023_v21, 0.0 }
 0x18f   : > { %v1066_v32 = vmax.f32 %v898_v26, 0.0  ;;  %v1098_v33 = vmax.f32 %v1026_v27, 0.0 }
 0x191   : > { %v1820_v34 = vpack.c.bf16 %v1066_v32, %v1065_v30  ;;  %v1900_v35 = vpack.c.bf16 %v1098_v33, %v1097_v31 }
 0x192   : > { %v902_v36 = vpop.f32.mrb[60].mxu0  ;;  %v1030_v37 = vpop.f32.mrb[60].mxu1 }
 0x193   : > { %1920 = vst [vmem:[%s2335_s8 + $0x70] sm:$0xff] %v1820_v34   ;;  %1936 = vst [vmem:[%s2335_s8 + $0xf0] sm:$0xff] %v1900_v35   ;;  %v903_v38 = vadd.f32 %v2325_v17, %v902_v36  ;;  %v1031_v39 = vadd.f32 %v2325_v17, %v1030_v37  ;;  %v904_v40 = vpop.f32.mrb[61].mxu0  ;;  %v1032_v41 = vpop.f32.mrb[61].mxu1 }
 0x194   : > { %v905_v42 = vpop.f32.mrb[62].mxu0  ;;  %v1033_v43 = vpop.f32.mrb[62].mxu1 }
 0x195   : > { %v906_v44 = vadd.f32 %v2325_v17, %v905_v42  ;;  %v1034_v45 = vadd.f32 %v2325_v17, %v1033_v43  ;;  %v907_v46 = vpop.f32.mrb[63].mxu0  ;;  %v1035_v47 = vpop.f32.mrb[63].mxu1  ;;  %v1067_v48 = vmax.f32 %v903_v38, 0.0  ;;  %v1099_v49 = vmax.f32 %v1031_v39, 0.0 }
 0x197   : > { %v1068_v50 = vmax.f32 %v906_v44, 0.0  ;;  %v1100_v51 = vmax.f32 %v1034_v45, 0.0 }
 0x199   : > { %v1825_v52 = vpack.c.bf16 %v1068_v50, %v1067_v48  ;;  %v1905_v53 = vpack.c.bf16 %v1100_v51, %v1099_v49 }
 0x19b   : > { %1921 = vst [vmem:[%s2335_s8 + $0x78] sm:$0xff] %v1825_v52   ;;  %1937 = vst [vmem:[%s2335_s8 + $0xf8] sm:$0xff] %v1905_v53  }
 0x19c PF: > { %s13_s14 = sadd.s32 1, %s2129_s14   ;;  %s2442_s12 = smov %s2125_s13 }
 0x19d   : > { %p10_p5 = scmp.ge.s32.totalorder %s13_s14, 10   ;;  %s2443_s13 = smov %s2445_s15 }
 0x19f   :  { %12 = sbr.rel (!%p10_p5) target bundleno = 2 (0x2), region = 68 }

// kernel: policy_forward.6
= control target key start
LH: loop header
LB: loop body
LE: loop exit
PB: predicated region body
PF: predicated region fallthrough
CT: control target
= control target key end

     0   :  { %s3242_s12 = smov 0   ;;  %s3244_s13 = smov 0   ;;  %s3641_s0 = inlined_call_operand.vmem [shape: bf16[1024,512], index: 0, kind: input, shape index: {}]   ;;  %s3642_s1 = inlined_call_operand.vmem [shape: bf16[512,128], index: 1, kind: input, shape index: {}]   ;;  %s3643_s2 = inlined_call_operand.vmem [shape: f32[1,128], index: 2, kind: input, shape index: {}]   ;;  %s3644_s3 = inlined_call_operand.vmem [shape: bf16[1024,128], index: 3, kind: output, shape index: {}]  }
   0x1   :  { %s3246_s14 = smov 0  }
   0x2 LB: > { %s25_s15 = sadd.s32 1, %s3215_s13  ;;  %p2330_p0 = scmp.ge.s32.totalorder %s3219_s14, 1  ;;  %s3219_s14 = sphi %s3246_s14, %s13_s14   ;;  %s3215_s13 = sphi %s3244_s13, %s3646_s13   ;;  %s3211_s12 = sphi %s3242_s12, %s3645_s12  }
   0x3   : > { %p27_p1 = scmp.ge.s32.totalorder %s25_s15, 2  ;;  %p170_p2 = scmp.lt.s32.totalorder %s3219_s14, 3 }
   0x5   : > { %s3648_s15 = smov (%p27_p1, %s25_s15), 0  ;;  %p171_p3 = pnand %p2330_p0, %p170_p2 }
   0x6   : > { %v2972_v0 = vld [vmem:[%s3642_s1] sm:$0xff] (!%p171_p3)   ;;  %v3221_v1 = vmov (!%p171_p3), 0   ;;  %v2974_v3 = vld [vmem:[%s3642_s1 + $0x8] sm:$0xff] (!%p171_p3)   ;;  %v2976_v5 = vld [vmem:[%s3642_s1 + $0x10] sm:$0xff] (!%p171_p3)   ;;  %s2331_s9 = sshll.u32 (!%p171_p3), %s3211_s12, 6 }
   0x7   : > { %174 = sbr.rel (%p171_p3) target bundleno = 542 (0x21e), region = 32  ;;  %1260 = vmatprep.subr.bf16.mxu1 (!%p171_p3), %v3221_v1  ;;  %1549 = vmatprep.subr.bf16.mxu0 (!%p171_p3), %v3221_v1  ;;  %v2973_v2 = vld [vmem:[%s3642_s1 + $0x80] sm:$0xff] (!%p171_p3)   ;;  %v2975_v4 = vld [vmem:[%s3642_s1 + $0x88] sm:$0xff] (!%p171_p3)   ;;  %v2977_v6 = vld [vmem:[%s3642_s1 + $0x90] sm:$0xff] (!%p171_p3)   ;;  %p206_p4 = scmp.lt.s32.totalorder (!%p171_p3), %s2331_s9, 127 }
   0x8   : > { %1261 = vmatpush1.bf16.msra.mxu1 (!%p171_p3), %v2972_v0  ;;  %1550 = vmatpush1.bf16.msra.mxu0 (!%p171_p3), %v2973_v2  ;;  %v2978_v7 = vld [vmem:[%s3642_s1 + $0x18] sm:$0xff] (!%p171_p3)   ;;  %v2980_v9 = vld [vmem:[%s3642_s1 + $0x20] sm:$0xff] (!%p171_p3)   ;;  %v2982_v11 = vld [vmem:[%s3642_s1 + $0x28] sm:$0xff] (!%p171_p3)  }
   0x9   : > { %1262 = vmatprep.subr.bf16.mxu1 (!%p171_p3), %v3221_v1  ;;  %1551 = vmatprep.subr.bf16.mxu0 (!%p171_p3), %v3221_v1  ;;  %v2979_v8 = vld [vmem:[%s3642_s1 + $0x98] sm:$0xff] (!%p171_p3)   ;;  %v2981_v10 = vld [vmem:[%s3642_s1 + $0xa0] sm:$0xff] (!%p171_p3)   ;;  %v2983_v12 = vld [vmem:[%s3642_s1 + $0xa8] sm:$0xff] (!%p171_p3)  }
   0xa   : > { %v2984_v13 = vld [vmem:[%s3642_s1 + $0x30] sm:$0xff] (!%p171_p3)   ;;  %v2986_v15 = vld [vmem:[%s3642_s1 + $0x38] sm:$0xff] (!%p171_p3)   ;;  %v2988_v17 = vld [vmem:[%s3642_s1 + $0x40] sm:$0xff] (!%p171_p3)  }
   0xb   : > { %v2985_v14 = vld [vmem:[%s3642_s1 + $0xb0] sm:$0xff] (!%p171_p3)   ;;  %v2987_v16 = vld [vmem:[%s3642_s1 + $0xb8] sm:$0xff] (!%p171_p3)   ;;  %v2989_v18 = vld [vmem:[%s3642_s1 + $0xc0] sm:$0xff] (!%p171_p3)  }
   0xc   : > { %1263 = vmatpush1.bf16.msra.mxu1 (!%p171_p3), %v2974_v3  ;;  %1552 = vmatpush1.bf16.msra.mxu0 (!%p171_p3), %v2975_v4  ;;  %v2990_v20 = vld [vmem:[%s3642_s1 + $0x48] sm:$0xff] (!%p171_p3)   ;;  %v2992_v23 = vld [vmem:[%s3642_s1 + $0x50] sm:$0xff] (!%p171_p3)   ;;  %v2994_v25 = vld [vmem:[%s3642_s1 + $0x58] sm:$0xff] (!%p171_p3)  }
   0xd   : > { %1264 = vmatprep.subr.bf16.mxu1 (!%p171_p3), %v3221_v1  ;;  %1553 = vmatprep.subr.bf16.mxu0 (!%p171_p3), %v3221_v1  ;;  %v2991_v22 = vld [vmem:[%s3642_s1 + $0xc8] sm:$0xff] (!%p171_p3)   ;;  %v2993_v24 = vld [vmem:[%s3642_s1 + $0xd0] sm:$0xff] (!%p171_p3)   ;;  %v2995_v26 = vld [vmem:[%s3642_s1 + $0xd8] sm:$0xff] (!%p171_p3)  }
   0xe   : > { %s3650_s9 = smov (!%p206_p4, %s2331_s9), 127  ;;  %v2996_v27 = vld [vmem:[%s3642_s1 + $0x60] sm:$0xff]   ;;  %v2998_v29 = vld [vmem:[%s3642_s1 + $0x68] sm:$0xff]   ;;  %v3000_v31 = vld [vmem:[%s3642_s1 + $0x70] sm:$0xff]  }
   0xf   : > { %s2563_s25 = sshll.u32 %s3650_s9, 4  ;;  %v2997_v28 = vld [vmem:[%s3642_s1 + $0xe0] sm:$0xff]   ;;  %v2999_v30 = vld [vmem:[%s3642_s1 + $0xe8] sm:$0xff]   ;;  %v3001_v32 = vld [vmem:[%s3642_s1 + $0xf0] sm:$0xff]   ;;  %s2335_s19 = sshll.u32 %s3650_s9, 2 }
  0x10   : > { %1265 = vmatpush1.bf16.msra.mxu1 %v2976_v5  ;;  %1554 = vmatpush1.bf16.msra.mxu0 %v2977_v6  ;;  %s3336_s30 = scalar_lea.vmem %s3641_s0, %s2563_s25  ;;  %v3002_v33 = vld [vmem:[%s3642_s1 + $0x78] sm:$0xff]   ;;  %s3524_s21 = scalar_lea.vmem %s3644_s3, %s2335_s19 }
  0x11   : > { %1266 = vmatprep.subr.bf16.mxu1 %v3221_v1  ;;  %1555 = vmatprep.subr.bf16.mxu0 %v3221_v1  ;;  %v3006_v19 = vld [vmem:[%s3336_s30 + $0x4] ss:$16 sps:$4 sm:$0xff]   ;;  %v3009_v21 = vld [vmem:[%s3336_s30 + $0xc] ss:$16 sps:$4 sm:$0xff]   ;;  %v3004_v35 = vld [vmem:[%s3336_s30] ss:$16 sps:$4 sm:$0xff]  }
  0x12   : > { %1292 = vmatprep.mubr.bf16.mxu1 %v3006_v19  ;;  %1581 = vmatprep.mubr.bf16.mxu0 %v3009_v21  ;;  %v3003_v34 = vld [vmem:[%s3642_s1 + $0xf8] sm:$0xff]   ;;  %v3010_v37 = vld [vmem:[%s3336_s30 + $0x24] ss:$16 sps:$4 sm:$0xff]   ;;  %v3014_v39 = vld [vmem:[%s3336_s30 + $0x20] ss:$16 sps:$4 sm:$0xff]  }
  0x13   : > { %v3007_v36 = vld [vmem:[%s3336_s30 + $0x8] ss:$16 sps:$4 sm:$0xff]   ;;  %v3012_v38 = vld [vmem:[%s3336_s30 + $0x2c] ss:$16 sps:$4 sm:$0xff]   ;;  %v3016_v41 = vld [vmem:[%s3336_s30 + $0x44] ss:$16 sps:$4 sm:$0xff]  }
  0x14   : > { %1267 = vmatpush1.bf16.msra.mxu1 %v2978_v7  ;;  %1556 = vmatpush1.bf16.msra.mxu0 %v2979_v8  ;;  %v3015_v40 = vld [vmem:[%s3336_s30 + $0x28] ss:$16 sps:$4 sm:$0xff]   ;;  %v3018_v42 = vld [vmem:[%s3336_s30 + $0x4c] ss:$16 sps:$4 sm:$0xff]   ;;  %v3020_v43 = vld [vmem:[%s3336_s30 + $0x40] ss:$16 sps:$4 sm:$0xff]  }
  0x15   : > { %1268 = vmatprep.subr.bf16.mxu1 %v3221_v1  ;;  %1557 = vmatprep.subr.bf16.mxu0 %v3221_v1  ;;  %v3021_v44 = vld [vmem:[%s3336_s30 + $0x48] ss:$16 sps:$4 sm:$0xff]   ;;  %v3022_v45 = vld [vmem:[%s3336_s30 + $0x64] ss:$16 sps:$4 sm:$0xff]   ;;  %v3024_v46 = vld [vmem:[%s3336_s30 + $0x6c] ss:$16 sps:$4 sm:$0xff]  }
  0x16   : > { %v3026_v47 = vld [vmem:[%s3336_s30 + $0x60] ss:$16 sps:$4 sm:$0xff]   ;;  %v3027_v48 = vld [vmem:[%s3336_s30 + $0x68] ss:$16 sps:$4 sm:$0xff]   ;;  %v3028_v49 = vld [vmem:[%s3336_s30 + $0x84] ss:$16 sps:$4 sm:$0xff]  }
  0x17   : > { %v3030_v50 = vld [vmem:[%s3336_s30 + $0x8c] ss:$16 sps:$4 sm:$0xff]   ;;  %v3032_v51 = vld [vmem:[%s3336_s30 + $0x80] ss:$16 sps:$4 sm:$0xff]   ;;  %v3033_v52 = vld [vmem:[%s3336_s30 + $0x88] ss:$16 sps:$4 sm:$0xff]  }
  0x18   : > { %1269 = vmatpush1.bf16.msra.mxu1 %v2980_v9  ;;  %1558 = vmatpush1.bf16.msra.mxu0 %v2981_v10  ;;  %v3034_v53 = vld [vmem:[%s3336_s30 + $0xa4] ss:$16 sps:$4 sm:$0xff]   ;;  %v3036_v54 = vld [vmem:[%s3336_s30 + $0xac] ss:$16 sps:$4 sm:$0xff]   ;;  %v3038_v55 = vld [vmem:[%s3336_s30 + $0xa0] ss:$16 sps:$4 sm:$0xff]  }
  0x19   : > { %1270 = vmatprep.subr.bf16.mxu1 %v3221_v1  ;;  %1559 = vmatprep.subr.bf16.mxu0 %v3221_v1  ;;  %v3039_v56 = vld [vmem:[%s3336_s30 + $0xa8] ss:$16 sps:$4 sm:$0xff]   ;;  %v3040_v57 = vld [vmem:[%s3336_s30 + $0xc4] ss:$16 sps:$4 sm:$0xff]   ;;  %v3042_v58 = vld [vmem:[%s3336_s30 + $0xcc] ss:$16 sps:$4 sm:$0xff]  }
  0x1a   : > { %v3044_v59 = vld [vmem:[%s3336_s30 + $0xc0] ss:$16 sps:$4 sm:$0xff]   ;;  %v3045_v60 = vld [vmem:[%s3336_s30 + $0xc8] ss:$16 sps:$4 sm:$0xff]   ;;  %v3046_v61 = vld [vmem:[%s3336_s30 + $0xe4] ss:$16 sps:$4 sm:$0xff]  }
  0x1b   : > { %v3048_v62 = vld [vmem:[%s3336_s30 + $0xec] ss:$16 sps:$4 sm:$0xff]   ;;  %v3050_v63 = vld [vmem:[%s3336_s30 + $0xe0] ss:$16 sps:$4 sm:$0xff]   ;;  %v3051_v0 = vld [vmem:[%s3336_s30 + $0xe8] ss:$16 sps:$4 sm:$0xff]  }
  0x1c   : > { %1271 = vmatpush1.bf16.msra.mxu1 %v2982_v11  ;;  %1560 = vmatpush1.bf16.msra.mxu0 %v2983_v12  ;;  %v3054_v2 = vld [vmem:[%s3336_s30 + $0x10c] ss:$16 sps:$4 sm:$0xff]   ;;  %v3056_v3 = vld [vmem:[%s3336_s30 + $0x100] ss:$16 sps:$4 sm:$0xff]   ;;  %v3057_v4 = vld [vmem:[%s3336_s30 + $0x108] ss:$16 sps:$4 sm:$0xff]  }
  0x1d   : > { %1272 = vmatprep.subr.bf16.mxu1 %v3221_v1  ;;  %1561 = vmatprep.subr.bf16.mxu0 %v3221_v1  ;;  %v3058_v5 = vld [vmem:[%s3336_s30 + $0x124] ss:$16 sps:$4 sm:$0xff]   ;;  %v3060_v6 = vld [vmem:[%s3336_s30 + $0x12c] ss:$16 sps:$4 sm:$0xff]   ;;  %v3062_v7 = vld [vmem:[%s3336_s30 + $0x120] ss:$16 sps:$4 sm:$0xff]  }
  0x1e   : > { %v3063_v8 = vld [vmem:[%s3336_s30 + $0x128] ss:$16 sps:$4 sm:$0xff]   ;;  %v3064_v9 = vld [vmem:[%s3336_s30 + $0x144] ss:$16 sps:$4 sm:$0xff]   ;;  %v3066_v10 = vld [vmem:[%s3336_s30 + $0x14c] ss:$16 sps:$4 sm:$0xff]  }
  0x1f   : > { %v3068_v11 = vld [vmem:[%s3336_s30 + $0x140] ss:$16 sps:$4 sm:$0xff]   ;;  %v3069_v12 = vld [vmem:[%s3336_s30 + $0x148] ss:$16 sps:$4 sm:$0xff]   ;;  %v3082_v21 = vld [vmem:[%s3336_s30 + $0x1a4] ss:$16 sps:$4 sm:$0xff]  }
  0x20   : > { %1273 = vmatpush1.bf16.msra.mxu1 %v2984_v13  ;;  %1562 = vmatpush1.bf16.msra.mxu0 %v2985_v14  ;;  %v3070_v13 = vld [vmem:[%s3336_s30 + $0x164] ss:$16 sps:$4 sm:$0xff]   ;;  %v3072_v14 = vld [vmem:[%s3336_s30 + $0x16c] ss:$16 sps:$4 sm:$0xff]   ;;  %v3080_v19 = vld [vmem:[%s3336_s30 + $0x180] ss:$16 sps:$4 sm:$0xff]  }
  0x21   : > { %1274 = vmatprep.subr.bf16.mxu1 %v3221_v1  ;;  %1563 = vmatprep.subr.bf16.mxu0 %v3221_v1 }
  0x24   : > { %1275 = vmatpush1.bf16.msra.mxu1 %v2986_v15  ;;  %1564 = vmatpush1.bf16.msra.mxu0 %v2987_v16  ;;  %v3074_v15 = vld [vmem:[%s3336_s30 + $0x160] ss:$16 sps:$4 sm:$0xff]   ;;  %v3075_v16 = vld [vmem:[%s3336_s30 + $0x168] ss:$16 sps:$4 sm:$0xff]  }
  0x25   : > { %1276 = vmatprep.subr.bf16.mxu1 %v3221_v1  ;;  %1565 = vmatprep.subr.bf16.mxu0 %v3221_v1 }
  0x28   : > { %1277 = vmatpush1.bf16.msra.mxu1 %v2988_v17  ;;  %1566 = vmatpush1.bf16.msra.mxu0 %v2989_v18  ;;  %v3076_v17 = vld [vmem:[%s3336_s30 + $0x184] ss:$16 sps:$4 sm:$0xff]   ;;  %v3078_v18 = vld [vmem:[%s3336_s30 + $0x18c] ss:$16 sps:$4 sm:$0xff]  }
  0x29   : > { %1278 = vmatprep.subr.bf16.mxu1 %v3221_v1  ;;  %1567 = vmatprep.subr.bf16.mxu0 %v3221_v1 }
  0x2c   : > { %1279 = vmatpush1.bf16.msra.mxu1 %v2990_v20  ;;  %1568 = vmatpush1.bf16.msra.mxu0 %v2991_v22  ;;  %v3081_v20 = vld [vmem:[%s3336_s30 + $0x188] ss:$16 sps:$4 sm:$0xff]   ;;  %v3084_v22 = vld [vmem:[%s3336_s30 + $0x1ac] ss:$16 sps:$4 sm:$0xff]  }
  0x2d   : > { %1280 = vmatprep.subr.bf16.mxu1 %v3221_v1  ;;  %1569 = vmatprep.subr.bf16.mxu0 %v3221_v1 }
  0x30   : > { %1281 = vmatpush1.bf16.msra.mxu1 %v2992_v23  ;;  %1570 = vmatpush1.bf16.msra.mxu0 %v2993_v24  ;;  %v3086_v23 = vld [vmem:[%s3336_s30 + $0x1a0] ss:$16 sps:$4 sm:$0xff]   ;;  %v3087_v24 = vld [vmem:[%s3336_s30 + $0x1a8] ss:$16 sps:$4 sm:$0xff]  }
  0x31   : > { %1282 = vmatprep.subr.bf16.mxu1 %v3221_v1  ;;  %1571 = vmatprep.subr.bf16.mxu0 %v3221_v1 }
  0x34   : > { %1283 = vmatpush1.bf16.msra.mxu1 %v2994_v25  ;;  %1572 = vmatpush1.bf16.msra.mxu0 %v2995_v26  ;;  %v3088_v25 = vld [vmem:[%s3336_s30 + $0x1c4] ss:$16 sps:$4 sm:$0xff]   ;;  %v3090_v26 = vld [vmem:[%s3336_s30 + $0x1cc] ss:$16 sps:$4 sm:$0xff]  }
  0x35   : > { %1284 = vmatprep.subr.bf16.mxu1 %v3221_v1  ;;  %1573 = vmatprep.subr.bf16.mxu0 %v3221_v1 }
  0x38   : > { %1285 = vmatpush1.bf16.msra.mxu1 %v2996_v27  ;;  %1574 = vmatpush1.bf16.msra.mxu0 %v2997_v28  ;;  %v3092_v27 = vld [vmem:[%s3336_s30 + $0x1c0] ss:$16 sps:$4 sm:$0xff]   ;;  %v3093_v28 = vld [vmem:[%s3336_s30 + $0x1c8] ss:$16 sps:$4 sm:$0xff]  }
  0x39   : > { %1286 = vmatprep.subr.bf16.mxu1 %v3221_v1  ;;  %1575 = vmatprep.subr.bf16.mxu0 %v3221_v1 }
  0x3c   : > { %1287 = vmatpush1.bf16.msra.mxu1 %v2998_v29  ;;  %1576 = vmatpush1.bf16.msra.mxu0 %v2999_v30  ;;  %v3094_v29 = vld [vmem:[%s3336_s30 + $0x1e4] ss:$16 sps:$4 sm:$0xff]   ;;  %v3096_v30 = vld [vmem:[%s3336_s30 + $0x1ec] ss:$16 sps:$4 sm:$0xff]  }
  0x3d   : > { %1288 = vmatprep.subr.bf16.mxu1 %v3221_v1  ;;  %1577 = vmatprep.subr.bf16.mxu0 %v3221_v1 }
  0x40   : > { %1289 = vmatpush1.bf16.msra.mxu1 %v3000_v31  ;;  %1578 = vmatpush1.bf16.msra.mxu0 %v3001_v32  ;;  %v3098_v31 = vld [vmem:[%s3336_s30 + $0x1e0] ss:$16 sps:$4 sm:$0xff]   ;;  %v3099_v32 = vld [vmem:[%s3336_s30 + $0x1e8] ss:$16 sps:$4 sm:$0xff]  }
  0x41   : > { %1290 = vmatprep.subr.bf16.mxu1 %v3221_v1  ;;  %1579 = vmatprep.subr.bf16.mxu0 %v3221_v1  ;;  %v3052_v1 = vld [vmem:[%s3336_s30 + $0x104] ss:$16 sps:$4 sm:$0xff]  }
  0x44   : > { %1291 = vmatpush1.bf16.msra.mxu1 %v3002_v33  ;;  %1580 = vmatpush1.bf16.msra.mxu0 %v3003_v34  ;;  %v3100_v33 = vld [vmem:[%s3336_s30 + $0x204] ss:$16 sps:$4 sm:$0xff]   ;;  %v3102_v34 = vld [vmem:[%s3336_s30 + $0x20c] ss:$16 sps:$4 sm:$0xff]  }
  0x47   : > { %1293 = vmatmul.mubr.bf16.vlgmr.msra.gmra.mrb[0].mxu1 %v3004_v35  ;;  %1582 = vmatmul.mubr.bf16.vlgmr.msra.gmra.mrb[0].mxu0 %v3007_v36  ;;  %v3104_v35 = vld [vmem:[%s3336_s30 + $0x200] ss:$16 sps:$4 sm:$0xff]   ;;  %v3105_v36 = vld [vmem:[%s3336_s30 + $0x208] ss:$16 sps:$4 sm:$0xff]  }
  0x48   : > { %1300 = vmatprep.mubr.bf16.mxu1 %v3010_v37  ;;  %1589 = vmatprep.mubr.bf16.mxu0 %v3012_v38  ;;  %v3106_v37 = vld [vmem:[%s3336_s30 + $0x224] ss:$16 sps:$4 sm:$0xff]   ;;  %v3108_v38 = vld [vmem:[%s3336_s30 + $0x22c] ss:$16 sps:$4 sm:$0xff]  }
  0x4f   : > { %1301 = vmatmul.mubr.bf16.gmra.mrb[4].mxu1 %v3014_v39  ;;  %1590 = vmatmul.mubr.bf16.gmra.mrb[4].mxu0 %v3015_v40  ;;  %v3110_v39 = vld [vmem:[%s3336_s30 + $0x220] ss:$16 sps:$4 sm:$0xff]   ;;  %v3111_v40 = vld [vmem:[%s3336_s30 + $0x228] ss:$16 sps:$4 sm:$0xff]  }
  0x50   : > { %1308 = vmatprep.mubr.bf16.mxu1 %v3016_v41  ;;  %1597 = vmatprep.mubr.bf16.mxu0 %v3018_v42  ;;  %v3112_v41 = vld [vmem:[%s3336_s30 + $0x244] ss:$16 sps:$4 sm:$0xff]   ;;  %v3114_v42 = vld [vmem:[%s3336_s30 + $0x24c] ss:$16 sps:$4 sm:$0xff]  }
  0x57   : > { %1309 = vmatmul.mubr.bf16.gmra.mrb[8].mxu1 %v3020_v43  ;;  %1598 = vmatmul.mubr.bf16.gmra.mrb[8].mxu0 %v3021_v44  ;;  %v3116_v43 = vld [vmem:[%s3336_s30 + $0x240] ss:$16 sps:$4 sm:$0xff]   ;;  %v3117_v44 = vld [vmem:[%s3336_s30 + $0x248] ss:$16 sps:$4 sm:$0xff]  }
  0x58   : > { %1316 = vmatprep.mubr.bf16.mxu1 %v3022_v45  ;;  %1605 = vmatprep.mubr.bf16.mxu0 %v3024_v46  ;;  %v3118_v45 = vld [vmem:[%s3336_s30 + $0x264] ss:$16 sps:$4 sm:$0xff]   ;;  %v3120_v46 = vld [vmem:[%s3336_s30 + $0x26c] ss:$16 sps:$4 sm:$0xff]  }
  0x5f   : > { %1317 = vmatmul.mubr.bf16.gmra.mrb[12].mxu1 %v3026_v47  ;;  %1606 = vmatmul.mubr.bf16.gmra.mrb[12].mxu0 %v3027_v48  ;;  %v3122_v47 = vld [vmem:[%s3336_s30 + $0x260] ss:$16 sps:$4 sm:$0xff]   ;;  %v3123_v48 = vld [vmem:[%s3336_s30 + $0x268] ss:$16 sps:$4 sm:$0xff]  }
  0x60   : > { %1324 = vmatprep.mubr.bf16.mxu1 %v3028_v49  ;;  %1613 = vmatprep.mubr.bf16.mxu0 %v3030_v50  ;;  %v3124_v49 = vld [vmem:[%s3336_s30 + $0x284] ss:$16 sps:$4 sm:$0xff]   ;;  %v3126_v50 = vld [vmem:[%s3336_s30 + $0x28c] ss:$16 sps:$4 sm:$0xff]  }
  0x67   : > { %1325 = vmatmul.mubr.bf16.gmra.mrb[16].mxu1 %v3032_v51  ;;  %1614 = vmatmul.mubr.bf16.gmra.mrb[16].mxu0 %v3033_v52  ;;  %v3128_v51 = vld [vmem:[%s3336_s30 + $0x280] ss:$16 sps:$4 sm:$0xff]   ;;  %v3129_v52 = vld [vmem:[%s3336_s30 + $0x288] ss:$16 sps:$4 sm:$0xff]  }
  0x68   : > { %1332 = vmatprep.mubr.bf16.mxu1 %v3034_v53  ;;  %1621 = vmatprep.mubr.bf16.mxu0 %v3036_v54  ;;  %v3130_v53 = vld [vmem:[%s3336_s30 + $0x2a4] ss:$16 sps:$4 sm:$0xff]   ;;  %v3132_v54 = vld [vmem:[%s3336_s30 + $0x2ac] ss:$16 sps:$4 sm:$0xff]  }
  0x6f   : > { %1333 = vmatmul.mubr.bf16.gmra.mrb[20].mxu1 %v3038_v55  ;;  %1622 = vmatmul.mubr.bf16.gmra.mrb[20].mxu0 %v3039_v56  ;;  %v3134_v55 = vld [vmem:[%s3336_s30 + $0x2a0] ss:$16 sps:$4 sm:$0xff]   ;;  %v3135_v56 = vld [vmem:[%s3336_s30 + $0x2a8] ss:$16 sps:$4 sm:$0xff]  }
  0x70   : > { %1340 = vmatprep.mubr.bf16.mxu1 %v3040_v57  ;;  %1629 = vmatprep.mubr.bf16.mxu0 %v3042_v58  ;;  %v3136_v57 = vld [vmem:[%s3336_s30 + $0x2c4] ss:$16 sps:$4 sm:$0xff]   ;;  %v3138_v58 = vld [vmem:[%s3336_s30 + $0x2cc] ss:$16 sps:$4 sm:$0xff]  }
  0x77   : > { %1341 = vmatmul.mubr.bf16.gmra.mrb[24].mxu1 %v3044_v59  ;;  %1630 = vmatmul.mubr.bf16.gmra.mrb[24].mxu0 %v3045_v60  ;;  %v3140_v59 = vld [vmem:[%s3336_s30 + $0x2c0] ss:$16 sps:$4 sm:$0xff]   ;;  %v3141_v60 = vld [vmem:[%s3336_s30 + $0x2c8] ss:$16 sps:$4 sm:$0xff]  }
  0x78   : > { %1348 = vmatprep.mubr.bf16.mxu1 %v3046_v61  ;;  %1637 = vmatprep.mubr.bf16.mxu0 %v3048_v62  ;;  %v3142_v61 = vld [vmem:[%s3336_s30 + $0x2e4] ss:$16 sps:$4 sm:$0xff]   ;;  %v3144_v62 = vld [vmem:[%s3336_s30 + $0x2ec] ss:$16 sps:$4 sm:$0xff]  }
  0x7f   : > { %1349 = vmatmul.mubr.bf16.gmra.mrb[28].mxu1 %v3050_v63  ;;  %1638 = vmatmul.mubr.bf16.gmra.mrb[28].mxu0 %v3051_v0  ;;  %v3146_v63 = vld [vmem:[%s3336_s30 + $0x2e0] ss:$16 sps:$4 sm:$0xff]   ;;  %v3147_v0 = vld [vmem:[%s3336_s30 + $0x2e8] ss:$16 sps:$4 sm:$0xff]  }
  0x80   : > { %1356 = vmatprep.mubr.bf16.mxu1 %v3052_v1  ;;  %1645 = vmatprep.mubr.bf16.mxu0 %v3054_v2  ;;  %v3148_v1 = vld [vmem:[%s3336_s30 + $0x304] ss:$16 sps:$4 sm:$0xff]   ;;  %v3150_v2 = vld [vmem:[%s3336_s30 + $0x30c] ss:$16 sps:$4 sm:$0xff]  }
  0x87   : > { %1357 = vmatmul.mubr.bf16.gmra.mrb[32].mxu1 %v3056_v3  ;;  %1646 = vmatmul.mubr.bf16.gmra.mrb[32].mxu0 %v3057_v4  ;;  %v3152_v3 = vld [vmem:[%s3336_s30 + $0x300] ss:$16 sps:$4 sm:$0xff]   ;;  %v3153_v4 = vld [vmem:[%s3336_s30 + $0x308] ss:$16 sps:$4 sm:$0xff]  }
  0x88   : > { %1364 = vmatprep.mubr.bf16.mxu1 %v3058_v5  ;;  %1653 = vmatprep.mubr.bf16.mxu0 %v3060_v6  ;;  %v3154_v5 = vld [vmem:[%s3336_s30 + $0x324] ss:$16 sps:$4 sm:$0xff]   ;;  %v3156_v6 = vld [vmem:[%s3336_s30 + $0x32c] ss:$16 sps:$4 sm:$0xff]  }
  0x8f   : > { %1365 = vmatmul.mubr.bf16.gmra.mrb[36].mxu1 %v3062_v7  ;;  %1654 = vmatmul.mubr.bf16.gmra.mrb[36].mxu0 %v3063_v8  ;;  %v3158_v7 = vld [vmem:[%s3336_s30 + $0x320] ss:$16 sps:$4 sm:$0xff]   ;;  %v3159_v8 = vld [vmem:[%s3336_s30 + $0x328] ss:$16 sps:$4 sm:$0xff]  }
  0x90   : > { %1372 = vmatprep.mubr.bf16.mxu1 %v3064_v9  ;;  %1661 = vmatprep.mubr.bf16.mxu0 %v3066_v10  ;;  %v3160_v9 = vld [vmem:[%s3336_s30 + $0x344] ss:$16 sps:$4 sm:$0xff]   ;;  %v3162_v10 = vld [vmem:[%s3336_s30 + $0x34c] ss:$16 sps:$4 sm:$0xff]  }
  0x97   : > { %1373 = vmatmul.mubr.bf16.gmra.mrb[40].mxu1 %v3068_v11  ;;  %1662 = vmatmul.mubr.bf16.gmra.mrb[40].mxu0 %v3069_v12  ;;  %v3164_v11 = vld [vmem:[%s3336_s30 + $0x340] ss:$16 sps:$4 sm:$0xff]   ;;  %v3165_v12 = vld [vmem:[%s3336_s30 + $0x348] ss:$16 sps:$4 sm:$0xff]  }
  0x98   : > { %1380 = vmatprep.mubr.bf16.mxu1 %v3070_v13  ;;  %1669 = vmatprep.mubr.bf16.mxu0 %v3072_v14  ;;  %v3166_v13 = vld [vmem:[%s3336_s30 + $0x364] ss:$16 sps:$4 sm:$0xff]   ;;  %v3168_v14 = vld [vmem:[%s3336_s30 + $0x36c] ss:$16 sps:$4 sm:$0xff]  }
  0x9f   : > { %1381 = vmatmul.mubr.bf16.gmra.mrb[44].mxu1 %v3074_v15  ;;  %1670 = vmatmul.mubr.bf16.gmra.mrb[44].mxu0 %v3075_v16  ;;  %v3512_v15 = vld [vmem:[%s3643_s2] ss:$0 sm:$0xff] }
  0xa0   : > { %1388 = vmatprep.mubr.bf16.mxu1 %v3076_v17  ;;  %1677 = vmatprep.mubr.bf16.mxu0 %v3078_v18 }
  0xa7   : > { %1389 = vmatmul.mubr.bf16.gmra.mrb[48].mxu1 %v3080_v19  ;;  %1678 = vmatmul.mubr.bf16.gmra.mrb[48].mxu0 %v3081_v20  ;;  %v3170_v20 = vld [vmem:[%s3336_s30 + $0x360] ss:$16 sps:$4 sm:$0xff]  }
  0xa8   : > { %1396 = vmatprep.mubr.bf16.mxu1 %v3082_v21  ;;  %1685 = vmatprep.mubr.bf16.mxu0 %v3084_v22 }
  0xaf   : > { %1397 = vmatmul.mubr.bf16.gmra.mrb[52].mxu1 %v3086_v23  ;;  %1686 = vmatmul.mubr.bf16.gmra.mrb[52].mxu0 %v3087_v24  ;;  %v3171_v23 = vld [vmem:[%s3336_s30 + $0x368] ss:$16 sps:$4 sm:$0xff]   ;;  %v3172_v24 = vld [vmem:[%s3336_s30 + $0x384] ss:$16 sps:$4 sm:$0xff]  }
  0xb0   : > { %1404 = vmatprep.mubr.bf16.mxu1 %v3088_v25  ;;  %1693 = vmatprep.mubr.bf16.mxu0 %v3090_v26 }
  0xb7   : > { %1405 = vmatmul.mubr.bf16.gmra.mrb[56].mxu1 %v3092_v27  ;;  %1694 = vmatmul.mubr.bf16.gmra.mrb[56].mxu0 %v3093_v28 }
  0xb8   : > { %1412 = vmatprep.mubr.bf16.mxu1 %v3094_v29  ;;  %1701 = vmatprep.mubr.bf16.mxu0 %v3096_v30  ;;  %v3174_v29 = vld [vmem:[%s3336_s30 + $0x38c] ss:$16 sps:$4 sm:$0xff]  }
  0xbf   : > { %1413 = vmatmul.mubr.bf16.gmra.mrb[60].mxu1 %v3098_v31  ;;  %1702 = vmatmul.mubr.bf16.gmra.mrb[60].mxu0 %v3099_v32 }
  0xc0   : > { %1420 = vmatprep.mubr.bf16.mxu1 %v3100_v33  ;;  %1709 = vmatprep.mubr.bf16.mxu0 %v3102_v34 }
  0xc7   : > { %1421 = vmatmul.mubr.bf16.gmra.mrb[64].mxu1 %v3104_v35  ;;  %1710 = vmatmul.mubr.bf16.gmra.mrb[64].mxu0 %v3105_v36 }
  0xc8   : > { %1428 = vmatprep.mubr.bf16.mxu1 %v3106_v37  ;;  %1717 = vmatprep.mubr.bf16.mxu0 %v3108_v38 }
  0xcf   : > { %1429 = vmatmul.mubr.bf16.gmra.mrb[68].mxu1 %v3110_v39  ;;  %1718 = vmatmul.mubr.bf16.gmra.mrb[68].mxu0 %v3111_v40  ;;  %v3176_v39 = vld [vmem:[%s3336_s30 + $0x380] ss:$16 sps:$4 sm:$0xff]  }
  0xd0   : > { %1436 = vmatprep.mubr.bf16.mxu1 %v3112_v41  ;;  %1725 = vmatprep.mubr.bf16.mxu0 %v3114_v42  ;;  %v3177_v42 = vld [vmem:[%s3336_s30 + $0x388] ss:$16 sps:$4 sm:$0xff]  }
  0xd7   : > { %1437 = vmatmul.mubr.bf16.gmra.mrb[72].mxu1 %v3116_v43  ;;  %1726 = vmatmul.mubr.bf16.gmra.mrb[72].mxu0 %v3117_v44  ;;  %v3178_v43 = vld [vmem:[%s3336_s30 + $0x3a4] ss:$16 sps:$4 sm:$0xff]  }
  0xd8   : > { %1444 = vmatprep.mubr.bf16.mxu1 %v3118_v45  ;;  %1733 = vmatprep.mubr.bf16.mxu0 %v3120_v46 }
  0xdf   : > { %1445 = vmatmul.mubr.bf16.gmra.mrb[76].mxu1 %v3122_v47  ;;  %1734 = vmatmul.mubr.bf16.gmra.mrb[76].mxu0 %v3123_v48  ;;  %v3180_v48 = vld [vmem:[%s3336_s30 + $0x3ac] ss:$16 sps:$4 sm:$0xff]  }
  0xe0   : > { %1452 = vmatprep.mubr.bf16.mxu1 %v3124_v49  ;;  %1741 = vmatprep.mubr.bf16.mxu0 %v3126_v50 }
  0xe7   : > { %1453 = vmatmul.mubr.bf16.gmra.mrb[80].mxu1 %v3128_v51  ;;  %1742 = vmatmul.mubr.bf16.gmra.mrb[80].mxu0 %v3129_v52 }
  0xe8   : > { %1460 = vmatprep.mubr.bf16.mxu1 %v3130_v53  ;;  %1749 = vmatprep.mubr.bf16.mxu0 %v3132_v54 }
  0xef   : > { %1461 = vmatmul.mubr.bf16.gmra.mrb[84].mxu1 %v3134_v55  ;;  %1750 = vmatmul.mubr.bf16.gmra.mrb[84].mxu0 %v3135_v56 }
  0xf0   : > { %1468 = vmatprep.mubr.bf16.mxu1 %v3136_v57  ;;  %1757 = vmatprep.mubr.bf16.mxu0 %v3138_v58  ;;  %v3182_v58 = vld [vmem:[%s3336_s30 + $0x3a0] ss:$16 sps:$4 sm:$0xff]  }
  0xf7   : > { %1469 = vmatmul.mubr.bf16.gmra.mrb[88].mxu1 %v3140_v59  ;;  %1758 = vmatmul.mubr.bf16.gmra.mrb[88].mxu0 %v3141_v60 }
  0xf8   : > { %1476 = vmatprep.mubr.bf16.mxu1 %v3142_v61  ;;  %1765 = vmatprep.mubr.bf16.mxu0 %v3144_v62  ;;  %v3183_v61 = vld [vmem:[%s3336_s30 + $0x3a8] ss:$16 sps:$4 sm:$0xff]   ;;  %v3184_v62 = vld [vmem:[%s3336_s30 + $0x3c4] ss:$16 sps:$4 sm:$0xff]  }
  0xff   : > { %1477 = vmatmul.mubr.bf16.gmra.mrb[92].mxu1 %v3146_v63  ;;  %1766 = vmatmul.mubr.bf16.gmra.mrb[92].mxu0 %v3147_v0 }
 0x100   : > { %1484 = vmatprep.mubr.bf16.mxu1 %v3148_v1  ;;  %1773 = vmatprep.mubr.bf16.mxu0 %v3150_v2 }
 0x107   : > { %1485 = vmatmul.mubr.bf16.gmra.mrb[96].mxu1 %v3152_v3  ;;  %1774 = vmatmul.mubr.bf16.gmra.mrb[96].mxu0 %v3153_v4  ;;  %v3186_v3 = vld [vmem:[%s3336_s30 + $0x3cc] ss:$16 sps:$4 sm:$0xff]  }
 0x108   : > { %1492 = vmatprep.mubr.bf16.mxu1 %v3154_v5  ;;  %1781 = vmatprep.mubr.bf16.mxu0 %v3156_v6 }
 0x10f   : > { %1493 = vmatmul.mubr.bf16.gmra.mrb[100].mxu1 %v3158_v7  ;;  %1782 = vmatmul.mubr.bf16.gmra.mrb[100].mxu0 %v3159_v8 }
 0x110   : > { %1500 = vmatprep.mubr.bf16.mxu1 %v3160_v9  ;;  %1789 = vmatprep.mubr.bf16.mxu0 %v3162_v10 }
 0x117   : > { %1501 = vmatmul.mubr.bf16.gmra.mrb[104].mxu1 %v3164_v11  ;;  %1790 = vmatmul.mubr.bf16.gmra.mrb[104].mxu0 %v3165_v12 }
 0x118   : > { %1508 = vmatprep.mubr.bf16.mxu1 %v3166_v13  ;;  %1797 = vmatprep.mubr.bf16.mxu0 %v3168_v14  ;;  %v3188_v13 = vld [vmem:[%s3336_s30 + $0x3c0] ss:$16 sps:$4 sm:$0xff]  }
 0x11a   : > { %v1294_v16 = vpop.f32.mrb[0].mxu1  ;;  %v1583_v18 = vpop.f32.mrb[0].mxu0 }
 0x11b   : > { %v1295_v17 = vadd.f32 %v3512_v15, %v1294_v16  ;;  %v1296_v19 = vpop.f32.mrb[1].mxu1  ;;  %v1585_v21 = vpop.f32.mrb[1].mxu0 }
 0x11c   : > { %v1297_v22 = vpop.f32.mrb[2].mxu1  ;;  %v1586_v27 = vpop.f32.mrb[2].mxu0 }
 0x11d   : > { %v1584_v25 = vadd.f32 %v1583_v18, %v1295_v17  ;;  %v1298_v26 = vadd.f32 %v3512_v15, %v1297_v22  ;;  %v1299_v28 = vpop.f32.mrb[3].mxu1  ;;  %v1588_v30 = vpop.f32.mrb[3].mxu0  ;;  %v3189_v17 = vld [vmem:[%s3336_s30 + $0x3c8] ss:$16 sps:$4 sm:$0xff]   ;;  %v3190_v18 = vld [vmem:[%s3336_s30 + $0x3e4] ss:$16 sps:$4 sm:$0xff]  }
 0x11f   : > { %v1587_v31 = vadd.f32 %v1586_v27, %v1298_v26  ;;  %1509 = vmatmul.mubr.bf16.gmra.mrb[108].mxu1 %v3170_v20  ;;  %1798 = vmatmul.mubr.bf16.gmra.mrb[108].mxu0 %v3171_v23  ;;  %v1838_v32 = vmax.f32 %v1584_v25, 0.0  ;;  %v3192_v23 = vld [vmem:[%s3336_s30 + $0x3ec] ss:$16 sps:$4 sm:$0xff]  }
 0x120   : > { %1516 = vmatprep.mubr.bf16.mxu1 %v3172_v24  ;;  %1805 = vmatprep.mubr.bf16.mxu0 %v3174_v29 }
 0x121   : > { %v1839_v33 = vmax.f32 %v1587_v31, 0.0 }
 0x122   : > { %v1302_v34 = vpop.f32.mrb[4].mxu1  ;;  %v1591_v37 = vpop.f32.mrb[4].mxu0 }
 0x123   : > { %v2631_v35 = vpack.c.bf16 %v1839_v33, %v1838_v32  ;;  %v1303_v36 = vadd.f32 %v3512_v15, %v1302_v34  ;;  %v1304_v38 = vpop.f32.mrb[5].mxu1  ;;  %v1593_v40 = vpop.f32.mrb[5].mxu0  ;;  %v3194_v33 = vld [vmem:[%s3336_s30 + $0x3e0] ss:$16 sps:$4 sm:$0xff]  }
 0x124   : > { %v1305_v41 = vpop.f32.mrb[6].mxu1  ;;  %v1594_v46 = vpop.f32.mrb[6].mxu0 }
 0x125   : > { %2632 = vst [vmem:[%s3524_s21] sm:$0xff] %v2631_v35   ;;  %v1592_v44 = vadd.f32 %v1591_v37, %v1303_v36  ;;  %v1306_v45 = vadd.f32 %v3512_v15, %v1305_v41  ;;  %v1307_v47 = vpop.f32.mrb[7].mxu1  ;;  %v1596_v49 = vpop.f32.mrb[7].mxu0  ;;  %v3195_v36 = vld [vmem:[%s3336_s30 + $0x3e8] ss:$16 sps:$4 sm:$0xff]  }
 0x127   : > { %v1595_v50 = vadd.f32 %v1594_v46, %v1306_v45  ;;  %1517 = vmatmul.mubr.bf16.gmra.mrb[112].mxu1 %v3176_v39  ;;  %1806 = vmatmul.mubr.bf16.gmra.mrb[112].mxu0 %v3177_v42  ;;  %v1840_v51 = vmax.f32 %v1592_v44, 0.0 }
 0x128   : > { %1524 = vmatprep.mubr.bf16.mxu1 %v3178_v43  ;;  %1813 = vmatprep.mubr.bf16.mxu0 %v3180_v48 }
 0x129   : > { %v1841_v52 = vmax.f32 %v1595_v50, 0.0 }
 0x12a   : > { %v1310_v53 = vpop.f32.mrb[8].mxu1  ;;  %v1599_v56 = vpop.f32.mrb[8].mxu0 }
 0x12b   : > { %v2636_v54 = vpack.c.bf16 %v1841_v52, %v1840_v51  ;;  %v1311_v55 = vadd.f32 %v3512_v15, %v1310_v53  ;;  %v1312_v57 = vpop.f32.mrb[9].mxu1  ;;  %v1601_v59 = vpop.f32.mrb[9].mxu0 }
 0x12c   : > { %v1313_v60 = vpop.f32.mrb[10].mxu1  ;;  %v1602_v1 = vpop.f32.mrb[10].mxu0 }
 0x12d   : > { %2788 = vst [vmem:[%s3524_s21 + $0x8] sm:$0xff] %v2636_v54   ;;  %v1600_v63 = vadd.f32 %v1599_v56, %v1311_v55  ;;  %v1314_v0 = vadd.f32 %v3512_v15, %v1313_v60  ;;  %v1315_v2 = vpop.f32.mrb[11].mxu1  ;;  %v1604_v4 = vpop.f32.mrb[11].mxu0 }
 0x12f   : > { %v1603_v5 = vadd.f32 %v1602_v1, %v1314_v0  ;;  %1525 = vmatmul.mubr.bf16.gmra.mrb[116].mxu1 %v3182_v58  ;;  %1814 = vmatmul.mubr.bf16.gmra.mrb[116].mxu0 %v3183_v61  ;;  %v1842_v6 = vmax.f32 %v1600_v63, 0.0 }
 0x130   : > { %1532 = vmatprep.mubr.bf16.mxu1 %v3184_v62  ;;  %1821 = vmatprep.mubr.bf16.mxu0 %v3186_v3 }
 0x131   : > { %v1843_v7 = vmax.f32 %v1603_v5, 0.0 }
 0x132   : > { %v1318_v8 = vpop.f32.mrb[12].mxu1  ;;  %v1607_v11 = vpop.f32.mrb[12].mxu0 }
 0x133   : > { %v2641_v9 = vpack.c.bf16 %v1843_v7, %v1842_v6  ;;  %v1319_v10 = vadd.f32 %v3512_v15, %v1318_v8  ;;  %v1320_v12 = vpop.f32.mrb[13].mxu1  ;;  %v1609_v14 = vpop.f32.mrb[13].mxu0 }
 0x134   : > { %v1321_v16 = vpop.f32.mrb[14].mxu1  ;;  %v1610_v21 = vpop.f32.mrb[14].mxu0 }
 0x135   : > { %2789 = vst [vmem:[%s3524_s21 + $0x10] sm:$0xff] %v2641_v9   ;;  %v1608_v19 = vadd.f32 %v1607_v11, %v1319_v10  ;;  %v1322_v20 = vadd.f32 %v3512_v15, %v1321_v16  ;;  %v1323_v22 = vpop.f32.mrb[15].mxu1  ;;  %v1612_v24 = vpop.f32.mrb[15].mxu0 }
 0x137   : > { %v1611_v25 = vadd.f32 %v1610_v21, %v1322_v20  ;;  %1533 = vmatmul.mubr.bf16.gmra.mrb[120].mxu1 %v3188_v13  ;;  %1822 = vmatmul.mubr.bf16.gmra.mrb[120].mxu0 %v3189_v17  ;;  %v1844_v26 = vmax.f32 %v1608_v19, 0.0 }
 0x138   : > { %1540 = vmatprep.mubr.bf16.mxu1 %v3190_v18  ;;  %1829 = vmatprep.mubr.bf16.mxu0 %v3192_v23 }
 0x139   : > { %v1845_v27 = vmax.f32 %v1611_v25, 0.0 }
 0x13a   : > { %v1326_v28 = vpop.f32.mrb[16].mxu1  ;;  %v1615_v31 = vpop.f32.mrb[16].mxu0 }
 0x13b   : > { %v2646_v29 = vpack.c.bf16 %v1845_v27, %v1844_v26  ;;  %v1327_v30 = vadd.f32 %v3512_v15, %v1326_v28  ;;  %v1328_v32 = vpop.f32.mrb[17].mxu1  ;;  %v1617_v34 = vpop.f32.mrb[17].mxu0 }
 0x13c   : > { %v1329_v35 = vpop.f32.mrb[18].mxu1  ;;  %v1618_v39 = vpop.f32.mrb[18].mxu0 }
 0x13d   : > { %2790 = vst [vmem:[%s3524_s21 + $0x18] sm:$0xff] %v2646_v29   ;;  %v1616_v37 = vadd.f32 %v1615_v31, %v1327_v30  ;;  %v1330_v38 = vadd.f32 %v3512_v15, %v1329_v35  ;;  %v1331_v40 = vpop.f32.mrb[19].mxu1  ;;  %v1620_v41 = vpop.f32.mrb[19].mxu0 }
 0x13f   : > { %v1619_v42 = vadd.f32 %v1618_v39, %v1330_v38  ;;  %1541 = vmatmul.mubr.bf16.gmra.mrb[124].mxu1 %v3194_v33  ;;  %1830 = vmatmul.mubr.bf16.gmra.mrb[124].mxu0 %v3195_v36  ;;  %v1846_v43 = vmax.f32 %v1616_v37, 0.0 }
 0x141   : > { %v1847_v44 = vmax.f32 %v1619_v42, 0.0 }
 0x142   : > { %v1334_v45 = vpop.f32.mrb[20].mxu1  ;;  %v1623_v48 = vpop.f32.mrb[20].mxu0 }
 0x143   : > { %v2651_v46 = vpack.c.bf16 %v1847_v44, %v1846_v43  ;;  %v1335_v47 = vadd.f32 %v3512_v15, %v1334_v45  ;;  %v1336_v49 = vpop.f32.mrb[21].mxu1  ;;  %v1625_v50 = vpop.f32.mrb[21].mxu0 }
 0x144   : > { %v1337_v51 = vpop.f32.mrb[22].mxu1  ;;  %v1626_v54 = vpop.f32.mrb[22].mxu0 }
 0x145   : > { %2791 = vst [vmem:[%s3524_s21 + $0x20] sm:$0xff] %v2651_v46   ;;  %v1624_v52 = vadd.f32 %v1623_v48, %v1335_v47  ;;  %v1338_v53 = vadd.f32 %v3512_v15, %v1337_v51  ;;  %v1339_v55 = vpop.f32.mrb[23].mxu1  ;;  %v1628_v56 = vpop.f32.mrb[23].mxu0 }
 0x147   : > { %v1627_v57 = vadd.f32 %v1626_v54, %v1338_v53  ;;  %v1848_v58 = vmax.f32 %v1624_v52, 0.0 }
 0x149   : > { %v1849_v59 = vmax.f32 %v1627_v57, 0.0 }
 0x14a   : > { %v1342_v60 = vpop.f32.mrb[24].mxu1  ;;  %v1631_v63 = vpop.f32.mrb[24].mxu0 }
 0x14b   : > { %v2656_v61 = vpack.c.bf16 %v1849_v59, %v1848_v58  ;;  %v1343_v62 = vadd.f32 %v3512_v15, %v1342_v60  ;;  %v1344_v0 = vpop.f32.mrb[25].mxu1  ;;  %v1633_v1 = vpop.f32.mrb[25].mxu0 }
 0x14c   : > { %v1345_v2 = vpop.f32.mrb[26].mxu1  ;;  %v1634_v5 = vpop.f32.mrb[26].mxu0 }
 0x14d   : > { %2792 = vst [vmem:[%s3524_s21 + $0x28] sm:$0xff] %v2656_v61   ;;  %v1632_v3 = vadd.f32 %v1631_v63, %v1343_v62  ;;  %v1346_v4 = vadd.f32 %v3512_v15, %v1345_v2  ;;  %v1347_v6 = vpop.f32.mrb[27].mxu1  ;;  %v1636_v7 = vpop.f32.mrb[27].mxu0 }
 0x14f   : > { %v1635_v8 = vadd.f32 %v1634_v5, %v1346_v4  ;;  %v1850_v9 = vmax.f32 %v1632_v3, 0.0 }
 0x151   : > { %v1851_v10 = vmax.f32 %v1635_v8, 0.0 }
 0x152   : > { %v1350_v11 = vpop.f32.mrb[28].mxu1  ;;  %v1639_v14 = vpop.f32.mrb[28].mxu0 }
 0x153   : > { %v2661_v12 = vpack.c.bf16 %v1851_v10, %v1850_v9  ;;  %v1351_v13 = vadd.f32 %v3512_v15, %v1350_v11  ;;  %v1352_v16 = vpop.f32.mrb[29].mxu1  ;;  %v1641_v17 = vpop.f32.mrb[29].mxu0 }
 0x154   : > { %v1353_v18 = vpop.f32.mrb[30].mxu1  ;;  %v1642_v21 = vpop.f32.mrb[30].mxu0 }
 0x155   : > { %2793 = vst [vmem:[%s3524_s21 + $0x30] sm:$0xff] %v2661_v12   ;;  %v1640_v19 = vadd.f32 %v1639_v14, %v1351_v13  ;;  %v1354_v20 = vadd.f32 %v3512_v15, %v1353_v18  ;;  %v1355_v22 = vpop.f32.mrb[31].mxu1  ;;  %v1644_v23 = vpop.f32.mrb[31].mxu0 }
 0x157   : > { %v1643_v24 = vadd.f32 %v1642_v21, %v1354_v20  ;;  %v1852_v25 = vmax.f32 %v1640_v19, 0.0 }
 0x159   : > { %v1853_v26 = vmax.f32 %v1643_v24, 0.0 }
 0x15a   : > { %v1358_v27 = vpop.f32.mrb[32].mxu1  ;;  %v1647_v30 = vpop.f32.mrb[32].mxu0 }
 0x15b   : > { %v2666_v28 = vpack.c.bf16 %v1853_v26, %v1852_v25  ;;  %v1359_v29 = vadd.f32 %v3512_v15, %v1358_v27  ;;  %v1360_v31 = vpop.f32.mrb[33].mxu1  ;;  %v1649_v32 = vpop.f32.mrb[33].mxu0 }
 0x15c   : > { %v1361_v33 = vpop.f32.mrb[34].mxu1  ;;  %v1650_v36 = vpop.f32.mrb[34].mxu0 }
 0x15d   : > { %2794 = vst [vmem:[%s3524_s21 + $0x38] sm:$0xff] %v2666_v28   ;;  %v1648_v34 = vadd.f32 %v1647_v30, %v1359_v29  ;;  %v1362_v35 = vadd.f32 %v3512_v15, %v1361_v33  ;;  %v1363_v37 = vpop.f32.mrb[35].mxu1  ;;  %v1652_v38 = vpop.f32.mrb[35].mxu0 }
 0x15f   : > { %v1651_v39 = vadd.f32 %v1650_v36, %v1362_v35  ;;  %v1854_v40 = vmax.f32 %v1648_v34, 0.0 }
 0x161   : > { %v1855_v41 = vmax.f32 %v1651_v39, 0.0 }
 0x162   : > { %v1366_v42 = vpop.f32.mrb[36].mxu1  ;;  %v1655_v45 = vpop.f32.mrb[36].mxu0 }
 0x163   : > { %v2671_v43 = vpack.c.bf16 %v1855_v41, %v1854_v40  ;;  %v1367_v44 = vadd.f32 %v3512_v15, %v1366_v42  ;;  %v1368_v46 = vpop.f32.mrb[37].mxu1  ;;  %v1657_v47 = vpop.f32.mrb[37].mxu0 }
 0x164   : > { %v1369_v48 = vpop.f32.mrb[38].mxu1  ;;  %v1658_v51 = vpop.f32.mrb[38].mxu0 }
 0x165   : > { %2795 = vst [vmem:[%s3524_s21 + $0x40] sm:$0xff] %v2671_v43   ;;  %v1656_v49 = vadd.f32 %v1655_v45, %v1367_v44  ;;  %v1370_v50 = vadd.f32 %v3512_v15, %v1369_v48  ;;  %v1371_v52 = vpop.f32.mrb[39].mxu1  ;;  %v1660_v53 = vpop.f32.mrb[39].mxu0 }
 0x167   : > { %v1659_v54 = vadd.f32 %v1658_v51, %v1370_v50  ;;  %v1856_v55 = vmax.f32 %v1656_v49, 0.0 }
 0x169   : > { %v1857_v56 = vmax.f32 %v1659_v54, 0.0 }
 0x16a   : > { %v1374_v57 = vpop.f32.mrb[40].mxu1  ;;  %v1663_v60 = vpop.f32.mrb[40].mxu0 }
 0x16b   : > { %v2676_v58 = vpack.c.bf16 %v1857_v56, %v1856_v55  ;;  %v1375_v59 = vadd.f32 %v3512_v15, %v1374_v57  ;;  %v1376_v61 = vpop.f32.mrb[41].mxu1  ;;  %v1665_v62 = vpop.f32.mrb[41].mxu0 }
 0x16c   : > { %v1377_v63 = vpop.f32.mrb[42].mxu1  ;;  %v1666_v2 = vpop.f32.mrb[42].mxu0 }
 0x16d   : > { %2796 = vst [vmem:[%s3524_s21 + $0x48] sm:$0xff] %v2676_v58   ;;  %v1664_v0 = vadd.f32 %v1663_v60, %v1375_v59  ;;  %v1378_v1 = vadd.f32 %v3512_v15, %v1377_v63  ;;  %v1379_v3 = vpop.f32.mrb[43].mxu1  ;;  %v1668_v4 = vpop.f32.mrb[43].mxu0 }
 0x16f   : > { %v1667_v5 = vadd.f32 %v1666_v2, %v1378_v1  ;;  %v1858_v6 = vmax.f32 %v1664_v0, 0.0 }
 0x171   : > { %v1859_v7 = vmax.f32 %v1667_v5, 0.0 }
 0x172   : > { %v1382_v8 = vpop.f32.mrb[44].mxu1  ;;  %v1671_v11 = vpop.f32.mrb[44].mxu0 }
 0x173   : > { %v2681_v9 = vpack.c.bf16 %v1859_v7, %v1858_v6  ;;  %v1383_v10 = vadd.f32 %v3512_v15, %v1382_v8  ;;  %v1384_v12 = vpop.f32.mrb[45].mxu1  ;;  %v1673_v13 = vpop.f32.mrb[45].mxu0 }
 0x174   : > { %v1385_v14 = vpop.f32.mrb[46].mxu1  ;;  %v1674_v18 = vpop.f32.mrb[46].mxu0 }
 0x175   : > { %2797 = vst [vmem:[%s3524_s21 + $0x50] sm:$0xff] %v2681_v9   ;;  %v1672_v16 = vadd.f32 %v1671_v11, %v1383_v10  ;;  %v1386_v17 = vadd.f32 %v3512_v15, %v1385_v14  ;;  %v1387_v19 = vpop.f32.mrb[47].mxu1  ;;  %v1676_v20 = vpop.f32.mrb[47].mxu0 }
 0x177   : > { %v1675_v21 = vadd.f32 %v1674_v18, %v1386_v17  ;;  %v1860_v22 = vmax.f32 %v1672_v16, 0.0 }
 0x179   : > { %v1861_v23 = vmax.f32 %v1675_v21, 0.0 }
 0x17a   : > { %v1390_v24 = vpop.f32.mrb[48].mxu1  ;;  %v1679_v27 = vpop.f32.mrb[48].mxu0 }
 0x17b   : > { %v2686_v25 = vpack.c.bf16 %v1861_v23, %v1860_v22  ;;  %v1391_v26 = vadd.f32 %v3512_v15, %v1390_v24  ;;  %v1392_v28 = vpop.f32.mrb[49].mxu1  ;;  %v1681_v29 = vpop.f32.mrb[49].mxu0 }
 0x17c   : > { %v1393_v30 = vpop.f32.mrb[50].mxu1  ;;  %v1682_v33 = vpop.f32.mrb[50].mxu0 }
 0x17d   : > { %2798 = vst [vmem:[%s3524_s21 + $0x58] sm:$0xff] %v2686_v25   ;;  %v1680_v31 = vadd.f32 %v1679_v27, %v1391_v26  ;;  %v1394_v32 = vadd.f32 %v3512_v15, %v1393_v30  ;;  %v1395_v34 = vpop.f32.mrb[51].mxu1  ;;  %v1684_v35 = vpop.f32.mrb[51].mxu0 }
 0x17f   : > { %v1683_v36 = vadd.f32 %v1682_v33, %v1394_v32  ;;  %v1862_v37 = vmax.f32 %v1680_v31, 0.0 }
 0x181   : > { %v1863_v38 = vmax.f32 %v1683_v36, 0.0 }
 0x182   : > { %v1398_v39 = vpop.f32.mrb[52].mxu1  ;;  %v1687_v42 = vpop.f32.mrb[52].mxu0 }
 0x183   : > { %v2691_v40 = vpack.c.bf16 %v1863_v38, %v1862_v37  ;;  %v1399_v41 = vadd.f32 %v3512_v15, %v1398_v39  ;;  %v1400_v43 = vpop.f32.mrb[53].mxu1  ;;  %v1689_v44 = vpop.f32.mrb[53].mxu0 }
 0x184   : > { %v1401_v45 = vpop.f32.mrb[54].mxu1  ;;  %v1690_v48 = vpop.f32.mrb[54].mxu0 }
 0x185   : > { %2799 = vst [vmem:[%s3524_s21 + $0x60] sm:$0xff] %v2691_v40   ;;  %v1688_v46 = vadd.f32 %v1687_v42, %v1399_v41  ;;  %v1402_v47 = vadd.f32 %v3512_v15, %v1401_v45  ;;  %v1403_v49 = vpop.f32.mrb[55].mxu1  ;;  %v1692_v50 = vpop.f32.mrb[55].mxu0 }
 0x187   : > { %v1691_v51 = vadd.f32 %v1690_v48, %v1402_v47  ;;  %v1864_v52 = vmax.f32 %v1688_v46, 0.0 }
 0x189   : > { %v1865_v53 = vmax.f32 %v1691_v51, 0.0 }
 0x18a   : > { %v1406_v54 = vpop.f32.mrb[56].mxu1  ;;  %v1695_v57 = vpop.f32.mrb[56].mxu0 }
 0x18b   : > { %v2696_v55 = vpack.c.bf16 %v1865_v53, %v1864_v52  ;;  %v1407_v56 = vadd.f32 %v3512_v15, %v1406_v54  ;;  %v1408_v58 = vpop.f32.mrb[57].mxu1  ;;  %v1697_v59 = vpop.f32.mrb[57].mxu0 }
 0x18c   : > { %v1409_v60 = vpop.f32.mrb[58].mxu1  ;;  %v1698_v63 = vpop.f32.mrb[58].mxu0 }
 0x18d   : > { %2800 = vst [vmem:[%s3524_s21 + $0x68] sm:$0xff] %v2696_v55   ;;  %v1696_v61 = vadd.f32 %v1695_v57, %v1407_v56  ;;  %v1410_v62 = vadd.f32 %v3512_v15, %v1409_v60  ;;  %v1411_v0 = vpop.f32.mrb[59].mxu1  ;;  %v1700_v1 = vpop.f32.mrb[59].mxu0 }
 0x18f   : > { %v1699_v2 = vadd.f32 %v1698_v63, %v1410_v62  ;;  %v1866_v3 = vmax.f32 %v1696_v61, 0.0 }
 0x191   : > { %v1867_v4 = vmax.f32 %v1699_v2, 0.0 }
 0x192   : > { %v1414_v5 = vpop.f32.mrb[60].mxu1  ;;  %v1703_v8 = vpop.f32.mrb[60].mxu0 }
 0x193   : > { %v2701_v6 = vpack.c.bf16 %v1867_v4, %v1866_v3  ;;  %v1415_v7 = vadd.f32 %v3512_v15, %v1414_v5  ;;  %v1416_v9 = vpop.f32.mrb[61].mxu1  ;;  %v1705_v10 = vpop.f32.mrb[61].mxu0 }
 0x194   : > { %v1417_v11 = vpop.f32.mrb[62].mxu1  ;;  %v1706_v14 = vpop.f32.mrb[62].mxu0 }
 0x195   : > { %2801 = vst [vmem:[%s3524_s21 + $0x70] sm:$0xff] %v2701_v6   ;;  %v1704_v12 = vadd.f32 %v1703_v8, %v1415_v7  ;;  %v1418_v13 = vadd.f32 %v3512_v15, %v1417_v11  ;;  %v1419_v16 = vpop.f32.mrb[63].mxu1  ;;  %v1708_v17 = vpop.f32.mrb[63].mxu0 }
 0x197   : > { %v1707_v18 = vadd.f32 %v1706_v14, %v1418_v13  ;;  %v1868_v19 = vmax.f32 %v1704_v12, 0.0 }
 0x199   : > { %v1869_v20 = vmax.f32 %v1707_v18, 0.0 }
 0x19a   : > { %v1422_v21 = vpop.f32.mrb[64].mxu1  ;;  %v1711_v24 = vpop.f32.mrb[64].mxu0 }
 0x19b   : > { %v2706_v22 = vpack.c.bf16 %v1869_v20, %v1868_v19  ;;  %v1423_v23 = vadd.f32 %v3512_v15, %v1422_v21  ;;  %v1424_v25 = vpop.f32.mrb[65].mxu1  ;;  %v1713_v26 = vpop.f32.mrb[65].mxu0 }
 0x19c   : > { %v1425_v27 = vpop.f32.mrb[66].mxu1  ;;  %v1714_v30 = vpop.f32.mrb[66].mxu0 }
 0x19d   : > { %2802 = vst [vmem:[%s3524_s21 + $0x78] sm:$0xff] %v2706_v22   ;;  %v1712_v28 = vadd.f32 %v1711_v24, %v1423_v23  ;;  %v1426_v29 = vadd.f32 %v3512_v15, %v1425_v27  ;;  %v1427_v31 = vpop.f32.mrb[67].mxu1  ;;  %v1716_v32 = vpop.f32.mrb[67].mxu0 }
 0x19f   : > { %v1715_v33 = vadd.f32 %v1714_v30, %v1426_v29  ;;  %v1870_v34 = vmax.f32 %v1712_v28, 0.0 }
 0x1a1   : > { %v1871_v35 = vmax.f32 %v1715_v33, 0.0 }
 0x1a2   : > { %v1430_v36 = vpop.f32.mrb[68].mxu1  ;;  %v1719_v39 = vpop.f32.mrb[68].mxu0 }
 0x1a3   : > { %v2711_v37 = vpack.c.bf16 %v1871_v35, %v1870_v34  ;;  %v1431_v38 = vadd.f32 %v3512_v15, %v1430_v36  ;;  %v1432_v40 = vpop.f32.mrb[69].mxu1  ;;  %v1721_v41 = vpop.f32.mrb[69].mxu0 }
 0x1a4   : > { %v1433_v42 = vpop.f32.mrb[70].mxu1  ;;  %v1722_v45 = vpop.f32.mrb[70].mxu0 }
 0x1a5   : > { %2803 = vst [vmem:[%s3524_s21 + $0x80] sm:$0xff] %v2711_v37   ;;  %v1720_v43 = vadd.f32 %v1719_v39, %v1431_v38  ;;  %v1434_v44 = vadd.f32 %v3512_v15, %v1433_v42  ;;  %v1435_v46 = vpop.f32.mrb[71].mxu1  ;;  %v1724_v47 = vpop.f32.mrb[71].mxu0 }
 0x1a7   : > { %v1723_v48 = vadd.f32 %v1722_v45, %v1434_v44  ;;  %v1872_v49 = vmax.f32 %v1720_v43, 0.0 }
 0x1a9   : > { %v1873_v50 = vmax.f32 %v1723_v48, 0.0 }
 0x1aa   : > { %v1438_v51 = vpop.f32.mrb[72].mxu1  ;;  %v1727_v54 = vpop.f32.mrb[72].mxu0 }
 0x1ab   : > { %v2716_v52 = vpack.c.bf16 %v1873_v50, %v1872_v49  ;;  %v1439_v53 = vadd.f32 %v3512_v15, %v1438_v51  ;;  %v1440_v55 = vpop.f32.mrb[73].mxu1  ;;  %v1729_v56 = vpop.f32.mrb[73].mxu0 }
 0x1ac   : > { %v1441_v57 = vpop.f32.mrb[74].mxu1  ;;  %v1730_v60 = vpop.f32.mrb[74].mxu0 }
 0x1ad   : > { %2804 = vst [vmem:[%s3524_s21 + $0x88] sm:$0xff] %v2716_v52   ;;  %v1728_v58 = vadd.f32 %v1727_v54, %v1439_v53  ;;  %v1442_v59 = vadd.f32 %v3512_v15, %v1441_v57  ;;  %v1443_v61 = vpop.f32.mrb[75].mxu1  ;;  %v1732_v62 = vpop.f32.mrb[75].mxu0 }
 0x1af   : > { %v1731_v63 = vadd.f32 %v1730_v60, %v1442_v59  ;;  %v1874_v0 = vmax.f32 %v1728_v58, 0.0 }
 0x1b1   : > { %v1875_v1 = vmax.f32 %v1731_v63, 0.0 }
 0x1b2   : > { %v1446_v2 = vpop.f32.mrb[76].mxu1  ;;  %v1735_v5 = vpop.f32.mrb[76].mxu0 }
 0x1b3   : > { %v2721_v3 = vpack.c.bf16 %v1875_v1, %v1874_v0  ;;  %v1447_v4 = vadd.f32 %v3512_v15, %v1446_v2  ;;  %v1448_v6 = vpop.f32.mrb[77].mxu1  ;;  %v1737_v7 = vpop.f32.mrb[77].mxu0 }
 0x1b4   : > { %v1449_v8 = vpop.f32.mrb[78].mxu1  ;;  %v1738_v11 = vpop.f32.mrb[78].mxu0 }
 0x1b5   : > { %2805 = vst [vmem:[%s3524_s21 + $0x90] sm:$0xff] %v2721_v3   ;;  %v1736_v9 = vadd.f32 %v1735_v5, %v1447_v4  ;;  %v1450_v10 = vadd.f32 %v3512_v15, %v1449_v8  ;;  %v1451_v12 = vpop.f32.mrb[79].mxu1  ;;  %v1740_v13 = vpop.f32.mrb[79].mxu0 }
 0x1b7   : > { %v1739_v14 = vadd.f32 %v1738_v11, %v1450_v10  ;;  %v1876_v16 = vmax.f32 %v1736_v9, 0.0 }
 0x1b9   : > { %v1877_v17 = vmax.f32 %v1739_v14, 0.0 }
 0x1ba   : > { %v1454_v18 = vpop.f32.mrb[80].mxu1  ;;  %v1743_v21 = vpop.f32.mrb[80].mxu0 }
 0x1bb   : > { %v2726_v19 = vpack.c.bf16 %v1877_v17, %v1876_v16  ;;  %v1455_v20 = vadd.f32 %v3512_v15, %v1454_v18  ;;  %v1456_v22 = vpop.f32.mrb[81].mxu1  ;;  %v1745_v23 = vpop.f32.mrb[81].mxu0 }
 0x1bc   : > { %v1457_v24 = vpop.f32.mrb[82].mxu1  ;;  %v1746_v27 = vpop.f32.mrb[82].mxu0 }
 0x1bd   : > { %2806 = vst [vmem:[%s3524_s21 + $0x98] sm:$0xff] %v2726_v19   ;;  %v1744_v25 = vadd.f32 %v1743_v21, %v1455_v20  ;;  %v1458_v26 = vadd.f32 %v3512_v15, %v1457_v24  ;;  %v1459_v28 = vpop.f32.mrb[83].mxu1  ;;  %v1748_v29 = vpop.f32.mrb[83].mxu0 }
 0x1bf   : > { %v1747_v30 = vadd.f32 %v1746_v27, %v1458_v26  ;;  %v1878_v31 = vmax.f32 %v1744_v25, 0.0 }
 0x1c1   : > { %v1879_v32 = vmax.f32 %v1747_v30, 0.0 }
 0x1c2   : > { %v1462_v33 = vpop.f32.mrb[84].mxu1  ;;  %v1751_v36 = vpop.f32.mrb[84].mxu0 }
 0x1c3   : > { %v2731_v34 = vpack.c.bf16 %v1879_v32, %v1878_v31  ;;  %v1463_v35 = vadd.f32 %v3512_v15, %v1462_v33  ;;  %v1464_v37 = vpop.f32.mrb[85].mxu1  ;;  %v1753_v38 = vpop.f32.mrb[85].mxu0 }
 0x1c4   : > { %v1465_v39 = vpop.f32.mrb[86].mxu1  ;;  %v1754_v42 = vpop.f32.mrb[86].mxu0 }
 0x1c5   : > { %2807 = vst [vmem:[%s3524_s21 + $0xa0] sm:$0xff] %v2731_v34   ;;  %v1752_v40 = vadd.f32 %v1751_v36, %v1463_v35  ;;  %v1466_v41 = vadd.f32 %v3512_v15, %v1465_v39  ;;  %v1467_v43 = vpop.f32.mrb[87].mxu1  ;;  %v1756_v44 = vpop.f32.mrb[87].mxu0 }
 0x1c7   : > { %v1755_v45 = vadd.f32 %v1754_v42, %v1466_v41  ;;  %v1880_v46 = vmax.f32 %v1752_v40, 0.0 }
 0x1c9   : > { %v1881_v47 = vmax.f32 %v1755_v45, 0.0 }
 0x1ca   : > { %v1470_v48 = vpop.f32.mrb[88].mxu1  ;;  %v1759_v51 = vpop.f32.mrb[88].mxu0 }
 0x1cb   : > { %v2736_v49 = vpack.c.bf16 %v1881_v47, %v1880_v46  ;;  %v1471_v50 = vadd.f32 %v3512_v15, %v1470_v48  ;;  %v1472_v52 = vpop.f32.mrb[89].mxu1  ;;  %v1761_v53 = vpop.f32.mrb[89].mxu0 }
 0x1cc   : > { %v1473_v54 = vpop.f32.mrb[90].mxu1  ;;  %v1762_v57 = vpop.f32.mrb[90].mxu0 }
 0x1cd   : > { %2808 = vst [vmem:[%s3524_s21 + $0xa8] sm:$0xff] %v2736_v49   ;;  %v1760_v55 = vadd.f32 %v1759_v51, %v1471_v50  ;;  %v1474_v56 = vadd.f32 %v3512_v15, %v1473_v54  ;;  %v1475_v58 = vpop.f32.mrb[91].mxu1  ;;  %v1764_v59 = vpop.f32.mrb[91].mxu0 }
 0x1cf   : > { %v1763_v60 = vadd.f32 %v1762_v57, %v1474_v56  ;;  %v1882_v61 = vmax.f32 %v1760_v55, 0.0 }
 0x1d1   : > { %v1883_v62 = vmax.f32 %v1763_v60, 0.0 }
 0x1d2   : > { %v1478_v63 = vpop.f32.mrb[92].mxu1  ;;  %v1767_v2 = vpop.f32.mrb[92].mxu0 }
 0x1d3   : > { %v2741_v0 = vpack.c.bf16 %v1883_v62, %v1882_v61  ;;  %v1479_v1 = vadd.f32 %v3512_v15, %v1478_v63  ;;  %v1480_v3 = vpop.f32.mrb[93].mxu1  ;;  %v1769_v4 = vpop.f32.mrb[93].mxu0 }
 0x1d4   : > { %v1481_v5 = vpop.f32.mrb[94].mxu1  ;;  %v1770_v8 = vpop.f32.mrb[94].mxu0 }
 0x1d5   : > { %2809 = vst [vmem:[%s3524_s21 + $0xb0] sm:$0xff] %v2741_v0   ;;  %v1768_v6 = vadd.f32 %v1767_v2, %v1479_v1  ;;  %v1482_v7 = vadd.f32 %v3512_v15, %v1481_v5  ;;  %v1483_v9 = vpop.f32.mrb[95].mxu1  ;;  %v1772_v10 = vpop.f32.mrb[95].mxu0 }
 0x1d7   : > { %v1771_v11 = vadd.f32 %v1770_v8, %v1482_v7  ;;  %v1884_v12 = vmax.f32 %v1768_v6, 0.0 }
 0x1d9   : > { %v1885_v13 = vmax.f32 %v1771_v11, 0.0 }
 0x1da   : > { %v1486_v14 = vpop.f32.mrb[96].mxu1  ;;  %v1775_v18 = vpop.f32.mrb[96].mxu0 }
 0x1db   : > { %v2746_v16 = vpack.c.bf16 %v1885_v13, %v1884_v12  ;;  %v1487_v17 = vadd.f32 %v3512_v15, %v1486_v14  ;;  %v1488_v19 = vpop.f32.mrb[97].mxu1  ;;  %v1777_v20 = vpop.f32.mrb[97].mxu0 }
 0x1dc   : > { %v1489_v21 = vpop.f32.mrb[98].mxu1  ;;  %v1778_v24 = vpop.f32.mrb[98].mxu0 }
 0x1dd   : > { %2810 = vst [vmem:[%s3524_s21 + $0xb8] sm:$0xff] %v2746_v16   ;;  %v1776_v22 = vadd.f32 %v1775_v18, %v1487_v17  ;;  %v1490_v23 = vadd.f32 %v3512_v15, %v1489_v21  ;;  %v1491_v25 = vpop.f32.mrb[99].mxu1  ;;  %v1780_v26 = vpop.f32.mrb[99].mxu0 }
 0x1df   : > { %v1779_v27 = vadd.f32 %v1778_v24, %v1490_v23  ;;  %v1886_v28 = vmax.f32 %v1776_v22, 0.0 }
 0x1e1   : > { %v1887_v29 = vmax.f32 %v1779_v27, 0.0 }
 0x1e2   : > { %v1494_v30 = vpop.f32.mrb[100].mxu1  ;;  %v1783_v33 = vpop.f32.mrb[100].mxu0 }
 0x1e3   : > { %v2751_v31 = vpack.c.bf16 %v1887_v29, %v1886_v28  ;;  %v1495_v32 = vadd.f32 %v3512_v15, %v1494_v30  ;;  %v1496_v34 = vpop.f32.mrb[101].mxu1  ;;  %v1785_v35 = vpop.f32.mrb[101].mxu0 }
 0x1e4   : > { %v1497_v36 = vpop.f32.mrb[102].mxu1  ;;  %v1786_v39 = vpop.f32.mrb[102].mxu0  ;;  %v3196_v35 = vld [vmem:[%s3643_s2] ss:$0 sm:$0xff] }
 0x1e5   : > { %2811 = vst [vmem:[%s3524_s21 + $0xc0] sm:$0xff] %v2751_v31   ;;  %v1784_v37 = vadd.f32 %v1783_v33, %v1495_v32  ;;  %v1498_v38 = vadd.f32 %v3512_v15, %v1497_v36  ;;  %v1499_v40 = vpop.f32.mrb[103].mxu1  ;;  %v1788_v41 = vpop.f32.mrb[103].mxu0 }
 0x1e7   : > { %v1787_v42 = vadd.f32 %v1786_v39, %v1498_v38  ;;  %v1888_v43 = vmax.f32 %v1784_v37, 0.0 }
 0x1e9   : > { %v1889_v44 = vmax.f32 %v1787_v42, 0.0 }
 0x1ea   : > { %v1502_v45 = vpop.f32.mrb[104].mxu1  ;;  %v1791_v48 = vpop.f32.mrb[104].mxu0 }
 0x1eb   : > { %v2756_v46 = vpack.c.bf16 %v1889_v44, %v1888_v43  ;;  %v1503_v47 = vadd.f32 %v3512_v15, %v1502_v45  ;;  %v1504_v49 = vpop.f32.mrb[105].mxu1  ;;  %v1793_v50 = vpop.f32.mrb[105].mxu0 }
 0x1ec   : > { %v1505_v51 = vpop.f32.mrb[106].mxu1  ;;  %v1794_v54 = vpop.f32.mrb[106].mxu0 }
 0x1ed   : > { %2812 = vst [vmem:[%s3524_s21 + $0xc8] sm:$0xff] %v2756_v46   ;;  %v1792_v52 = vadd.f32 %v1791_v48, %v1503_v47  ;;  %v1506_v53 = vadd.f32 %v3512_v15, %v1505_v51  ;;  %v1507_v55 = vpop.f32.mrb[107].mxu1  ;;  %v1796_v56 = vpop.f32.mrb[107].mxu0 }
 0x1ef   : > { %v1795_v57 = vadd.f32 %v1794_v54, %v1506_v53  ;;  %v1890_v58 = vmax.f32 %v1792_v52, 0.0 }
 0x1f1   : > { %v1891_v59 = vmax.f32 %v1795_v57, 0.0 }
 0x1f2   : > { %v1510_v60 = vpop.f32.mrb[108].mxu1  ;;  %v1799_v63 = vpop.f32.mrb[108].mxu0 }
 0x1f3   : > { %v2761_v61 = vpack.c.bf16 %v1891_v59, %v1890_v58  ;;  %v1511_v62 = vadd.f32 %v3512_v15, %v1510_v60  ;;  %v1512_v0 = vpop.f32.mrb[109].mxu1  ;;  %v1801_v1 = vpop.f32.mrb[109].mxu0 }
 0x1f4   : > { %v1513_v2 = vpop.f32.mrb[110].mxu1  ;;  %v1802_v5 = vpop.f32.mrb[110].mxu0 }
 0x1f5   : > { %2813 = vst [vmem:[%s3524_s21 + $0xd0] sm:$0xff] %v2761_v61   ;;  %v1800_v3 = vadd.f32 %v1799_v63, %v1511_v62  ;;  %v1514_v4 = vadd.f32 %v3512_v15, %v1513_v2  ;;  %v1515_v6 = vpop.f32.mrb[111].mxu1  ;;  %v1804_v7 = vpop.f32.mrb[111].mxu0 }
 0x1f7   : > { %v1803_v8 = vadd.f32 %v1802_v5, %v1514_v4  ;;  %v1892_v9 = vmax.f32 %v1800_v3, 0.0 }
 0x1f9   : > { %v1893_v10 = vmax.f32 %v1803_v8, 0.0 }
 0x1fa   : > { %v1518_v11 = vpop.f32.mrb[112].mxu1  ;;  %v1807_v14 = vpop.f32.mrb[112].mxu0 }
 0x1fb   : > { %v2766_v12 = vpack.c.bf16 %v1893_v10, %v1892_v9  ;;  %v1519_v13 = vadd.f32 %v3512_v15, %v1518_v11  ;;  %v1520_v16 = vpop.f32.mrb[113].mxu1  ;;  %v1809_v17 = vpop.f32.mrb[113].mxu0 }
 0x1fc   : > { %v1521_v18 = vpop.f32.mrb[114].mxu1  ;;  %v1810_v21 = vpop.f32.mrb[114].mxu0 }
 0x1fd   : > { %2814 = vst [vmem:[%s3524_s21 + $0xd8] sm:$0xff] %v2766_v12   ;;  %v1808_v19 = vadd.f32 %v1807_v14, %v1519_v13  ;;  %v1522_v20 = vadd.f32 %v3512_v15, %v1521_v18  ;;  %v1523_v22 = vpop.f32.mrb[115].mxu1  ;;  %v1812_v23 = vpop.f32.mrb[115].mxu0 }
 0x1ff   : > { %v1811_v24 = vadd.f32 %v1810_v21, %v1522_v20  ;;  %v1894_v25 = vmax.f32 %v1808_v19, 0.0 }
 0x201   : > { %v1895_v26 = vmax.f32 %v1811_v24, 0.0 }
 0x202   : > { %v1526_v27 = vpop.f32.mrb[116].mxu1  ;;  %v1815_v30 = vpop.f32.mrb[116].mxu0 }
 0x203   : > { %v2771_v28 = vpack.c.bf16 %v1895_v26, %v1894_v25  ;;  %v1527_v29 = vadd.f32 %v3512_v15, %v1526_v27  ;;  %v1528_v31 = vpop.f32.mrb[117].mxu1  ;;  %v1817_v32 = vpop.f32.mrb[117].mxu0 }
 0x204   : > { %v1529_v33 = vpop.f32.mrb[118].mxu1  ;;  %v1818_v37 = vpop.f32.mrb[118].mxu0 }
 0x205   : > { %2815 = vst [vmem:[%s3524_s21 + $0xe0] sm:$0xff] %v2771_v28   ;;  %v1816_v34 = vadd.f32 %v1815_v30, %v1527_v29  ;;  %v1530_v36 = vadd.f32 %v3196_v35, %v1529_v33  ;;  %v1531_v38 = vpop.f32.mrb[119].mxu1  ;;  %v1820_v39 = vpop.f32.mrb[119].mxu0 }
 0x207   : > { %v1819_v40 = vadd.f32 %v1818_v37, %v1530_v36  ;;  %v1896_v41 = vmax.f32 %v1816_v34, 0.0 }
 0x209   : > { %v1897_v42 = vmax.f32 %v1819_v40, 0.0 }
 0x20a   : > { %v1534_v43 = vpop.f32.mrb[120].mxu1  ;;  %v1823_v45 = vpop.f32.mrb[120].mxu0 }
 0x20b   : > { %v2776_v15 = vpack.c.bf16 %v1897_v42, %v1896_v41  ;;  %v1535_v44 = vadd.f32 %v3196_v35, %v1534_v43  ;;  %v1536_v46 = vpop.f32.mrb[121].mxu1  ;;  %v1825_v47 = vpop.f32.mrb[121].mxu0 }
 0x20c   : > { %v1537_v48 = vpop.f32.mrb[122].mxu1  ;;  %v1826_v51 = vpop.f32.mrb[122].mxu0 }
 0x20d   : > { %2816 = vst [vmem:[%s3524_s21 + $0xe8] sm:$0xff] %v2776_v15   ;;  %v1824_v49 = vadd.f32 %v1823_v45, %v1535_v44  ;;  %v1538_v50 = vadd.f32 %v3196_v35, %v1537_v48  ;;  %v1539_v52 = vpop.f32.mrb[123].mxu1  ;;  %v1828_v53 = vpop.f32.mrb[123].mxu0 }
 0x20f   : > { %v1827_v54 = vadd.f32 %v1826_v51, %v1538_v50  ;;  %v1898_v55 = vmax.f32 %v1824_v49, 0.0 }
 0x211   : > { %v1899_v56 = vmax.f32 %v1827_v54, 0.0 }
 0x212   : > { %v1542_v57 = vpop.f32.mrb[124].mxu1  ;;  %v1831_v60 = vpop.f32.mrb[124].mxu0 }
 0x213   : > { %v2781_v58 = vpack.c.bf16 %v1899_v56, %v1898_v55  ;;  %v1543_v59 = vadd.f32 %v3196_v35, %v1542_v57  ;;  %v1544_v61 = vpop.f32.mrb[125].mxu1  ;;  %v1833_v62 = vpop.f32.mrb[125].mxu0 }
 0x214   : > { %v1545_v63 = vpop.f32.mrb[126].mxu1  ;;  %v1834_v2 = vpop.f32.mrb[126].mxu0 }
 0x215   : > { %2817 = vst [vmem:[%s3524_s21 + $0xf0] sm:$0xff] %v2781_v58   ;;  %v1832_v0 = vadd.f32 %v1831_v60, %v1543_v59  ;;  %v1546_v1 = vadd.f32 %v3196_v35, %v1545_v63  ;;  %v1547_v3 = vpop.f32.mrb[127].mxu1  ;;  %v1836_v4 = vpop.f32.mrb[127].mxu0 }
 0x217   : > { %v1835_v5 = vadd.f32 %v1834_v2, %v1546_v1  ;;  %v1900_v6 = vmax.f32 %v1832_v0, 0.0 }
 0x219   : > { %v1901_v7 = vmax.f32 %v1835_v5, 0.0 }
 0x21b   : > { %v2786_v8 = vpack.c.bf16 %v1901_v7, %v1900_v6 }
 0x21d   : > { %2818 = vst [vmem:[%s3524_s21 + $0xf8] sm:$0xff] %v2786_v8  }
 0x21e PF: > { %s13_s14 = sadd.s32 1, %s3219_s14   ;;  %s3645_s12 = smov %s3215_s13 }
 0x21f   : > { %p10_p5 = scmp.ge.s32.totalorder %s13_s14, 4   ;;  %s3646_s13 = smov %s3648_s15 }
 0x221   :  { %12 = sbr.rel (!%p10_p5) target bundleno = 2 (0x2), region = 68 }

// kernel: policy_forward.7
= control target key start
LH: loop header
LB: loop body
LE: loop exit
PB: predicated region body
PF: predicated region fallthrough
CT: control target
= control target key end

     0   :  { %s3315_s12 = smov 0   ;;  %s3317_s13 = smov 0   ;;  %s4016_s0 = inlined_call_operand.vmem [shape: bf16[768,640], index: 0, kind: input, shape index: {}]   ;;  %s4017_s1 = inlined_call_operand.vmem [shape: bf16[640,128], index: 1, kind: input, shape index: {}]   ;;  %s4018_s2 = inlined_call_operand.vmem [shape: f32[1,128], index: 2, kind: input, shape index: {}]   ;;  %s4019_s3 = inlined_call_operand.vmem [shape: bf16[768,128], index: 3, kind: output, shape index: {}]  }
   0x1   :  { %s3319_s14 = smov 0  }
   0x2 LB: > { %s25_s15 = sadd.s32 1, %s3288_s13  ;;  %p2395_p0 = scmp.ge.s32.totalorder %s3292_s14, 1  ;;  %s3292_s14 = sphi %s3319_s14, %s13_s14   ;;  %s3288_s13 = sphi %s3317_s13, %s4021_s13   ;;  %s3284_s12 = sphi %s3315_s12, %s4020_s12  }
   0x3   : > { %p27_p1 = scmp.ge.s32.totalorder %s25_s15, 2  ;;  %p170_p2 = scmp.lt.s32.totalorder %s3292_s14, 3 }
   0x5   : > { %s4023_s15 = smov (%p27_p1, %s25_s15), 0  ;;  %p171_p3 = pnand %p2395_p0, %p170_p2 }
   0x6   : > { %v3062_v0 = vld [vmem:[%s4017_s1] sm:$0xff] (!%p171_p3)   ;;  %v3294_v1 = vmov (!%p171_p3), 0   ;;  %v3064_v3 = vld [vmem:[%s4017_s1 + $0x8] sm:$0xff] (!%p171_p3)   ;;  %v3066_v5 = vld [vmem:[%s4017_s1 + $0x10] sm:$0xff] (!%p171_p3)   ;;  %s205_s7 = smul.u32 (!%p171_p3), 48, %s3284_s12 }
   0x7   : > { %174 = sbr.rel (%p171_p3) target bundleno = 526 (0x20e), region = 32  ;;  %1324 = vmatprep.subr.bf16.mxu0 (!%p171_p3), %v3294_v1  ;;  %2896 = vmatprep.subr.bf16.mxu1 (!%p171_p3), %v3294_v1  ;;  %v3343_v2 = vld [vmem:[%s4017_s1 + $0x80] sm:$0xff] (!%p171_p3)   ;;  %v3353_v4 = vld [vmem:[%s4017_s1 + $0x88] sm:$0xff] (!%p171_p3)   ;;  %v3364_v6 = vld [vmem:[%s4017_s1 + $0x90] sm:$0xff] (!%p171_p3)  }
   0x8   : > { %1325 = vmatpush1.bf16.msra.mxu0 (!%p171_p3), %v3062_v0  ;;  %2912 = vmatpush1.bf16.msra.mxu1 (!%p171_p3), %v3343_v2  ;;  %v3068_v7 = vld [vmem:[%s4017_s1 + $0x18] sm:$0xff] (!%p171_p3)   ;;  %v3070_v9 = vld [vmem:[%s4017_s1 + $0x20] sm:$0xff] (!%p171_p3)   ;;  %v3072_v11 = vld [vmem:[%s4017_s1 + $0x28] sm:$0xff] (!%p171_p3)   ;;  %p206_p4 = scmp.lt.s32.totalorder (!%p171_p3), %s205_s7, 95 }
   0x9   : > { %1326 = vmatprep.subr.bf16.mxu0 (!%p171_p3), %v3294_v1  ;;  %2897 = vmatprep.subr.bf16.mxu1 (!%p171_p3), %v3294_v1  ;;  %v3375_v8 = vld [vmem:[%s4017_s1 + $0x98] sm:$0xff] (!%p171_p3)   ;;  %v3387_v10 = vld [vmem:[%s4017_s1 + $0xa0] sm:$0xff] (!%p171_p3)   ;;  %v3398_v12 = vld [vmem:[%s4017_s1 + $0xa8] sm:$0xff] (!%p171_p3)  }
   0xa   : > { %v3074_v13 = vld [vmem:[%s4017_s1 + $0x30] sm:$0xff] (!%p171_p3)   ;;  %v3076_v15 = vld [vmem:[%s4017_s1 + $0x38] sm:$0xff] (!%p171_p3)   ;;  %v3078_v17 = vld [vmem:[%s4017_s1 + $0x40] sm:$0xff] (!%p171_p3)  }
   0xb   : > { %v3411_v14 = vld [vmem:[%s4017_s1 + $0xb0] sm:$0xff] (!%p171_p3)   ;;  %v3423_v16 = vld [vmem:[%s4017_s1 + $0xb8] sm:$0xff] (!%p171_p3)   ;;  %v3439_v18 = vld [vmem:[%s4017_s1 + $0xc0] sm:$0xff] (!%p171_p3)  }
   0xc   : > { %1327 = vmatpush1.bf16.msra.mxu0 (!%p171_p3), %v3064_v3  ;;  %2913 = vmatpush1.bf16.msra.mxu1 (!%p171_p3), %v3353_v4  ;;  %v3080_v20 = vld [vmem:[%s4017_s1 + $0x48] sm:$0xff] (!%p171_p3)   ;;  %v3082_v23 = vld [vmem:[%s4017_s1 + $0x50] sm:$0xff] (!%p171_p3)   ;;  %v3084_v25 = vld [vmem:[%s4017_s1 + $0x58] sm:$0xff] (!%p171_p3)  }
   0xd   : > { %1328 = vmatprep.subr.bf16.mxu0 (!%p171_p3), %v3294_v1  ;;  %2898 = vmatprep.subr.bf16.mxu1 (!%p171_p3), %v3294_v1  ;;  %v3452_v22 = vld [vmem:[%s4017_s1 + $0xc8] sm:$0xff] (!%p171_p3)   ;;  %v3463_v24 = vld [vmem:[%s4017_s1 + $0xd0] sm:$0xff] (!%p171_p3)   ;;  %v3474_v26 = vld [vmem:[%s4017_s1 + $0xd8] sm:$0xff] (!%p171_p3)  }
   0xe   : > { %s4025_s7 = smov (!%p206_p4, %s205_s7), 95  ;;  %v3086_v27 = vld [vmem:[%s4017_s1 + $0x60] sm:$0xff]   ;;  %v3088_v29 = vld [vmem:[%s4017_s1 + $0x68] sm:$0xff]   ;;  %v3090_v31 = vld [vmem:[%s4017_s1 + $0x70] sm:$0xff]  }
   0xf   : > { %s3036_s23 = smul.u32 20, %s4025_s7  ;;  %v3485_v28 = vld [vmem:[%s4017_s1 + $0xe0] sm:$0xff]   ;;  %v3496_v30 = vld [vmem:[%s4017_s1 + $0xe8] sm:$0xff]   ;;  %v3507_v32 = vld [vmem:[%s4017_s1 + $0xf0] sm:$0xff]   ;;  %s2397_s8 = sshll.u32 %s4025_s7, 2 }
  0x10   : > { %1329 = vmatpush1.bf16.msra.mxu0 %v3066_v5  ;;  %2914 = vmatpush1.bf16.msra.mxu1 %v3364_v6  ;;  %v3092_v33 = vld [vmem:[%s4017_s1 + $0x78] sm:$0xff]   ;;  %v3100_v35 = vld [vmem:[%s4017_s1 + $0x100] sm:$0xff]   ;;  %v3113_v40 = vld [vmem:[%s4017_s1 + $0x108] sm:$0xff]   ;;  %s3909_s11 = scalar_lea.vmem %s4019_s3, %s2397_s8 }
  0x11   : > { %1330 = vmatprep.subr.bf16.mxu0 %v3294_v1  ;;  %2899 = vmatprep.subr.bf16.mxu1 %v3294_v1  ;;  %s3432_s30 = scalar_lea.vmem %s4016_s0, %s3036_s23  ;;  %v3518_v34 = vld [vmem:[%s4017_s1 + $0xf8] sm:$0xff]   ;;  %v3126_v42 = vld [vmem:[%s4017_s1 + $0x110] sm:$0xff]   ;;  %v3158_v48 = vld [vmem:[%s4017_s1 + $0x120] sm:$0xff]  }
  0x12   : > { %v3096_v19 = vld [vmem:[%s3432_s30 + $0x4] ss:$20 sps:$4 sm:$0xff]   ;;  %v3099_v21 = vld [vmem:[%s3432_s30 + $0xfc] ss:$20 sps:$4 sm:$0xff]   ;;  %v3094_v36 = vld [vmem:[%s3432_s30] ss:$20 sps:$4 sm:$0xff]  }
  0x13   : > { %1356 = vmatprep.mubr.bf16.mxu0 %v3096_v19  ;;  %1629 = vmatprep.mubr.bf16.mxu1 %v3099_v21  ;;  %v3097_v37 = vld [vmem:[%s3432_s30 + $0xf8] ss:$20 sps:$4 sm:$0xff]   ;;  %v3105_v41 = vld [vmem:[%s3432_s30 + $0x28] ss:$20 sps:$4 sm:$0xff]   ;;  %v3106_v43 = vld [vmem:[%s3432_s30 + $0x120] ss:$20 sps:$4 sm:$0xff]  }
  0x14   : > { %1331 = vmatpush1.bf16.msra.mxu0 %v3068_v7  ;;  %2915 = vmatpush1.bf16.msra.mxu1 %v3375_v8  ;;  %v3101_v38 = vld [vmem:[%s3432_s30 + $0x2c] ss:$20 sps:$4 sm:$0xff]   ;;  %v3103_v39 = vld [vmem:[%s3432_s30 + $0x124] ss:$20 sps:$4 sm:$0xff]   ;;  %v3107_v44 = vld [vmem:[%s3432_s30 + $0x54] ss:$20 sps:$4 sm:$0xff]  }
  0x15   : > { %1332 = vmatprep.subr.bf16.mxu0 %v3294_v1  ;;  %2900 = vmatprep.subr.bf16.mxu1 %v3294_v1  ;;  %v3109_v45 = vld [vmem:[%s3432_s30 + $0x14c] ss:$20 sps:$4 sm:$0xff]   ;;  %v3143_v46 = vld [vmem:[%s4017_s1 + $0x118] sm:$0xff]   ;;  %v3111_v47 = vld [vmem:[%s3432_s30 + $0x50] ss:$20 sps:$4 sm:$0xff]  }
  0x16   : > { %v3112_v49 = vld [vmem:[%s3432_s30 + $0x148] ss:$20 sps:$4 sm:$0xff]   ;;  %v3118_v53 = vld [vmem:[%s3432_s30 + $0x78] ss:$20 sps:$4 sm:$0xff]   ;;  %v3119_v54 = vld [vmem:[%s3432_s30 + $0x170] ss:$20 sps:$4 sm:$0xff]  }
  0x17   : > { %v3114_v50 = vld [vmem:[%s3432_s30 + $0x7c] ss:$20 sps:$4 sm:$0xff]   ;;  %v3116_v51 = vld [vmem:[%s3432_s30 + $0x174] ss:$20 sps:$4 sm:$0xff]   ;;  %v3120_v56 = vld [vmem:[%s3432_s30 + $0xa4] ss:$20 sps:$4 sm:$0xff]  }
  0x18   : > { %1333 = vmatpush1.bf16.msra.mxu0 %v3070_v9  ;;  %2916 = vmatpush1.bf16.msra.mxu1 %v3387_v10  ;;  %v3171_v52 = vld [vmem:[%s4017_s1 + $0x128] sm:$0xff]   ;;  %v3184_v55 = vld [vmem:[%s4017_s1 + $0x130] sm:$0xff]   ;;  %v3201_v58 = vld [vmem:[%s4017_s1 + $0x138] sm:$0xff]  }
  0x19   : > { %1334 = vmatprep.subr.bf16.mxu0 %v3294_v1  ;;  %2901 = vmatprep.subr.bf16.mxu1 %v3294_v1  ;;  %v3122_v57 = vld [vmem:[%s3432_s30 + $0x19c] ss:$20 sps:$4 sm:$0xff]   ;;  %v3124_v59 = vld [vmem:[%s3432_s30 + $0xa0] ss:$20 sps:$4 sm:$0xff]   ;;  %v3125_v60 = vld [vmem:[%s3432_s30 + $0x198] ss:$20 sps:$4 sm:$0xff]  }
  0x1a   : > { %v3127_v61 = vld [vmem:[%s3432_s30 + $0xcc] ss:$20 sps:$4 sm:$0xff]   ;;  %v3129_v62 = vld [vmem:[%s3432_s30 + $0x1c4] ss:$20 sps:$4 sm:$0xff]   ;;  %v3131_v63 = vld [vmem:[%s3432_s30 + $0xc8] ss:$20 sps:$4 sm:$0xff]  }
  0x1b   : > { %v3132_v0 = vld [vmem:[%s3432_s30 + $0x1c0] ss:$20 sps:$4 sm:$0xff]   ;;  %v3138_v5 = vld [vmem:[%s3432_s30 + $0x1e8] ss:$20 sps:$4 sm:$0xff]   ;;  %v3145_v9 = vld [vmem:[%s3432_s30 + $0x210] ss:$20 sps:$4 sm:$0xff]  }
  0x1c   : > { %1335 = vmatpush1.bf16.msra.mxu0 %v3072_v11  ;;  %2917 = vmatpush1.bf16.msra.mxu1 %v3398_v12  ;;  %v3135_v3 = vld [vmem:[%s3432_s30 + $0x1ec] ss:$20 sps:$4 sm:$0xff]   ;;  %v3141_v7 = vld [vmem:[%s3432_s30 + $0x214] ss:$20 sps:$4 sm:$0xff]   ;;  %v3148_v11 = vld [vmem:[%s3432_s30 + $0x23c] ss:$20 sps:$4 sm:$0xff]  }
  0x1d   : > { %1336 = vmatprep.subr.bf16.mxu0 %v3294_v1  ;;  %2902 = vmatprep.subr.bf16.mxu1 %v3294_v1  ;;  %v3163_v19 = vld [vmem:[%s3432_s30 + $0x190] ss:$20 sps:$4 sm:$0xff]  }
  0x1e   : > { %v3165_v21 = vld [vmem:[%s3432_s30 + $0x1bc] ss:$20 sps:$4 sm:$0xff]  }
  0x20   : > { %1337 = vmatpush1.bf16.msra.mxu0 %v3074_v13  ;;  %2918 = vmatpush1.bf16.msra.mxu1 %v3411_v14  ;;  %v3151_v13 = vld [vmem:[%s3432_s30 + $0x238] ss:$20 sps:$4 sm:$0xff]  }
  0x21   : > { %1338 = vmatprep.subr.bf16.mxu0 %v3294_v1  ;;  %2903 = vmatprep.subr.bf16.mxu1 %v3294_v1 }
  0x24   : > { %1339 = vmatpush1.bf16.msra.mxu0 %v3076_v15  ;;  %2919 = vmatpush1.bf16.msra.mxu1 %v3423_v16  ;;  %v3154_v15 = vld [vmem:[%s3432_s30 + $0x264] ss:$20 sps:$4 sm:$0xff]  }
  0x25   : > { %1340 = vmatprep.subr.bf16.mxu0 %v3294_v1  ;;  %2904 = vmatprep.subr.bf16.mxu1 %v3294_v1 }
  0x28   : > { %1341 = vmatpush1.bf16.msra.mxu0 %v3078_v17  ;;  %2920 = vmatpush1.bf16.msra.mxu1 %v3439_v18  ;;  %v3157_v17 = vld [vmem:[%s3432_s30 + $0x260] ss:$20 sps:$4 sm:$0xff]  }
  0x29   : > { %1342 = vmatprep.subr.bf16.mxu0 %v3294_v1  ;;  %2905 = vmatprep.subr.bf16.mxu1 %v3294_v1 }
  0x2c   : > { %1343 = vmatpush1.bf16.msra.mxu0 %v3080_v20  ;;  %2921 = vmatpush1.bf16.msra.mxu1 %v3452_v22  ;;  %v3164_v20 = vld [vmem:[%s3432_s30 + $0x288] ss:$20 sps:$4 sm:$0xff]  }
  0x2d   : > { %1344 = vmatprep.subr.bf16.mxu0 %v3294_v1  ;;  %2906 = vmatprep.subr.bf16.mxu1 %v3294_v1 }
  0x30   : > { %1345 = vmatpush1.bf16.msra.mxu0 %v3082_v23  ;;  %2922 = vmatpush1.bf16.msra.mxu1 %v3463_v24  ;;  %v3169_v23 = vld [vmem:[%s3432_s30 + $0x1b8] ss:$20 sps:$4 sm:$0xff]  }
  0x31   : > { %1346 = vmatprep.subr.bf16.mxu0 %v3294_v1  ;;  %2907 = vmatprep.subr.bf16.mxu1 %v3294_v1 }
  0x34   : > { %1347 = vmatpush1.bf16.msra.mxu0 %v3084_v25  ;;  %2923 = vmatpush1.bf16.msra.mxu1 %v3474_v26  ;;  %v3172_v25 = vld [vmem:[%s3432_s30 + $0x1e4] ss:$20 sps:$4 sm:$0xff]  }
  0x35   : > { %1348 = vmatprep.subr.bf16.mxu0 %v3294_v1  ;;  %2908 = vmatprep.subr.bf16.mxu1 %v3294_v1 }
  0x38   : > { %1349 = vmatpush1.bf16.msra.mxu0 %v3086_v27  ;;  %2924 = vmatpush1.bf16.msra.mxu1 %v3485_v28  ;;  %v3176_v27 = vld [vmem:[%s3432_s30 + $0x1e0] ss:$20 sps:$4 sm:$0xff]  }
  0x39   : > { %1350 = vmatprep.subr.bf16.mxu0 %v3294_v1  ;;  %2909 = vmatprep.subr.bf16.mxu1 %v3294_v1 }
  0x3c   : > { %1351 = vmatpush1.bf16.msra.mxu0 %v3088_v29  ;;  %2925 = vmatpush1.bf16.msra.mxu1 %v3496_v30  ;;  %v3178_v29 = vld [vmem:[%s3432_s30 + $0x20c] ss:$20 sps:$4 sm:$0xff]  }
  0x3d   : > { %1352 = vmatprep.subr.bf16.mxu0 %v3294_v1  ;;  %2910 = vmatprep.subr.bf16.mxu1 %v3294_v1 }
  0x40   : > { %1353 = vmatpush1.bf16.msra.mxu0 %v3090_v31  ;;  %2926 = vmatpush1.bf16.msra.mxu1 %v3507_v32  ;;  %v3182_v31 = vld [vmem:[%s3432_s30 + $0x208] ss:$20 sps:$4 sm:$0xff]  }
  0x41   : > { %1354 = vmatprep.subr.bf16.mxu0 %v3294_v1  ;;  %2911 = vmatprep.subr.bf16.mxu1 %v3294_v1 }
  0x44   : > { %1355 = vmatpush1.bf16.msra.mxu0 %v3092_v33  ;;  %2927 = vmatpush1.bf16.msra.mxu1 %v3518_v34  ;;  %v3185_v33 = vld [vmem:[%s3432_s30 + $0x234] ss:$20 sps:$4 sm:$0xff]  }
  0x45   : > { %1549 = vmatprep.subr.bf16.mxu0 %v3294_v1  ;;  %2832 = vmatprep.subr.bf16.mxu1 %v3100_v35 }
  0x47   : > { %1357 = vmatmul.mubr.bf16.vlgmr.msra.gmra.mrb[0].mxu0 %v3094_v36  ;;  %1630 = vmatmul.mubr.bf16.vlgmr.msra.gmra.mrb[0].mxu1 %v3097_v37  ;;  %v3190_v36 = vld [vmem:[%s3432_s30 + $0x328] ss:$20 sps:$4 sm:$0xff]  }
  0x48   : > { %1550 = vmatpush1.bf16.msra.mxu0 %v3343_v2  ;;  %2833 = vmatpush3.bf16.msra.mxu1 %v3100_v35  ;;  %v3133_v2 = vld [vmem:[%s3432_s30 + $0xf4] ss:$20 sps:$4 sm:$0xff]   ;;  %v3189_v35 = vld [vmem:[%s3432_s30 + $0x230] ss:$20 sps:$4 sm:$0xff]  }
  0x49   : > { %1364 = vmatprep.mubr.bf16.mxu0 %v3101_v38  ;;  %1637 = vmatprep.mubr.bf16.mxu1 %v3103_v39  ;;  %v3191_v37 = vld [vmem:[%s3432_s30 + $0x25c] ss:$20 sps:$4 sm:$0xff]   ;;  %v3193_v38 = vld [vmem:[%s3432_s30 + $0x354] ss:$20 sps:$4 sm:$0xff]   ;;  %v3195_v39 = vld [vmem:[%s3432_s30 + $0x258] ss:$20 sps:$4 sm:$0xff]  }
  0x4a   : > { %1551 = vmatprep.subr.bf16.mxu0 %v3294_v1  ;;  %2834 = vmatprep.subr.bf16.mxu1 %v3113_v40 }
  0x4c   : > { %1552 = vmatpush1.bf16.msra.mxu0 %v3353_v4  ;;  %2835 = vmatpush3.bf16.msra.mxu1 %v3113_v40  ;;  %v3137_v4 = vld [vmem:[%s3432_s30 + $0xf0] ss:$20 sps:$4 sm:$0xff]  }
  0x4d   : > { %1553 = vmatprep.subr.bf16.mxu0 %v3294_v1  ;;  %2836 = vmatprep.subr.bf16.mxu1 %v3126_v42  ;;  %v3196_v40 = vld [vmem:[%s3432_s30 + $0x350] ss:$20 sps:$4 sm:$0xff]  }
  0x4f   : > { %1365 = vmatmul.mubr.bf16.gmra.mrb[4].mxu0 %v3105_v41  ;;  %1638 = vmatmul.mubr.bf16.gmra.mrb[4].mxu1 %v3106_v43  ;;  %v3197_v41 = vld [vmem:[%s3432_s30 + $0x284] ss:$20 sps:$4 sm:$0xff]   ;;  %v3202_v43 = vld [vmem:[%s3432_s30 + $0x280] ss:$20 sps:$4 sm:$0xff]  }
  0x50   : > { %1372 = vmatprep.mubr.bf16.mxu0 %v3107_v44  ;;  %1645 = vmatprep.mubr.bf16.mxu1 %v3109_v45  ;;  %v3203_v44 = vld [vmem:[%s3432_s30 + $0x378] ss:$20 sps:$4 sm:$0xff]  }
  0x51   : > { %1554 = vmatpush1.bf16.msra.mxu0 %v3364_v6  ;;  %2837 = vmatpush3.bf16.msra.mxu1 %v3126_v42  ;;  %v3139_v6 = vld [vmem:[%s3432_s30 + $0x11c] ss:$20 sps:$4 sm:$0xff]   ;;  %v3204_v45 = vld [vmem:[%s3432_s30 + $0x2ac] ss:$20 sps:$4 sm:$0xff]  }
  0x52   : > { %1555 = vmatprep.subr.bf16.mxu0 %v3294_v1  ;;  %2838 = vmatprep.subr.bf16.mxu1 %v3143_v46  ;;  %v3199_v42 = vld [vmem:[%s3432_s30 + $0x37c] ss:$20 sps:$4 sm:$0xff]  }
  0x55   : > { %1556 = vmatpush1.bf16.msra.mxu0 %v3375_v8  ;;  %2839 = vmatpush3.bf16.msra.mxu1 %v3143_v46  ;;  %v3144_v8 = vld [vmem:[%s3432_s30 + $0x118] ss:$20 sps:$4 sm:$0xff]  }
  0x56   : > { %1557 = vmatprep.subr.bf16.mxu0 %v3294_v1  ;;  %2840 = vmatprep.subr.bf16.mxu1 %v3158_v48  ;;  %v3206_v46 = vld [vmem:[%s3432_s30 + $0x3a4] ss:$20 sps:$4 sm:$0xff]  }
  0x57   : > { %1373 = vmatmul.mubr.bf16.gmra.mrb[8].mxu0 %v3111_v47  ;;  %1646 = vmatmul.mubr.bf16.gmra.mrb[8].mxu1 %v3112_v49  ;;  %v3208_v47 = vld [vmem:[%s3432_s30 + $0x2a8] ss:$20 sps:$4 sm:$0xff]  }
  0x58   : > { %1380 = vmatprep.mubr.bf16.mxu0 %v3114_v50  ;;  %1653 = vmatprep.mubr.bf16.mxu1 %v3116_v51  ;;  %v3210_v49 = vld [vmem:[%s3432_s30 + $0x2d4] ss:$20 sps:$4 sm:$0xff]   ;;  %v3212_v50 = vld [vmem:[%s3432_s30 + $0x10] ss:$20 sps:$4 sm:$0xff]  }
  0x59   : > { %1558 = vmatpush1.bf16.msra.mxu0 %v3387_v10  ;;  %2841 = vmatpush3.bf16.msra.mxu1 %v3158_v48  ;;  %v3146_v10 = vld [vmem:[%s3432_s30 + $0x144] ss:$20 sps:$4 sm:$0xff]   ;;  %v3209_v48 = vld [vmem:[%s3432_s30 + $0x3a0] ss:$20 sps:$4 sm:$0xff]  }
  0x5a   : > { %1559 = vmatprep.subr.bf16.mxu0 %v3294_v1  ;;  %2842 = vmatprep.subr.bf16.mxu1 %v3171_v52  ;;  %v3213_v51 = vld [vmem:[%s3432_s30 + $0x2d0] ss:$20 sps:$4 sm:$0xff]  }
  0x5d   : > { %1560 = vmatpush1.bf16.msra.mxu0 %v3398_v12  ;;  %2843 = vmatpush3.bf16.msra.mxu1 %v3171_v52  ;;  %v3150_v12 = vld [vmem:[%s3432_s30 + $0x140] ss:$20 sps:$4 sm:$0xff]   ;;  %v3214_v52 = vld [vmem:[%s3432_s30 + $0x38] ss:$20 sps:$4 sm:$0xff]  }
  0x5e   : > { %1561 = vmatprep.subr.bf16.mxu0 %v3294_v1  ;;  %2844 = vmatprep.subr.bf16.mxu1 %v3184_v55 }
  0x5f   : > { %1381 = vmatmul.mubr.bf16.gmra.mrb[12].mxu0 %v3118_v53  ;;  %1654 = vmatmul.mubr.bf16.gmra.mrb[12].mxu1 %v3119_v54  ;;  %v3215_v53 = vld [vmem:[%s3432_s30 + $0x2fc] ss:$20 sps:$4 sm:$0xff]   ;;  %v3217_v54 = vld [vmem:[%s3432_s30 + $0x60] ss:$20 sps:$4 sm:$0xff]  }
  0x60   : > { %1388 = vmatprep.mubr.bf16.mxu0 %v3120_v56  ;;  %1661 = vmatprep.mubr.bf16.mxu1 %v3122_v57  ;;  %v3219_v56 = vld [vmem:[%s3432_s30 + $0x88] ss:$20 sps:$4 sm:$0xff]   ;;  %v3220_v57 = vld [vmem:[%s3432_s30 + $0x324] ss:$20 sps:$4 sm:$0xff]  }
  0x61   : > { %1562 = vmatpush1.bf16.msra.mxu0 %v3411_v14  ;;  %2845 = vmatpush3.bf16.msra.mxu1 %v3184_v55  ;;  %v3152_v14 = vld [vmem:[%s3432_s30 + $0x16c] ss:$20 sps:$4 sm:$0xff]  }
  0x62   : > { %1563 = vmatprep.subr.bf16.mxu0 %v3294_v1  ;;  %2846 = vmatprep.subr.bf16.mxu1 %v3201_v58  ;;  %v3218_v55 = vld [vmem:[%s3432_s30 + $0x2f8] ss:$20 sps:$4 sm:$0xff]  }
  0x65   : > { %1564 = vmatpush1.bf16.msra.mxu0 %v3423_v16  ;;  %2847 = vmatpush3.bf16.msra.mxu1 %v3201_v58  ;;  %v3156_v16 = vld [vmem:[%s3432_s30 + $0x168] ss:$20 sps:$4 sm:$0xff]   ;;  %v3222_v58 = vld [vmem:[%s3432_s30 + $0xb0] ss:$20 sps:$4 sm:$0xff]  }
  0x66   : > { %1565 = vmatprep.subr.bf16.mxu0 %v3294_v1 }
  0x67   : > { %1389 = vmatmul.mubr.bf16.gmra.mrb[16].mxu0 %v3124_v59  ;;  %1662 = vmatmul.mubr.bf16.gmra.mrb[16].mxu1 %v3125_v60  ;;  %v3223_v59 = vld [vmem:[%s3432_s30 + $0x320] ss:$20 sps:$4 sm:$0xff]   ;;  %v3224_v60 = vld [vmem:[%s3432_s30 + $0xd8] ss:$20 sps:$4 sm:$0xff]  }
  0x68   : > { %1396 = vmatprep.mubr.bf16.mxu0 %v3127_v61  ;;  %1669 = vmatprep.mubr.bf16.mxu1 %v3129_v62  ;;  %v3225_v61 = vld [vmem:[%s3432_s30 + $0x34c] ss:$20 sps:$4 sm:$0xff]  }
  0x69   : > { %1566 = vmatpush1.bf16.msra.mxu0 %v3439_v18  ;;  %v3159_v18 = vld [vmem:[%s3432_s30 + $0x194] ss:$20 sps:$4 sm:$0xff]  }
  0x6a   : > { %1567 = vmatprep.subr.bf16.mxu0 %v3294_v1  ;;  %v3227_v62 = vld [vmem:[%s3432_s30 + $0x100] ss:$20 sps:$4 sm:$0xff]  }
  0x6d   : > { %1568 = vmatpush1.bf16.msra.mxu0 %v3452_v22  ;;  %v3167_v22 = vld [vmem:[%s3432_s30 + $0x2b4] ss:$20 sps:$4 sm:$0xff]  }
  0x6e   : > { %1569 = vmatprep.subr.bf16.mxu0 %v3294_v1 }
  0x6f   : > { %1397 = vmatmul.mubr.bf16.gmra.mrb[20].mxu0 %v3131_v63  ;;  %1670 = vmatmul.mubr.bf16.gmra.mrb[20].mxu1 %v3132_v0  ;;  %v3228_v63 = vld [vmem:[%s3432_s30 + $0x348] ss:$20 sps:$4 sm:$0xff]  }
  0x70   : > { %1404 = vmatprep.mubr.bf16.mxu0 %v3133_v2  ;;  %1677 = vmatprep.mubr.bf16.mxu1 %v3135_v3  ;;  %v3229_v0 = vld [vmem:[%s3432_s30 + $0x128] ss:$20 sps:$4 sm:$0xff]   ;;  %v3232_v3 = vld [vmem:[%s3432_s30 + $0x150] ss:$20 sps:$4 sm:$0xff]  }
  0x71   : > { %1570 = vmatpush1.bf16.msra.mxu0 %v3463_v24  ;;  %v3170_v24 = vld [vmem:[%s3432_s30 + $0x2b0] ss:$20 sps:$4 sm:$0xff]   ;;  %v3230_v2 = vld [vmem:[%s3432_s30 + $0x374] ss:$20 sps:$4 sm:$0xff]  }
  0x72   : > { %1571 = vmatprep.subr.bf16.mxu0 %v3294_v1 }
  0x75   : > { %1572 = vmatpush1.bf16.msra.mxu0 %v3474_v26  ;;  %v3174_v26 = vld [vmem:[%s3432_s30 + $0x2dc] ss:$20 sps:$4 sm:$0xff]  }
  0x76   : > { %1573 = vmatprep.subr.bf16.mxu0 %v3294_v1 }
  0x77   : > { %1405 = vmatmul.mubr.bf16.gmra.mrb[24].mxu0 %v3137_v4  ;;  %1678 = vmatmul.mubr.bf16.gmra.mrb[24].mxu1 %v3138_v5  ;;  %v3233_v4 = vld [vmem:[%s3432_s30 + $0x370] ss:$20 sps:$4 sm:$0xff]   ;;  %v3234_v5 = vld [vmem:[%s3432_s30 + $0x178] ss:$20 sps:$4 sm:$0xff]  }
  0x78   : > { %1412 = vmatprep.mubr.bf16.mxu0 %v3139_v6  ;;  %1685 = vmatprep.mubr.bf16.mxu1 %v3141_v7  ;;  %v3235_v6 = vld [vmem:[%s3432_s30 + $0x39c] ss:$20 sps:$4 sm:$0xff]   ;;  %v3237_v7 = vld [vmem:[%s3432_s30 + $0x1a0] ss:$20 sps:$4 sm:$0xff]  }
  0x79   : > { %1574 = vmatpush1.bf16.msra.mxu0 %v3485_v28  ;;  %v3177_v28 = vld [vmem:[%s3432_s30 + $0x2d8] ss:$20 sps:$4 sm:$0xff]  }
  0x7a   : > { %1575 = vmatprep.subr.bf16.mxu0 %v3294_v1 }
  0x7d   : > { %1576 = vmatpush1.bf16.msra.mxu0 %v3496_v30  ;;  %v3180_v30 = vld [vmem:[%s3432_s30 + $0x304] ss:$20 sps:$4 sm:$0xff]  }
  0x7e   : > { %1577 = vmatprep.subr.bf16.mxu0 %v3294_v1 }
  0x7f   : > { %1413 = vmatmul.mubr.bf16.gmra.mrb[28].mxu0 %v3144_v8  ;;  %1686 = vmatmul.mubr.bf16.gmra.mrb[28].mxu1 %v3145_v9  ;;  %v3238_v8 = vld [vmem:[%s3432_s30 + $0x398] ss:$20 sps:$4 sm:$0xff]   ;;  %v3239_v9 = vld [vmem:[%s3432_s30 + $0x1c8] ss:$20 sps:$4 sm:$0xff]  }
  0x80   : > { %1420 = vmatprep.mubr.bf16.mxu0 %v3146_v10  ;;  %1693 = vmatprep.mubr.bf16.mxu1 %v3148_v11  ;;  %v3242_v10 = vld [vmem:[%s3432_s30 + $0xc] ss:$20 sps:$4 sm:$0xff]   ;;  %v3243_v11 = vld [vmem:[%s3432_s30 + $0x1f0] ss:$20 sps:$4 sm:$0xff]  }
  0x81   : > { %1578 = vmatpush1.bf16.msra.mxu0 %v3507_v32  ;;  %v3183_v32 = vld [vmem:[%s3432_s30 + $0x300] ss:$20 sps:$4 sm:$0xff]  }
  0x82   : > { %1579 = vmatprep.subr.bf16.mxu0 %v3294_v1  ;;  %v3161_v1 = vld [vmem:[%s3432_s30 + $0x28c] ss:$20 sps:$4 sm:$0xff]  }
  0x85   : > { %1580 = vmatpush1.bf16.msra.mxu0 %v3518_v34  ;;  %v3187_v34 = vld [vmem:[%s3432_s30 + $0x32c] ss:$20 sps:$4 sm:$0xff]  }
  0x87   : > { %1421 = vmatmul.mubr.bf16.gmra.mrb[32].mxu0 %v3150_v12  ;;  %1694 = vmatmul.mubr.bf16.gmra.mrb[32].mxu1 %v3151_v13  ;;  %v3240_v12 = vld [vmem:[%s3432_s30 + $0x8] ss:$20 sps:$4 sm:$0xff]   ;;  %v3244_v13 = vld [vmem:[%s3432_s30 + $0x218] ss:$20 sps:$4 sm:$0xff]  }
  0x88   : > { %1428 = vmatprep.mubr.bf16.mxu0 %v3152_v14  ;;  %1701 = vmatprep.mubr.bf16.mxu1 %v3154_v15  ;;  %v3245_v14 = vld [vmem:[%s3432_s30 + $0x34] ss:$20 sps:$4 sm:$0xff]  }
  0x89   : > { %v3247_v15 = vld [vmem:[%s3432_s30 + $0x240] ss:$20 sps:$4 sm:$0xff]  }
  0x8f   : > { %1429 = vmatmul.mubr.bf16.gmra.mrb[36].mxu0 %v3156_v16  ;;  %1702 = vmatmul.mubr.bf16.gmra.mrb[36].mxu1 %v3157_v17  ;;  %v3248_v16 = vld [vmem:[%s3432_s30 + $0x30] ss:$20 sps:$4 sm:$0xff]   ;;  %v3249_v17 = vld [vmem:[%s3432_s30 + $0x268] ss:$20 sps:$4 sm:$0xff]  }
  0x90   : > { %1436 = vmatprep.mubr.bf16.mxu0 %v3159_v18  ;;  %1709 = vmatprep.mubr.bf16.mxu1 %v3161_v1  ;;  %v3250_v18 = vld [vmem:[%s3432_s30 + $0x5c] ss:$20 sps:$4 sm:$0xff]  }
  0x91   : > { %v3252_v1 = vld [vmem:[%s3432_s30 + $0x290] ss:$20 sps:$4 sm:$0xff]  }
  0x97   : > { %1437 = vmatmul.mubr.bf16.gmra.mrb[40].mxu0 %v3163_v19  ;;  %1710 = vmatmul.mubr.bf16.gmra.mrb[40].mxu1 %v3164_v20  ;;  %v3253_v19 = vld [vmem:[%s3432_s30 + $0x58] ss:$20 sps:$4 sm:$0xff]  }
  0x98   : > { %1444 = vmatprep.mubr.bf16.mxu0 %v3165_v21  ;;  %1717 = vmatprep.mubr.bf16.mxu1 %v3167_v22  ;;  %v3254_v20 = vld [vmem:[%s3432_s30 + $0x2b8] ss:$20 sps:$4 sm:$0xff]   ;;  %v3257_v22 = vld [vmem:[%s3432_s30 + $0x2e0] ss:$20 sps:$4 sm:$0xff]  }
  0x99   : > { %v3255_v21 = vld [vmem:[%s3432_s30 + $0x84] ss:$20 sps:$4 sm:$0xff]  }
  0x9f   : > { %1445 = vmatmul.mubr.bf16.gmra.mrb[44].mxu0 %v3169_v23  ;;  %1718 = vmatmul.mubr.bf16.gmra.mrb[44].mxu1 %v3170_v24  ;;  %v3258_v24 = vld [vmem:[%s3432_s30 + $0x80] ss:$20 sps:$4 sm:$0xff]  }
  0xa0   : > { %1452 = vmatprep.mubr.bf16.mxu0 %v3172_v25  ;;  %1725 = vmatprep.mubr.bf16.mxu1 %v3174_v26  ;;  %v3259_v26 = vld [vmem:[%s3432_s30 + $0x308] ss:$20 sps:$4 sm:$0xff]  }
  0xa7   : > { %1453 = vmatmul.mubr.bf16.gmra.mrb[48].mxu0 %v3176_v27  ;;  %1726 = vmatmul.mubr.bf16.gmra.mrb[48].mxu1 %v3177_v28  ;;  %v3260_v27 = vld [vmem:[%s3432_s30 + $0xac] ss:$20 sps:$4 sm:$0xff]  }
  0xa8   : > { %1460 = vmatprep.mubr.bf16.mxu0 %v3178_v29  ;;  %1733 = vmatprep.mubr.bf16.mxu1 %v3180_v30  ;;  %v3262_v29 = vld [vmem:[%s3432_s30 + $0x330] ss:$20 sps:$4 sm:$0xff]  }
  0xaf   : > { %1461 = vmatmul.mubr.bf16.gmra.mrb[52].mxu0 %v3182_v31  ;;  %1734 = vmatmul.mubr.bf16.gmra.mrb[52].mxu1 %v3183_v32  ;;  %v3263_v32 = vld [vmem:[%s3432_s30 + $0xa8] ss:$20 sps:$4 sm:$0xff]  }
  0xb0   : > { %1468 = vmatprep.mubr.bf16.mxu0 %v3185_v33  ;;  %1741 = vmatprep.mubr.bf16.mxu1 %v3187_v34  ;;  %v3264_v34 = vld [vmem:[%s3432_s30 + $0x358] ss:$20 sps:$4 sm:$0xff]  }
  0xb7   : > { %1469 = vmatmul.mubr.bf16.gmra.mrb[56].mxu0 %v3189_v35  ;;  %1742 = vmatmul.mubr.bf16.gmra.mrb[56].mxu1 %v3190_v36  ;;  %v3265_v35 = vld [vmem:[%s3432_s30 + $0xd4] ss:$20 sps:$4 sm:$0xff]  }
  0xb8   : > { %1476 = vmatprep.mubr.bf16.mxu0 %v3191_v37  ;;  %1749 = vmatprep.mubr.bf16.mxu1 %v3193_v38  ;;  %v3267_v37 = vld [vmem:[%s3432_s30 + $0x380] ss:$20 sps:$4 sm:$0xff]  }
  0xbf   : > { %1477 = vmatmul.mubr.bf16.gmra.mrb[60].mxu0 %v3195_v39  ;;  %1750 = vmatmul.mubr.bf16.gmra.mrb[60].mxu1 %v3196_v40  ;;  %v3268_v40 = vld [vmem:[%s3432_s30 + $0xd0] ss:$20 sps:$4 sm:$0xff]  }
  0xc0   : > { %1484 = vmatprep.mubr.bf16.mxu0 %v3197_v41  ;;  %1757 = vmatprep.mubr.bf16.mxu1 %v3199_v42  ;;  %v3269_v42 = vld [vmem:[%s3432_s30 + $0x3a8] ss:$20 sps:$4 sm:$0xff]  }
  0xc7   : > { %1485 = vmatmul.mubr.bf16.gmra.mrb[64].mxu0 %v3202_v43  ;;  %1758 = vmatmul.mubr.bf16.gmra.mrb[64].mxu1 %v3203_v44 }
  0xc8   : > { %1492 = vmatprep.mubr.bf16.mxu0 %v3204_v45  ;;  %1765 = vmatprep.mubr.bf16.mxu1 %v3206_v46 }
  0xcf   : > { %1493 = vmatmul.mubr.bf16.gmra.mrb[68].mxu0 %v3208_v47  ;;  %1766 = vmatmul.mubr.bf16.gmra.mrb[68].mxu1 %v3209_v48 }
  0xd0   : > { %1500 = vmatprep.mubr.bf16.mxu0 %v3210_v49  ;;  %2848 = vmatprep.mubr.bf16.mxu1 %v3212_v50 }
  0xd7   : > { %1501 = vmatmul.mubr.bf16.gmra.mrb[72].mxu0 %v3213_v51  ;;  %2849 = vmatmul.mubr.bf16.vlgmr.msra.gmra.mrb[72].mxu1 %v3214_v52 }
  0xd8   : > { %1508 = vmatprep.mubr.bf16.mxu0 %v3215_v53  ;;  %2852 = vmatprep.mubr.bf16.mxu1 %v3217_v54 }
  0xdf   : > { %1509 = vmatmul.mubr.bf16.gmra.mrb[76].mxu0 %v3218_v55  ;;  %2853 = vmatmul.mubr.bf16.gmra.mrb[76].mxu1 %v3219_v56 }
  0xe0   : > { %1516 = vmatprep.mubr.bf16.mxu0 %v3220_v57  ;;  %2856 = vmatprep.mubr.bf16.mxu1 %v3222_v58  ;;  %v3707_v57 = vld [vmem:[%s4018_s2] ss:$0 sm:$0xff] }
  0xe7   : > { %1517 = vmatmul.mubr.bf16.gmra.mrb[80].mxu0 %v3223_v59  ;;  %2857 = vmatmul.mubr.bf16.gmra.mrb[80].mxu1 %v3224_v60 }
  0xe8   : > { %1524 = vmatprep.mubr.bf16.mxu0 %v3225_v61  ;;  %2860 = vmatprep.mubr.bf16.mxu1 %v3227_v62 }
  0xef   : > { %1525 = vmatmul.mubr.bf16.gmra.mrb[84].mxu0 %v3228_v63  ;;  %2861 = vmatmul.mubr.bf16.gmra.mrb[84].mxu1 %v3229_v0 }
  0xf0   : > { %1532 = vmatprep.mubr.bf16.mxu0 %v3230_v2  ;;  %2864 = vmatprep.mubr.bf16.mxu1 %v3232_v3 }
  0xf7   : > { %1533 = vmatmul.mubr.bf16.gmra.mrb[88].mxu0 %v3233_v4  ;;  %2865 = vmatmul.mubr.bf16.gmra.mrb[88].mxu1 %v3234_v5 }
  0xf8   : > { %1540 = vmatprep.mubr.bf16.mxu0 %v3235_v6  ;;  %2868 = vmatprep.mubr.bf16.mxu1 %v3237_v7 }
  0xff   : > { %1541 = vmatmul.mubr.bf16.gmra.mrb[92].mxu0 %v3238_v8  ;;  %2869 = vmatmul.mubr.bf16.gmra.mrb[92].mxu1 %v3239_v9 }
 0x100   : > { %1581 = vmatprep.mubr.bf16.mxu0 %v3242_v10  ;;  %2872 = vmatprep.mubr.bf16.mxu1 %v3243_v11 }
 0x107   : > { %1582 = vmatmul.mubr.bf16.vlgmr.msra.gmra.mrb[0].mxu0 %v3240_v12  ;;  %2873 = vmatmul.mubr.bf16.gmra.mrb[96].mxu1 %v3244_v13 }
 0x108   : > { %1589 = vmatprep.mubr.bf16.mxu0 %v3245_v14  ;;  %2876 = vmatprep.mubr.bf16.mxu1 %v3247_v15 }
 0x10f   : > { %1590 = vmatmul.mubr.bf16.gmra.mrb[4].mxu0 %v3248_v16  ;;  %2877 = vmatmul.mubr.bf16.gmra.mrb[100].mxu1 %v3249_v17 }
 0x110   : > { %1597 = vmatprep.mubr.bf16.mxu0 %v3250_v18  ;;  %2880 = vmatprep.mubr.bf16.mxu1 %v3252_v1 }
 0x117   : > { %1598 = vmatmul.mubr.bf16.gmra.mrb[8].mxu0 %v3253_v19  ;;  %2881 = vmatmul.mubr.bf16.gmra.mrb[104].mxu1 %v3254_v20 }
 0x118   : > { %1605 = vmatprep.mubr.bf16.mxu0 %v3255_v21  ;;  %2884 = vmatprep.mubr.bf16.mxu1 %v3257_v22 }
 0x11a   : > { %v1631_v23 = vpop.f32.mrb[0].mxu1 }
 0x11b   : > { %v1633_v25 = vpop.f32.mrb[1].mxu1 }
 0x11c   : > { %v1634_v28 = vpop.f32.mrb[2].mxu1 }
 0x11d   : > { %v1636_v30 = vpop.f32.mrb[3].mxu1 }
 0x11f   : > { %1606 = vmatmul.mubr.bf16.gmra.mrb[12].mxu0 %v3258_v24  ;;  %2885 = vmatmul.mubr.bf16.gmra.mrb[108].mxu1 %v3259_v26 }
 0x120   : > { %1613 = vmatprep.mubr.bf16.mxu0 %v3260_v27  ;;  %2888 = vmatprep.mubr.bf16.mxu1 %v3262_v29 }
 0x122   : > { %v1639_v31 = vpop.f32.mrb[4].mxu1 }
 0x123   : > { %v1641_v33 = vpop.f32.mrb[5].mxu1 }
 0x124   : > { %v1642_v36 = vpop.f32.mrb[6].mxu1 }
 0x125   : > { %v1644_v38 = vpop.f32.mrb[7].mxu1 }
 0x127   : > { %1614 = vmatmul.mubr.bf16.gmra.mrb[16].mxu0 %v3263_v32  ;;  %2889 = vmatmul.mubr.bf16.gmra.mrb[112].mxu1 %v3264_v34 }
 0x128   : > { %1621 = vmatprep.mubr.bf16.mxu0 %v3265_v35  ;;  %2892 = vmatprep.mubr.bf16.mxu1 %v3267_v37 }
 0x12a   : > { %v1647_v39 = vpop.f32.mrb[8].mxu1 }
 0x12b   : > { %v1649_v41 = vpop.f32.mrb[9].mxu1 }
 0x12c   : > { %v1650_v43 = vpop.f32.mrb[10].mxu1 }
 0x12d   : > { %v1652_v44 = vpop.f32.mrb[11].mxu1 }
 0x12f   : > { %1622 = vmatmul.mubr.bf16.gmra.mrb[20].mxu0 %v3268_v40  ;;  %2893 = vmatmul.mubr.bf16.gmra.mrb[116].mxu1 %v3269_v42 }
 0x132   : > { %v1655_v45 = vpop.f32.mrb[12].mxu1 }
 0x133   : > { %v1657_v46 = vpop.f32.mrb[13].mxu1 }
 0x134   : > { %v1658_v47 = vpop.f32.mrb[14].mxu1 }
 0x135   : > { %v1660_v48 = vpop.f32.mrb[15].mxu1 }
 0x13a   : > { %v3696_v49 = vpop.f32.mrb[16].mxu1 }
 0x13b   : > { %v1665_v50 = vpop.f32.mrb[17].mxu1 }
 0x13c   : > { %v3698_v51 = vpop.f32.mrb[18].mxu1 }
 0x13d   : > { %v1668_v52 = vpop.f32.mrb[19].mxu1 }
 0x142   : > { %v3700_v53 = vpop.f32.mrb[20].mxu1 }
 0x143   : > { %v1673_v54 = vpop.f32.mrb[21].mxu1 }
 0x144   : > { %v3702_v55 = vpop.f32.mrb[22].mxu1 }
 0x145   : > { %v1676_v56 = vpop.f32.mrb[23].mxu1 }
 0x14a   : > { %v1406_v58 = vpop.f32.mrb[24].mxu0  ;;  %v3710_v60 = vpop.f32.mrb[24].mxu1 }
 0x14b   : > { %v1407_v59 = vadd.f32 %v3707_v57, %v1406_v58  ;;  %v1408_v61 = vpop.f32.mrb[25].mxu0  ;;  %v1681_v62 = vpop.f32.mrb[25].mxu1 }
 0x14c   : > { %v1409_v63 = vpop.f32.mrb[26].mxu0  ;;  %v3713_v2 = vpop.f32.mrb[26].mxu1 }
 0x14d   : > { %v1410_v0 = vadd.f32 %v3707_v57, %v1409_v63  ;;  %v1411_v3 = vpop.f32.mrb[27].mxu0  ;;  %v3715_v4 = vadd.f32 %v1631_v23, %v1407_v59  ;;  %v1684_v5 = vpop.f32.mrb[27].mxu1 }
 0x14f   : > { %v3717_v6 = vadd.f32 %v1634_v28, %v1410_v0 }
 0x152   : > { %v1414_v7 = vpop.f32.mrb[28].mxu0  ;;  %v3720_v9 = vpop.f32.mrb[28].mxu1 }
 0x153   : > { %v1415_v8 = vadd.f32 %v3707_v57, %v1414_v7  ;;  %v1416_v10 = vpop.f32.mrb[29].mxu0  ;;  %v1689_v11 = vpop.f32.mrb[29].mxu1 }
 0x154   : > { %v1417_v12 = vpop.f32.mrb[30].mxu0  ;;  %v3723_v14 = vpop.f32.mrb[30].mxu1 }
 0x155   : > { %v1418_v13 = vadd.f32 %v3707_v57, %v1417_v12  ;;  %v1419_v15 = vpop.f32.mrb[31].mxu0  ;;  %v3725_v16 = vadd.f32 %v1639_v31, %v1415_v8  ;;  %v1692_v17 = vpop.f32.mrb[31].mxu1 }
 0x157   : > { %v3727_v18 = vadd.f32 %v1642_v36, %v1418_v13 }
 0x15a   : > { %v1422_v1 = vpop.f32.mrb[32].mxu0  ;;  %v3730_v20 = vpop.f32.mrb[32].mxu1 }
 0x15b   : > { %v1423_v19 = vadd.f32 %v3707_v57, %v1422_v1  ;;  %v1424_v21 = vpop.f32.mrb[33].mxu0  ;;  %v1697_v22 = vpop.f32.mrb[33].mxu1 }
 0x15c   : > { %v1425_v23 = vpop.f32.mrb[34].mxu0  ;;  %v3733_v25 = vpop.f32.mrb[34].mxu1 }
 0x15d   : > { %v1426_v24 = vadd.f32 %v3707_v57, %v1425_v23  ;;  %v1427_v26 = vpop.f32.mrb[35].mxu0  ;;  %v3735_v27 = vadd.f32 %v1647_v39, %v1423_v19  ;;  %v1700_v28 = vpop.f32.mrb[35].mxu1 }
 0x15f   : > { %v3737_v29 = vadd.f32 %v1650_v43, %v1426_v24 }
 0x162   : > { %v1430_v30 = vpop.f32.mrb[36].mxu0  ;;  %v3740_v32 = vpop.f32.mrb[36].mxu1 }
 0x163   : > { %v1431_v31 = vadd.f32 %v3707_v57, %v1430_v30  ;;  %v1432_v33 = vpop.f32.mrb[37].mxu0  ;;  %v1705_v34 = vpop.f32.mrb[37].mxu1 }
 0x164   : > { %v1433_v35 = vpop.f32.mrb[38].mxu0  ;;  %v3743_v37 = vpop.f32.mrb[38].mxu1 }
 0x165   : > { %v1434_v36 = vadd.f32 %v3707_v57, %v1433_v35  ;;  %v1435_v38 = vpop.f32.mrb[39].mxu0  ;;  %v3745_v40 = vadd.f32 %v1655_v45, %v1431_v31  ;;  %v1708_v39 = vpop.f32.mrb[39].mxu1 }
 0x167   : > { %v3747_v41 = vadd.f32 %v1658_v47, %v1434_v36 }
 0x16a   : > { %v1438_v42 = vpop.f32.mrb[40].mxu0  ;;  %v3750_v44 = vpop.f32.mrb[40].mxu1 }
 0x16b   : > { %v1439_v43 = vadd.f32 %v3707_v57, %v1438_v42  ;;  %v1440_v46 = vpop.f32.mrb[41].mxu0  ;;  %v1713_v48 = vpop.f32.mrb[41].mxu1 }
 0x16c   : > { %v1441_v50 = vpop.f32.mrb[42].mxu0  ;;  %v3753_v54 = vpop.f32.mrb[42].mxu1 }
 0x16d   : > { %v1442_v52 = vadd.f32 %v3707_v57, %v1441_v50  ;;  %v1443_v56 = vpop.f32.mrb[43].mxu0  ;;  %v3756_v58 = vadd.f32 %v3696_v49, %v1439_v43  ;;  %v1716_v45 = vpop.f32.mrb[43].mxu1 }
 0x16f   : > { %v3759_v47 = vadd.f32 %v3698_v51, %v1442_v52 }
 0x172   : > { %v1446_v59 = vpop.f32.mrb[44].mxu0  ;;  %v3762_v62 = vpop.f32.mrb[44].mxu1 }
 0x173   : > { %v1447_v61 = vadd.f32 %v3707_v57, %v1446_v59  ;;  %v1448_v63 = vpop.f32.mrb[45].mxu0  ;;  %v1721_v0 = vpop.f32.mrb[45].mxu1 }
 0x174   : > { %v1449_v3 = vpop.f32.mrb[46].mxu0  ;;  %v3765_v7 = vpop.f32.mrb[46].mxu1 }
 0x175   : > { %v1450_v5 = vadd.f32 %v3707_v57, %v1449_v3  ;;  %v1451_v8 = vpop.f32.mrb[47].mxu0  ;;  %v3768_v49 = vadd.f32 %v3700_v53, %v1447_v61  ;;  %v1724_v10 = vpop.f32.mrb[47].mxu1 }
 0x177   : > { %v3771_v51 = vadd.f32 %v3702_v55, %v1450_v5 }
 0x17a   : > { %v1454_v11 = vpop.f32.mrb[48].mxu0  ;;  %v3774_v13 = vpop.f32.mrb[48].mxu1 }
 0x17b   : > { %v1455_v12 = vadd.f32 %v3707_v57, %v1454_v11  ;;  %v1456_v15 = vpop.f32.mrb[49].mxu0  ;;  %v1729_v17 = vpop.f32.mrb[49].mxu1 }
 0x17c   : > { %v1457_v1 = vpop.f32.mrb[50].mxu0  ;;  %v3777_v21 = vpop.f32.mrb[50].mxu1 }
 0x17d   : > { %v1458_v19 = vadd.f32 %v3707_v57, %v1457_v1  ;;  %v1459_v22 = vpop.f32.mrb[51].mxu0  ;;  %v3780_v53 = vadd.f32 %v3710_v60, %v1455_v12  ;;  %v1732_v23 = vpop.f32.mrb[51].mxu1 }
 0x17f   : > { %v3783_v55 = vadd.f32 %v3713_v2, %v1458_v19 }
 0x182   : > { %v1462_v24 = vpop.f32.mrb[52].mxu0  ;;  %v3786_v28 = vpop.f32.mrb[52].mxu1 }
 0x183   : > { %v1463_v26 = vadd.f32 %v3707_v57, %v1462_v24  ;;  %v1464_v30 = vpop.f32.mrb[53].mxu0  ;;  %v1737_v31 = vpop.f32.mrb[53].mxu1 }
 0x184   : > { %v1465_v33 = vpop.f32.mrb[54].mxu0  ;;  %v3789_v35 = vpop.f32.mrb[54].mxu1 }
 0x185   : > { %v1466_v34 = vadd.f32 %v3707_v57, %v1465_v33  ;;  %v1467_v36 = vpop.f32.mrb[55].mxu0  ;;  %v3792_v60 = vadd.f32 %v3720_v9, %v1463_v26  ;;  %v1740_v38 = vpop.f32.mrb[55].mxu1 }
 0x187   : > { %v3795_v2 = vadd.f32 %v3723_v14, %v1466_v34 }
 0x18a   : > { %v1470_v39 = vpop.f32.mrb[56].mxu0  ;;  %v3798_v43 = vpop.f32.mrb[56].mxu1 }
 0x18b   : > { %v1471_v42 = vadd.f32 %v3707_v57, %v1470_v39  ;;  %v1472_v46 = vpop.f32.mrb[57].mxu0  ;;  %v1745_v48 = vpop.f32.mrb[57].mxu1 }
 0x18c   : > { %v1473_v50 = vpop.f32.mrb[58].mxu0  ;;  %v3801_v56 = vpop.f32.mrb[58].mxu1 }
 0x18d   : > { %v1474_v52 = vadd.f32 %v3707_v57, %v1473_v50  ;;  %v1475_v45 = vpop.f32.mrb[59].mxu0  ;;  %v3804_v9 = vadd.f32 %v3730_v20, %v1471_v42  ;;  %v1748_v59 = vpop.f32.mrb[59].mxu1 }
 0x18f   : > { %v3807_v14 = vadd.f32 %v3733_v25, %v1474_v52 }
 0x192   : > { %v1478_v61 = vpop.f32.mrb[60].mxu0  ;;  %v3810_v0 = vpop.f32.mrb[60].mxu1 }
 0x193   : > { %v1479_v63 = vadd.f32 %v3707_v57, %v1478_v61  ;;  %v1480_v3 = vpop.f32.mrb[61].mxu0  ;;  %v1753_v5 = vpop.f32.mrb[61].mxu1 }
 0x194   : > { %v1481_v8 = vpop.f32.mrb[62].mxu0  ;;  %v3813_v11 = vpop.f32.mrb[62].mxu1 }
 0x195   : > { %v1482_v10 = vadd.f32 %v3707_v57, %v1481_v8  ;;  %v1483_v12 = vpop.f32.mrb[63].mxu0  ;;  %v3816_v20 = vadd.f32 %v3740_v32, %v1479_v63  ;;  %v1756_v15 = vpop.f32.mrb[63].mxu1 }
 0x197   : > { %v3819_v25 = vadd.f32 %v3743_v37, %v1482_v10 }
 0x19a   : > { %v1486_v17 = vpop.f32.mrb[64].mxu0  ;;  %v3822_v19 = vpop.f32.mrb[64].mxu1 }
 0x19b   : > { %v1487_v1 = vadd.f32 %v3707_v57, %v1486_v17  ;;  %v1488_v22 = vpop.f32.mrb[65].mxu0  ;;  %v1761_v23 = vpop.f32.mrb[65].mxu1 }
 0x19c   : > { %v1489_v24 = vpop.f32.mrb[66].mxu0  ;;  %v3825_v30 = vpop.f32.mrb[66].mxu1 }
 0x19d   : > { %v1490_v26 = vadd.f32 %v3707_v57, %v1489_v24  ;;  %v1491_v31 = vpop.f32.mrb[67].mxu0  ;;  %v3828_v32 = vadd.f32 %v3750_v44, %v1487_v1  ;;  %v1764_v33 = vpop.f32.mrb[67].mxu1 }
 0x19f   : > { %v3831_v37 = vadd.f32 %v3753_v54, %v1490_v26 }
 0x1a2   : > { %v1494_v34 = vpop.f32.mrb[68].mxu0  ;;  %v3834_v38 = vpop.f32.mrb[68].mxu1 }
 0x1a3   : > { %v1495_v36 = vadd.f32 %v3707_v57, %v1494_v34  ;;  %v1496_v39 = vpop.f32.mrb[69].mxu0  ;;  %v1769_v42 = vpop.f32.mrb[69].mxu1 }
 0x1a4   : > { %v1497_v46 = vpop.f32.mrb[70].mxu0  ;;  %v3837_v50 = vpop.f32.mrb[70].mxu1 }
 0x1a5   : > { %v1498_v48 = vadd.f32 %v3707_v57, %v1497_v46  ;;  %v1499_v52 = vpop.f32.mrb[71].mxu0  ;;  %v3840_v44 = vadd.f32 %v3762_v62, %v1495_v36  ;;  %v1772_v45 = vpop.f32.mrb[71].mxu1 }
 0x1a7   : > { %v3843_v54 = vadd.f32 %v3765_v7, %v1498_v48 }
 0x1aa   : > { %v1502_v59 = vpop.f32.mrb[72].mxu0  ;;  %v3846_v63 = vpop.f32.mrb[72].mxu1 }
 0x1ab   : > { %v1503_v61 = vadd.f32 %v3707_v57, %v1502_v59  ;;  %v1504_v3 = vpop.f32.mrb[73].mxu0  ;;  %v3848_v5 = vpop.f32.mrb[73].mxu1 }
 0x1ac   : > { %v1505_v8 = vpop.f32.mrb[74].mxu0  ;;  %v3851_v12 = vpop.f32.mrb[74].mxu1 }
 0x1ad   : > { %v1506_v10 = vadd.f32 %v3707_v57, %v1505_v8  ;;  %v1507_v15 = vpop.f32.mrb[75].mxu0  ;;  %v3854_v62 = vadd.f32 %v3774_v13, %v1503_v61  ;;  %v3856_v17 = vpop.f32.mrb[75].mxu1 }
 0x1af   : > { %v3859_v7 = vadd.f32 %v3777_v21, %v1506_v10 }
 0x1b2   : > { %v1510_v1 = vpop.f32.mrb[76].mxu0  ;;  %v3862_v23 = vpop.f32.mrb[76].mxu1 }
 0x1b3   : > { %v1511_v22 = vadd.f32 %v3707_v57, %v1510_v1  ;;  %v1512_v24 = vpop.f32.mrb[77].mxu0  ;;  %v3864_v26 = vpop.f32.mrb[77].mxu1 }
 0x1b4   : > { %v1513_v31 = vpop.f32.mrb[78].mxu0  ;;  %v3867_v34 = vpop.f32.mrb[78].mxu1 }
 0x1b5   : > { %v1514_v33 = vadd.f32 %v3707_v57, %v1513_v31  ;;  %v1515_v13 = vpop.f32.mrb[79].mxu0  ;;  %v3870_v36 = vadd.f32 %v3786_v28, %v1511_v22  ;;  %v3872_v39 = vpop.f32.mrb[79].mxu1 }
 0x1b7   : > { %v3875_v21 = vadd.f32 %v3789_v35, %v1514_v33 }
 0x1ba   : > { %v1518_v42 = vpop.f32.mrb[80].mxu0  ;;  %v3878_v48 = vpop.f32.mrb[80].mxu1 }
 0x1bb   : > { %v1519_v46 = vadd.f32 %v3707_v57, %v1518_v42  ;;  %v1520_v52 = vpop.f32.mrb[81].mxu0  ;;  %v3880_v45 = vpop.f32.mrb[81].mxu1 }
 0x1bc   : > { %v1521_v59 = vpop.f32.mrb[82].mxu0  ;;  %v3883_v3 = vpop.f32.mrb[82].mxu1 }
 0x1bd   : > { %v1522_v61 = vadd.f32 %v3707_v57, %v1521_v59  ;;  %v1523_v28 = vpop.f32.mrb[83].mxu0  ;;  %v3886_v8 = vadd.f32 %v3798_v43, %v1519_v46  ;;  %v3888_v35 = vpop.f32.mrb[83].mxu1 }
 0x1bf   : > { %v3891_v10 = vadd.f32 %v3801_v56, %v1522_v61 }
 0x1c2   : > { %v1526_v15 = vpop.f32.mrb[84].mxu0  ;;  %v2862_v22 = vpop.f32.mrb[84].mxu1 }
 0x1c3   : > { %v1527_v1 = vadd.f32 %v3707_v57, %v1526_v15  ;;  %v1528_v24 = vpop.f32.mrb[85].mxu0  ;;  %v1865_v31 = vadd.f32 %v2862_v22, %v3725_v16  ;;  %v1856_v33 = vpop.f32.mrb[85].mxu1 }
 0x1c4   : > { %v1529_v13 = vpop.f32.mrb[86].mxu0  ;;  %v1857_v42 = vadd.f32 %v1856_v33, %v3715_v4  ;;  %v2863_v43 = vpop.f32.mrb[86].mxu1 }
 0x1c5   : > { %v1530_v52 = vadd.f32 %v3707_v57, %v1529_v13  ;;  %v1531_v46 = vpop.f32.mrb[87].mxu0  ;;  %v3898_v59 = vadd.f32 %v3810_v0, %v1527_v1  ;;  %v1868_v56 = vadd.f32 %v2863_v43, %v3727_v18  ;;  %v1859_v61 = vpop.f32.mrb[87].mxu1  ;;  %v2013_v16 = vmax.f32 %v1865_v31, 0.0 }
 0x1c6   : > { %v1860_v28 = vadd.f32 %v1859_v61, %v3717_v6  ;;  %v2011_v24 = vmax.f32 %v1857_v42, 0.0 }
 0x1c7   : > { %v3904_v15 = vadd.f32 %v3813_v11, %v1530_v52  ;;  %v2014_v22 = vmax.f32 %v1868_v56, 0.0 }
 0x1c8   : > { %v2012_v4 = vmax.f32 %v1860_v28, 0.0 }
 0x1c9   : > { %v2695_v0 = vpack.c.bf16 %v2014_v22, %v2013_v16 }
 0x1ca   : > { %v1534_v1 = vpop.f32.mrb[88].mxu0  ;;  %v2690_v18 = vpack.c.bf16 %v2012_v4, %v2011_v24  ;;  %v2866_v6 = vpop.f32.mrb[88].mxu1 }
 0x1cb   : > { %v1535_v33 = vadd.f32 %v3707_v57, %v1534_v1  ;;  %v1536_v13 = vpop.f32.mrb[89].mxu0  ;;  %2783 = vst [vmem:[%s3909_s11 + $0x38] sm:$0xff] %v2695_v0   ;;  %v1881_v11 = vadd.f32 %v2866_v6, %v3745_v40  ;;  %v1872_v31 = vpop.f32.mrb[89].mxu1 }
 0x1cc   : > { %v1537_v42 = vpop.f32.mrb[90].mxu0  ;;  %2782 = vst [vmem:[%s3909_s11 + $0x30] sm:$0xff] %v2690_v18   ;;  %v1873_v52 = vadd.f32 %v1872_v31, %v3735_v27  ;;  %v2867_v46 = vpop.f32.mrb[90].mxu1 }
 0x1cd   : > { %v1538_v43 = vadd.f32 %v3707_v57, %v1537_v42  ;;  %v1539_v56 = vpop.f32.mrb[91].mxu0  ;;  %v3918_v61 = vadd.f32 %v3822_v19, %v1535_v33  ;;  %v1884_v28 = vadd.f32 %v2867_v46, %v3747_v41  ;;  %v1875_v16 = vpop.f32.mrb[91].mxu1  ;;  %v2017_v24 = vmax.f32 %v1881_v11, 0.0 }
 0x1ce   : > { %v1876_v22 = vadd.f32 %v1875_v16, %v3737_v29  ;;  %v2015_v27 = vmax.f32 %v1873_v52, 0.0 }
 0x1cf   : > { %v3923_v40 = vadd.f32 %v3825_v30, %v1538_v43  ;;  %v2018_v4 = vmax.f32 %v1884_v28, 0.0 }
 0x1d0   : > { %v2016_v0 = vmax.f32 %v1876_v22, 0.0 }
 0x1d1   : > { %v2705_v1 = vpack.c.bf16 %v2018_v4, %v2017_v24 }
 0x1d2   : > { %v1542_v18 = vpop.f32.mrb[92].mxu0  ;;  %v2700_v6 = vpack.c.bf16 %v2016_v0, %v2015_v27  ;;  %v2870_v19 = vpop.f32.mrb[92].mxu1 }
 0x1d3   : > { %v1543_v13 = vadd.f32 %v3707_v57, %v1542_v18  ;;  %v1544_v33 = vpop.f32.mrb[93].mxu0  ;;  %2785 = vst [vmem:[%s3909_s11 + $0x48] sm:$0xff] %v2705_v1   ;;  %v1897_v41 = vadd.f32 %v2870_v19, %v3768_v49  ;;  %v1888_v31 = vpop.f32.mrb[93].mxu1 }
 0x1d4   : > { %v1545_v29 = vpop.f32.mrb[94].mxu0  ;;  %2784 = vst [vmem:[%s3909_s11 + $0x40] sm:$0xff] %v2700_v6   ;;  %v1889_v30 = vadd.f32 %v1888_v31, %v3756_v58  ;;  %v2871_v42 = vpop.f32.mrb[94].mxu1 }
 0x1d5   : > { %v1546_v11 = vadd.f32 %v3707_v57, %v1545_v29  ;;  %v1547_v52 = vpop.f32.mrb[95].mxu0  ;;  %v3932_v43 = vadd.f32 %v3834_v38, %v1543_v13  ;;  %v1900_v46 = vadd.f32 %v2871_v42, %v3771_v51  ;;  %v1891_v56 = vpop.f32.mrb[95].mxu1  ;;  %v2021_v16 = vmax.f32 %v1897_v41, 0.0 }
 0x1d6   : > { %v1892_v28 = vadd.f32 %v1891_v56, %v3759_v47  ;;  %v2019_v58 = vmax.f32 %v1889_v30, 0.0 }
 0x1d7   : > { %v3937_v49 = vadd.f32 %v3837_v50, %v1546_v11  ;;  %v2022_v22 = vmax.f32 %v1900_v46, 0.0 }
 0x1d8   : > { %v2020_v24 = vmax.f32 %v1892_v28, 0.0 }
 0x1d9   : > { %v2715_v4 = vpack.c.bf16 %v2022_v22, %v2021_v16 }
 0x1da   : > { %v1583_v27 = vpop.f32.mrb[0].mxu0  ;;  %v2710_v0 = vpack.c.bf16 %v2020_v24, %v2019_v58  ;;  %v2874_v38 = vpop.f32.mrb[96].mxu1 }
 0x1db   : > { %v2928_v1 = vadd.f32 %v3707_v57, %v1583_v27  ;;  %v1585_v18 = vpop.f32.mrb[1].mxu0  ;;  %2787 = vst [vmem:[%s3909_s11 + $0x58] sm:$0xff] %v2715_v4   ;;  %v1913_v51 = vadd.f32 %v2874_v38, %v3792_v60  ;;  %v1904_v6 = vpop.f32.mrb[97].mxu1 }
 0x1dc   : > { %v1586_v47 = vpop.f32.mrb[2].mxu0  ;;  %2786 = vst [vmem:[%s3909_s11 + $0x50] sm:$0xff] %v2710_v0   ;;  %v1905_v13 = vadd.f32 %v1904_v6, %v3780_v53  ;;  %v2875_v33 = vpop.f32.mrb[98].mxu1 }
 0x1dd   : > { %v1809_v50 = vadd.f32 %v2928_v1, %v3848_v5  ;;  %v2929_v19 = vadd.f32 %v3707_v57, %v1586_v47  ;;  %v1588_v41 = vpop.f32.mrb[3].mxu0  ;;  %v1916_v31 = vadd.f32 %v2875_v33, %v3795_v2  ;;  %v1907_v29 = vpop.f32.mrb[99].mxu1  ;;  %v2025_v60 = vmax.f32 %v1913_v51, 0.0 }
 0x1de   : > { %v1908_v11 = vadd.f32 %v1907_v29, %v3783_v55  ;;  %v2023_v5 = vmax.f32 %v1905_v13, 0.0 }
 0x1df   : > { %v1812_v30 = vadd.f32 %v2929_v19, %v3856_v17  ;;  %v2026_v42 = vmax.f32 %v1916_v31, 0.0  ;;  %v1999_v52 = vmax.f32 %v1809_v50, 0.0 }
 0x1e0   : > { %v2024_v53 = vmax.f32 %v1908_v11, 0.0 }
 0x1e1   : > { %v2000_v46 = vmax.f32 %v1812_v30, 0.0  ;;  %v2725_v56 = vpack.c.bf16 %v2026_v42, %v2025_v60 }
 0x1e2   : > { %v1591_v28 = vpop.f32.mrb[4].mxu0  ;;  %v2720_v22 = vpack.c.bf16 %v2024_v53, %v2023_v5  ;;  %v2878_v58 = vpop.f32.mrb[100].mxu1 }
 0x1e3   : > { %v2660_v16 = vpack.c.bf16 %v2000_v46, %v1999_v52  ;;  %v2930_v2 = vadd.f32 %v3707_v57, %v1591_v28  ;;  %v1593_v24 = vpop.f32.mrb[5].mxu0  ;;  %2789 = vst [vmem:[%s3909_s11 + $0x68] sm:$0xff] %v2725_v56   ;;  %v1929_v17 = vadd.f32 %v2878_v58, %v3816_v20  ;;  %v1920_v55 = vpop.f32.mrb[101].mxu1 }
 0x1e4   : > { %v1594_v4 = vpop.f32.mrb[6].mxu0  ;;  %2788 = vst [vmem:[%s3909_s11 + $0x60] sm:$0xff] %v2720_v22   ;;  %v1921_v0 = vadd.f32 %v1920_v55, %v3804_v9  ;;  %v2879_v38 = vpop.f32.mrb[102].mxu1 }
 0x1e5   : > { %2661 = vst [vmem:[%s3909_s11] sm:$0xff] %v2660_v16   ;;  %v1817_v27 = vadd.f32 %v2930_v2, %v3846_v63  ;;  %v2931_v1 = vadd.f32 %v3707_v57, %v1594_v4  ;;  %v1596_v18 = vpop.f32.mrb[7].mxu0  ;;  %v1932_v51 = vadd.f32 %v2879_v38, %v3819_v25  ;;  %v1923_v6 = vpop.f32.mrb[103].mxu1  ;;  %v2029_v50 = vmax.f32 %v1929_v17, 0.0 }
 0x1e6   : > { %v1924_v20 = vadd.f32 %v1923_v6, %v3807_v14  ;;  %v2027_v63 = vmax.f32 %v1921_v0, 0.0 }
 0x1e7   : > { %v1820_v47 = vadd.f32 %v2931_v1, %v3851_v12  ;;  %v2030_v13 = vmax.f32 %v1932_v51, 0.0  ;;  %v2001_v19 = vmax.f32 %v1817_v27, 0.0 }
 0x1e8   : > { %v2028_v9 = vmax.f32 %v1924_v20, 0.0 }
 0x1e9   : > { %v2002_v33 = vmax.f32 %v1820_v47, 0.0  ;;  %v2735_v41 = vpack.c.bf16 %v2030_v13, %v2029_v50 }
 0x1ea   : > { %v1599_v31 = vpop.f32.mrb[8].mxu0  ;;  %v2730_v30 = vpack.c.bf16 %v2028_v9, %v2027_v63  ;;  %v2882_v11 = vpop.f32.mrb[104].mxu1 }
 0x1eb   : > { %v2665_v29 = vpack.c.bf16 %v2002_v33, %v2001_v19  ;;  %v2932_v25 = vadd.f32 %v3707_v57, %v1599_v31  ;;  %v1601_v60 = vpop.f32.mrb[9].mxu0  ;;  %2791 = vst [vmem:[%s3909_s11 + $0x78] sm:$0xff] %v2735_v41   ;;  %v1945_v12 = vadd.f32 %v2882_v11, %v3840_v44  ;;  %v1936_v14 = vpop.f32.mrb[105].mxu1 }
 0x1ec   : > { %v1602_v42 = vpop.f32.mrb[10].mxu0  ;;  %2790 = vst [vmem:[%s3909_s11 + $0x70] sm:$0xff] %v2730_v30   ;;  %v1937_v5 = vadd.f32 %v1936_v14, %v3828_v32  ;;  %v2883_v53 = vpop.f32.mrb[106].mxu1 }
 0x1ed   : > { %2777 = vst [vmem:[%s3909_s11 + $0x8] sm:$0xff] %v2665_v29   ;;  %v1825_v52 = vadd.f32 %v2932_v25, %v3864_v26  ;;  %v2933_v46 = vadd.f32 %v3707_v57, %v1602_v42  ;;  %v1604_v56 = vpop.f32.mrb[11].mxu0  ;;  %v1948_v28 = vadd.f32 %v2883_v53, %v3843_v54  ;;  %v1939_v16 = vpop.f32.mrb[107].mxu1  ;;  %v2033_v2 = vmax.f32 %v1945_v12, 0.0 }
 0x1ee   : > { %v1940_v44 = vadd.f32 %v1939_v16, %v3831_v37  ;;  %v2031_v26 = vmax.f32 %v1937_v5, 0.0 }
 0x1ef   : > { %v1828_v22 = vadd.f32 %v2933_v46, %v3872_v39  ;;  %v2034_v58 = vmax.f32 %v1948_v28, 0.0  ;;  %v2003_v24 = vmax.f32 %v1825_v52, 0.0 }
 0x1f0   : > { %v2032_v32 = vmax.f32 %v1940_v44, 0.0 }
 0x1f1   : > { %v2004_v17 = vmax.f32 %v1828_v22, 0.0  ;;  %v2745_v55 = vpack.c.bf16 %v2034_v58, %v2033_v2 }
 0x1f2   : > { %v1607_v4 = vpop.f32.mrb[12].mxu0  ;;  %v2740_v0 = vpack.c.bf16 %v2032_v32, %v2031_v26  ;;  %v2886_v1 = vpop.f32.mrb[108].mxu1 }
 0x1f3   : > { %v2670_v27 = vpack.c.bf16 %v2004_v17, %v2003_v24  ;;  %v2934_v54 = vadd.f32 %v3707_v57, %v1607_v4  ;;  %v1609_v38 = vpop.f32.mrb[13].mxu0  ;;  %2793 = vst [vmem:[%s3909_s11 + $0x88] sm:$0xff] %v2745_v55   ;;  %v1961_v39 = vadd.f32 %v2886_v1, %v3870_v36  ;;  %v1952_v37 = vpop.f32.mrb[109].mxu1 }
 0x1f4   : > { %v1610_v18 = vpop.f32.mrb[14].mxu0  ;;  %2792 = vst [vmem:[%s3909_s11 + $0x80] sm:$0xff] %v2740_v0   ;;  %v1953_v6 = vadd.f32 %v1952_v37, %v3854_v62  ;;  %v2887_v20 = vpop.f32.mrb[110].mxu1 }
 0x1f5   : > { %2778 = vst [vmem:[%s3909_s11 + $0x10] sm:$0xff] %v2670_v27   ;;  %v1833_v51 = vadd.f32 %v2934_v54, %v3862_v23  ;;  %v2935_v47 = vadd.f32 %v3707_v57, %v1610_v18  ;;  %v1612_v50 = vpop.f32.mrb[15].mxu0  ;;  %v1964_v13 = vadd.f32 %v2887_v20, %v3875_v21  ;;  %v1955_v19 = vpop.f32.mrb[111].mxu1  ;;  %v2037_v33 = vmax.f32 %v1961_v39, 0.0 }
 0x1f6   : > { %v1956_v36 = vadd.f32 %v1955_v19, %v3859_v7  ;;  %v2035_v23 = vmax.f32 %v1953_v6, 0.0 }
 0x1f7   : > { %v1836_v63 = vadd.f32 %v2935_v47, %v3867_v34  ;;  %v2038_v9 = vmax.f32 %v1964_v13, 0.0  ;;  %v2005_v41 = vmax.f32 %v1833_v51, 0.0 }
 0x1f8   : > { %v2036_v62 = vmax.f32 %v1956_v36, 0.0 }
 0x1f9   : > { %v2006_v31 = vmax.f32 %v1836_v63, 0.0  ;;  %v2755_v29 = vpack.c.bf16 %v2038_v9, %v2037_v33 }
 0x1fa   : > { %v1615_v30 = vpop.f32.mrb[16].mxu0  ;;  %v2750_v11 = vpack.c.bf16 %v2036_v62, %v2035_v23  ;;  %v2890_v60 = vpop.f32.mrb[112].mxu1 }
 0x1fb   : > { %v2675_v25 = vpack.c.bf16 %v2006_v31, %v2005_v41  ;;  %v2936_v21 = vadd.f32 %v3707_v57, %v1615_v30  ;;  %v1617_v12 = vpop.f32.mrb[17].mxu0  ;;  %2795 = vst [vmem:[%s3909_s11 + $0x98] sm:$0xff] %v2755_v29   ;;  %v1977_v34 = vadd.f32 %v2890_v60, %v3898_v59  ;;  %v1968_v7 = vpop.f32.mrb[113].mxu1 }
 0x1fc   : > { %v1618_v14 = vpop.f32.mrb[18].mxu0  ;;  %2794 = vst [vmem:[%s3909_s11 + $0x90] sm:$0xff] %v2750_v11   ;;  %v1969_v52 = vadd.f32 %v1968_v7, %v3886_v8  ;;  %v2891_v46 = vpop.f32.mrb[114].mxu1 }
 0x1fd   : > { %2779 = vst [vmem:[%s3909_s11 + $0x18] sm:$0xff] %v2675_v25   ;;  %v1841_v42 = vadd.f32 %v2936_v21, %v3880_v45  ;;  %v2937_v5 = vadd.f32 %v3707_v57, %v1618_v14  ;;  %v1620_v53 = vpop.f32.mrb[19].mxu0  ;;  %v1980_v56 = vadd.f32 %v2891_v46, %v3904_v15  ;;  %v1971_v28 = vpop.f32.mrb[115].mxu1  ;;  %v2041_v22 = vmax.f32 %v1977_v34, 0.0 }
 0x1fe   : > { %v1972_v59 = vadd.f32 %v1971_v28, %v3891_v10  ;;  %v2039_v45 = vmax.f32 %v1969_v52, 0.0 }
 0x1ff   : > { %v1844_v16 = vadd.f32 %v2937_v5, %v3888_v35  ;;  %v2042_v44 = vmax.f32 %v1980_v56, 0.0  ;;  %v2007_v2 = vmax.f32 %v1841_v42, 0.0 }
 0x200   : > { %v2040_v8 = vmax.f32 %v1972_v59, 0.0 }
 0x201   : > { %v2008_v58 = vmax.f32 %v1844_v16, 0.0  ;;  %v2765_v24 = vpack.c.bf16 %v2042_v44, %v2041_v22 }
 0x202   : > { %v1623_v26 = vpop.f32.mrb[20].mxu0  ;;  %v2760_v32 = vpack.c.bf16 %v2040_v8, %v2039_v45  ;;  %v2894_v55 = vpop.f32.mrb[116].mxu1 }
 0x203   : > { %v2680_v17 = vpack.c.bf16 %v2008_v58, %v2007_v2  ;;  %v2938_v15 = vadd.f32 %v3707_v57, %v1623_v26  ;;  %v1625_v4 = vpop.f32.mrb[21].mxu0  ;;  %2797 = vst [vmem:[%s3909_s11 + $0xa8] sm:$0xff] %v2765_v24   ;;  %v1993_v35 = vadd.f32 %v2894_v55, %v3932_v43  ;;  %v1984_v10 = vpop.f32.mrb[117].mxu1 }
 0x204   : > { %v1626_v27 = vpop.f32.mrb[22].mxu0  ;;  %2796 = vst [vmem:[%s3909_s11 + $0xa0] sm:$0xff] %v2760_v32   ;;  %v1985_v54 = vadd.f32 %v1984_v10, %v3918_v61  ;;  %v2895_v38 = vpop.f32.mrb[118].mxu1 }
 0x205   : > { %2780 = vst [vmem:[%s3909_s11 + $0x20] sm:$0xff] %v2680_v17   ;;  %v1849_v0 = vadd.f32 %v2938_v15, %v3878_v48  ;;  %v2939_v1 = vadd.f32 %v3707_v57, %v1626_v27  ;;  %v1628_v39 = vpop.f32.mrb[23].mxu0  ;;  %v1996_v37 = vadd.f32 %v2895_v38, %v3937_v49  ;;  %v1987_v18 = vpop.f32.mrb[119].mxu1  ;;  %v2045_v6 = vmax.f32 %v1993_v35, 0.0 }
 0x206   : > { %v1988_v51 = vadd.f32 %v1987_v18, %v3923_v40  ;;  %v2043_v48 = vmax.f32 %v1985_v54, 0.0 }
 0x207   : > { %v1852_v43 = vadd.f32 %v2939_v1, %v3883_v3  ;;  %v2046_v47 = vmax.f32 %v1996_v37, 0.0  ;;  %v2009_v20 = vmax.f32 %v1849_v0, 0.0 }
 0x208   : > { %v2044_v61 = vmax.f32 %v1988_v51, 0.0 }
 0x209   : > { %v2010_v50 = vmax.f32 %v1852_v43, 0.0  ;;  %v2775_v13 = vpack.c.bf16 %v2046_v47, %v2045_v6 }
 0x20a   : > { %v2770_v19 = vpack.c.bf16 %v2044_v61, %v2043_v48 }
 0x20b   : > { %v2685_v57 = vpack.c.bf16 %v2010_v50, %v2009_v20  ;;  %2799 = vst [vmem:[%s3909_s11 + $0xb8] sm:$0xff] %v2775_v13  }
 0x20c   : > { %2798 = vst [vmem:[%s3909_s11 + $0xb0] sm:$0xff] %v2770_v19  }
 0x20d   : > { %2781 = vst [vmem:[%s3909_s11 + $0x28] sm:$0xff] %v2685_v57  }
 0x20e PF: > { %s13_s14 = sadd.s32 1, %s3292_s14   ;;  %s4020_s12 = smov %s3288_s13 }
 0x20f   : > { %p10_p5 = scmp.ge.s32.totalorder %s13_s14, 4   ;;  %s4021_s13 = smov %s4023_s15 }
 0x211   :  { %12 = sbr.rel (!%p10_p5) target bundleno = 2 (0x2), region = 68 }

// kernel: policy_forward.9
= control target key start
LH: loop header
LB: loop body
LE: loop exit
PB: predicated region body
PF: predicated region fallthrough
CT: control target
= control target key end

     0   :  { %s646_s1 = inlined_call_operand.vmem [shape: bf16[512,128], index: 1, kind: input, shape index: {}]   ;;  %s647_s0 = inlined_call_operand.vmem [shape: bf16[16,512], index: 0, kind: input, shape index: {}]   ;;  %s648_s2 = inlined_call_operand.vmem [shape: f32[1,128], index: 2, kind: input, shape index: {}]   ;;  %s649_s3 = inlined_call_operand.vmem [shape: f32[16,128], index: 3, kind: output, shape index: {}]  }
   0x1   :  { %v471_v0 = vld [vmem:[%s646_s1 + $0x40] sm:$0xff]   ;;  %v475_v4 = vld [vmem:[%s646_s1 + $0x48] sm:$0xff]   ;;  %v479_v8 = vld [vmem:[%s646_s1 + $0x50] sm:$0xff]  }
   0x2   :  { %v472_v1 = vld [vmem:[%s646_s1 + $0xc0] sm:$0xff]   ;;  %427 = vmatprep.subr.bf16.mxu0 %v471_v0  ;;  %v476_v5 = vld [vmem:[%s646_s1 + $0xc8] sm:$0xff]   ;;  %v480_v9 = vld [vmem:[%s646_s1 + $0xd0] sm:$0xff]  }
   0x3   :  { %v473_v2 = vld [vmem:[%s646_s1] sm:$0xff]   ;;  %449 = vmatprep.subr.bf16.mxu1 %v472_v1  ;;  %v477_v6 = vld [vmem:[%s646_s1 + $0x8] sm:$0xff]   ;;  %v481_v10 = vld [vmem:[%s646_s1 + $0x10] sm:$0xff]  }
   0x4   :  { %v474_v3 = vld [vmem:[%s646_s1 + $0x80] sm:$0xff]   ;;  %428 = vmatpush3.bf16.msra.mxu0 %v473_v2  ;;  %v478_v7 = vld [vmem:[%s646_s1 + $0x88] sm:$0xff]   ;;  %v482_v11 = vld [vmem:[%s646_s1 + $0x90] sm:$0xff]  }
   0x5   :  { %450 = vmatpush3.bf16.msra.mxu1 %v474_v3  ;;  %429 = vmatprep.subr.bf16.mxu0 %v475_v4  ;;  %v483_v12 = vld [vmem:[%s646_s1 + $0x58] sm:$0xff]   ;;  %v487_v16 = vld [vmem:[%s646_s1 + $0x60] sm:$0xff]   ;;  %v491_v20 = vld [vmem:[%s646_s1 + $0x68] sm:$0xff]  }
   0x6   :  { %451 = vmatprep.subr.bf16.mxu1 %v476_v5  ;;  %v484_v13 = vld [vmem:[%s646_s1 + $0xd8] sm:$0xff]   ;;  %v488_v17 = vld [vmem:[%s646_s1 + $0xe0] sm:$0xff]   ;;  %v492_v21 = vld [vmem:[%s646_s1 + $0xe8] sm:$0xff]  }
   0x7   :  { %v485_v14 = vld [vmem:[%s646_s1 + $0x18] sm:$0xff]   ;;  %v489_v18 = vld [vmem:[%s646_s1 + $0x20] sm:$0xff]   ;;  %v493_v22 = vld [vmem:[%s646_s1 + $0x28] sm:$0xff]  }
   0x8   :  { %430 = vmatpush3.bf16.msra.mxu0 %v477_v6  ;;  %v486_v15 = vld [vmem:[%s646_s1 + $0x98] sm:$0xff]   ;;  %v490_v19 = vld [vmem:[%s646_s1 + $0xa0] sm:$0xff]   ;;  %v494_v23 = vld [vmem:[%s646_s1 + $0xa8] sm:$0xff]  }
   0x9   :  { %452 = vmatpush3.bf16.msra.mxu1 %v478_v7  ;;  %431 = vmatprep.subr.bf16.mxu0 %v479_v8  ;;  %v495_v24 = vld [vmem:[%s646_s1 + $0x70] sm:$0xff]   ;;  %v499_v28 = vld [vmem:[%s646_s1 + $0x78] sm:$0xff]   ;;  %v390_v38 = vld [vmem:[%s648_s2] ss:$0 sm:$0xff] }
   0xa   :  { %453 = vmatprep.subr.bf16.mxu1 %v480_v9  ;;  %v496_v25 = vld [vmem:[%s646_s1 + $0xf0] sm:$0xff]   ;;  %v500_v29 = vld [vmem:[%s646_s1 + $0xf8] sm:$0xff]  }
   0xb   :  { %v497_v26 = vld [vmem:[%s646_s1 + $0x30] sm:$0xff]   ;;  %v501_v30 = vld [vmem:[%s646_s1 + $0x38] sm:$0xff]  }
   0xc   :  { %432 = vmatpush3.bf16.msra.mxu0 %v481_v10  ;;  %v498_v27 = vld [vmem:[%s646_s1 + $0xb0] sm:$0xff]   ;;  %v502_v31 = vld [vmem:[%s646_s1 + $0xb8] sm:$0xff]  }
   0xd   :  { %454 = vmatpush3.bf16.msra.mxu1 %v482_v11  ;;  %433 = vmatprep.subr.bf16.mxu0 %v483_v12  ;;  %v503_v32 = vld [vmem:[%s647_s0] ss:$16 sps:$4 sm:$0xff]   ;;  %v505_v33 = vld [vmem:[%s647_s0 + $0x4] ss:$16 sps:$4 sm:$0xff]   ;;  %v506_v34 = vld [vmem:[%s647_s0 + $0x8] ss:$16 sps:$4 sm:$0xff]  }
   0xe   :  { %455 = vmatprep.subr.bf16.mxu1 %v484_v13  ;;  %v508_v35 = vld [vmem:[%s647_s0 + $0xc] ss:$16 sps:$4 sm:$0xff]   ;;  %334 = vmatprep.mubr.bf16.mxu0 %v505_v33 }
   0xf   :  { %375 = vmatprep.mubr.bf16.mxu1 %v508_v35 }
  0x10   :  { %434 = vmatpush3.bf16.msra.mxu0 %v485_v14 }
  0x11   :  { %456 = vmatpush3.bf16.msra.mxu1 %v486_v15  ;;  %435 = vmatprep.subr.bf16.mxu0 %v487_v16 }
  0x12   :  { %457 = vmatprep.subr.bf16.mxu1 %v488_v17 }
  0x14   :  { %436 = vmatpush3.bf16.msra.mxu0 %v489_v18 }
  0x15   :  { %458 = vmatpush3.bf16.msra.mxu1 %v490_v19  ;;  %437 = vmatprep.subr.bf16.mxu0 %v491_v20 }
  0x16   :  { %459 = vmatprep.subr.bf16.mxu1 %v492_v21 }
  0x18   :  { %438 = vmatpush3.bf16.msra.mxu0 %v493_v22 }
  0x19   :  { %460 = vmatpush3.bf16.msra.mxu1 %v494_v23  ;;  %439 = vmatprep.subr.bf16.mxu0 %v495_v24 }
  0x1a   :  { %461 = vmatprep.subr.bf16.mxu1 %v496_v25 }
  0x1c   :  { %440 = vmatpush3.bf16.msra.mxu0 %v497_v26 }
  0x1d   :  { %462 = vmatpush3.bf16.msra.mxu1 %v498_v27  ;;  %441 = vmatprep.subr.bf16.mxu0 %v499_v28 }
  0x1e   :  { %463 = vmatprep.subr.bf16.mxu1 %v500_v29 }
  0x20   :  { %442 = vmatpush3.bf16.msra.mxu0 %v501_v30 }
  0x21   :  { %464 = vmatpush3.bf16.msra.mxu1 %v502_v31 }
  0x23   :  { %335 = vmatmul.mubr.bf16.vlgmr.msra.gmra.mrb[0].mxu0 %v503_v32 }
  0x24   :  { %376 = vmatmul.mubr.bf16.vlgmr.msra.gmra.mrb[0].mxu1 %v506_v34 }
  0xf6   :  { %v443_v36 = vpop.f32.mrb[0].mxu0 }
  0xf7   :  { %v465_v37 = vpop.f32.mrb[0].mxu1  ;;  %v444_v39 = vpop.f32.mrb[1].mxu0 }
  0xf8   :  { %v445_v40 = vadd.f32 %v444_v39, %v443_v36  ;;  %v466_v41 = vpop.f32.mrb[1].mxu1  ;;  %v446_v42 = vpop.f32.mrb[2].mxu0 }
  0xf9   :  { %v467_v43 = vadd.f32 %v466_v41, %v465_v37  ;;  %v468_v44 = vpop.f32.mrb[2].mxu1  ;;  %v447_v45 = vpop.f32.mrb[3].mxu0 }
  0xfa   :  { %v337_v46 = vadd.f32 %v445_v40, %v390_v38  ;;  %v448_v47 = vadd.f32 %v447_v45, %v446_v42  ;;  %v469_v48 = vpop.f32.mrb[3].mxu1 }
  0xfb   :  { %v470_v49 = vadd.f32 %v469_v48, %v468_v44 }
  0xfc   :  { %v378_v50 = vadd.f32 %v467_v43, %v337_v46  ;;  %v340_v51 = vadd.f32 %v448_v47, %v390_v38 }
  0xfe   :  { %384 = vst [vmem:[%s649_s3] sm:$0xff] %v378_v50  ;;  %v381_v52 = vadd.f32 %v470_v49, %v340_v51 }
 0x100   :  { %385 = vst [vmem:[%s649_s3 + $0x8] sm:$0xff] %v381_v52 }

// kernel: policy_forward.8
= control target key start
LH: loop header
LB: loop body
LE: loop exit
PB: predicated region body
PF: predicated region fallthrough
CT: control target
= control target key end

     0   :  { %s16325_s0 = inlined_call_operand.vmem [shape: bf16[16,22528], index: 0, kind: input, shape index: {}]   ;;  %s16326_s1 = inlined_call_operand.vmem [shape: bf16[22528,512], index: 1, kind: input, shape index: {}]   ;;  %s16327_s2 = inlined_call_operand.vmem [shape: f32[1,512], index: 2, kind: input, shape index: {}]   ;;  %s16328_s3 = inlined_call_operand.vmem [shape: bf16[16,512], index: 3, kind: output, shape index: {}]  }
   0x1   :  { %16330 = sst [smem:[#allocation7_spill]] %s16325_s0 }
   0x2   :  { %16331 = sst [smem:[#allocation8_spill]] %s16326_s1 }
   0x3   :  { %s13891_s12 = smov 0   ;;  %s13893_s13 = smov 0  }
   0x4   :  { %s13895_s14 = smov 0   ;;  %s13897_s15 = smov 0  }
   0x5   :  { %s13899_s16 = smov 0   ;;  %s13901_s17 = smov 0  }
   0x6   :  { %s13903_s18 = smov 0   ;;  %s13905_s19 = smov 0  }
   0x7   :  { %s13907_s20 = smov 0   ;;  %s13909_s21 = smov 0  }
   0x8   :  { %s13911_s22 = smov 0  }
   0x9 LB: > { %s11710_s23 = sadd.s32 4294967295, %s13868_s22   ;;  %s25_s24 = sadd.s32 1, %s13860_s20  ;;  %s13868_s22 = sphi %s13911_s22, %s13_s22   ;;  %s13864_s21 = sphi %s13909_s21, %s16348_s21   ;;  %s13860_s20 = sphi %s13907_s20, %s16347_s20   ;;  %s13856_s19 = sphi %s13905_s19, %s16346_s19   ;;  %s13852_s18 = sphi %s13903_s18, %s16345_s18   ;;  %s13848_s17 = sphi %s13901_s17, %s16344_s17   ;;  %s13844_s16 = sphi %s13899_s16, %s16343_s16   ;;  %s13840_s15 = sphi %s13897_s15, %s16342_s15   ;;  %s13836_s14 = sphi %s13895_s14, %s16341_s14   ;;  %s13832_s13 = sphi %s13893_s13, %s16340_s13   ;;  %s13828_s12 = sphi %s13891_s12, %s16339_s12  }
   0xa   : > { %p26_p0 = scmp.ge.s32.totalorder %s25_s24, 4  ;;  %s28_s25 = sadd.s32 1, %s13864_s21 }
   0xb   : > { %s41_s26 = sadd.s32 1, %s13848_s17  ;;  %p48_p1 = scmp.ne.s32.totalorder %s13848_s17, %s13844_s16 }
   0xc   : > { %s16350_s24 = smov (%p26_p0, %s25_s24), 0  ;;  %s16352_s25 = smov (!%p26_p0, %s28_s25), %s13864_s21 }
   0xd   : > { %s37_s27 = ssub.s32 %s13860_s20, %s16350_s24  ;;  %p49_p2 = scmp.eq.s32.totalorder %s13868_s22, 0 }
   0xe   : > { %p30_p3 = scmp.ge.s32.totalorder %s16352_s25, 2  ;;  %p39_p4 = scmp.eq.s32.totalorder %s37_s27, 0 }
   0xf   : > { %p13958_p5 = por %p49_p2, %p48_p1  ;;  %s69_s29 = sadd.s32 1, %s13840_s15 }
  0x10   : > { %s16354_s25 = smov (%p30_p3, %s16352_s25), 0  ;;  %p76_p6 = scmp.ne.s32.totalorder %s13840_s15, %s13836_s14 }
  0x11   : > { %16333 = sst [smem:[#allocation6_spill]] %s16354_s25  ;;  %s65_s4 = ssub.s32 %s13864_s21, %s16354_s25 }
  0x12   : > { %s13966_s30 = scalar_select %p39_p4, %s13848_s17, %s41_s26  }
  0x13   : > { %s66_s5 = sor.u32 %s65_s4, %s37_s27  ;;  %p121_p7 = scmp.eq.s32.totalorder %s65_s4, 0 }
  0x14   : > { %p67_p8 = scmp.eq.s32.totalorder %s66_s5, 0  ;;  %p13972_p9 = por %p76_p6, %p49_p2 }
  0x15   : > { %s123_s7 = sadd.s32 1, %s13832_s13  ;;  %p133_p10 = scmp.ne.s32.totalorder %s13832_s13, %s13828_s12 }
  0x16   : > { %s13980_s8 = scalar_select %p67_p8, %s13840_s15, %s69_s29  }
  0x17   : > { %s13983_s9 = scalar_select %p121_p7, %s13832_s13, %s123_s7  }
  0x18   : > { %p134_p11 = scmp.eq.s32.totalorder %s11710_s23, 7  ;;  %p11713_p13 = scmp.ge.s32.totalorder %s13868_s22, 8 }
  0x1a   : > { %p13985_p12 = por %p134_p11, %p133_p10  ;;  %156 = sbr.rel (%p11713_p13) target bundleno = 426 (0x1aa), region = 16 }
  0x21   : > { %159 = sbr.rel (!%p13958_p5) target bundleno = 64 (0x40), region = 20  ;;  %s161_s11 = sand.u32 (%p13958_p5), 1, %s13848_s17  }
  0x22   : > { %s12478_s26 = smul.u32 (%p13958_p5), 176, %s13860_s20  ;;  %s16336_s0 = sld [smem:[#allocation7_spill]] (%p13958_p5) }
  0x23   : > { %s12567_s27 = smul.u32 (%p13958_p5), 352, %s161_s11 }
  0x25   : > { %s14002_s23 = scalar_lea.vmem (%p13958_p5), [#allocation3], %s12567_s27 }
  0x28   : > { %s13997_s5 = scalar_lea.vmem %s16336_s0, %s12478_s26 }
  0x29   : > { %v182_v0 = vld [vmem:[%s13997_s5] sm:$0xff]  ;;  %v184_v1 = vld [vmem:[%s13997_s5 + $0x8] sm:$0xff]  ;;  %v186_v2 = vld [vmem:[%s13997_s5 + $0x10] sm:$0xff] }
  0x2a   : > { %183 = vst [vmem:[%s14002_s23] sm:$0xff] %v182_v0  ;;  %185 = vst [vmem:[%s14002_s23 + $0x8] sm:$0xff] %v184_v1  ;;  %v188_v3 = vld [vmem:[%s13997_s5 + $0x18] sm:$0xff]  ;;  %v190_v4 = vld [vmem:[%s13997_s5 + $0x20] sm:$0xff] }
  0x2b   : > { %187 = vst [vmem:[%s14002_s23 + $0x10] sm:$0xff] %v186_v2  ;;  %v192_v5 = vld [vmem:[%s13997_s5 + $0x28] sm:$0xff]  ;;  %189 = vst [vmem:[%s14002_s23 + $0x18] sm:$0xff] %v188_v3  ;;  %v194_v6 = vld [vmem:[%s13997_s5 + $0x30] sm:$0xff] }
  0x2c   : > { %191 = vst [vmem:[%s14002_s23 + $0x20] sm:$0xff] %v190_v4  ;;  %193 = vst [vmem:[%s14002_s23 + $0x28] sm:$0xff] %v192_v5  ;;  %v196_v7 = vld [vmem:[%s13997_s5 + $0x38] sm:$0xff]  ;;  %v198_v8 = vld [vmem:[%s13997_s5 + $0x40] sm:$0xff] }
  0x2d   : > { %195 = vst [vmem:[%s14002_s23 + $0x30] sm:$0xff] %v194_v6  ;;  %197 = vst [vmem:[%s14002_s23 + $0x38] sm:$0xff] %v196_v7  ;;  %v200_v9 = vld [vmem:[%s13997_s5 + $0x48] sm:$0xff]  ;;  %v202_v10 = vld [vmem:[%s13997_s5 + $0x50] sm:$0xff] }
  0x2e   : > { %199 = vst [vmem:[%s14002_s23 + $0x40] sm:$0xff] %v198_v8  ;;  %v204_v11 = vld [vmem:[%s13997_s5 + $0x58] sm:$0xff]  ;;  %201 = vst [vmem:[%s14002_s23 + $0x48] sm:$0xff] %v200_v9  ;;  %v206_v12 = vld [vmem:[%s13997_s5 + $0x60] sm:$0xff] }
  0x2f   : > { %203 = vst [vmem:[%s14002_s23 + $0x50] sm:$0xff] %v202_v10  ;;  %205 = vst [vmem:[%s14002_s23 + $0x58] sm:$0xff] %v204_v11  ;;  %v208_v13 = vld [vmem:[%s13997_s5 + $0x68] sm:$0xff]  ;;  %v210_v14 = vld [vmem:[%s13997_s5 + $0x70] sm:$0xff] }
  0x30   : > { %207 = vst [vmem:[%s14002_s23 + $0x60] sm:$0xff] %v206_v12  ;;  %209 = vst [vmem:[%s14002_s23 + $0x68] sm:$0xff] %v208_v13  ;;  %v212_v15 = vld [vmem:[%s13997_s5 + $0x78] sm:$0xff]  ;;  %v214_v16 = vld [vmem:[%s13997_s5 + $0x80] sm:$0xff] }
  0x31   : > { %211 = vst [vmem:[%s14002_s23 + $0x70] sm:$0xff] %v210_v14  ;;  %v216_v17 = vld [vmem:[%s13997_s5 + $0x88] sm:$0xff]  ;;  %213 = vst [vmem:[%s14002_s23 + $0x78] sm:$0xff] %v212_v15  ;;  %v218_v18 = vld [vmem:[%s13997_s5 + $0x90] sm:$0xff] }
  0x32   : > { %215 = vst [vmem:[%s14002_s23 + $0x80] sm:$0xff] %v214_v16  ;;  %217 = vst [vmem:[%s14002_s23 + $0x88] sm:$0xff] %v216_v17  ;;  %v220_v19 = vld [vmem:[%s13997_s5 + $0x98] sm:$0xff]  ;;  %v222_v20 = vld [vmem:[%s13997_s5 + $0xa0] sm:$0xff] }
  0x33   : > { %219 = vst [vmem:[%s14002_s23 + $0x90] sm:$0xff] %v218_v18  ;;  %221 = vst [vmem:[%s14002_s23 + $0x98] sm:$0xff] %v220_v19  ;;  %v224_v21 = vld [vmem:[%s13997_s5 + $0xa8] sm:$0xff]  ;;  %v226_v22 = vld [vmem:[%s13997_s5 + $0x2c0] sm:$0xff] }
  0x34   : > { %223 = vst [vmem:[%s14002_s23 + $0xa0] sm:$0xff] %v222_v20  ;;  %v228_v23 = vld [vmem:[%s13997_s5 + $0x2c8] sm:$0xff]  ;;  %225 = vst [vmem:[%s14002_s23 + $0xa8] sm:$0xff] %v224_v21  ;;  %v230_v24 = vld [vmem:[%s13997_s5 + $0x2d0] sm:$0xff] }
  0x35   : > { %227 = vst [vmem:[%s14002_s23 + $0xb0] sm:$0xff] %v226_v22  ;;  %229 = vst [vmem:[%s14002_s23 + $0xb8] sm:$0xff] %v228_v23  ;;  %v232_v25 = vld [vmem:[%s13997_s5 + $0x2d8] sm:$0xff]  ;;  %v234_v26 = vld [vmem:[%s13997_s5 + $0x2e0] sm:$0xff] }
  0x36   : > { %231 = vst [vmem:[%s14002_s23 + $0xc0] sm:$0xff] %v230_v24  ;;  %233 = vst [vmem:[%s14002_s23 + $0xc8] sm:$0xff] %v232_v25  ;;  %v236_v27 = vld [vmem:[%s13997_s5 + $0x2e8] sm:$0xff]  ;;  %v238_v28 = vld [vmem:[%s13997_s5 + $0x2f0] sm:$0xff] }
  0x37   : > { %235 = vst [vmem:[%s14002_s23 + $0xd0] sm:$0xff] %v234_v26  ;;  %v240_v29 = vld [vmem:[%s13997_s5 + $0x2f8] sm:$0xff]  ;;  %237 = vst [vmem:[%s14002_s23 + $0xd8] sm:$0xff] %v236_v27  ;;  %v242_v30 = vld [vmem:[%s13997_s5 + $0x300] sm:$0xff] }
  0x38   : > { %239 = vst [vmem:[%s14002_s23 + $0xe0] sm:$0xff] %v238_v28  ;;  %241 = vst [vmem:[%s14002_s23 + $0xe8] sm:$0xff] %v240_v29  ;;  %v244_v31 = vld [vmem:[%s13997_s5 + $0x308] sm:$0xff]  ;;  %v246_v32 = vld [vmem:[%s13997_s5 + $0x310] sm:$0xff] }
  0x39   : > { %243 = vst [vmem:[%s14002_s23 + $0xf0] sm:$0xff] %v242_v30  ;;  %245 = vst [vmem:[%s14002_s23 + $0xf8] sm:$0xff] %v244_v31  ;;  %v248_v33 = vld [vmem:[%s13997_s5 + $0x318] sm:$0xff]  ;;  %v250_v34 = vld [vmem:[%s13997_s5 + $0x320] sm:$0xff] }
  0x3a   : > { %247 = vst [vmem:[%s14002_s23 + $0x100] sm:$0xff] %v246_v32  ;;  %v252_v35 = vld [vmem:[%s13997_s5 + $0x328] sm:$0xff]  ;;  %249 = vst [vmem:[%s14002_s23 + $0x108] sm:$0xff] %v248_v33  ;;  %v254_v36 = vld [vmem:[%s13997_s5 + $0x330] sm:$0xff] }
  0x3b   : > { %251 = vst [vmem:[%s14002_s23 + $0x110] sm:$0xff] %v250_v34  ;;  %253 = vst [vmem:[%s14002_s23 + $0x118] sm:$0xff] %v252_v35  ;;  %v256_v37 = vld [vmem:[%s13997_s5 + $0x338] sm:$0xff]  ;;  %v258_v38 = vld [vmem:[%s13997_s5 + $0x340] sm:$0xff] }
  0x3c   : > { %255 = vst [vmem:[%s14002_s23 + $0x120] sm:$0xff] %v254_v36  ;;  %257 = vst [vmem:[%s14002_s23 + $0x128] sm:$0xff] %v256_v37  ;;  %v260_v39 = vld [vmem:[%s13997_s5 + $0x348] sm:$0xff]  ;;  %v262_v40 = vld [vmem:[%s13997_s5 + $0x350] sm:$0xff] }
  0x3d   : > { %259 = vst [vmem:[%s14002_s23 + $0x130] sm:$0xff] %v258_v38  ;;  %v264_v41 = vld [vmem:[%s13997_s5 + $0x358] sm:$0xff]  ;;  %261 = vst [vmem:[%s14002_s23 + $0x138] sm:$0xff] %v260_v39  ;;  %v266_v42 = vld [vmem:[%s13997_s5 + $0x360] sm:$0xff] }
  0x3e   : > { %263 = vst [vmem:[%s14002_s23 + $0x140] sm:$0xff] %v262_v40  ;;  %265 = vst [vmem:[%s14002_s23 + $0x148] sm:$0xff] %v264_v41  ;;  %v268_v43 = vld [vmem:[%s13997_s5 + $0x368] sm:$0xff] }
  0x3f   : > { %267 = vst [vmem:[%s14002_s23 + $0x150] sm:$0xff] %v266_v42  ;;  %269 = vst [vmem:[%s14002_s23 + $0x158] sm:$0xff] %v268_v43 }
  0x40 PF: > { %275 = sbr.rel (!%p13972_p9) target bundleno = 426 (0x1aa), region = 43  ;;  %s277_s28 = sand.u32 (%p13972_p9), 1, %s13840_s15  }
  0x41   : > { %s12568_s7 = smul.u32 (%p13972_p9), 5632, %s277_s28  ;;  %s11715_s11 = sshll.u32 (%p13972_p9), %s13864_s21, 1 }
  0x42   : > { %s12479_s26 = smul.u32 (%p13972_p9), 2816, %s13860_s20  ;;  %s16337_s1 = sld [smem:[#allocation8_spill]] (%p13972_p9) }
  0x43   : > { %s14102_s6 = scalar_lea.vmem (%p13972_p9), [#allocation4], %s12568_s7 }
  0x44   : > { %s283_s27 = sadd.s32 (%p13972_p9), %s12479_s26, %s11715_s11 }
  0x45   : > { %s11717_s29 = sshll.u32 (%p13972_p9), %s283_s27, 2 }
  0x48   : > { %s14097_s25 = scalar_lea.vmem %s16337_s1, %s11717_s29 }
  0x49   : > { %v1722_v44 = vld [vmem:[%s14097_s25] sm:$0xff]  ;;  %v1724_v45 = vld [vmem:[%s14097_s25 + $0x10] sm:$0xff] }
  0x4a   : > { %v1726_v46 = vld [vmem:[%s14097_s25 + $0x20] sm:$0xff]  ;;  %1723 = vst [vmem:[%s14102_s6] sm:$0xff] %v1722_v44  ;;  %1725 = vst [vmem:[%s14102_s6 + $0x8] sm:$0xff] %v1724_v45  ;;  %v1728_v47 = vld [vmem:[%s14097_s25 + $0x30] sm:$0xff] }
  0x4b   : > { %1727 = vst [vmem:[%s14102_s6 + $0x10] sm:$0xff] %v1726_v46  ;;  %v1730_v48 = vld [vmem:[%s14097_s25 + $0x40] sm:$0xff]  ;;  %v1732_v49 = vld [vmem:[%s14097_s25 + $0x50] sm:$0xff]  ;;  %1729 = vst [vmem:[%s14102_s6 + $0x18] sm:$0xff] %v1728_v47 }
  0x4c   : > { %1731 = vst [vmem:[%s14102_s6 + $0x20] sm:$0xff] %v1730_v48  ;;  %1733 = vst [vmem:[%s14102_s6 + $0x28] sm:$0xff] %v1732_v49  ;;  %v1734_v50 = vld [vmem:[%s14097_s25 + $0x60] sm:$0xff]  ;;  %v1736_v51 = vld [vmem:[%s14097_s25 + $0x70] sm:$0xff] }
  0x4d   : > { %v1738_v52 = vld [vmem:[%s14097_s25 + $0x80] sm:$0xff]  ;;  %1735 = vst [vmem:[%s14102_s6 + $0x30] sm:$0xff] %v1734_v50  ;;  %1737 = vst [vmem:[%s14102_s6 + $0x38] sm:$0xff] %v1736_v51  ;;  %v1740_v53 = vld [vmem:[%s14097_s25 + $0x90] sm:$0xff] }
  0x4e   : > { %1739 = vst [vmem:[%s14102_s6 + $0x40] sm:$0xff] %v1738_v52  ;;  %v1742_v54 = vld [vmem:[%s14097_s25 + $0xa0] sm:$0xff]  ;;  %v1744_v55 = vld [vmem:[%s14097_s25 + $0xb0] sm:$0xff]  ;;  %1741 = vst [vmem:[%s14102_s6 + $0x48] sm:$0xff] %v1740_v53 }
  0x4f   : > { %1743 = vst [vmem:[%s14102_s6 + $0x50] sm:$0xff] %v1742_v54  ;;  %1745 = vst [vmem:[%s14102_s6 + $0x58] sm:$0xff] %v1744_v55  ;;  %v1746_v56 = vld [vmem:[%s14097_s25 + $0xc0] sm:$0xff]  ;;  %v1748_v57 = vld [vmem:[%s14097_s25 + $0xd0] sm:$0xff] }
  0x50   : > { %v1750_v58 = vld [vmem:[%s14097_s25 + $0xe0] sm:$0xff]  ;;  %1747 = vst [vmem:[%s14102_s6 + $0x60] sm:$0xff] %v1746_v56  ;;  %1749 = vst [vmem:[%s14102_s6 + $0x68] sm:$0xff] %v1748_v57  ;;  %v1752_v59 = vld [vmem:[%s14097_s25 + $0xf0] sm:$0xff] }
  0x51   : > { %1751 = vst [vmem:[%s14102_s6 + $0x70] sm:$0xff] %v1750_v58  ;;  %v1754_v60 = vld [vmem:[%s14097_s25 + $0x100] sm:$0xff]  ;;  %v1756_v61 = vld [vmem:[%s14097_s25 + $0x110] sm:$0xff]  ;;  %1753 = vst [vmem:[%s14102_s6 + $0x78] sm:$0xff] %v1752_v59 }
  0x52   : > { %1755 = vst [vmem:[%s14102_s6 + $0x80] sm:$0xff] %v1754_v60  ;;  %1757 = vst [vmem:[%s14102_s6 + $0x88] sm:$0xff] %v1756_v61  ;;  %v1758_v62 = vld [vmem:[%s14097_s25 + $0x120] sm:$0xff]  ;;  %v1760_v63 = vld [vmem:[%s14097_s25 + $0x130] sm:$0xff] }
  0x53   : > { %v1762_v0 = vld [vmem:[%s14097_s25 + $0x140] sm:$0xff]  ;;  %1759 = vst [vmem:[%s14102_s6 + $0x90] sm:$0xff] %v1758_v62  ;;  %1761 = vst [vmem:[%s14102_s6 + $0x98] sm:$0xff] %v1760_v63  ;;  %v1764_v1 = vld [vmem:[%s14097_s25 + $0x150] sm:$0xff] }
  0x54   : > { %1763 = vst [vmem:[%s14102_s6 + $0xa0] sm:$0xff] %v1762_v0  ;;  %v1766_v2 = vld [vmem:[%s14097_s25 + $0x160] sm:$0xff]  ;;  %v1768_v3 = vld [vmem:[%s14097_s25 + $0x170] sm:$0xff]  ;;  %1765 = vst [vmem:[%s14102_s6 + $0xa8] sm:$0xff] %v1764_v1 }
  0x55   : > { %1767 = vst [vmem:[%s14102_s6 + $0xb0] sm:$0xff] %v1766_v2  ;;  %1769 = vst [vmem:[%s14102_s6 + $0xb8] sm:$0xff] %v1768_v3  ;;  %v1770_v4 = vld [vmem:[%s14097_s25 + $0x180] sm:$0xff]  ;;  %v1772_v5 = vld [vmem:[%s14097_s25 + $0x190] sm:$0xff] }
  0x56   : > { %v1774_v6 = vld [vmem:[%s14097_s25 + $0x1a0] sm:$0xff]  ;;  %1771 = vst [vmem:[%s14102_s6 + $0xc0] sm:$0xff] %v1770_v4  ;;  %1773 = vst [vmem:[%s14102_s6 + $0xc8] sm:$0xff] %v1772_v5  ;;  %v1776_v7 = vld [vmem:[%s14097_s25 + $0x1b0] sm:$0xff] }
  0x57   : > { %1775 = vst [vmem:[%s14102_s6 + $0xd0] sm:$0xff] %v1774_v6  ;;  %v1778_v8 = vld [vmem:[%s14097_s25 + $0x1c0] sm:$0xff]  ;;  %v1780_v9 = vld [vmem:[%s14097_s25 + $0x1d0] sm:$0xff]  ;;  %1777 = vst [vmem:[%s14102_s6 + $0xd8] sm:$0xff] %v1776_v7 }
  0x58   : > { %1779 = vst [vmem:[%s14102_s6 + $0xe0] sm:$0xff] %v1778_v8  ;;  %1781 = vst [vmem:[%s14102_s6 + $0xe8] sm:$0xff] %v1780_v9  ;;  %v1782_v10 = vld [vmem:[%s14097_s25 + $0x1e0] sm:$0xff]  ;;  %v1784_v11 = vld [vmem:[%s14097_s25 + $0x1f0] sm:$0xff] }
  0x59   : > { %v1786_v12 = vld [vmem:[%s14097_s25 + $0x200] sm:$0xff]  ;;  %1783 = vst [vmem:[%s14102_s6 + $0xf0] sm:$0xff] %v1782_v10  ;;  %1785 = vst [vmem:[%s14102_s6 + $0xf8] sm:$0xff] %v1784_v11  ;;  %v1788_v13 = vld [vmem:[%s14097_s25 + $0x210] sm:$0xff] }
  0x5a   : > { %1787 = vst [vmem:[%s14102_s6 + $0x100] sm:$0xff] %v1786_v12  ;;  %v1790_v14 = vld [vmem:[%s14097_s25 + $0x220] sm:$0xff]  ;;  %v1792_v15 = vld [vmem:[%s14097_s25 + $0x230] sm:$0xff]  ;;  %1789 = vst [vmem:[%s14102_s6 + $0x108] sm:$0xff] %v1788_v13 }
  0x5b   : > { %1791 = vst [vmem:[%s14102_s6 + $0x110] sm:$0xff] %v1790_v14  ;;  %1793 = vst [vmem:[%s14102_s6 + $0x118] sm:$0xff] %v1792_v15  ;;  %v1794_v16 = vld [vmem:[%s14097_s25 + $0x240] sm:$0xff]  ;;  %v1796_v17 = vld [vmem:[%s14097_s25 + $0x250] sm:$0xff] }
  0x5c   : > { %v1798_v18 = vld [vmem:[%s14097_s25 + $0x260] sm:$0xff]  ;;  %1795 = vst [vmem:[%s14102_s6 + $0x120] sm:$0xff] %v1794_v16  ;;  %1797 = vst [vmem:[%s14102_s6 + $0x128] sm:$0xff] %v1796_v17  ;;  %v1800_v19 = vld [vmem:[%s14097_s25 + $0x270] sm:$0xff] }
  0x5d   : > { %1799 = vst [vmem:[%s14102_s6 + $0x130] sm:$0xff] %v1798_v18  ;;  %v1802_v20 = vld [vmem:[%s14097_s25 + $0x280] sm:$0xff]  ;;  %v1804_v21 = vld [vmem:[%s14097_s25 + $0x290] sm:$0xff]  ;;  %1801 = vst [vmem:[%s14102_s6 + $0x138] sm:$0xff] %v1800_v19 }
  0x5e   : > { %1803 = vst [vmem:[%s14102_s6 + $0x140] sm:$0xff] %v1802_v20  ;;  %1805 = vst [vmem:[%s14102_s6 + $0x148] sm:$0xff] %v1804_v21  ;;  %v1806_v22 = vld [vmem:[%s14097_s25 + $0x2a0] sm:$0xff]  ;;  %v1808_v23 = vld [vmem:[%s14097_s25 + $0x2b0] sm:$0xff] }
  0x5f   : > { %v1810_v24 = vld [vmem:[%s14097_s25 + $0x2c0] sm:$0xff]  ;;  %1807 = vst [vmem:[%s14102_s6 + $0x150] sm:$0xff] %v1806_v22  ;;  %1809 = vst [vmem:[%s14102_s6 + $0x158] sm:$0xff] %v1808_v23  ;;  %v1812_v25 = vld [vmem:[%s14097_s25 + $0x2d0] sm:$0xff] }
  0x60   : > { %1811 = vst [vmem:[%s14102_s6 + $0x160] sm:$0xff] %v1810_v24  ;;  %v1814_v26 = vld [vmem:[%s14097_s25 + $0x2e0] sm:$0xff]  ;;  %v1816_v27 = vld [vmem:[%s14097_s25 + $0x2f0] sm:$0xff]  ;;  %1813 = vst [vmem:[%s14102_s6 + $0x168] sm:$0xff] %v1812_v25 }
  0x61   : > { %1815 = vst [vmem:[%s14102_s6 + $0x170] sm:$0xff] %v1814_v26  ;;  %1817 = vst [vmem:[%s14102_s6 + $0x178] sm:$0xff] %v1816_v27  ;;  %v1818_v28 = vld [vmem:[%s14097_s25 + $0x300] sm:$0xff]  ;;  %v1820_v29 = vld [vmem:[%s14097_s25 + $0x310] sm:$0xff] }
  0x62   : > { %v1822_v30 = vld [vmem:[%s14097_s25 + $0x320] sm:$0xff]  ;;  %1819 = vst [vmem:[%s14102_s6 + $0x180] sm:$0xff] %v1818_v28  ;;  %1821 = vst [vmem:[%s14102_s6 + $0x188] sm:$0xff] %v1820_v29  ;;  %v1824_v31 = vld [vmem:[%s14097_s25 + $0x330] sm:$0xff] }
  0x63   : > { %1823 = vst [vmem:[%s14102_s6 + $0x190] sm:$0xff] %v1822_v30  ;;  %v1826_v32 = vld [vmem:[%s14097_s25 + $0x340] sm:$0xff]  ;;  %v1828_v33 = vld [vmem:[%s14097_s25 + $0x350] sm:$0xff]  ;;  %1825 = vst [vmem:[%s14102_s6 + $0x198] sm:$0xff] %v1824_v31 }
  0x64   : > { %1827 = vst [vmem:[%s14102_s6 + $0x1a0] sm:$0xff] %v1826_v32  ;;  %1829 = vst [vmem:[%s14102_s6 + $0x1a8] sm:$0xff] %v1828_v33  ;;  %v1830_v34 = vld [vmem:[%s14097_s25 + $0x360] sm:$0xff]  ;;  %v1832_v35 = vld [vmem:[%s14097_s25 + $0x370] sm:$0xff] }
  0x65   : > { %v1834_v36 = vld [vmem:[%s14097_s25 + $0x380] sm:$0xff]  ;;  %1831 = vst [vmem:[%s14102_s6 + $0x1b0] sm:$0xff] %v1830_v34  ;;  %1833 = vst [vmem:[%s14102_s6 + $0x1b8] sm:$0xff] %v1832_v35  ;;  %v1836_v37 = vld [vmem:[%s14097_s25 + $0x390] sm:$0xff] }
  0x66   : > { %1835 = vst [vmem:[%s14102_s6 + $0x1c0] sm:$0xff] %v1834_v36  ;;  %v1838_v38 = vld [vmem:[%s14097_s25 + $0x3a0] sm:$0xff]  ;;  %v1840_v39 = vld [vmem:[%s14097_s25 + $0x3b0] sm:$0xff]  ;;  %1837 = vst [vmem:[%s14102_s6 + $0x1c8] sm:$0xff] %v1836_v37 }
  0x67   : > { %1839 = vst [vmem:[%s14102_s6 + $0x1d0] sm:$0xff] %v1838_v38  ;;  %1841 = vst [vmem:[%s14102_s6 + $0x1d8] sm:$0xff] %v1840_v39  ;;  %v1842_v40 = vld [vmem:[%s14097_s25 + $0x3c0] sm:$0xff]  ;;  %v1844_v41 = vld [vmem:[%s14097_s25 + $0x3d0] sm:$0xff] }
  0x68   : > { %v1846_v42 = vld [vmem:[%s14097_s25 + $0x3e0] sm:$0xff]  ;;  %1843 = vst [vmem:[%s14102_s6 + $0x1e0] sm:$0xff] %v1842_v40  ;;  %1845 = vst [vmem:[%s14102_s6 + $0x1e8] sm:$0xff] %v1844_v41  ;;  %v1848_v43 = vld [vmem:[%s14097_s25 + $0x3f0] sm:$0xff] }
  0x69   : > { %1847 = vst [vmem:[%s14102_s6 + $0x1f0] sm:$0xff] %v1846_v42  ;;  %v1850_v44 = vld [vmem:[%s14097_s25 + $0x400] sm:$0xff]  ;;  %v1852_v45 = vld [vmem:[%s14097_s25 + $0x410] sm:$0xff]  ;;  %1849 = vst [vmem:[%s14102_s6 + $0x1f8] sm:$0xff] %v1848_v43 }
  0x6a   : > { %1851 = vst [vmem:[%s14102_s6 + $0x200] sm:$0xff] %v1850_v44  ;;  %1853 = vst [vmem:[%s14102_s6 + $0x208] sm:$0xff] %v1852_v45  ;;  %v1854_v46 = vld [vmem:[%s14097_s25 + $0x420] sm:$0xff]  ;;  %v1856_v47 = vld [vmem:[%s14097_s25 + $0x430] sm:$0xff] }
  0x6b   : > { %v1858_v48 = vld [vmem:[%s14097_s25 + $0x440] sm:$0xff]  ;;  %1855 = vst [vmem:[%s14102_s6 + $0x210] sm:$0xff] %v1854_v46  ;;  %1857 = vst [vmem:[%s14102_s6 + $0x218] sm:$0xff] %v1856_v47  ;;  %v1860_v49 = vld [vmem:[%s14097_s25 + $0x450] sm:$0xff] }
  0x6c   : > { %1859 = vst [vmem:[%s14102_s6 + $0x220] sm:$0xff] %v1858_v48  ;;  %v1862_v50 = vld [vmem:[%s14097_s25 + $0x460] sm:$0xff]  ;;  %v1864_v51 = vld [vmem:[%s14097_s25 + $0x470] sm:$0xff]  ;;  %1861 = vst [vmem:[%s14102_s6 + $0x228] sm:$0xff] %v1860_v49 }
  0x6d   : > { %1863 = vst [vmem:[%s14102_s6 + $0x230] sm:$0xff] %v1862_v50  ;;  %1865 = vst [vmem:[%s14102_s6 + $0x238] sm:$0xff] %v1864_v51  ;;  %v1866_v52 = vld [vmem:[%s14097_s25 + $0x480] sm:$0xff]  ;;  %v1868_v53 = vld [vmem:[%s14097_s25 + $0x490] sm:$0xff] }
  0x6e   : > { %v1870_v54 = vld [vmem:[%s14097_s25 + $0x4a0] sm:$0xff]  ;;  %1867 = vst [vmem:[%s14102_s6 + $0x240] sm:$0xff] %v1866_v52  ;;  %1869 = vst [vmem:[%s14102_s6 + $0x248] sm:$0xff] %v1868_v53  ;;  %v1872_v55 = vld [vmem:[%s14097_s25 + $0x4b0] sm:$0xff] }
  0x6f   : > { %1871 = vst [vmem:[%s14102_s6 + $0x250] sm:$0xff] %v1870_v54  ;;  %v1874_v56 = vld [vmem:[%s14097_s25 + $0x4c0] sm:$0xff]  ;;  %v1876_v57 = vld [vmem:[%s14097_s25 + $0x4d0] sm:$0xff]  ;;  %1873 = vst [vmem:[%s14102_s6 + $0x258] sm:$0xff] %v1872_v55 }
  0x70   : > { %1875 = vst [vmem:[%s14102_s6 + $0x260] sm:$0xff] %v1874_v56  ;;  %1877 = vst [vmem:[%s14102_s6 + $0x268] sm:$0xff] %v1876_v57  ;;  %v1878_v58 = vld [vmem:[%s14097_s25 + $0x4e0] sm:$0xff]  ;;  %v1880_v59 = vld [vmem:[%s14097_s25 + $0x4f0] sm:$0xff] }
  0x71   : > { %v1882_v60 = vld [vmem:[%s14097_s25 + $0x500] sm:$0xff]  ;;  %1879 = vst [vmem:[%s14102_s6 + $0x270] sm:$0xff] %v1878_v58  ;;  %1881 = vst [vmem:[%s14102_s6 + $0x278] sm:$0xff] %v1880_v59  ;;  %v1884_v61 = vld [vmem:[%s14097_s25 + $0x510] sm:$0xff] }
  0x72   : > { %1883 = vst [vmem:[%s14102_s6 + $0x280] sm:$0xff] %v1882_v60  ;;  %v1886_v62 = vld [vmem:[%s14097_s25 + $0x520] sm:$0xff]  ;;  %v1888_v63 = vld [vmem:[%s14097_s25 + $0x530] sm:$0xff]  ;;  %1885 = vst [vmem:[%s14102_s6 + $0x288] sm:$0xff] %v1884_v61 }
  0x73   : > { %1887 = vst [vmem:[%s14102_s6 + $0x290] sm:$0xff] %v1886_v62  ;;  %1889 = vst [vmem:[%s14102_s6 + $0x298] sm:$0xff] %v1888_v63  ;;  %v1890_v0 = vld [vmem:[%s14097_s25 + $0x540] sm:$0xff]  ;;  %v1892_v1 = vld [vmem:[%s14097_s25 + $0x550] sm:$0xff] }
  0x74   : > { %v1894_v2 = vld [vmem:[%s14097_s25 + $0x560] sm:$0xff]  ;;  %1891 = vst [vmem:[%s14102_s6 + $0x2a0] sm:$0xff] %v1890_v0  ;;  %1893 = vst [vmem:[%s14102_s6 + $0x2a8] sm:$0xff] %v1892_v1  ;;  %v1896_v3 = vld [vmem:[%s14097_s25 + $0x570] sm:$0xff] }
  0x75   : > { %1895 = vst [vmem:[%s14102_s6 + $0x2b0] sm:$0xff] %v1894_v2  ;;  %v1898_v4 = vld [vmem:[%s14097_s25 + $0x580] sm:$0xff]  ;;  %v1900_v5 = vld [vmem:[%s14097_s25 + $0x590] sm:$0xff]  ;;  %1897 = vst [vmem:[%s14102_s6 + $0x2b8] sm:$0xff] %v1896_v3 }
  0x76   : > { %1899 = vst [vmem:[%s14102_s6 + $0x2c0] sm:$0xff] %v1898_v4  ;;  %1901 = vst [vmem:[%s14102_s6 + $0x2c8] sm:$0xff] %v1900_v5  ;;  %v1902_v6 = vld [vmem:[%s14097_s25 + $0x5a0] sm:$0xff]  ;;  %v1904_v7 = vld [vmem:[%s14097_s25 + $0x5b0] sm:$0xff] }
  0x77   : > { %v1906_v8 = vld [vmem:[%s14097_s25 + $0x5c0] sm:$0xff]  ;;  %1903 = vst [vmem:[%s14102_s6 + $0x2d0] sm:$0xff] %v1902_v6  ;;  %1905 = vst [vmem:[%s14102_s6 + $0x2d8] sm:$0xff] %v1904_v7  ;;  %v1908_v9 = vld [vmem:[%s14097_s25 + $0x5d0] sm:$0xff] }
  0x78   : > { %1907 = vst [vmem:[%s14102_s6 + $0x2e0] sm:$0xff] %v1906_v8  ;;  %v1910_v10 = vld [vmem:[%s14097_s25 + $0x5e0] sm:$0xff]  ;;  %v1912_v11 = vld [vmem:[%s14097_s25 + $0x5f0] sm:$0xff]  ;;  %1909 = vst [vmem:[%s14102_s6 + $0x2e8] sm:$0xff] %v1908_v9 }
  0x79   : > { %1911 = vst [vmem:[%s14102_s6 + $0x2f0] sm:$0xff] %v1910_v10  ;;  %1913 = vst [vmem:[%s14102_s6 + $0x2f8] sm:$0xff] %v1912_v11  ;;  %v1914_v12 = vld [vmem:[%s14097_s25 + $0x600] sm:$0xff]  ;;  %v1916_v13 = vld [vmem:[%s14097_s25 + $0x610] sm:$0xff] }
  0x7a   : > { %v1918_v14 = vld [vmem:[%s14097_s25 + $0x620] sm:$0xff]  ;;  %1915 = vst [vmem:[%s14102_s6 + $0x300] sm:$0xff] %v1914_v12  ;;  %1917 = vst [vmem:[%s14102_s6 + $0x308] sm:$0xff] %v1916_v13  ;;  %v1920_v15 = vld [vmem:[%s14097_s25 + $0x630] sm:$0xff] }
  0x7b   : > { %1919 = vst [vmem:[%s14102_s6 + $0x310] sm:$0xff] %v1918_v14  ;;  %v1922_v16 = vld [vmem:[%s14097_s25 + $0x640] sm:$0xff]  ;;  %v1924_v17 = vld [vmem:[%s14097_s25 + $0x650] sm:$0xff]  ;;  %1921 = vst [vmem:[%s14102_s6 + $0x318] sm:$0xff] %v1920_v15 }
  0x7c   : > { %1923 = vst [vmem:[%s14102_s6 + $0x320] sm:$0xff] %v1922_v16  ;;  %1925 = vst [vmem:[%s14102_s6 + $0x328] sm:$0xff] %v1924_v17  ;;  %v1926_v18 = vld [vmem:[%s14097_s25 + $0x660] sm:$0xff]  ;;  %v1928_v19 = vld [vmem:[%s14097_s25 + $0x670] sm:$0xff] }
  0x7d   : > { %v1930_v20 = vld [vmem:[%s14097_s25 + $0x680] sm:$0xff]  ;;  %1927 = vst [vmem:[%s14102_s6 + $0x330] sm:$0xff] %v1926_v18  ;;  %1929 = vst [vmem:[%s14102_s6 + $0x338] sm:$0xff] %v1928_v19  ;;  %v1932_v21 = vld [vmem:[%s14097_s25 + $0x690] sm:$0xff] }
  0x7e   : > { %1931 = vst [vmem:[%s14102_s6 + $0x340] sm:$0xff] %v1930_v20  ;;  %v1934_v22 = vld [vmem:[%s14097_s25 + $0x6a0] sm:$0xff]  ;;  %v1936_v23 = vld [vmem:[%s14097_s25 + $0x6b0] sm:$0xff]  ;;  %1933 = vst [vmem:[%s14102_s6 + $0x348] sm:$0xff] %v1932_v21 }
  0x7f   : > { %1935 = vst [vmem:[%s14102_s6 + $0x350] sm:$0xff] %v1934_v22  ;;  %1937 = vst [vmem:[%s14102_s6 + $0x358] sm:$0xff] %v1936_v23  ;;  %v1938_v24 = vld [vmem:[%s14097_s25 + $0x6c0] sm:$0xff]  ;;  %v1940_v25 = vld [vmem:[%s14097_s25 + $0x6d0] sm:$0xff] }
  0x80   : > { %v1942_v26 = vld [vmem:[%s14097_s25 + $0x6e0] sm:$0xff]  ;;  %1939 = vst [vmem:[%s14102_s6 + $0x360] sm:$0xff] %v1938_v24  ;;  %1941 = vst [vmem:[%s14102_s6 + $0x368] sm:$0xff] %v1940_v25  ;;  %v1944_v27 = vld [vmem:[%s14097_s25 + $0x6f0] sm:$0xff] }
  0x81   : > { %1943 = vst [vmem:[%s14102_s6 + $0x370] sm:$0xff] %v1942_v26  ;;  %v1946_v28 = vld [vmem:[%s14097_s25 + $0x700] sm:$0xff]  ;;  %v1948_v29 = vld [vmem:[%s14097_s25 + $0x710] sm:$0xff]  ;;  %1945 = vst [vmem:[%s14102_s6 + $0x378] sm:$0xff] %v1944_v27 }
  0x82   : > { %1947 = vst [vmem:[%s14102_s6 + $0x380] sm:$0xff] %v1946_v28  ;;  %1949 = vst [vmem:[%s14102_s6 + $0x388] sm:$0xff] %v1948_v29  ;;  %v1950_v30 = vld [vmem:[%s14097_s25 + $0x720] sm:$0xff]  ;;  %v1952_v31 = vld [vmem:[%s14097_s25 + $0x730] sm:$0xff] }
  0x83   : > { %v1954_v32 = vld [vmem:[%s14097_s25 + $0x740] sm:$0xff]  ;;  %1951 = vst [vmem:[%s14102_s6 + $0x390] sm:$0xff] %v1950_v30  ;;  %1953 = vst [vmem:[%s14102_s6 + $0x398] sm:$0xff] %v1952_v31  ;;  %v1956_v33 = vld [vmem:[%s14097_s25 + $0x750] sm:$0xff] }
  0x84   : > { %1955 = vst [vmem:[%s14102_s6 + $0x3a0] sm:$0xff] %v1954_v32  ;;  %v1958_v34 = vld [vmem:[%s14097_s25 + $0x760] sm:$0xff]  ;;  %v1960_v35 = vld [vmem:[%s14097_s25 + $0x770] sm:$0xff]  ;;  %1957 = vst [vmem:[%s14102_s6 + $0x3a8] sm:$0xff] %v1956_v33 }
  0x85   : > { %1959 = vst [vmem:[%s14102_s6 + $0x3b0] sm:$0xff] %v1958_v34  ;;  %1961 = vst [vmem:[%s14102_s6 + $0x3b8] sm:$0xff] %v1960_v35  ;;  %v1962_v36 = vld [vmem:[%s14097_s25 + $0x780] sm:$0xff]  ;;  %v1964_v37 = vld [vmem:[%s14097_s25 + $0x790] sm:$0xff] }
  0x86   : > { %v1966_v38 = vld [vmem:[%s14097_s25 + $0x7a0] sm:$0xff]  ;;  %1963 = vst [vmem:[%s14102_s6 + $0x3c0] sm:$0xff] %v1962_v36  ;;  %1965 = vst [vmem:[%s14102_s6 + $0x3c8] sm:$0xff] %v1964_v37  ;;  %v1968_v39 = vld [vmem:[%s14097_s25 + $0x7b0] sm:$0xff] }
  0x87   : > { %1967 = vst [vmem:[%s14102_s6 + $0x3d0] sm:$0xff] %v1966_v38  ;;  %v1970_v40 = vld [vmem:[%s14097_s25 + $0x7c0] sm:$0xff]  ;;  %v1972_v41 = vld [vmem:[%s14097_s25 + $0x7d0] sm:$0xff]  ;;  %1969 = vst [vmem:[%s14102_s6 + $0x3d8] sm:$0xff] %v1968_v39 }
  0x88   : > { %1971 = vst [vmem:[%s14102_s6 + $0x3e0] sm:$0xff] %v1970_v40  ;;  %1973 = vst [vmem:[%s14102_s6 + $0x3e8] sm:$0xff] %v1972_v41  ;;  %v1974_v42 = vld [vmem:[%s14097_s25 + $0x7e0] sm:$0xff]  ;;  %v1976_v43 = vld [vmem:[%s14097_s25 + $0x7f0] sm:$0xff] }
  0x89   : > { %v1978_v44 = vld [vmem:[%s14097_s25 + $0x800] sm:$0xff]  ;;  %1975 = vst [vmem:[%s14102_s6 + $0x3f0] sm:$0xff] %v1974_v42  ;;  %1977 = vst [vmem:[%s14102_s6 + $0x3f8] sm:$0xff] %v1976_v43  ;;  %v1980_v45 = vld [vmem:[%s14097_s25 + $0x810] sm:$0xff] }
  0x8a   : > { %1979 = vst [vmem:[%s14102_s6 + $0x400] sm:$0xff] %v1978_v44  ;;  %v1982_v46 = vld [vmem:[%s14097_s25 + $0x820] sm:$0xff]  ;;  %v1984_v47 = vld [vmem:[%s14097_s25 + $0x830] sm:$0xff]  ;;  %1981 = vst [vmem:[%s14102_s6 + $0x408] sm:$0xff] %v1980_v45 }
  0x8b   : > { %1983 = vst [vmem:[%s14102_s6 + $0x410] sm:$0xff] %v1982_v46  ;;  %1985 = vst [vmem:[%s14102_s6 + $0x418] sm:$0xff] %v1984_v47  ;;  %v1986_v48 = vld [vmem:[%s14097_s25 + $0x840] sm:$0xff]  ;;  %v1988_v49 = vld [vmem:[%s14097_s25 + $0x850] sm:$0xff] }
  0x8c   : > { %v1990_v50 = vld [vmem:[%s14097_s25 + $0x860] sm:$0xff]  ;;  %1987 = vst [vmem:[%s14102_s6 + $0x420] sm:$0xff] %v1986_v48  ;;  %1989 = vst [vmem:[%s14102_s6 + $0x428] sm:$0xff] %v1988_v49  ;;  %v1992_v51 = vld [vmem:[%s14097_s25 + $0x870] sm:$0xff] }
  0x8d   : > { %1991 = vst [vmem:[%s14102_s6 + $0x430] sm:$0xff] %v1990_v50  ;;  %v1994_v52 = vld [vmem:[%s14097_s25 + $0x880] sm:$0xff]  ;;  %v1996_v53 = vld [vmem:[%s14097_s25 + $0x890] sm:$0xff]  ;;  %1993 = vst [vmem:[%s14102_s6 + $0x438] sm:$0xff] %v1992_v51 }
  0x8e   : > { %1995 = vst [vmem:[%s14102_s6 + $0x440] sm:$0xff] %v1994_v52  ;;  %1997 = vst [vmem:[%s14102_s6 + $0x448] sm:$0xff] %v1996_v53  ;;  %v1998_v54 = vld [vmem:[%s14097_s25 + $0x8a0] sm:$0xff]  ;;  %v2000_v55 = vld [vmem:[%s14097_s25 + $0x8b0] sm:$0xff] }
  0x8f   : > { %v2002_v56 = vld [vmem:[%s14097_s25 + $0x8c0] sm:$0xff]  ;;  %1999 = vst [vmem:[%s14102_s6 + $0x450] sm:$0xff] %v1998_v54  ;;  %2001 = vst [vmem:[%s14102_s6 + $0x458] sm:$0xff] %v2000_v55  ;;  %v2004_v57 = vld [vmem:[%s14097_s25 + $0x8d0] sm:$0xff] }
  0x90   : > { %2003 = vst [vmem:[%s14102_s6 + $0x460] sm:$0xff] %v2002_v56  ;;  %v2006_v58 = vld [vmem:[%s14097_s25 + $0x8e0] sm:$0xff]  ;;  %v2008_v59 = vld [vmem:[%s14097_s25 + $0x8f0] sm:$0xff]  ;;  %2005 = vst [vmem:[%s14102_s6 + $0x468] sm:$0xff] %v2004_v57 }
  0x91   : > { %2007 = vst [vmem:[%s14102_s6 + $0x470] sm:$0xff] %v2006_v58  ;;  %2009 = vst [vmem:[%s14102_s6 + $0x478] sm:$0xff] %v2008_v59  ;;  %v2010_v60 = vld [vmem:[%s14097_s25 + $0x900] sm:$0xff]  ;;  %v2012_v61 = vld [vmem:[%s14097_s25 + $0x910] sm:$0xff] }
  0x92   : > { %v2014_v62 = vld [vmem:[%s14097_s25 + $0x920] sm:$0xff]  ;;  %2011 = vst [vmem:[%s14102_s6 + $0x480] sm:$0xff] %v2010_v60  ;;  %2013 = vst [vmem:[%s14102_s6 + $0x488] sm:$0xff] %v2012_v61  ;;  %v2016_v63 = vld [vmem:[%s14097_s25 + $0x930] sm:$0xff] }
  0x93   : > { %2015 = vst [vmem:[%s14102_s6 + $0x490] sm:$0xff] %v2014_v62  ;;  %v2018_v0 = vld [vmem:[%s14097_s25 + $0x940] sm:$0xff]  ;;  %v2020_v1 = vld [vmem:[%s14097_s25 + $0x950] sm:$0xff]  ;;  %2017 = vst [vmem:[%s14102_s6 + $0x498] sm:$0xff] %v2016_v63 }
  0x94   : > { %2019 = vst [vmem:[%s14102_s6 + $0x4a0] sm:$0xff] %v2018_v0  ;;  %2021 = vst [vmem:[%s14102_s6 + $0x4a8] sm:$0xff] %v2020_v1  ;;  %v2022_v2 = vld [vmem:[%s14097_s25 + $0x960] sm:$0xff]  ;;  %v2024_v3 = vld [vmem:[%s14097_s25 + $0x970] sm:$0xff] }
  0x95   : > { %v2026_v4 = vld [vmem:[%s14097_s25 + $0x980] sm:$0xff]  ;;  %2023 = vst [vmem:[%s14102_s6 + $0x4b0] sm:$0xff] %v2022_v2  ;;  %2025 = vst [vmem:[%s14102_s6 + $0x4b8] sm:$0xff] %v2024_v3  ;;  %v2028_v5 = vld [vmem:[%s14097_s25 + $0x990] sm:$0xff] }
  0x96   : > { %2027 = vst [vmem:[%s14102_s6 + $0x4c0] sm:$0xff] %v2026_v4  ;;  %v2030_v6 = vld [vmem:[%s14097_s25 + $0x9a0] sm:$0xff]  ;;  %v2032_v7 = vld [vmem:[%s14097_s25 + $0x9b0] sm:$0xff]  ;;  %2029 = vst [vmem:[%s14102_s6 + $0x4c8] sm:$0xff] %v2028_v5 }
  0x97   : > { %2031 = vst [vmem:[%s14102_s6 + $0x4d0] sm:$0xff] %v2030_v6  ;;  %2033 = vst [vmem:[%s14102_s6 + $0x4d8] sm:$0xff] %v2032_v7  ;;  %v2034_v8 = vld [vmem:[%s14097_s25 + $0x9c0] sm:$0xff]  ;;  %v2036_v9 = vld [vmem:[%s14097_s25 + $0x9d0] sm:$0xff] }
  0x98   : > { %v2038_v10 = vld [vmem:[%s14097_s25 + $0x9e0] sm:$0xff]  ;;  %2035 = vst [vmem:[%s14102_s6 + $0x4e0] sm:$0xff] %v2034_v8  ;;  %2037 = vst [vmem:[%s14102_s6 + $0x4e8] sm:$0xff] %v2036_v9  ;;  %v2040_v11 = vld [vmem:[%s14097_s25 + $0x9f0] sm:$0xff] }
  0x99   : > { %2039 = vst [vmem:[%s14102_s6 + $0x4f0] sm:$0xff] %v2038_v10  ;;  %v2042_v12 = vld [vmem:[%s14097_s25 + $0xa00] sm:$0xff]  ;;  %v2044_v13 = vld [vmem:[%s14097_s25 + $0xa10] sm:$0xff]  ;;  %2041 = vst [vmem:[%s14102_s6 + $0x4f8] sm:$0xff] %v2040_v11 }
  0x9a   : > { %2043 = vst [vmem:[%s14102_s6 + $0x500] sm:$0xff] %v2042_v12  ;;  %2045 = vst [vmem:[%s14102_s6 + $0x508] sm:$0xff] %v2044_v13  ;;  %v2046_v14 = vld [vmem:[%s14097_s25 + $0xa20] sm:$0xff]  ;;  %v2048_v15 = vld [vmem:[%s14097_s25 + $0xa30] sm:$0xff] }
  0x9b   : > { %v2050_v16 = vld [vmem:[%s14097_s25 + $0xa40] sm:$0xff]  ;;  %2047 = vst [vmem:[%s14102_s6 + $0x510] sm:$0xff] %v2046_v14  ;;  %2049 = vst [vmem:[%s14102_s6 + $0x518] sm:$0xff] %v2048_v15  ;;  %v2052_v17 = vld [vmem:[%s14097_s25 + $0xa50] sm:$0xff] }
  0x9c   : > { %2051 = vst [vmem:[%s14102_s6 + $0x520] sm:$0xff] %v2050_v16  ;;  %v2054_v18 = vld [vmem:[%s14097_s25 + $0xa60] sm:$0xff]  ;;  %v2056_v19 = vld [vmem:[%s14097_s25 + $0xa70] sm:$0xff]  ;;  %2053 = vst [vmem:[%s14102_s6 + $0x528] sm:$0xff] %v2052_v17 }
  0x9d   : > { %2055 = vst [vmem:[%s14102_s6 + $0x530] sm:$0xff] %v2054_v18  ;;  %2057 = vst [vmem:[%s14102_s6 + $0x538] sm:$0xff] %v2056_v19  ;;  %v2058_v20 = vld [vmem:[%s14097_s25 + $0xa80] sm:$0xff]  ;;  %v2060_v21 = vld [vmem:[%s14097_s25 + $0xa90] sm:$0xff] }
  0x9e   : > { %v2062_v22 = vld [vmem:[%s14097_s25 + $0xaa0] sm:$0xff]  ;;  %2059 = vst [vmem:[%s14102_s6 + $0x540] sm:$0xff] %v2058_v20  ;;  %2061 = vst [vmem:[%s14102_s6 + $0x548] sm:$0xff] %v2060_v21  ;;  %v2064_v23 = vld [vmem:[%s14097_s25 + $0xab0] sm:$0xff] }
  0x9f   : > { %2063 = vst [vmem:[%s14102_s6 + $0x550] sm:$0xff] %v2062_v22  ;;  %v2066_v24 = vld [vmem:[%s14097_s25 + $0xac0] sm:$0xff]  ;;  %v2068_v25 = vld [vmem:[%s14097_s25 + $0xad0] sm:$0xff]  ;;  %2065 = vst [vmem:[%s14102_s6 + $0x558] sm:$0xff] %v2064_v23 }
  0xa0   : > { %2067 = vst [vmem:[%s14102_s6 + $0x560] sm:$0xff] %v2066_v24  ;;  %2069 = vst [vmem:[%s14102_s6 + $0x568] sm:$0xff] %v2068_v25  ;;  %v2070_v26 = vld [vmem:[%s14097_s25 + $0xae0] sm:$0xff]  ;;  %v2072_v27 = vld [vmem:[%s14097_s25 + $0xaf0] sm:$0xff] }
  0xa1   : > { %v2074_v28 = vld [vmem:[%s14097_s25 + $0xb00] sm:$0xff]  ;;  %2071 = vst [vmem:[%s14102_s6 + $0x570] sm:$0xff] %v2070_v26  ;;  %2073 = vst [vmem:[%s14102_s6 + $0x578] sm:$0xff] %v2072_v27  ;;  %v2076_v29 = vld [vmem:[%s14097_s25 + $0xb10] sm:$0xff] }
  0xa2   : > { %2075 = vst [vmem:[%s14102_s6 + $0x580] sm:$0xff] %v2074_v28  ;;  %v2078_v30 = vld [vmem:[%s14097_s25 + $0xb20] sm:$0xff]  ;;  %v2080_v31 = vld [vmem:[%s14097_s25 + $0xb30] sm:$0xff]  ;;  %2077 = vst [vmem:[%s14102_s6 + $0x588] sm:$0xff] %v2076_v29 }
  0xa3   : > { %2079 = vst [vmem:[%s14102_s6 + $0x590] sm:$0xff] %v2078_v30  ;;  %2081 = vst [vmem:[%s14102_s6 + $0x598] sm:$0xff] %v2080_v31  ;;  %v2082_v32 = vld [vmem:[%s14097_s25 + $0xb40] sm:$0xff]  ;;  %v2084_v33 = vld [vmem:[%s14097_s25 + $0xb50] sm:$0xff] }
  0xa4   : > { %v2086_v34 = vld [vmem:[%s14097_s25 + $0xb60] sm:$0xff]  ;;  %2083 = vst [vmem:[%s14102_s6 + $0x5a0] sm:$0xff] %v2082_v32  ;;  %2085 = vst [vmem:[%s14102_s6 + $0x5a8] sm:$0xff] %v2084_v33  ;;  %v2088_v35 = vld [vmem:[%s14097_s25 + $0xb70] sm:$0xff] }
  0xa5   : > { %2087 = vst [vmem:[%s14102_s6 + $0x5b0] sm:$0xff] %v2086_v34  ;;  %v2090_v36 = vld [vmem:[%s14097_s25 + $0xb80] sm:$0xff]  ;;  %v2092_v37 = vld [vmem:[%s14097_s25 + $0xb90] sm:$0xff]  ;;  %2089 = vst [vmem:[%s14102_s6 + $0x5b8] sm:$0xff] %v2088_v35 }
  0xa6   : > { %2091 = vst [vmem:[%s14102_s6 + $0x5c0] sm:$0xff] %v2090_v36  ;;  %2093 = vst [vmem:[%s14102_s6 + $0x5c8] sm:$0xff] %v2092_v37  ;;  %v2094_v38 = vld [vmem:[%s14097_s25 + $0xba0] sm:$0xff]  ;;  %v2096_v39 = vld [vmem:[%s14097_s25 + $0xbb0] sm:$0xff] }
  0xa7   : > { %v2098_v40 = vld [vmem:[%s14097_s25 + $0xbc0] sm:$0xff]  ;;  %2095 = vst [vmem:[%s14102_s6 + $0x5d0] sm:$0xff] %v2094_v38  ;;  %2097 = vst [vmem:[%s14102_s6 + $0x5d8] sm:$0xff] %v2096_v39  ;;  %v2100_v41 = vld [vmem:[%s14097_s25 + $0xbd0] sm:$0xff] }
  0xa8   : > { %2099 = vst [vmem:[%s14102_s6 + $0x5e0] sm:$0xff] %v2098_v40  ;;  %v2102_v42 = vld [vmem:[%s14097_s25 + $0xbe0] sm:$0xff]  ;;  %v2104_v43 = vld [vmem:[%s14097_s25 + $0xbf0] sm:$0xff]  ;;  %2101 = vst [vmem:[%s14102_s6 + $0x5e8] sm:$0xff] %v2100_v41 }
  0xa9   : > { %2103 = vst [vmem:[%s14102_s6 + $0x5f0] sm:$0xff] %v2102_v42  ;;  %2105 = vst [vmem:[%s14102_s6 + $0x5f8] sm:$0xff] %v2104_v43  ;;  %v2106_v44 = vld [vmem:[%s14097_s25 + $0xc00] sm:$0xff]  ;;  %v2108_v45 = vld [vmem:[%s14097_s25 + $0xc10] sm:$0xff] }
  0xaa   : > { %v2110_v46 = vld [vmem:[%s14097_s25 + $0xc20] sm:$0xff]  ;;  %2107 = vst [vmem:[%s14102_s6 + $0x600] sm:$0xff] %v2106_v44  ;;  %2109 = vst [vmem:[%s14102_s6 + $0x608] sm:$0xff] %v2108_v45  ;;  %v2112_v47 = vld [vmem:[%s14097_s25 + $0xc30] sm:$0xff] }
  0xab   : > { %2111 = vst [vmem:[%s14102_s6 + $0x610] sm:$0xff] %v2110_v46  ;;  %v2114_v48 = vld [vmem:[%s14097_s25 + $0xc40] sm:$0xff]  ;;  %v2116_v49 = vld [vmem:[%s14097_s25 + $0xc50] sm:$0xff]  ;;  %2113 = vst [vmem:[%s14102_s6 + $0x618] sm:$0xff] %v2112_v47 }
  0xac   : > { %2115 = vst [vmem:[%s14102_s6 + $0x620] sm:$0xff] %v2114_v48  ;;  %2117 = vst [vmem:[%s14102_s6 + $0x628] sm:$0xff] %v2116_v49  ;;  %v2118_v50 = vld [vmem:[%s14097_s25 + $0xc60] sm:$0xff]  ;;  %v2120_v51 = vld [vmem:[%s14097_s25 + $0xc70] sm:$0xff] }
  0xad   : > { %v2122_v52 = vld [vmem:[%s14097_s25 + $0xc80] sm:$0xff]  ;;  %2119 = vst [vmem:[%s14102_s6 + $0x630] sm:$0xff] %v2118_v50  ;;  %2121 = vst [vmem:[%s14102_s6 + $0x638] sm:$0xff] %v2120_v51  ;;  %v2124_v53 = vld [vmem:[%s14097_s25 + $0xc90] sm:$0xff] }
  0xae   : > { %2123 = vst [vmem:[%s14102_s6 + $0x640] sm:$0xff] %v2122_v52  ;;  %v2126_v54 = vld [vmem:[%s14097_s25 + $0xca0] sm:$0xff]  ;;  %v2128_v55 = vld [vmem:[%s14097_s25 + $0xcb0] sm:$0xff]  ;;  %2125 = vst [vmem:[%s14102_s6 + $0x648] sm:$0xff] %v2124_v53 }
  0xaf   : > { %2127 = vst [vmem:[%s14102_s6 + $0x650] sm:$0xff] %v2126_v54  ;;  %2129 = vst [vmem:[%s14102_s6 + $0x658] sm:$0xff] %v2128_v55  ;;  %v2130_v56 = vld [vmem:[%s14097_s25 + $0xcc0] sm:$0xff]  ;;  %v2132_v57 = vld [vmem:[%s14097_s25 + $0xcd0] sm:$0xff] }
  0xb0   : > { %v2134_v58 = vld [vmem:[%s14097_s25 + $0xce0] sm:$0xff]  ;;  %2131 = vst [vmem:[%s14102_s6 + $0x660] sm:$0xff] %v2130_v56  ;;  %2133 = vst [vmem:[%s14102_s6 + $0x668] sm:$0xff] %v2132_v57  ;;  %v2136_v59 = vld [vmem:[%s14097_s25 + $0xcf0] sm:$0xff] }
  0xb1   : > { %2135 = vst [vmem:[%s14102_s6 + $0x670] sm:$0xff] %v2134_v58  ;;  %v2138_v60 = vld [vmem:[%s14097_s25 + $0xd00] sm:$0xff]  ;;  %v2140_v61 = vld [vmem:[%s14097_s25 + $0xd10] sm:$0xff]  ;;  %2137 = vst [vmem:[%s14102_s6 + $0x678] sm:$0xff] %v2136_v59 }
  0xb2   : > { %2139 = vst [vmem:[%s14102_s6 + $0x680] sm:$0xff] %v2138_v60  ;;  %2141 = vst [vmem:[%s14102_s6 + $0x688] sm:$0xff] %v2140_v61  ;;  %v2142_v62 = vld [vmem:[%s14097_s25 + $0xd20] sm:$0xff]  ;;  %v2144_v63 = vld [vmem:[%s14097_s25 + $0xd30] sm:$0xff] }
  0xb3   : > { %v2146_v0 = vld [vmem:[%s14097_s25 + $0xd40] sm:$0xff]  ;;  %2143 = vst [vmem:[%s14102_s6 + $0x690] sm:$0xff] %v2142_v62  ;;  %2145 = vst [vmem:[%s14102_s6 + $0x698] sm:$0xff] %v2144_v63  ;;  %v2148_v1 = vld [vmem:[%s14097_s25 + $0xd50] sm:$0xff] }
  0xb4   : > { %2147 = vst [vmem:[%s14102_s6 + $0x6a0] sm:$0xff] %v2146_v0  ;;  %v2150_v2 = vld [vmem:[%s14097_s25 + $0xd60] sm:$0xff]  ;;  %v2152_v3 = vld [vmem:[%s14097_s25 + $0xd70] sm:$0xff]  ;;  %2149 = vst [vmem:[%s14102_s6 + $0x6a8] sm:$0xff] %v2148_v1 }
  0xb5   : > { %2151 = vst [vmem:[%s14102_s6 + $0x6b0] sm:$0xff] %v2150_v2  ;;  %2153 = vst [vmem:[%s14102_s6 + $0x6b8] sm:$0xff] %v2152_v3  ;;  %v2154_v4 = vld [vmem:[%s14097_s25 + $0xd80] sm:$0xff]  ;;  %v2156_v5 = vld [vmem:[%s14097_s25 + $0xd90] sm:$0xff] }
  0xb6   : > { %v2158_v6 = vld [vmem:[%s14097_s25 + $0xda0] sm:$0xff]  ;;  %2155 = vst [vmem:[%s14102_s6 + $0x6c0] sm:$0xff] %v2154_v4  ;;  %2157 = vst [vmem:[%s14102_s6 + $0x6c8] sm:$0xff] %v2156_v5  ;;  %v2160_v7 = vld [vmem:[%s14097_s25 + $0xdb0] sm:$0xff] }
  0xb7   : > { %2159 = vst [vmem:[%s14102_s6 + $0x6d0] sm:$0xff] %v2158_v6  ;;  %v2162_v8 = vld [vmem:[%s14097_s25 + $0xdc0] sm:$0xff]  ;;  %v2164_v9 = vld [vmem:[%s14097_s25 + $0xdd0] sm:$0xff]  ;;  %2161 = vst [vmem:[%s14102_s6 + $0x6d8] sm:$0xff] %v2160_v7 }
  0xb8   : > { %2163 = vst [vmem:[%s14102_s6 + $0x6e0] sm:$0xff] %v2162_v8  ;;  %2165 = vst [vmem:[%s14102_s6 + $0x6e8] sm:$0xff] %v2164_v9  ;;  %v2166_v10 = vld [vmem:[%s14097_s25 + $0xde0] sm:$0xff]  ;;  %v2168_v11 = vld [vmem:[%s14097_s25 + $0xdf0] sm:$0xff] }
  0xb9   : > { %v2170_v12 = vld [vmem:[%s14097_s25 + $0xe00] sm:$0xff]  ;;  %2167 = vst [vmem:[%s14102_s6 + $0x6f0] sm:$0xff] %v2166_v10  ;;  %2169 = vst [vmem:[%s14102_s6 + $0x6f8] sm:$0xff] %v2168_v11  ;;  %v2172_v13 = vld [vmem:[%s14097_s25 + $0xe10] sm:$0xff] }
  0xba   : > { %2171 = vst [vmem:[%s14102_s6 + $0x700] sm:$0xff] %v2170_v12  ;;  %v2174_v14 = vld [vmem:[%s14097_s25 + $0xe20] sm:$0xff]  ;;  %v2176_v15 = vld [vmem:[%s14097_s25 + $0xe30] sm:$0xff]  ;;  %2173 = vst [vmem:[%s14102_s6 + $0x708] sm:$0xff] %v2172_v13 }
  0xbb   : > { %2175 = vst [vmem:[%s14102_s6 + $0x710] sm:$0xff] %v2174_v14  ;;  %2177 = vst [vmem:[%s14102_s6 + $0x718] sm:$0xff] %v2176_v15  ;;  %v2178_v16 = vld [vmem:[%s14097_s25 + $0xe40] sm:$0xff]  ;;  %v2180_v17 = vld [vmem:[%s14097_s25 + $0xe50] sm:$0xff] }
  0xbc   : > { %v2182_v18 = vld [vmem:[%s14097_s25 + $0xe60] sm:$0xff]  ;;  %2179 = vst [vmem:[%s14102_s6 + $0x720] sm:$0xff] %v2178_v16  ;;  %2181 = vst [vmem:[%s14102_s6 + $0x728] sm:$0xff] %v2180_v17  ;;  %v2184_v19 = vld [vmem:[%s14097_s25 + $0xe70] sm:$0xff] }
  0xbd   : > { %2183 = vst [vmem:[%s14102_s6 + $0x730] sm:$0xff] %v2182_v18  ;;  %v2186_v20 = vld [vmem:[%s14097_s25 + $0xe80] sm:$0xff]  ;;  %v2188_v21 = vld [vmem:[%s14097_s25 + $0xe90] sm:$0xff]  ;;  %2185 = vst [vmem:[%s14102_s6 + $0x738] sm:$0xff] %v2184_v19 }
  0xbe   : > { %2187 = vst [vmem:[%s14102_s6 + $0x740] sm:$0xff] %v2186_v20  ;;  %2189 = vst [vmem:[%s14102_s6 + $0x748] sm:$0xff] %v2188_v21  ;;  %v2190_v22 = vld [vmem:[%s14097_s25 + $0xea0] sm:$0xff]  ;;  %v2192_v23 = vld [vmem:[%s14097_s25 + $0xeb0] sm:$0xff] }
  0xbf   : > { %v2194_v24 = vld [vmem:[%s14097_s25 + $0xec0] sm:$0xff]  ;;  %2191 = vst [vmem:[%s14102_s6 + $0x750] sm:$0xff] %v2190_v22  ;;  %2193 = vst [vmem:[%s14102_s6 + $0x758] sm:$0xff] %v2192_v23  ;;  %v2196_v25 = vld [vmem:[%s14097_s25 + $0xed0] sm:$0xff] }
  0xc0   : > { %2195 = vst [vmem:[%s14102_s6 + $0x760] sm:$0xff] %v2194_v24  ;;  %v2198_v26 = vld [vmem:[%s14097_s25 + $0xee0] sm:$0xff]  ;;  %v2200_v27 = vld [vmem:[%s14097_s25 + $0xef0] sm:$0xff]  ;;  %2197 = vst [vmem:[%s14102_s6 + $0x768] sm:$0xff] %v2196_v25 }
  0xc1   : > { %2199 = vst [vmem:[%s14102_s6 + $0x770] sm:$0xff] %v2198_v26  ;;  %2201 = vst [vmem:[%s14102_s6 + $0x778] sm:$0xff] %v2200_v27  ;;  %v2202_v28 = vld [vmem:[%s14097_s25 + $0xf00] sm:$0xff]  ;;  %v2204_v29 = vld [vmem:[%s14097_s25 + $0xf10] sm:$0xff] }
  0xc2   : > { %v2206_v30 = vld [vmem:[%s14097_s25 + $0xf20] sm:$0xff]  ;;  %2203 = vst [vmem:[%s14102_s6 + $0x780] sm:$0xff] %v2202_v28  ;;  %2205 = vst [vmem:[%s14102_s6 + $0x788] sm:$0xff] %v2204_v29  ;;  %v2208_v31 = vld [vmem:[%s14097_s25 + $0xf30] sm:$0xff] }
  0xc3   : > { %2207 = vst [vmem:[%s14102_s6 + $0x790] sm:$0xff] %v2206_v30  ;;  %v2210_v32 = vld [vmem:[%s14097_s25 + $0xf40] sm:$0xff]  ;;  %v2212_v33 = vld [vmem:[%s14097_s25 + $0xf50] sm:$0xff]  ;;  %2209 = vst [vmem:[%s14102_s6 + $0x798] sm:$0xff] %v2208_v31 }
  0xc4   : > { %2211 = vst [vmem:[%s14102_s6 + $0x7a0] sm:$0xff] %v2210_v32  ;;  %2213 = vst [vmem:[%s14102_s6 + $0x7a8] sm:$0xff] %v2212_v33  ;;  %v2214_v34 = vld [vmem:[%s14097_s25 + $0xf60] sm:$0xff]  ;;  %v2216_v35 = vld [vmem:[%s14097_s25 + $0xf70] sm:$0xff] }
  0xc5   : > { %v2218_v36 = vld [vmem:[%s14097_s25 + $0xf80] sm:$0xff]  ;;  %2215 = vst [vmem:[%s14102_s6 + $0x7b0] sm:$0xff] %v2214_v34  ;;  %2217 = vst [vmem:[%s14102_s6 + $0x7b8] sm:$0xff] %v2216_v35  ;;  %v2220_v37 = vld [vmem:[%s14097_s25 + $0xf90] sm:$0xff] }
  0xc6   : > { %2219 = vst [vmem:[%s14102_s6 + $0x7c0] sm:$0xff] %v2218_v36  ;;  %v2222_v38 = vld [vmem:[%s14097_s25 + $0xfa0] sm:$0xff]  ;;  %v2224_v39 = vld [vmem:[%s14097_s25 + $0xfb0] sm:$0xff]  ;;  %2221 = vst [vmem:[%s14102_s6 + $0x7c8] sm:$0xff] %v2220_v37 }
  0xc7   : > { %2223 = vst [vmem:[%s14102_s6 + $0x7d0] sm:$0xff] %v2222_v38  ;;  %2225 = vst [vmem:[%s14102_s6 + $0x7d8] sm:$0xff] %v2224_v39  ;;  %v2226_v40 = vld [vmem:[%s14097_s25 + $0xfc0] sm:$0xff]  ;;  %v2228_v41 = vld [vmem:[%s14097_s25 + $0xfd0] sm:$0xff] }
  0xc8   : > { %v2230_v42 = vld [vmem:[%s14097_s25 + $0xfe0] sm:$0xff]  ;;  %2227 = vst [vmem:[%s14102_s6 + $0x7e0] sm:$0xff] %v2226_v40  ;;  %2229 = vst [vmem:[%s14102_s6 + $0x7e8] sm:$0xff] %v2228_v41  ;;  %v2232_v43 = vld [vmem:[%s14097_s25 + $0xff0] sm:$0xff] }
  0xc9   : > { %2231 = vst [vmem:[%s14102_s6 + $0x7f0] sm:$0xff] %v2230_v42  ;;  %v2234_v44 = vld [vmem:[%s14097_s25 + $0x1000] sm:$0xff]  ;;  %v2236_v45 = vld [vmem:[%s14097_s25 + $0x1010] sm:$0xff]  ;;  %2233 = vst [vmem:[%s14102_s6 + $0x7f8] sm:$0xff] %v2232_v43 }
  0xca   : > { %2235 = vst [vmem:[%s14102_s6 + $0x800] sm:$0xff] %v2234_v44  ;;  %2237 = vst [vmem:[%s14102_s6 + $0x808] sm:$0xff] %v2236_v45  ;;  %v2238_v46 = vld [vmem:[%s14097_s25 + $0x1020] sm:$0xff]  ;;  %v2240_v47 = vld [vmem:[%s14097_s25 + $0x1030] sm:$0xff] }
  0xcb   : > { %v2242_v48 = vld [vmem:[%s14097_s25 + $0x1040] sm:$0xff]  ;;  %2239 = vst [vmem:[%s14102_s6 + $0x810] sm:$0xff] %v2238_v46  ;;  %2241 = vst [vmem:[%s14102_s6 + $0x818] sm:$0xff] %v2240_v47  ;;  %v2244_v49 = vld [vmem:[%s14097_s25 + $0x1050] sm:$0xff] }
  0xcc   : > { %2243 = vst [vmem:[%s14102_s6 + $0x820] sm:$0xff] %v2242_v48  ;;  %v2246_v50 = vld [vmem:[%s14097_s25 + $0x1060] sm:$0xff]  ;;  %v2248_v51 = vld [vmem:[%s14097_s25 + $0x1070] sm:$0xff]  ;;  %2245 = vst [vmem:[%s14102_s6 + $0x828] sm:$0xff] %v2244_v49 }
  0xcd   : > { %2247 = vst [vmem:[%s14102_s6 + $0x830] sm:$0xff] %v2246_v50  ;;  %2249 = vst [vmem:[%s14102_s6 + $0x838] sm:$0xff] %v2248_v51  ;;  %v2250_v52 = vld [vmem:[%s14097_s25 + $0x1080] sm:$0xff]  ;;  %v2252_v53 = vld [vmem:[%s14097_s25 + $0x1090] sm:$0xff] }
  0xce   : > { %v2254_v54 = vld [vmem:[%s14097_s25 + $0x10a0] sm:$0xff]  ;;  %2251 = vst [vmem:[%s14102_s6 + $0x840] sm:$0xff] %v2250_v52  ;;  %2253 = vst [vmem:[%s14102_s6 + $0x848] sm:$0xff] %v2252_v53  ;;  %v2256_v55 = vld [vmem:[%s14097_s25 + $0x10b0] sm:$0xff] }
  0xcf   : > { %2255 = vst [vmem:[%s14102_s6 + $0x850] sm:$0xff] %v2254_v54  ;;  %v2258_v56 = vld [vmem:[%s14097_s25 + $0x10c0] sm:$0xff]  ;;  %v2260_v57 = vld [vmem:[%s14097_s25 + $0x10d0] sm:$0xff]  ;;  %2257 = vst [vmem:[%s14102_s6 + $0x858] sm:$0xff] %v2256_v55 }
  0xd0   : > { %2259 = vst [vmem:[%s14102_s6 + $0x860] sm:$0xff] %v2258_v56  ;;  %2261 = vst [vmem:[%s14102_s6 + $0x868] sm:$0xff] %v2260_v57  ;;  %v2262_v58 = vld [vmem:[%s14097_s25 + $0x10e0] sm:$0xff]  ;;  %v2264_v59 = vld [vmem:[%s14097_s25 + $0x10f0] sm:$0xff] }
  0xd1   : > { %v2266_v60 = vld [vmem:[%s14097_s25 + $0x1100] sm:$0xff]  ;;  %2263 = vst [vmem:[%s14102_s6 + $0x870] sm:$0xff] %v2262_v58  ;;  %2265 = vst [vmem:[%s14102_s6 + $0x878] sm:$0xff] %v2264_v59  ;;  %v2268_v61 = vld [vmem:[%s14097_s25 + $0x1110] sm:$0xff] }
  0xd2   : > { %2267 = vst [vmem:[%s14102_s6 + $0x880] sm:$0xff] %v2266_v60  ;;  %v2270_v62 = vld [vmem:[%s14097_s25 + $0x1120] sm:$0xff]  ;;  %v2272_v63 = vld [vmem:[%s14097_s25 + $0x1130] sm:$0xff]  ;;  %2269 = vst [vmem:[%s14102_s6 + $0x888] sm:$0xff] %v2268_v61 }
  0xd3   : > { %2271 = vst [vmem:[%s14102_s6 + $0x890] sm:$0xff] %v2270_v62  ;;  %2273 = vst [vmem:[%s14102_s6 + $0x898] sm:$0xff] %v2272_v63  ;;  %v2274_v0 = vld [vmem:[%s14097_s25 + $0x1140] sm:$0xff]  ;;  %v2276_v1 = vld [vmem:[%s14097_s25 + $0x1150] sm:$0xff] }
  0xd4   : > { %v2278_v2 = vld [vmem:[%s14097_s25 + $0x1160] sm:$0xff]  ;;  %2275 = vst [vmem:[%s14102_s6 + $0x8a0] sm:$0xff] %v2274_v0  ;;  %2277 = vst [vmem:[%s14102_s6 + $0x8a8] sm:$0xff] %v2276_v1  ;;  %v2280_v3 = vld [vmem:[%s14097_s25 + $0x1170] sm:$0xff] }
  0xd5   : > { %2279 = vst [vmem:[%s14102_s6 + $0x8b0] sm:$0xff] %v2278_v2  ;;  %v2282_v4 = vld [vmem:[%s14097_s25 + $0x1180] sm:$0xff]  ;;  %v2284_v5 = vld [vmem:[%s14097_s25 + $0x1190] sm:$0xff]  ;;  %2281 = vst [vmem:[%s14102_s6 + $0x8b8] sm:$0xff] %v2280_v3 }
  0xd6   : > { %2283 = vst [vmem:[%s14102_s6 + $0x8c0] sm:$0xff] %v2282_v4  ;;  %2285 = vst [vmem:[%s14102_s6 + $0x8c8] sm:$0xff] %v2284_v5  ;;  %v2286_v6 = vld [vmem:[%s14097_s25 + $0x11a0] sm:$0xff]  ;;  %v2288_v7 = vld [vmem:[%s14097_s25 + $0x11b0] sm:$0xff] }
  0xd7   : > { %v2290_v8 = vld [vmem:[%s14097_s25 + $0x11c0] sm:$0xff]  ;;  %2287 = vst [vmem:[%s14102_s6 + $0x8d0] sm:$0xff] %v2286_v6  ;;  %2289 = vst [vmem:[%s14102_s6 + $0x8d8] sm:$0xff] %v2288_v7  ;;  %v2292_v9 = vld [vmem:[%s14097_s25 + $0x11d0] sm:$0xff] }
  0xd8   : > { %2291 = vst [vmem:[%s14102_s6 + $0x8e0] sm:$0xff] %v2290_v8  ;;  %v2294_v10 = vld [vmem:[%s14097_s25 + $0x11e0] sm:$0xff]  ;;  %v2296_v11 = vld [vmem:[%s14097_s25 + $0x11f0] sm:$0xff]  ;;  %2293 = vst [vmem:[%s14102_s6 + $0x8e8] sm:$0xff] %v2292_v9 }
  0xd9   : > { %2295 = vst [vmem:[%s14102_s6 + $0x8f0] sm:$0xff] %v2294_v10  ;;  %2297 = vst [vmem:[%s14102_s6 + $0x8f8] sm:$0xff] %v2296_v11  ;;  %v2298_v12 = vld [vmem:[%s14097_s25 + $0x1200] sm:$0xff]  ;;  %v2300_v13 = vld [vmem:[%s14097_s25 + $0x1210] sm:$0xff] }
  0xda   : > { %v2302_v14 = vld [vmem:[%s14097_s25 + $0x1220] sm:$0xff]  ;;  %2299 = vst [vmem:[%s14102_s6 + $0x900] sm:$0xff] %v2298_v12  ;;  %2301 = vst [vmem:[%s14102_s6 + $0x908] sm:$0xff] %v2300_v13  ;;  %v2304_v15 = vld [vmem:[%s14097_s25 + $0x1230] sm:$0xff] }
  0xdb   : > { %2303 = vst [vmem:[%s14102_s6 + $0x910] sm:$0xff] %v2302_v14  ;;  %v2306_v16 = vld [vmem:[%s14097_s25 + $0x1240] sm:$0xff]  ;;  %v2308_v17 = vld [vmem:[%s14097_s25 + $0x1250] sm:$0xff]  ;;  %2305 = vst [vmem:[%s14102_s6 + $0x918] sm:$0xff] %v2304_v15 }
  0xdc   : > { %2307 = vst [vmem:[%s14102_s6 + $0x920] sm:$0xff] %v2306_v16  ;;  %2309 = vst [vmem:[%s14102_s6 + $0x928] sm:$0xff] %v2308_v17  ;;  %v2310_v18 = vld [vmem:[%s14097_s25 + $0x1260] sm:$0xff]  ;;  %v2312_v19 = vld [vmem:[%s14097_s25 + $0x1270] sm:$0xff] }
  0xdd   : > { %v2314_v20 = vld [vmem:[%s14097_s25 + $0x1280] sm:$0xff]  ;;  %2311 = vst [vmem:[%s14102_s6 + $0x930] sm:$0xff] %v2310_v18  ;;  %2313 = vst [vmem:[%s14102_s6 + $0x938] sm:$0xff] %v2312_v19  ;;  %v2316_v21 = vld [vmem:[%s14097_s25 + $0x1290] sm:$0xff] }
  0xde   : > { %2315 = vst [vmem:[%s14102_s6 + $0x940] sm:$0xff] %v2314_v20  ;;  %v2318_v22 = vld [vmem:[%s14097_s25 + $0x12a0] sm:$0xff]  ;;  %v2320_v23 = vld [vmem:[%s14097_s25 + $0x12b0] sm:$0xff]  ;;  %2317 = vst [vmem:[%s14102_s6 + $0x948] sm:$0xff] %v2316_v21 }
  0xdf   : > { %2319 = vst [vmem:[%s14102_s6 + $0x950] sm:$0xff] %v2318_v22  ;;  %2321 = vst [vmem:[%s14102_s6 + $0x958] sm:$0xff] %v2320_v23  ;;  %v2322_v24 = vld [vmem:[%s14097_s25 + $0x12c0] sm:$0xff]  ;;  %v2324_v25 = vld [vmem:[%s14097_s25 + $0x12d0] sm:$0xff] }
  0xe0   : > { %v2326_v26 = vld [vmem:[%s14097_s25 + $0x12e0] sm:$0xff]  ;;  %2323 = vst [vmem:[%s14102_s6 + $0x960] sm:$0xff] %v2322_v24  ;;  %2325 = vst [vmem:[%s14102_s6 + $0x968] sm:$0xff] %v2324_v25  ;;  %v2328_v27 = vld [vmem:[%s14097_s25 + $0x12f0] sm:$0xff] }
  0xe1   : > { %2327 = vst [vmem:[%s14102_s6 + $0x970] sm:$0xff] %v2326_v26  ;;  %v2330_v28 = vld [vmem:[%s14097_s25 + $0x1300] sm:$0xff]  ;;  %v2332_v29 = vld [vmem:[%s14097_s25 + $0x1310] sm:$0xff]  ;;  %2329 = vst [vmem:[%s14102_s6 + $0x978] sm:$0xff] %v2328_v27 }
  0xe2   : > { %2331 = vst [vmem:[%s14102_s6 + $0x980] sm:$0xff] %v2330_v28  ;;  %2333 = vst [vmem:[%s14102_s6 + $0x988] sm:$0xff] %v2332_v29  ;;  %v2334_v30 = vld [vmem:[%s14097_s25 + $0x1320] sm:$0xff]  ;;  %v2336_v31 = vld [vmem:[%s14097_s25 + $0x1330] sm:$0xff] }
  0xe3   : > { %v2338_v32 = vld [vmem:[%s14097_s25 + $0x1340] sm:$0xff]  ;;  %2335 = vst [vmem:[%s14102_s6 + $0x990] sm:$0xff] %v2334_v30  ;;  %2337 = vst [vmem:[%s14102_s6 + $0x998] sm:$0xff] %v2336_v31  ;;  %v2340_v33 = vld [vmem:[%s14097_s25 + $0x1350] sm:$0xff] }
  0xe4   : > { %2339 = vst [vmem:[%s14102_s6 + $0x9a0] sm:$0xff] %v2338_v32  ;;  %v2342_v34 = vld [vmem:[%s14097_s25 + $0x1360] sm:$0xff]  ;;  %v2344_v35 = vld [vmem:[%s14097_s25 + $0x1370] sm:$0xff]  ;;  %2341 = vst [vmem:[%s14102_s6 + $0x9a8] sm:$0xff] %v2340_v33 }
  0xe5   : > { %2343 = vst [vmem:[%s14102_s6 + $0x9b0] sm:$0xff] %v2342_v34  ;;  %2345 = vst [vmem:[%s14102_s6 + $0x9b8] sm:$0xff] %v2344_v35  ;;  %v2346_v36 = vld [vmem:[%s14097_s25 + $0x1380] sm:$0xff]  ;;  %v2348_v37 = vld [vmem:[%s14097_s25 + $0x1390] sm:$0xff] }
  0xe6   : > { %v2350_v38 = vld [vmem:[%s14097_s25 + $0x13a0] sm:$0xff]  ;;  %2347 = vst [vmem:[%s14102_s6 + $0x9c0] sm:$0xff] %v2346_v36  ;;  %2349 = vst [vmem:[%s14102_s6 + $0x9c8] sm:$0xff] %v2348_v37  ;;  %v2352_v39 = vld [vmem:[%s14097_s25 + $0x13b0] sm:$0xff] }
  0xe7   : > { %2351 = vst [vmem:[%s14102_s6 + $0x9d0] sm:$0xff] %v2350_v38  ;;  %v2354_v40 = vld [vmem:[%s14097_s25 + $0x13c0] sm:$0xff]  ;;  %v2356_v41 = vld [vmem:[%s14097_s25 + $0x13d0] sm:$0xff]  ;;  %2353 = vst [vmem:[%s14102_s6 + $0x9d8] sm:$0xff] %v2352_v39 }
  0xe8   : > { %2355 = vst [vmem:[%s14102_s6 + $0x9e0] sm:$0xff] %v2354_v40  ;;  %2357 = vst [vmem:[%s14102_s6 + $0x9e8] sm:$0xff] %v2356_v41  ;;  %v2358_v42 = vld [vmem:[%s14097_s25 + $0x13e0] sm:$0xff]  ;;  %v2360_v43 = vld [vmem:[%s14097_s25 + $0x13f0] sm:$0xff] }
  0xe9   : > { %v2362_v44 = vld [vmem:[%s14097_s25 + $0x1400] sm:$0xff]  ;;  %2359 = vst [vmem:[%s14102_s6 + $0x9f0] sm:$0xff] %v2358_v42  ;;  %2361 = vst [vmem:[%s14102_s6 + $0x9f8] sm:$0xff] %v2360_v43  ;;  %v2364_v45 = vld [vmem:[%s14097_s25 + $0x1410] sm:$0xff] }
  0xea   : > { %2363 = vst [vmem:[%s14102_s6 + $0xa00] sm:$0xff] %v2362_v44  ;;  %v2366_v46 = vld [vmem:[%s14097_s25 + $0x1420] sm:$0xff]  ;;  %v2368_v47 = vld [vmem:[%s14097_s25 + $0x1430] sm:$0xff]  ;;  %2365 = vst [vmem:[%s14102_s6 + $0xa08] sm:$0xff] %v2364_v45 }
  0xeb   : > { %2367 = vst [vmem:[%s14102_s6 + $0xa10] sm:$0xff] %v2366_v46  ;;  %2369 = vst [vmem:[%s14102_s6 + $0xa18] sm:$0xff] %v2368_v47  ;;  %v2370_v48 = vld [vmem:[%s14097_s25 + $0x1440] sm:$0xff]  ;;  %v2372_v49 = vld [vmem:[%s14097_s25 + $0x1450] sm:$0xff] }
  0xec   : > { %v2374_v50 = vld [vmem:[%s14097_s25 + $0x1460] sm:$0xff]  ;;  %2371 = vst [vmem:[%s14102_s6 + $0xa20] sm:$0xff] %v2370_v48  ;;  %2373 = vst [vmem:[%s14102_s6 + $0xa28] sm:$0xff] %v2372_v49  ;;  %v2376_v51 = vld [vmem:[%s14097_s25 + $0x1470] sm:$0xff] }
  0xed   : > { %2375 = vst [vmem:[%s14102_s6 + $0xa30] sm:$0xff] %v2374_v50  ;;  %v2378_v52 = vld [vmem:[%s14097_s25 + $0x1480] sm:$0xff]  ;;  %v2380_v53 = vld [vmem:[%s14097_s25 + $0x1490] sm:$0xff]  ;;  %2377 = vst [vmem:[%s14102_s6 + $0xa38] sm:$0xff] %v2376_v51 }
  0xee   : > { %2379 = vst [vmem:[%s14102_s6 + $0xa40] sm:$0xff] %v2378_v52  ;;  %2381 = vst [vmem:[%s14102_s6 + $0xa48] sm:$0xff] %v2380_v53  ;;  %v2382_v54 = vld [vmem:[%s14097_s25 + $0x14a0] sm:$0xff]  ;;  %v2384_v55 = vld [vmem:[%s14097_s25 + $0x14b0] sm:$0xff] }
  0xef   : > { %v2386_v56 = vld [vmem:[%s14097_s25 + $0x14c0] sm:$0xff]  ;;  %2383 = vst [vmem:[%s14102_s6 + $0xa50] sm:$0xff] %v2382_v54  ;;  %2385 = vst [vmem:[%s14102_s6 + $0xa58] sm:$0xff] %v2384_v55  ;;  %v2388_v57 = vld [vmem:[%s14097_s25 + $0x14d0] sm:$0xff] }
  0xf0   : > { %2387 = vst [vmem:[%s14102_s6 + $0xa60] sm:$0xff] %v2386_v56  ;;  %v2390_v58 = vld [vmem:[%s14097_s25 + $0x14e0] sm:$0xff]  ;;  %v2392_v59 = vld [vmem:[%s14097_s25 + $0x14f0] sm:$0xff]  ;;  %2389 = vst [vmem:[%s14102_s6 + $0xa68] sm:$0xff] %v2388_v57 }
  0xf1   : > { %2391 = vst [vmem:[%s14102_s6 + $0xa70] sm:$0xff] %v2390_v58  ;;  %2393 = vst [vmem:[%s14102_s6 + $0xa78] sm:$0xff] %v2392_v59  ;;  %v2394_v60 = vld [vmem:[%s14097_s25 + $0x1500] sm:$0xff]  ;;  %v2396_v61 = vld [vmem:[%s14097_s25 + $0x1510] sm:$0xff] }
  0xf2   : > { %v2398_v62 = vld [vmem:[%s14097_s25 + $0x1520] sm:$0xff]  ;;  %2395 = vst [vmem:[%s14102_s6 + $0xa80] sm:$0xff] %v2394_v60  ;;  %2397 = vst [vmem:[%s14102_s6 + $0xa88] sm:$0xff] %v2396_v61  ;;  %v2400_v63 = vld [vmem:[%s14097_s25 + $0x1530] sm:$0xff] }
  0xf3   : > { %2399 = vst [vmem:[%s14102_s6 + $0xa90] sm:$0xff] %v2398_v62  ;;  %v2402_v0 = vld [vmem:[%s14097_s25 + $0x1540] sm:$0xff]  ;;  %v2404_v1 = vld [vmem:[%s14097_s25 + $0x1550] sm:$0xff]  ;;  %2401 = vst [vmem:[%s14102_s6 + $0xa98] sm:$0xff] %v2400_v63 }
  0xf4   : > { %2403 = vst [vmem:[%s14102_s6 + $0xaa0] sm:$0xff] %v2402_v0  ;;  %2405 = vst [vmem:[%s14102_s6 + $0xaa8] sm:$0xff] %v2404_v1  ;;  %v2406_v2 = vld [vmem:[%s14097_s25 + $0x1560] sm:$0xff]  ;;  %v2408_v3 = vld [vmem:[%s14097_s25 + $0x1570] sm:$0xff] }
  0xf5   : > { %v2410_v4 = vld [vmem:[%s14097_s25 + $0x1580] sm:$0xff]  ;;  %2407 = vst [vmem:[%s14102_s6 + $0xab0] sm:$0xff] %v2406_v2  ;;  %2409 = vst [vmem:[%s14102_s6 + $0xab8] sm:$0xff] %v2408_v3  ;;  %v2412_v5 = vld [vmem:[%s14097_s25 + $0x1590] sm:$0xff] }
  0xf6   : > { %2411 = vst [vmem:[%s14102_s6 + $0xac0] sm:$0xff] %v2410_v4  ;;  %v2414_v6 = vld [vmem:[%s14097_s25 + $0x15a0] sm:$0xff]  ;;  %v2416_v7 = vld [vmem:[%s14097_s25 + $0x15b0] sm:$0xff]  ;;  %2413 = vst [vmem:[%s14102_s6 + $0xac8] sm:$0xff] %v2412_v5 }
  0xf7   : > { %2415 = vst [vmem:[%s14102_s6 + $0xad0] sm:$0xff] %v2414_v6  ;;  %2417 = vst [vmem:[%s14102_s6 + $0xad8] sm:$0xff] %v2416_v7  ;;  %v2418_v8 = vld [vmem:[%s14097_s25 + $0x15c0] sm:$0xff]  ;;  %v2420_v9 = vld [vmem:[%s14097_s25 + $0x15d0] sm:$0xff] }
  0xf8   : > { %v2422_v10 = vld [vmem:[%s14097_s25 + $0x15e0] sm:$0xff]  ;;  %2419 = vst [vmem:[%s14102_s6 + $0xae0] sm:$0xff] %v2418_v8  ;;  %2421 = vst [vmem:[%s14102_s6 + $0xae8] sm:$0xff] %v2420_v9  ;;  %v2424_v11 = vld [vmem:[%s14097_s25 + $0x15f0] sm:$0xff] }
  0xf9   : > { %2423 = vst [vmem:[%s14102_s6 + $0xaf0] sm:$0xff] %v2422_v10  ;;  %v2426_v12 = vld [vmem:[%s14097_s25 + $0x1600] sm:$0xff]  ;;  %v2428_v13 = vld [vmem:[%s14097_s25 + $0x1610] sm:$0xff]  ;;  %2425 = vst [vmem:[%s14102_s6 + $0xaf8] sm:$0xff] %v2424_v11 }
  0xfa   : > { %2427 = vst [vmem:[%s14102_s6 + $0xb00] sm:$0xff] %v2426_v12  ;;  %2429 = vst [vmem:[%s14102_s6 + $0xb08] sm:$0xff] %v2428_v13  ;;  %v2430_v14 = vld [vmem:[%s14097_s25 + $0x1620] sm:$0xff]  ;;  %v2432_v15 = vld [vmem:[%s14097_s25 + $0x1630] sm:$0xff] }
  0xfb   : > { %v2434_v16 = vld [vmem:[%s14097_s25 + $0x1640] sm:$0xff]  ;;  %2431 = vst [vmem:[%s14102_s6 + $0xb10] sm:$0xff] %v2430_v14  ;;  %2433 = vst [vmem:[%s14102_s6 + $0xb18] sm:$0xff] %v2432_v15  ;;  %v2436_v17 = vld [vmem:[%s14097_s25 + $0x1650] sm:$0xff] }
  0xfc   : > { %2435 = vst [vmem:[%s14102_s6 + $0xb20] sm:$0xff] %v2434_v16  ;;  %v2438_v18 = vld [vmem:[%s14097_s25 + $0x1660] sm:$0xff]  ;;  %v2440_v19 = vld [vmem:[%s14097_s25 + $0x1670] sm:$0xff]  ;;  %2437 = vst [vmem:[%s14102_s6 + $0xb28] sm:$0xff] %v2436_v17 }
  0xfd   : > { %2439 = vst [vmem:[%s14102_s6 + $0xb30] sm:$0xff] %v2438_v18  ;;  %2441 = vst [vmem:[%s14102_s6 + $0xb38] sm:$0xff] %v2440_v19  ;;  %v2442_v20 = vld [vmem:[%s14097_s25 + $0x1680] sm:$0xff]  ;;  %v2444_v21 = vld [vmem:[%s14097_s25 + $0x1690] sm:$0xff] }
  0xfe   : > { %v2446_v22 = vld [vmem:[%s14097_s25 + $0x16a0] sm:$0xff]  ;;  %2443 = vst [vmem:[%s14102_s6 + $0xb40] sm:$0xff] %v2442_v20  ;;  %2445 = vst [vmem:[%s14102_s6 + $0xb48] sm:$0xff] %v2444_v21  ;;  %v2448_v23 = vld [vmem:[%s14097_s25 + $0x16b0] sm:$0xff] }
  0xff   : > { %2447 = vst [vmem:[%s14102_s6 + $0xb50] sm:$0xff] %v2446_v22  ;;  %v2450_v24 = vld [vmem:[%s14097_s25 + $0x16c0] sm:$0xff]  ;;  %v2452_v25 = vld [vmem:[%s14097_s25 + $0x16d0] sm:$0xff]  ;;  %2449 = vst [vmem:[%s14102_s6 + $0xb58] sm:$0xff] %v2448_v23 }
 0x100   : > { %2451 = vst [vmem:[%s14102_s6 + $0xb60] sm:$0xff] %v2450_v24  ;;  %2453 = vst [vmem:[%s14102_s6 + $0xb68] sm:$0xff] %v2452_v25  ;;  %v2454_v26 = vld [vmem:[%s14097_s25 + $0x16e0] sm:$0xff]  ;;  %v2456_v27 = vld [vmem:[%s14097_s25 + $0x16f0] sm:$0xff] }
 0x101   : > { %v2458_v28 = vld [vmem:[%s14097_s25 + $0x1700] sm:$0xff]  ;;  %2455 = vst [vmem:[%s14102_s6 + $0xb70] sm:$0xff] %v2454_v26  ;;  %2457 = vst [vmem:[%s14102_s6 + $0xb78] sm:$0xff] %v2456_v27  ;;  %v2460_v29 = vld [vmem:[%s14097_s25 + $0x1710] sm:$0xff] }
 0x102   : > { %2459 = vst [vmem:[%s14102_s6 + $0xb80] sm:$0xff] %v2458_v28  ;;  %v2462_v30 = vld [vmem:[%s14097_s25 + $0x1720] sm:$0xff]  ;;  %v2464_v31 = vld [vmem:[%s14097_s25 + $0x1730] sm:$0xff]  ;;  %2461 = vst [vmem:[%s14102_s6 + $0xb88] sm:$0xff] %v2460_v29 }
 0x103   : > { %2463 = vst [vmem:[%s14102_s6 + $0xb90] sm:$0xff] %v2462_v30  ;;  %2465 = vst [vmem:[%s14102_s6 + $0xb98] sm:$0xff] %v2464_v31  ;;  %v2466_v32 = vld [vmem:[%s14097_s25 + $0x1740] sm:$0xff]  ;;  %v2468_v33 = vld [vmem:[%s14097_s25 + $0x1750] sm:$0xff] }
 0x104   : > { %v2470_v34 = vld [vmem:[%s14097_s25 + $0x1760] sm:$0xff]  ;;  %2467 = vst [vmem:[%s14102_s6 + $0xba0] sm:$0xff] %v2466_v32  ;;  %2469 = vst [vmem:[%s14102_s6 + $0xba8] sm:$0xff] %v2468_v33  ;;  %v2472_v35 = vld [vmem:[%s14097_s25 + $0x1770] sm:$0xff] }
 0x105   : > { %2471 = vst [vmem:[%s14102_s6 + $0xbb0] sm:$0xff] %v2470_v34  ;;  %v2474_v36 = vld [vmem:[%s14097_s25 + $0x1780] sm:$0xff]  ;;  %v2476_v37 = vld [vmem:[%s14097_s25 + $0x1790] sm:$0xff]  ;;  %2473 = vst [vmem:[%s14102_s6 + $0xbb8] sm:$0xff] %v2472_v35 }
 0x106   : > { %2475 = vst [vmem:[%s14102_s6 + $0xbc0] sm:$0xff] %v2474_v36  ;;  %2477 = vst [vmem:[%s14102_s6 + $0xbc8] sm:$0xff] %v2476_v37  ;;  %v2478_v38 = vld [vmem:[%s14097_s25 + $0x17a0] sm:$0xff]  ;;  %v2480_v39 = vld [vmem:[%s14097_s25 + $0x17b0] sm:$0xff] }
 0x107   : > { %v2482_v40 = vld [vmem:[%s14097_s25 + $0x17c0] sm:$0xff]  ;;  %2479 = vst [vmem:[%s14102_s6 + $0xbd0] sm:$0xff] %v2478_v38  ;;  %2481 = vst [vmem:[%s14102_s6 + $0xbd8] sm:$0xff] %v2480_v39  ;;  %v2484_v41 = vld [vmem:[%s14097_s25 + $0x17d0] sm:$0xff] }
 0x108   : > { %2483 = vst [vmem:[%s14102_s6 + $0xbe0] sm:$0xff] %v2482_v40  ;;  %v2486_v42 = vld [vmem:[%s14097_s25 + $0x17e0] sm:$0xff]  ;;  %v2488_v43 = vld [vmem:[%s14097_s25 + $0x17f0] sm:$0xff]  ;;  %2485 = vst [vmem:[%s14102_s6 + $0xbe8] sm:$0xff] %v2484_v41 }
 0x109   : > { %2487 = vst [vmem:[%s14102_s6 + $0xbf0] sm:$0xff] %v2486_v42  ;;  %2489 = vst [vmem:[%s14102_s6 + $0xbf8] sm:$0xff] %v2488_v43  ;;  %v2490_v44 = vld [vmem:[%s14097_s25 + $0x1800] sm:$0xff]  ;;  %v2492_v45 = vld [vmem:[%s14097_s25 + $0x1810] sm:$0xff] }
 0x10a   : > { %v2494_v46 = vld [vmem:[%s14097_s25 + $0x1820] sm:$0xff]  ;;  %2491 = vst [vmem:[%s14102_s6 + $0xc00] sm:$0xff] %v2490_v44  ;;  %2493 = vst [vmem:[%s14102_s6 + $0xc08] sm:$0xff] %v2492_v45  ;;  %v2496_v47 = vld [vmem:[%s14097_s25 + $0x1830] sm:$0xff] }
 0x10b   : > { %2495 = vst [vmem:[%s14102_s6 + $0xc10] sm:$0xff] %v2494_v46  ;;  %v2498_v48 = vld [vmem:[%s14097_s25 + $0x1840] sm:$0xff]  ;;  %v2500_v49 = vld [vmem:[%s14097_s25 + $0x1850] sm:$0xff]  ;;  %2497 = vst [vmem:[%s14102_s6 + $0xc18] sm:$0xff] %v2496_v47 }
 0x10c   : > { %2499 = vst [vmem:[%s14102_s6 + $0xc20] sm:$0xff] %v2498_v48  ;;  %2501 = vst [vmem:[%s14102_s6 + $0xc28] sm:$0xff] %v2500_v49  ;;  %v2502_v50 = vld [vmem:[%s14097_s25 + $0x1860] sm:$0xff]  ;;  %v2504_v51 = vld [vmem:[%s14097_s25 + $0x1870] sm:$0xff] }
 0x10d   : > { %v2506_v52 = vld [vmem:[%s14097_s25 + $0x1880] sm:$0xff]  ;;  %2503 = vst [vmem:[%s14102_s6 + $0xc30] sm:$0xff] %v2502_v50  ;;  %2505 = vst [vmem:[%s14102_s6 + $0xc38] sm:$0xff] %v2504_v51  ;;  %v2508_v53 = vld [vmem:[%s14097_s25 + $0x1890] sm:$0xff] }
 0x10e   : > { %2507 = vst [vmem:[%s14102_s6 + $0xc40] sm:$0xff] %v2506_v52  ;;  %v2510_v54 = vld [vmem:[%s14097_s25 + $0x18a0] sm:$0xff]  ;;  %v2512_v55 = vld [vmem:[%s14097_s25 + $0x18b0] sm:$0xff]  ;;  %2509 = vst [vmem:[%s14102_s6 + $0xc48] sm:$0xff] %v2508_v53 }
 0x10f   : > { %2511 = vst [vmem:[%s14102_s6 + $0xc50] sm:$0xff] %v2510_v54  ;;  %2513 = vst [vmem:[%s14102_s6 + $0xc58] sm:$0xff] %v2512_v55  ;;  %v2514_v56 = vld [vmem:[%s14097_s25 + $0x18c0] sm:$0xff]  ;;  %v2516_v57 = vld [vmem:[%s14097_s25 + $0x18d0] sm:$0xff] }
 0x110   : > { %v2518_v58 = vld [vmem:[%s14097_s25 + $0x18e0] sm:$0xff]  ;;  %2515 = vst [vmem:[%s14102_s6 + $0xc60] sm:$0xff] %v2514_v56  ;;  %2517 = vst [vmem:[%s14102_s6 + $0xc68] sm:$0xff] %v2516_v57  ;;  %v2520_v59 = vld [vmem:[%s14097_s25 + $0x18f0] sm:$0xff] }
 0x111   : > { %2519 = vst [vmem:[%s14102_s6 + $0xc70] sm:$0xff] %v2518_v58  ;;  %v2522_v60 = vld [vmem:[%s14097_s25 + $0x1900] sm:$0xff]  ;;  %v2524_v61 = vld [vmem:[%s14097_s25 + $0x1910] sm:$0xff]  ;;  %2521 = vst [vmem:[%s14102_s6 + $0xc78] sm:$0xff] %v2520_v59 }
 0x112   : > { %2523 = vst [vmem:[%s14102_s6 + $0xc80] sm:$0xff] %v2522_v60  ;;  %2525 = vst [vmem:[%s14102_s6 + $0xc88] sm:$0xff] %v2524_v61  ;;  %v2526_v62 = vld [vmem:[%s14097_s25 + $0x1920] sm:$0xff]  ;;  %v2528_v63 = vld [vmem:[%s14097_s25 + $0x1930] sm:$0xff] }
 0x113   : > { %v2530_v0 = vld [vmem:[%s14097_s25 + $0x1940] sm:$0xff]  ;;  %2527 = vst [vmem:[%s14102_s6 + $0xc90] sm:$0xff] %v2526_v62  ;;  %2529 = vst [vmem:[%s14102_s6 + $0xc98] sm:$0xff] %v2528_v63  ;;  %v2532_v1 = vld [vmem:[%s14097_s25 + $0x1950] sm:$0xff] }
 0x114   : > { %2531 = vst [vmem:[%s14102_s6 + $0xca0] sm:$0xff] %v2530_v0  ;;  %v2534_v2 = vld [vmem:[%s14097_s25 + $0x1960] sm:$0xff]  ;;  %v2536_v3 = vld [vmem:[%s14097_s25 + $0x1970] sm:$0xff]  ;;  %2533 = vst [vmem:[%s14102_s6 + $0xca8] sm:$0xff] %v2532_v1 }
 0x115   : > { %2535 = vst [vmem:[%s14102_s6 + $0xcb0] sm:$0xff] %v2534_v2  ;;  %2537 = vst [vmem:[%s14102_s6 + $0xcb8] sm:$0xff] %v2536_v3  ;;  %v2538_v4 = vld [vmem:[%s14097_s25 + $0x1980] sm:$0xff]  ;;  %v2540_v5 = vld [vmem:[%s14097_s25 + $0x1990] sm:$0xff] }
 0x116   : > { %v2542_v6 = vld [vmem:[%s14097_s25 + $0x19a0] sm:$0xff]  ;;  %2539 = vst [vmem:[%s14102_s6 + $0xcc0] sm:$0xff] %v2538_v4  ;;  %2541 = vst [vmem:[%s14102_s6 + $0xcc8] sm:$0xff] %v2540_v5  ;;  %v2544_v7 = vld [vmem:[%s14097_s25 + $0x19b0] sm:$0xff] }
 0x117   : > { %2543 = vst [vmem:[%s14102_s6 + $0xcd0] sm:$0xff] %v2542_v6  ;;  %v2546_v8 = vld [vmem:[%s14097_s25 + $0x19c0] sm:$0xff]  ;;  %v2548_v9 = vld [vmem:[%s14097_s25 + $0x19d0] sm:$0xff]  ;;  %2545 = vst [vmem:[%s14102_s6 + $0xcd8] sm:$0xff] %v2544_v7 }
 0x118   : > { %2547 = vst [vmem:[%s14102_s6 + $0xce0] sm:$0xff] %v2546_v8  ;;  %2549 = vst [vmem:[%s14102_s6 + $0xce8] sm:$0xff] %v2548_v9  ;;  %v2550_v10 = vld [vmem:[%s14097_s25 + $0x19e0] sm:$0xff]  ;;  %v2552_v11 = vld [vmem:[%s14097_s25 + $0x19f0] sm:$0xff] }
 0x119   : > { %v2554_v12 = vld [vmem:[%s14097_s25 + $0x1a00] sm:$0xff]  ;;  %2551 = vst [vmem:[%s14102_s6 + $0xcf0] sm:$0xff] %v2550_v10  ;;  %2553 = vst [vmem:[%s14102_s6 + $0xcf8] sm:$0xff] %v2552_v11  ;;  %v2556_v13 = vld [vmem:[%s14097_s25 + $0x1a10] sm:$0xff] }
 0x11a   : > { %2555 = vst [vmem:[%s14102_s6 + $0xd00] sm:$0xff] %v2554_v12  ;;  %v2558_v14 = vld [vmem:[%s14097_s25 + $0x1a20] sm:$0xff]  ;;  %v2560_v15 = vld [vmem:[%s14097_s25 + $0x1a30] sm:$0xff]  ;;  %2557 = vst [vmem:[%s14102_s6 + $0xd08] sm:$0xff] %v2556_v13 }
 0x11b   : > { %2559 = vst [vmem:[%s14102_s6 + $0xd10] sm:$0xff] %v2558_v14  ;;  %2561 = vst [vmem:[%s14102_s6 + $0xd18] sm:$0xff] %v2560_v15  ;;  %v2562_v16 = vld [vmem:[%s14097_s25 + $0x1a40] sm:$0xff]  ;;  %v2564_v17 = vld [vmem:[%s14097_s25 + $0x1a50] sm:$0xff] }
 0x11c   : > { %v2566_v18 = vld [vmem:[%s14097_s25 + $0x1a60] sm:$0xff]  ;;  %2563 = vst [vmem:[%s14102_s6 + $0xd20] sm:$0xff] %v2562_v16  ;;  %2565 = vst [vmem:[%s14102_s6 + $0xd28] sm:$0xff] %v2564_v17  ;;  %v2568_v19 = vld [vmem:[%s14097_s25 + $0x1a70] sm:$0xff] }
 0x11d   : > { %2567 = vst [vmem:[%s14102_s6 + $0xd30] sm:$0xff] %v2566_v18  ;;  %v2570_v20 = vld [vmem:[%s14097_s25 + $0x1a80] sm:$0xff]  ;;  %v2572_v21 = vld [vmem:[%s14097_s25 + $0x1a90] sm:$0xff]  ;;  %2569 = vst [vmem:[%s14102_s6 + $0xd38] sm:$0xff] %v2568_v19 }
 0x11e   : > { %2571 = vst [vmem:[%s14102_s6 + $0xd40] sm:$0xff] %v2570_v20  ;;  %2573 = vst [vmem:[%s14102_s6 + $0xd48] sm:$0xff] %v2572_v21  ;;  %v2574_v22 = vld [vmem:[%s14097_s25 + $0x1aa0] sm:$0xff]  ;;  %v2576_v23 = vld [vmem:[%s14097_s25 + $0x1ab0] sm:$0xff] }
 0x11f   : > { %v2578_v24 = vld [vmem:[%s14097_s25 + $0x1ac0] sm:$0xff]  ;;  %2575 = vst [vmem:[%s14102_s6 + $0xd50] sm:$0xff] %v2574_v22  ;;  %2577 = vst [vmem:[%s14102_s6 + $0xd58] sm:$0xff] %v2576_v23  ;;  %v2580_v25 = vld [vmem:[%s14097_s25 + $0x1ad0] sm:$0xff] }
 0x120   : > { %2579 = vst [vmem:[%s14102_s6 + $0xd60] sm:$0xff] %v2578_v24  ;;  %v2582_v26 = vld [vmem:[%s14097_s25 + $0x1ae0] sm:$0xff]  ;;  %v2584_v27 = vld [vmem:[%s14097_s25 + $0x1af0] sm:$0xff]  ;;  %2581 = vst [vmem:[%s14102_s6 + $0xd68] sm:$0xff] %v2580_v25 }
 0x121   : > { %2583 = vst [vmem:[%s14102_s6 + $0xd70] sm:$0xff] %v2582_v26  ;;  %2585 = vst [vmem:[%s14102_s6 + $0xd78] sm:$0xff] %v2584_v27  ;;  %v2586_v28 = vld [vmem:[%s14097_s25 + $0x1b00] sm:$0xff]  ;;  %v2588_v29 = vld [vmem:[%s14097_s25 + $0x1b10] sm:$0xff] }
 0x122   : > { %v2590_v30 = vld [vmem:[%s14097_s25 + $0x1b20] sm:$0xff]  ;;  %2587 = vst [vmem:[%s14102_s6 + $0xd80] sm:$0xff] %v2586_v28  ;;  %2589 = vst [vmem:[%s14102_s6 + $0xd88] sm:$0xff] %v2588_v29  ;;  %v2592_v31 = vld [vmem:[%s14097_s25 + $0x1b30] sm:$0xff] }
 0x123   : > { %2591 = vst [vmem:[%s14102_s6 + $0xd90] sm:$0xff] %v2590_v30  ;;  %v2594_v32 = vld [vmem:[%s14097_s25 + $0x1b40] sm:$0xff]  ;;  %v2596_v33 = vld [vmem:[%s14097_s25 + $0x1b50] sm:$0xff]  ;;  %2593 = vst [vmem:[%s14102_s6 + $0xd98] sm:$0xff] %v2592_v31 }
 0x124   : > { %2595 = vst [vmem:[%s14102_s6 + $0xda0] sm:$0xff] %v2594_v32  ;;  %2597 = vst [vmem:[%s14102_s6 + $0xda8] sm:$0xff] %v2596_v33  ;;  %v2598_v34 = vld [vmem:[%s14097_s25 + $0x1b60] sm:$0xff]  ;;  %v2600_v35 = vld [vmem:[%s14097_s25 + $0x1b70] sm:$0xff] }
 0x125   : > { %v2602_v36 = vld [vmem:[%s14097_s25 + $0x1b80] sm:$0xff]  ;;  %2599 = vst [vmem:[%s14102_s6 + $0xdb0] sm:$0xff] %v2598_v34  ;;  %2601 = vst [vmem:[%s14102_s6 + $0xdb8] sm:$0xff] %v2600_v35  ;;  %v2604_v37 = vld [vmem:[%s14097_s25 + $0x1b90] sm:$0xff] }
 0x126   : > { %2603 = vst [vmem:[%s14102_s6 + $0xdc0] sm:$0xff] %v2602_v36  ;;  %v2606_v38 = vld [vmem:[%s14097_s25 + $0x1ba0] sm:$0xff]  ;;  %v2608_v39 = vld [vmem:[%s14097_s25 + $0x1bb0] sm:$0xff]  ;;  %2605 = vst [vmem:[%s14102_s6 + $0xdc8] sm:$0xff] %v2604_v37 }
 0x127   : > { %2607 = vst [vmem:[%s14102_s6 + $0xdd0] sm:$0xff] %v2606_v38  ;;  %2609 = vst [vmem:[%s14102_s6 + $0xdd8] sm:$0xff] %v2608_v39  ;;  %v2610_v40 = vld [vmem:[%s14097_s25 + $0x1bc0] sm:$0xff]  ;;  %v2612_v41 = vld [vmem:[%s14097_s25 + $0x1bd0] sm:$0xff] }
 0x128   : > { %v2614_v42 = vld [vmem:[%s14097_s25 + $0x1be0] sm:$0xff]  ;;  %2611 = vst [vmem:[%s14102_s6 + $0xde0] sm:$0xff] %v2610_v40  ;;  %2613 = vst [vmem:[%s14102_s6 + $0xde8] sm:$0xff] %v2612_v41  ;;  %v2616_v43 = vld [vmem:[%s14097_s25 + $0x1bf0] sm:$0xff] }
 0x129   : > { %2615 = vst [vmem:[%s14102_s6 + $0xdf0] sm:$0xff] %v2614_v42  ;;  %v2618_v44 = vld [vmem:[%s14097_s25 + $0x1c00] sm:$0xff]  ;;  %v2620_v45 = vld [vmem:[%s14097_s25 + $0x1c10] sm:$0xff]  ;;  %2617 = vst [vmem:[%s14102_s6 + $0xdf8] sm:$0xff] %v2616_v43 }
 0x12a   : > { %2619 = vst [vmem:[%s14102_s6 + $0xe00] sm:$0xff] %v2618_v44  ;;  %2621 = vst [vmem:[%s14102_s6 + $0xe08] sm:$0xff] %v2620_v45  ;;  %v2622_v46 = vld [vmem:[%s14097_s25 + $0x1c20] sm:$0xff]  ;;  %v2624_v47 = vld [vmem:[%s14097_s25 + $0x1c30] sm:$0xff] }
 0x12b   : > { %v2626_v48 = vld [vmem:[%s14097_s25 + $0x1c40] sm:$0xff]  ;;  %2623 = vst [vmem:[%s14102_s6 + $0xe10] sm:$0xff] %v2622_v46  ;;  %2625 = vst [vmem:[%s14102_s6 + $0xe18] sm:$0xff] %v2624_v47  ;;  %v2628_v49 = vld [vmem:[%s14097_s25 + $0x1c50] sm:$0xff] }
 0x12c   : > { %2627 = vst [vmem:[%s14102_s6 + $0xe20] sm:$0xff] %v2626_v48  ;;  %v2630_v50 = vld [vmem:[%s14097_s25 + $0x1c60] sm:$0xff]  ;;  %v2632_v51 = vld [vmem:[%s14097_s25 + $0x1c70] sm:$0xff]  ;;  %2629 = vst [vmem:[%s14102_s6 + $0xe28] sm:$0xff] %v2628_v49 }
 0x12d   : > { %2631 = vst [vmem:[%s14102_s6 + $0xe30] sm:$0xff] %v2630_v50  ;;  %2633 = vst [vmem:[%s14102_s6 + $0xe38] sm:$0xff] %v2632_v51  ;;  %v2634_v52 = vld [vmem:[%s14097_s25 + $0x1c80] sm:$0xff]  ;;  %v2636_v53 = vld [vmem:[%s14097_s25 + $0x1c90] sm:$0xff] }
 0x12e   : > { %v2638_v54 = vld [vmem:[%s14097_s25 + $0x1ca0] sm:$0xff]  ;;  %2635 = vst [vmem:[%s14102_s6 + $0xe40] sm:$0xff] %v2634_v52  ;;  %2637 = vst [vmem:[%s14102_s6 + $0xe48] sm:$0xff] %v2636_v53  ;;  %v2640_v55 = vld [vmem:[%s14097_s25 + $0x1cb0] sm:$0xff] }
 0x12f   : > { %2639 = vst [vmem:[%s14102_s6 + $0xe50] sm:$0xff] %v2638_v54  ;;  %v2642_v56 = vld [vmem:[%s14097_s25 + $0x1cc0] sm:$0xff]  ;;  %v2644_v57 = vld [vmem:[%s14097_s25 + $0x1cd0] sm:$0xff]  ;;  %2641 = vst [vmem:[%s14102_s6 + $0xe58] sm:$0xff] %v2640_v55 }
 0x130   : > { %2643 = vst [vmem:[%s14102_s6 + $0xe60] sm:$0xff] %v2642_v56  ;;  %2645 = vst [vmem:[%s14102_s6 + $0xe68] sm:$0xff] %v2644_v57  ;;  %v2646_v58 = vld [vmem:[%s14097_s25 + $0x1ce0] sm:$0xff]  ;;  %v2648_v59 = vld [vmem:[%s14097_s25 + $0x1cf0] sm:$0xff] }
 0x131   : > { %v2650_v60 = vld [vmem:[%s14097_s25 + $0x1d00] sm:$0xff]  ;;  %2647 = vst [vmem:[%s14102_s6 + $0xe70] sm:$0xff] %v2646_v58  ;;  %2649 = vst [vmem:[%s14102_s6 + $0xe78] sm:$0xff] %v2648_v59  ;;  %v2652_v61 = vld [vmem:[%s14097_s25 + $0x1d10] sm:$0xff] }
 0x132   : > { %2651 = vst [vmem:[%s14102_s6 + $0xe80] sm:$0xff] %v2650_v60  ;;  %v2654_v62 = vld [vmem:[%s14097_s25 + $0x1d20] sm:$0xff]  ;;  %v2656_v63 = vld [vmem:[%s14097_s25 + $0x1d30] sm:$0xff]  ;;  %2653 = vst [vmem:[%s14102_s6 + $0xe88] sm:$0xff] %v2652_v61 }
 0x133   : > { %2655 = vst [vmem:[%s14102_s6 + $0xe90] sm:$0xff] %v2654_v62  ;;  %2657 = vst [vmem:[%s14102_s6 + $0xe98] sm:$0xff] %v2656_v63  ;;  %v2658_v0 = vld [vmem:[%s14097_s25 + $0x1d40] sm:$0xff]  ;;  %v2660_v1 = vld [vmem:[%s14097_s25 + $0x1d50] sm:$0xff] }
 0x134   : > { %v2662_v2 = vld [vmem:[%s14097_s25 + $0x1d60] sm:$0xff]  ;;  %2659 = vst [vmem:[%s14102_s6 + $0xea0] sm:$0xff] %v2658_v0  ;;  %2661 = vst [vmem:[%s14102_s6 + $0xea8] sm:$0xff] %v2660_v1  ;;  %v2664_v3 = vld [vmem:[%s14097_s25 + $0x1d70] sm:$0xff] }
 0x135   : > { %2663 = vst [vmem:[%s14102_s6 + $0xeb0] sm:$0xff] %v2662_v2  ;;  %v2666_v4 = vld [vmem:[%s14097_s25 + $0x1d80] sm:$0xff]  ;;  %v2668_v5 = vld [vmem:[%s14097_s25 + $0x1d90] sm:$0xff]  ;;  %2665 = vst [vmem:[%s14102_s6 + $0xeb8] sm:$0xff] %v2664_v3 }
 0x136   : > { %2667 = vst [vmem:[%s14102_s6 + $0xec0] sm:$0xff] %v2666_v4  ;;  %2669 = vst [vmem:[%s14102_s6 + $0xec8] sm:$0xff] %v2668_v5  ;;  %v2670_v6 = vld [vmem:[%s14097_s25 + $0x1da0] sm:$0xff]  ;;  %v2672_v7 = vld [vmem:[%s14097_s25 + $0x1db0] sm:$0xff] }
 0x137   : > { %v2674_v8 = vld [vmem:[%s14097_s25 + $0x1dc0] sm:$0xff]  ;;  %2671 = vst [vmem:[%s14102_s6 + $0xed0] sm:$0xff] %v2670_v6  ;;  %2673 = vst [vmem:[%s14102_s6 + $0xed8] sm:$0xff] %v2672_v7  ;;  %v2676_v9 = vld [vmem:[%s14097_s25 + $0x1dd0] sm:$0xff] }
 0x138   : > { %2675 = vst [vmem:[%s14102_s6 + $0xee0] sm:$0xff] %v2674_v8  ;;  %v2678_v10 = vld [vmem:[%s14097_s25 + $0x1de0] sm:$0xff]  ;;  %v2680_v11 = vld [vmem:[%s14097_s25 + $0x1df0] sm:$0xff]  ;;  %2677 = vst [vmem:[%s14102_s6 + $0xee8] sm:$0xff] %v2676_v9 }
 0x139   : > { %2679 = vst [vmem:[%s14102_s6 + $0xef0] sm:$0xff] %v2678_v10  ;;  %2681 = vst [vmem:[%s14102_s6 + $0xef8] sm:$0xff] %v2680_v11  ;;  %v2682_v12 = vld [vmem:[%s14097_s25 + $0x1e00] sm:$0xff]  ;;  %v2684_v13 = vld [vmem:[%s14097_s25 + $0x1e10] sm:$0xff] }
 0x13a   : > { %v2686_v14 = vld [vmem:[%s14097_s25 + $0x1e20] sm:$0xff]  ;;  %2683 = vst [vmem:[%s14102_s6 + $0xf00] sm:$0xff] %v2682_v12  ;;  %2685 = vst [vmem:[%s14102_s6 + $0xf08] sm:$0xff] %v2684_v13  ;;  %v2688_v15 = vld [vmem:[%s14097_s25 + $0x1e30] sm:$0xff] }
 0x13b   : > { %2687 = vst [vmem:[%s14102_s6 + $0xf10] sm:$0xff] %v2686_v14  ;;  %v2690_v16 = vld [vmem:[%s14097_s25 + $0x1e40] sm:$0xff]  ;;  %v2692_v17 = vld [vmem:[%s14097_s25 + $0x1e50] sm:$0xff]  ;;  %2689 = vst [vmem:[%s14102_s6 + $0xf18] sm:$0xff] %v2688_v15 }
 0x13c   : > { %2691 = vst [vmem:[%s14102_s6 + $0xf20] sm:$0xff] %v2690_v16  ;;  %2693 = vst [vmem:[%s14102_s6 + $0xf28] sm:$0xff] %v2692_v17  ;;  %v2694_v18 = vld [vmem:[%s14097_s25 + $0x1e60] sm:$0xff]  ;;  %v2696_v19 = vld [vmem:[%s14097_s25 + $0x1e70] sm:$0xff] }
 0x13d   : > { %v2698_v20 = vld [vmem:[%s14097_s25 + $0x1e80] sm:$0xff]  ;;  %2695 = vst [vmem:[%s14102_s6 + $0xf30] sm:$0xff] %v2694_v18  ;;  %2697 = vst [vmem:[%s14102_s6 + $0xf38] sm:$0xff] %v2696_v19  ;;  %v2700_v21 = vld [vmem:[%s14097_s25 + $0x1e90] sm:$0xff] }
 0x13e   : > { %2699 = vst [vmem:[%s14102_s6 + $0xf40] sm:$0xff] %v2698_v20  ;;  %v2702_v22 = vld [vmem:[%s14097_s25 + $0x1ea0] sm:$0xff]  ;;  %v2704_v23 = vld [vmem:[%s14097_s25 + $0x1eb0] sm:$0xff]  ;;  %2701 = vst [vmem:[%s14102_s6 + $0xf48] sm:$0xff] %v2700_v21 }
 0x13f   : > { %2703 = vst [vmem:[%s14102_s6 + $0xf50] sm:$0xff] %v2702_v22  ;;  %2705 = vst [vmem:[%s14102_s6 + $0xf58] sm:$0xff] %v2704_v23  ;;  %v2706_v24 = vld [vmem:[%s14097_s25 + $0x1ec0] sm:$0xff]  ;;  %v2708_v25 = vld [vmem:[%s14097_s25 + $0x1ed0] sm:$0xff] }
 0x140   : > { %v2710_v26 = vld [vmem:[%s14097_s25 + $0x1ee0] sm:$0xff]  ;;  %2707 = vst [vmem:[%s14102_s6 + $0xf60] sm:$0xff] %v2706_v24  ;;  %2709 = vst [vmem:[%s14102_s6 + $0xf68] sm:$0xff] %v2708_v25  ;;  %v2712_v27 = vld [vmem:[%s14097_s25 + $0x1ef0] sm:$0xff] }
 0x141   : > { %2711 = vst [vmem:[%s14102_s6 + $0xf70] sm:$0xff] %v2710_v26  ;;  %v2714_v28 = vld [vmem:[%s14097_s25 + $0x1f00] sm:$0xff]  ;;  %v2716_v29 = vld [vmem:[%s14097_s25 + $0x1f10] sm:$0xff]  ;;  %2713 = vst [vmem:[%s14102_s6 + $0xf78] sm:$0xff] %v2712_v27 }
 0x142   : > { %2715 = vst [vmem:[%s14102_s6 + $0xf80] sm:$0xff] %v2714_v28  ;;  %2717 = vst [vmem:[%s14102_s6 + $0xf88] sm:$0xff] %v2716_v29  ;;  %v2718_v30 = vld [vmem:[%s14097_s25 + $0x1f20] sm:$0xff]  ;;  %v2720_v31 = vld [vmem:[%s14097_s25 + $0x1f30] sm:$0xff] }
 0x143   : > { %v2722_v32 = vld [vmem:[%s14097_s25 + $0x1f40] sm:$0xff]  ;;  %2719 = vst [vmem:[%s14102_s6 + $0xf90] sm:$0xff] %v2718_v30  ;;  %2721 = vst [vmem:[%s14102_s6 + $0xf98] sm:$0xff] %v2720_v31  ;;  %v2724_v33 = vld [vmem:[%s14097_s25 + $0x1f50] sm:$0xff] }
 0x144   : > { %2723 = vst [vmem:[%s14102_s6 + $0xfa0] sm:$0xff] %v2722_v32  ;;  %v2726_v34 = vld [vmem:[%s14097_s25 + $0x1f60] sm:$0xff]  ;;  %v2728_v35 = vld [vmem:[%s14097_s25 + $0x1f70] sm:$0xff]  ;;  %2725 = vst [vmem:[%s14102_s6 + $0xfa8] sm:$0xff] %v2724_v33 }
 0x145   : > { %2727 = vst [vmem:[%s14102_s6 + $0xfb0] sm:$0xff] %v2726_v34  ;;  %2729 = vst [vmem:[%s14102_s6 + $0xfb8] sm:$0xff] %v2728_v35  ;;  %v2730_v36 = vld [vmem:[%s14097_s25 + $0x1f80] sm:$0xff]  ;;  %v2732_v37 = vld [vmem:[%s14097_s25 + $0x1f90] sm:$0xff] }
 0x146   : > { %v2734_v38 = vld [vmem:[%s14097_s25 + $0x1fa0] sm:$0xff]  ;;  %2731 = vst [vmem:[%s14102_s6 + $0xfc0] sm:$0xff] %v2730_v36  ;;  %2733 = vst [vmem:[%s14102_s6 + $0xfc8] sm:$0xff] %v2732_v37  ;;  %v2736_v39 = vld [vmem:[%s14097_s25 + $0x1fb0] sm:$0xff] }
 0x147   : > { %2735 = vst [vmem:[%s14102_s6 + $0xfd0] sm:$0xff] %v2734_v38  ;;  %v2738_v40 = vld [vmem:[%s14097_s25 + $0x1fc0] sm:$0xff]  ;;  %v2740_v41 = vld [vmem:[%s14097_s25 + $0x1fd0] sm:$0xff]  ;;  %2737 = vst [vmem:[%s14102_s6 + $0xfd8] sm:$0xff] %v2736_v39 }
 0x148   : > { %2739 = vst [vmem:[%s14102_s6 + $0xfe0] sm:$0xff] %v2738_v40  ;;  %2741 = vst [vmem:[%s14102_s6 + $0xfe8] sm:$0xff] %v2740_v41  ;;  %v2742_v42 = vld [vmem:[%s14097_s25 + $0x1fe0] sm:$0xff]  ;;  %v2744_v43 = vld [vmem:[%s14097_s25 + $0x1ff0] sm:$0xff] }
 0x149   : > { %v2746_v44 = vld [vmem:[%s14097_s25 + $0x2000] sm:$0xff]  ;;  %2743 = vst [vmem:[%s14102_s6 + $0xff0] sm:$0xff] %v2742_v42  ;;  %2745 = vst [vmem:[%s14102_s6 + $0xff8] sm:$0xff] %v2744_v43  ;;  %v2748_v45 = vld [vmem:[%s14097_s25 + $0x2010] sm:$0xff] }
 0x14a   : > { %2747 = vst [vmem:[%s14102_s6 + $0x1000] sm:$0xff] %v2746_v44  ;;  %v2750_v46 = vld [vmem:[%s14097_s25 + $0x2020] sm:$0xff]  ;;  %v2752_v47 = vld [vmem:[%s14097_s25 + $0x2030] sm:$0xff]  ;;  %2749 = vst [vmem:[%s14102_s6 + $0x1008] sm:$0xff] %v2748_v45 }
 0x14b   : > { %2751 = vst [vmem:[%s14102_s6 + $0x1010] sm:$0xff] %v2750_v46  ;;  %2753 = vst [vmem:[%s14102_s6 + $0x1018] sm:$0xff] %v2752_v47  ;;  %v2754_v48 = vld [vmem:[%s14097_s25 + $0x2040] sm:$0xff]  ;;  %v2756_v49 = vld [vmem:[%s14097_s25 + $0x2050] sm:$0xff] }
 0x14c   : > { %v2758_v50 = vld [vmem:[%s14097_s25 + $0x2060] sm:$0xff]  ;;  %2755 = vst [vmem:[%s14102_s6 + $0x1020] sm:$0xff] %v2754_v48  ;;  %2757 = vst [vmem:[%s14102_s6 + $0x1028] sm:$0xff] %v2756_v49  ;;  %v2760_v51 = vld [vmem:[%s14097_s25 + $0x2070] sm:$0xff] }
 0x14d   : > { %2759 = vst [vmem:[%s14102_s6 + $0x1030] sm:$0xff] %v2758_v50  ;;  %v2762_v52 = vld [vmem:[%s14097_s25 + $0x2080] sm:$0xff]  ;;  %v2764_v53 = vld [vmem:[%s14097_s25 + $0x2090] sm:$0xff]  ;;  %2761 = vst [vmem:[%s14102_s6 + $0x1038] sm:$0xff] %v2760_v51 }
 0x14e   : > { %2763 = vst [vmem:[%s14102_s6 + $0x1040] sm:$0xff] %v2762_v52  ;;  %2765 = vst [vmem:[%s14102_s6 + $0x1048] sm:$0xff] %v2764_v53  ;;  %v2766_v54 = vld [vmem:[%s14097_s25 + $0x20a0] sm:$0xff]  ;;  %v2768_v55 = vld [vmem:[%s14097_s25 + $0x20b0] sm:$0xff] }
 0x14f   : > { %v2770_v56 = vld [vmem:[%s14097_s25 + $0x20c0] sm:$0xff]  ;;  %2767 = vst [vmem:[%s14102_s6 + $0x1050] sm:$0xff] %v2766_v54  ;;  %2769 = vst [vmem:[%s14102_s6 + $0x1058] sm:$0xff] %v2768_v55  ;;  %v2772_v57 = vld [vmem:[%s14097_s25 + $0x20d0] sm:$0xff] }
 0x150   : > { %2771 = vst [vmem:[%s14102_s6 + $0x1060] sm:$0xff] %v2770_v56  ;;  %v2774_v58 = vld [vmem:[%s14097_s25 + $0x20e0] sm:$0xff]  ;;  %v2776_v59 = vld [vmem:[%s14097_s25 + $0x20f0] sm:$0xff]  ;;  %2773 = vst [vmem:[%s14102_s6 + $0x1068] sm:$0xff] %v2772_v57 }
 0x151   : > { %2775 = vst [vmem:[%s14102_s6 + $0x1070] sm:$0xff] %v2774_v58  ;;  %2777 = vst [vmem:[%s14102_s6 + $0x1078] sm:$0xff] %v2776_v59  ;;  %v2778_v60 = vld [vmem:[%s14097_s25 + $0x2100] sm:$0xff]  ;;  %v2780_v61 = vld [vmem:[%s14097_s25 + $0x2110] sm:$0xff] }
 0x152   : > { %v2782_v62 = vld [vmem:[%s14097_s25 + $0x2120] sm:$0xff]  ;;  %2779 = vst [vmem:[%s14102_s6 + $0x1080] sm:$0xff] %v2778_v60  ;;  %2781 = vst [vmem:[%s14102_s6 + $0x1088] sm:$0xff] %v2780_v61  ;;  %v2784_v63 = vld [vmem:[%s14097_s25 + $0x2130] sm:$0xff] }
 0x153   : > { %2783 = vst [vmem:[%s14102_s6 + $0x1090] sm:$0xff] %v2782_v62  ;;  %v2786_v0 = vld [vmem:[%s14097_s25 + $0x2140] sm:$0xff]  ;;  %v2788_v1 = vld [vmem:[%s14097_s25 + $0x2150] sm:$0xff]  ;;  %2785 = vst [vmem:[%s14102_s6 + $0x1098] sm:$0xff] %v2784_v63 }
 0x154   : > { %2787 = vst [vmem:[%s14102_s6 + $0x10a0] sm:$0xff] %v2786_v0  ;;  %2789 = vst [vmem:[%s14102_s6 + $0x10a8] sm:$0xff] %v2788_v1  ;;  %v2790_v2 = vld [vmem:[%s14097_s25 + $0x2160] sm:$0xff]  ;;  %v2792_v3 = vld [vmem:[%s14097_s25 + $0x2170] sm:$0xff] }
 0x155   : > { %v2794_v4 = vld [vmem:[%s14097_s25 + $0x2180] sm:$0xff]  ;;  %2791 = vst [vmem:[%s14102_s6 + $0x10b0] sm:$0xff] %v2790_v2  ;;  %2793 = vst [vmem:[%s14102_s6 + $0x10b8] sm:$0xff] %v2792_v3  ;;  %v2796_v5 = vld [vmem:[%s14097_s25 + $0x2190] sm:$0xff] }
 0x156   : > { %2795 = vst [vmem:[%s14102_s6 + $0x10c0] sm:$0xff] %v2794_v4  ;;  %v2798_v6 = vld [vmem:[%s14097_s25 + $0x21a0] sm:$0xff]  ;;  %v2800_v7 = vld [vmem:[%s14097_s25 + $0x21b0] sm:$0xff]  ;;  %2797 = vst [vmem:[%s14102_s6 + $0x10c8] sm:$0xff] %v2796_v5 }
 0x157   : > { %2799 = vst [vmem:[%s14102_s6 + $0x10d0] sm:$0xff] %v2798_v6  ;;  %2801 = vst [vmem:[%s14102_s6 + $0x10d8] sm:$0xff] %v2800_v7  ;;  %v2802_v8 = vld [vmem:[%s14097_s25 + $0x21c0] sm:$0xff]  ;;  %v2804_v9 = vld [vmem:[%s14097_s25 + $0x21d0] sm:$0xff] }
 0x158   : > { %v2806_v10 = vld [vmem:[%s14097_s25 + $0x21e0] sm:$0xff]  ;;  %2803 = vst [vmem:[%s14102_s6 + $0x10e0] sm:$0xff] %v2802_v8  ;;  %2805 = vst [vmem:[%s14102_s6 + $0x10e8] sm:$0xff] %v2804_v9  ;;  %v2808_v11 = vld [vmem:[%s14097_s25 + $0x21f0] sm:$0xff] }
 0x159   : > { %2807 = vst [vmem:[%s14102_s6 + $0x10f0] sm:$0xff] %v2806_v10  ;;  %v2810_v12 = vld [vmem:[%s14097_s25 + $0x2200] sm:$0xff]  ;;  %v2812_v13 = vld [vmem:[%s14097_s25 + $0x2210] sm:$0xff]  ;;  %2809 = vst [vmem:[%s14102_s6 + $0x10f8] sm:$0xff] %v2808_v11 }
 0x15a   : > { %2811 = vst [vmem:[%s14102_s6 + $0x1100] sm:$0xff] %v2810_v12  ;;  %2813 = vst [vmem:[%s14102_s6 + $0x1108] sm:$0xff] %v2812_v13  ;;  %v2814_v14 = vld [vmem:[%s14097_s25 + $0x2220] sm:$0xff]  ;;  %v2816_v15 = vld [vmem:[%s14097_s25 + $0x2230] sm:$0xff] }
 0x15b   : > { %v2818_v16 = vld [vmem:[%s14097_s25 + $0x2240] sm:$0xff]  ;;  %2815 = vst [vmem:[%s14102_s6 + $0x1110] sm:$0xff] %v2814_v14  ;;  %2817 = vst [vmem:[%s14102_s6 + $0x1118] sm:$0xff] %v2816_v15  ;;  %v2820_v17 = vld [vmem:[%s14097_s25 + $0x2250] sm:$0xff] }
 0x15c   : > { %2819 = vst [vmem:[%s14102_s6 + $0x1120] sm:$0xff] %v2818_v16  ;;  %v2822_v18 = vld [vmem:[%s14097_s25 + $0x2260] sm:$0xff]  ;;  %v2824_v19 = vld [vmem:[%s14097_s25 + $0x2270] sm:$0xff]  ;;  %2821 = vst [vmem:[%s14102_s6 + $0x1128] sm:$0xff] %v2820_v17 }
 0x15d   : > { %2823 = vst [vmem:[%s14102_s6 + $0x1130] sm:$0xff] %v2822_v18  ;;  %2825 = vst [vmem:[%s14102_s6 + $0x1138] sm:$0xff] %v2824_v19  ;;  %v2826_v20 = vld [vmem:[%s14097_s25 + $0x2280] sm:$0xff]  ;;  %v2828_v21 = vld [vmem:[%s14097_s25 + $0x2290] sm:$0xff] }
 0x15e   : > { %v2830_v22 = vld [vmem:[%s14097_s25 + $0x22a0] sm:$0xff]  ;;  %2827 = vst [vmem:[%s14102_s6 + $0x1140] sm:$0xff] %v2826_v20  ;;  %2829 = vst [vmem:[%s14102_s6 + $0x1148] sm:$0xff] %v2828_v21  ;;  %v2832_v23 = vld [vmem:[%s14097_s25 + $0x22b0] sm:$0xff] }
 0x15f   : > { %2831 = vst [vmem:[%s14102_s6 + $0x1150] sm:$0xff] %v2830_v22  ;;  %v2834_v24 = vld [vmem:[%s14097_s25 + $0x22c0] sm:$0xff]  ;;  %v2836_v25 = vld [vmem:[%s14097_s25 + $0x22d0] sm:$0xff]  ;;  %2833 = vst [vmem:[%s14102_s6 + $0x1158] sm:$0xff] %v2832_v23 }
 0x160   : > { %2835 = vst [vmem:[%s14102_s6 + $0x1160] sm:$0xff] %v2834_v24  ;;  %2837 = vst [vmem:[%s14102_s6 + $0x1168] sm:$0xff] %v2836_v25  ;;  %v2838_v26 = vld [vmem:[%s14097_s25 + $0x22e0] sm:$0xff]  ;;  %v2840_v27 = vld [vmem:[%s14097_s25 + $0x22f0] sm:$0xff] }
 0x161   : > { %v2842_v28 = vld [vmem:[%s14097_s25 + $0x2300] sm:$0xff]  ;;  %2839 = vst [vmem:[%s14102_s6 + $0x1170] sm:$0xff] %v2838_v26  ;;  %2841 = vst [vmem:[%s14102_s6 + $0x1178] sm:$0xff] %v2840_v27  ;;  %v2844_v29 = vld [vmem:[%s14097_s25 + $0x2310] sm:$0xff] }
 0x162   : > { %2843 = vst [vmem:[%s14102_s6 + $0x1180] sm:$0xff] %v2842_v28  ;;  %v2846_v30 = vld [vmem:[%s14097_s25 + $0x2320] sm:$0xff]  ;;  %v2848_v31 = vld [vmem:[%s14097_s25 + $0x2330] sm:$0xff]  ;;  %2845 = vst [vmem:[%s14102_s6 + $0x1188] sm:$0xff] %v2844_v29 }
 0x163   : > { %2847 = vst [vmem:[%s14102_s6 + $0x1190] sm:$0xff] %v2846_v30  ;;  %2849 = vst [vmem:[%s14102_s6 + $0x1198] sm:$0xff] %v2848_v31  ;;  %v2850_v32 = vld [vmem:[%s14097_s25 + $0x2340] sm:$0xff]  ;;  %v2852_v33 = vld [vmem:[%s14097_s25 + $0x2350] sm:$0xff] }
 0x164   : > { %v2854_v34 = vld [vmem:[%s14097_s25 + $0x2360] sm:$0xff]  ;;  %2851 = vst [vmem:[%s14102_s6 + $0x11a0] sm:$0xff] %v2850_v32  ;;  %2853 = vst [vmem:[%s14102_s6 + $0x11a8] sm:$0xff] %v2852_v33  ;;  %v2856_v35 = vld [vmem:[%s14097_s25 + $0x2370] sm:$0xff] }
 0x165   : > { %2855 = vst [vmem:[%s14102_s6 + $0x11b0] sm:$0xff] %v2854_v34  ;;  %v2858_v36 = vld [vmem:[%s14097_s25 + $0x2380] sm:$0xff]  ;;  %v2860_v37 = vld [vmem:[%s14097_s25 + $0x2390] sm:$0xff]  ;;  %2857 = vst [vmem:[%s14102_s6 + $0x11b8] sm:$0xff] %v2856_v35 }
 0x166   : > { %2859 = vst [vmem:[%s14102_s6 + $0x11c0] sm:$0xff] %v2858_v36  ;;  %2861 = vst [vmem:[%s14102_s6 + $0x11c8] sm:$0xff] %v2860_v37  ;;  %v2862_v38 = vld [vmem:[%s14097_s25 + $0x23a0] sm:$0xff]  ;;  %v2864_v39 = vld [vmem:[%s14097_s25 + $0x23b0] sm:$0xff] }
 0x167   : > { %v2866_v40 = vld [vmem:[%s14097_s25 + $0x23c0] sm:$0xff]  ;;  %2863 = vst [vmem:[%s14102_s6 + $0x11d0] sm:$0xff] %v2862_v38  ;;  %2865 = vst [vmem:[%s14102_s6 + $0x11d8] sm:$0xff] %v2864_v39  ;;  %v2868_v41 = vld [vmem:[%s14097_s25 + $0x23d0] sm:$0xff] }
 0x168   : > { %2867 = vst [vmem:[%s14102_s6 + $0x11e0] sm:$0xff] %v2866_v40  ;;  %v2870_v42 = vld [vmem:[%s14097_s25 + $0x23e0] sm:$0xff]  ;;  %v2872_v43 = vld [vmem:[%s14097_s25 + $0x23f0] sm:$0xff]  ;;  %2869 = vst [vmem:[%s14102_s6 + $0x11e8] sm:$0xff] %v2868_v41 }
 0x169   : > { %2871 = vst [vmem:[%s14102_s6 + $0x11f0] sm:$0xff] %v2870_v42  ;;  %2873 = vst [vmem:[%s14102_s6 + $0x11f8] sm:$0xff] %v2872_v43  ;;  %v2874_v44 = vld [vmem:[%s14097_s25 + $0x2400] sm:$0xff]  ;;  %v2876_v45 = vld [vmem:[%s14097_s25 + $0x2410] sm:$0xff] }
 0x16a   : > { %v2878_v46 = vld [vmem:[%s14097_s25 + $0x2420] sm:$0xff]  ;;  %2875 = vst [vmem:[%s14102_s6 + $0x1200] sm:$0xff] %v2874_v44  ;;  %2877 = vst [vmem:[%s14102_s6 + $0x1208] sm:$0xff] %v2876_v45  ;;  %v2880_v47 = vld [vmem:[%s14097_s25 + $0x2430] sm:$0xff] }
 0x16b   : > { %2879 = vst [vmem:[%s14102_s6 + $0x1210] sm:$0xff] %v2878_v46  ;;  %v2882_v48 = vld [vmem:[%s14097_s25 + $0x2440] sm:$0xff]  ;;  %v2884_v49 = vld [vmem:[%s14097_s25 + $0x2450] sm:$0xff]  ;;  %2881 = vst [vmem:[%s14102_s6 + $0x1218] sm:$0xff] %v2880_v47 }
 0x16c   : > { %2883 = vst [vmem:[%s14102_s6 + $0x1220] sm:$0xff] %v2882_v48  ;;  %2885 = vst [vmem:[%s14102_s6 + $0x1228] sm:$0xff] %v2884_v49  ;;  %v2886_v50 = vld [vmem:[%s14097_s25 + $0x2460] sm:$0xff]  ;;  %v2888_v51 = vld [vmem:[%s14097_s25 + $0x2470] sm:$0xff] }
 0x16d   : > { %v2890_v52 = vld [vmem:[%s14097_s25 + $0x2480] sm:$0xff]  ;;  %2887 = vst [vmem:[%s14102_s6 + $0x1230] sm:$0xff] %v2886_v50  ;;  %2889 = vst [vmem:[%s14102_s6 + $0x1238] sm:$0xff] %v2888_v51  ;;  %v2892_v53 = vld [vmem:[%s14097_s25 + $0x2490] sm:$0xff] }
 0x16e   : > { %2891 = vst [vmem:[%s14102_s6 + $0x1240] sm:$0xff] %v2890_v52  ;;  %v2894_v54 = vld [vmem:[%s14097_s25 + $0x24a0] sm:$0xff]  ;;  %v2896_v55 = vld [vmem:[%s14097_s25 + $0x24b0] sm:$0xff]  ;;  %2893 = vst [vmem:[%s14102_s6 + $0x1248] sm:$0xff] %v2892_v53 }
 0x16f   : > { %2895 = vst [vmem:[%s14102_s6 + $0x1250] sm:$0xff] %v2894_v54  ;;  %2897 = vst [vmem:[%s14102_s6 + $0x1258] sm:$0xff] %v2896_v55  ;;  %v2898_v56 = vld [vmem:[%s14097_s25 + $0x24c0] sm:$0xff]  ;;  %v2900_v57 = vld [vmem:[%s14097_s25 + $0x24d0] sm:$0xff] }
 0x170   : > { %v2902_v58 = vld [vmem:[%s14097_s25 + $0x24e0] sm:$0xff]  ;;  %2899 = vst [vmem:[%s14102_s6 + $0x1260] sm:$0xff] %v2898_v56  ;;  %2901 = vst [vmem:[%s14102_s6 + $0x1268] sm:$0xff] %v2900_v57  ;;  %v2904_v59 = vld [vmem:[%s14097_s25 + $0x24f0] sm:$0xff] }
 0x171   : > { %2903 = vst [vmem:[%s14102_s6 + $0x1270] sm:$0xff] %v2902_v58  ;;  %v2906_v60 = vld [vmem:[%s14097_s25 + $0x2500] sm:$0xff]  ;;  %v2908_v61 = vld [vmem:[%s14097_s25 + $0x2510] sm:$0xff]  ;;  %2905 = vst [vmem:[%s14102_s6 + $0x1278] sm:$0xff] %v2904_v59 }
 0x172   : > { %2907 = vst [vmem:[%s14102_s6 + $0x1280] sm:$0xff] %v2906_v60  ;;  %2909 = vst [vmem:[%s14102_s6 + $0x1288] sm:$0xff] %v2908_v61  ;;  %v2910_v62 = vld [vmem:[%s14097_s25 + $0x2520] sm:$0xff]  ;;  %v2912_v63 = vld [vmem:[%s14097_s25 + $0x2530] sm:$0xff] }
 0x173   : > { %v2914_v0 = vld [vmem:[%s14097_s25 + $0x2540] sm:$0xff]  ;;  %2911 = vst [vmem:[%s14102_s6 + $0x1290] sm:$0xff] %v2910_v62  ;;  %2913 = vst [vmem:[%s14102_s6 + $0x1298] sm:$0xff] %v2912_v63  ;;  %v2916_v1 = vld [vmem:[%s14097_s25 + $0x2550] sm:$0xff] }
 0x174   : > { %2915 = vst [vmem:[%s14102_s6 + $0x12a0] sm:$0xff] %v2914_v0  ;;  %v2918_v2 = vld [vmem:[%s14097_s25 + $0x2560] sm:$0xff]  ;;  %v2920_v3 = vld [vmem:[%s14097_s25 + $0x2570] sm:$0xff]  ;;  %2917 = vst [vmem:[%s14102_s6 + $0x12a8] sm:$0xff] %v2916_v1 }
 0x175   : > { %2919 = vst [vmem:[%s14102_s6 + $0x12b0] sm:$0xff] %v2918_v2  ;;  %2921 = vst [vmem:[%s14102_s6 + $0x12b8] sm:$0xff] %v2920_v3  ;;  %v2922_v4 = vld [vmem:[%s14097_s25 + $0x2580] sm:$0xff]  ;;  %v2924_v5 = vld [vmem:[%s14097_s25 + $0x2590] sm:$0xff] }
 0x176   : > { %v2926_v6 = vld [vmem:[%s14097_s25 + $0x25a0] sm:$0xff]  ;;  %2923 = vst [vmem:[%s14102_s6 + $0x12c0] sm:$0xff] %v2922_v4  ;;  %2925 = vst [vmem:[%s14102_s6 + $0x12c8] sm:$0xff] %v2924_v5  ;;  %v2928_v7 = vld [vmem:[%s14097_s25 + $0x25b0] sm:$0xff] }
 0x177   : > { %2927 = vst [vmem:[%s14102_s6 + $0x12d0] sm:$0xff] %v2926_v6  ;;  %v2930_v8 = vld [vmem:[%s14097_s25 + $0x25c0] sm:$0xff]  ;;  %v2932_v9 = vld [vmem:[%s14097_s25 + $0x25d0] sm:$0xff]  ;;  %2929 = vst [vmem:[%s14102_s6 + $0x12d8] sm:$0xff] %v2928_v7 }
 0x178   : > { %2931 = vst [vmem:[%s14102_s6 + $0x12e0] sm:$0xff] %v2930_v8  ;;  %2933 = vst [vmem:[%s14102_s6 + $0x12e8] sm:$0xff] %v2932_v9  ;;  %v2934_v10 = vld [vmem:[%s14097_s25 + $0x25e0] sm:$0xff]  ;;  %v2936_v11 = vld [vmem:[%s14097_s25 + $0x25f0] sm:$0xff] }
 0x179   : > { %v2938_v12 = vld [vmem:[%s14097_s25 + $0x2600] sm:$0xff]  ;;  %2935 = vst [vmem:[%s14102_s6 + $0x12f0] sm:$0xff] %v2934_v10  ;;  %2937 = vst [vmem:[%s14102_s6 + $0x12f8] sm:$0xff] %v2936_v11  ;;  %v2940_v13 = vld [vmem:[%s14097_s25 + $0x2610] sm:$0xff] }
 0x17a   : > { %2939 = vst [vmem:[%s14102_s6 + $0x1300] sm:$0xff] %v2938_v12  ;;  %v2942_v14 = vld [vmem:[%s14097_s25 + $0x2620] sm:$0xff]  ;;  %v2944_v15 = vld [vmem:[%s14097_s25 + $0x2630] sm:$0xff]  ;;  %2941 = vst [vmem:[%s14102_s6 + $0x1308] sm:$0xff] %v2940_v13 }
 0x17b   : > { %2943 = vst [vmem:[%s14102_s6 + $0x1310] sm:$0xff] %v2942_v14  ;;  %2945 = vst [vmem:[%s14102_s6 + $0x1318] sm:$0xff] %v2944_v15  ;;  %v2946_v16 = vld [vmem:[%s14097_s25 + $0x2640] sm:$0xff]  ;;  %v2948_v17 = vld [vmem:[%s14097_s25 + $0x2650] sm:$0xff] }
 0x17c   : > { %v2950_v18 = vld [vmem:[%s14097_s25 + $0x2660] sm:$0xff]  ;;  %2947 = vst [vmem:[%s14102_s6 + $0x1320] sm:$0xff] %v2946_v16  ;;  %2949 = vst [vmem:[%s14102_s6 + $0x1328] sm:$0xff] %v2948_v17  ;;  %v2952_v19 = vld [vmem:[%s14097_s25 + $0x2670] sm:$0xff] }
 0x17d   : > { %2951 = vst [vmem:[%s14102_s6 + $0x1330] sm:$0xff] %v2950_v18  ;;  %v2954_v20 = vld [vmem:[%s14097_s25 + $0x2680] sm:$0xff]  ;;  %v2956_v21 = vld [vmem:[%s14097_s25 + $0x2690] sm:$0xff]  ;;  %2953 = vst [vmem:[%s14102_s6 + $0x1338] sm:$0xff] %v2952_v19 }
 0x17e   : > { %2955 = vst [vmem:[%s14102_s6 + $0x1340] sm:$0xff] %v2954_v20  ;;  %2957 = vst [vmem:[%s14102_s6 + $0x1348] sm:$0xff] %v2956_v21  ;;  %v2958_v22 = vld [vmem:[%s14097_s25 + $0x26a0] sm:$0xff]  ;;  %v2960_v23 = vld [vmem:[%s14097_s25 + $0x26b0] sm:$0xff] }
 0x17f   : > { %v2962_v24 = vld [vmem:[%s14097_s25 + $0x26c0] sm:$0xff]  ;;  %2959 = vst [vmem:[%s14102_s6 + $0x1350] sm:$0xff] %v2958_v22  ;;  %2961 = vst [vmem:[%s14102_s6 + $0x1358] sm:$0xff] %v2960_v23  ;;  %v2964_v25 = vld [vmem:[%s14097_s25 + $0x26d0] sm:$0xff] }
 0x180   : > { %2963 = vst [vmem:[%s14102_s6 + $0x1360] sm:$0xff] %v2962_v24  ;;  %v2966_v26 = vld [vmem:[%s14097_s25 + $0x26e0] sm:$0xff]  ;;  %v2968_v27 = vld [vmem:[%s14097_s25 + $0x26f0] sm:$0xff]  ;;  %2965 = vst [vmem:[%s14102_s6 + $0x1368] sm:$0xff] %v2964_v25 }
 0x181   : > { %2967 = vst [vmem:[%s14102_s6 + $0x1370] sm:$0xff] %v2966_v26  ;;  %2969 = vst [vmem:[%s14102_s6 + $0x1378] sm:$0xff] %v2968_v27  ;;  %v2970_v28 = vld [vmem:[%s14097_s25 + $0x2700] sm:$0xff]  ;;  %v2972_v29 = vld [vmem:[%s14097_s25 + $0x2710] sm:$0xff] }
 0x182   : > { %v2974_v30 = vld [vmem:[%s14097_s25 + $0x2720] sm:$0xff]  ;;  %2971 = vst [vmem:[%s14102_s6 + $0x1380] sm:$0xff] %v2970_v28  ;;  %2973 = vst [vmem:[%s14102_s6 + $0x1388] sm:$0xff] %v2972_v29  ;;  %v2976_v31 = vld [vmem:[%s14097_s25 + $0x2730] sm:$0xff] }
 0x183   : > { %2975 = vst [vmem:[%s14102_s6 + $0x1390] sm:$0xff] %v2974_v30  ;;  %v2978_v32 = vld [vmem:[%s14097_s25 + $0x2740] sm:$0xff]  ;;  %v2980_v33 = vld [vmem:[%s14097_s25 + $0x2750] sm:$0xff]  ;;  %2977 = vst [vmem:[%s14102_s6 + $0x1398] sm:$0xff] %v2976_v31 }
 0x184   : > { %2979 = vst [vmem:[%s14102_s6 + $0x13a0] sm:$0xff] %v2978_v32  ;;  %2981 = vst [vmem:[%s14102_s6 + $0x13a8] sm:$0xff] %v2980_v33  ;;  %v2982_v34 = vld [vmem:[%s14097_s25 + $0x2760] sm:$0xff]  ;;  %v2984_v35 = vld [vmem:[%s14097_s25 + $0x2770] sm:$0xff] }
 0x185   : > { %v2986_v36 = vld [vmem:[%s14097_s25 + $0x2780] sm:$0xff]  ;;  %2983 = vst [vmem:[%s14102_s6 + $0x13b0] sm:$0xff] %v2982_v34  ;;  %2985 = vst [vmem:[%s14102_s6 + $0x13b8] sm:$0xff] %v2984_v35  ;;  %v2988_v37 = vld [vmem:[%s14097_s25 + $0x2790] sm:$0xff] }
 0x186   : > { %2987 = vst [vmem:[%s14102_s6 + $0x13c0] sm:$0xff] %v2986_v36  ;;  %v2990_v38 = vld [vmem:[%s14097_s25 + $0x27a0] sm:$0xff]  ;;  %v2992_v39 = vld [vmem:[%s14097_s25 + $0x27b0] sm:$0xff]  ;;  %2989 = vst [vmem:[%s14102_s6 + $0x13c8] sm:$0xff] %v2988_v37 }
 0x187   : > { %2991 = vst [vmem:[%s14102_s6 + $0x13d0] sm:$0xff] %v2990_v38  ;;  %2993 = vst [vmem:[%s14102_s6 + $0x13d8] sm:$0xff] %v2992_v39  ;;  %v2994_v40 = vld [vmem:[%s14097_s25 + $0x27c0] sm:$0xff]  ;;  %v2996_v41 = vld [vmem:[%s14097_s25 + $0x27d0] sm:$0xff] }
 0x188   : > { %v2998_v42 = vld [vmem:[%s14097_s25 + $0x27e0] sm:$0xff]  ;;  %2995 = vst [vmem:[%s14102_s6 + $0x13e0] sm:$0xff] %v2994_v40  ;;  %2997 = vst [vmem:[%s14102_s6 + $0x13e8] sm:$0xff] %v2996_v41  ;;  %v3000_v43 = vld [vmem:[%s14097_s25 + $0x27f0] sm:$0xff] }
 0x189   : > { %2999 = vst [vmem:[%s14102_s6 + $0x13f0] sm:$0xff] %v2998_v42  ;;  %v3002_v44 = vld [vmem:[%s14097_s25 + $0x2800] sm:$0xff]  ;;  %v3004_v45 = vld [vmem:[%s14097_s25 + $0x2810] sm:$0xff]  ;;  %3001 = vst [vmem:[%s14102_s6 + $0x13f8] sm:$0xff] %v3000_v43 }
 0x18a   : > { %3003 = vst [vmem:[%s14102_s6 + $0x1400] sm:$0xff] %v3002_v44  ;;  %3005 = vst [vmem:[%s14102_s6 + $0x1408] sm:$0xff] %v3004_v45  ;;  %v3006_v46 = vld [vmem:[%s14097_s25 + $0x2820] sm:$0xff]  ;;  %v3008_v47 = vld [vmem:[%s14097_s25 + $0x2830] sm:$0xff] }
 0x18b   : > { %v3010_v48 = vld [vmem:[%s14097_s25 + $0x2840] sm:$0xff]  ;;  %3007 = vst [vmem:[%s14102_s6 + $0x1410] sm:$0xff] %v3006_v46  ;;  %3009 = vst [vmem:[%s14102_s6 + $0x1418] sm:$0xff] %v3008_v47  ;;  %v3012_v49 = vld [vmem:[%s14097_s25 + $0x2850] sm:$0xff] }
 0x18c   : > { %3011 = vst [vmem:[%s14102_s6 + $0x1420] sm:$0xff] %v3010_v48  ;;  %v3014_v50 = vld [vmem:[%s14097_s25 + $0x2860] sm:$0xff]  ;;  %v3016_v51 = vld [vmem:[%s14097_s25 + $0x2870] sm:$0xff]  ;;  %3013 = vst [vmem:[%s14102_s6 + $0x1428] sm:$0xff] %v3012_v49 }
 0x18d   : > { %3015 = vst [vmem:[%s14102_s6 + $0x1430] sm:$0xff] %v3014_v50  ;;  %3017 = vst [vmem:[%s14102_s6 + $0x1438] sm:$0xff] %v3016_v51  ;;  %v3018_v52 = vld [vmem:[%s14097_s25 + $0x2880] sm:$0xff]  ;;  %v3020_v53 = vld [vmem:[%s14097_s25 + $0x2890] sm:$0xff] }
 0x18e   : > { %v3022_v54 = vld [vmem:[%s14097_s25 + $0x28a0] sm:$0xff]  ;;  %3019 = vst [vmem:[%s14102_s6 + $0x1440] sm:$0xff] %v3018_v52  ;;  %3021 = vst [vmem:[%s14102_s6 + $0x1448] sm:$0xff] %v3020_v53  ;;  %v3024_v55 = vld [vmem:[%s14097_s25 + $0x28b0] sm:$0xff] }
 0x18f   : > { %3023 = vst [vmem:[%s14102_s6 + $0x1450] sm:$0xff] %v3022_v54  ;;  %v3026_v56 = vld [vmem:[%s14097_s25 + $0x28c0] sm:$0xff]  ;;  %v3028_v57 = vld [vmem:[%s14097_s25 + $0x28d0] sm:$0xff]  ;;  %3025 = vst [vmem:[%s14102_s6 + $0x1458] sm:$0xff] %v3024_v55 }
 0x190   : > { %3027 = vst [vmem:[%s14102_s6 + $0x1460] sm:$0xff] %v3026_v56  ;;  %3029 = vst [vmem:[%s14102_s6 + $0x1468] sm:$0xff] %v3028_v57  ;;  %v3030_v58 = vld [vmem:[%s14097_s25 + $0x28e0] sm:$0xff]  ;;  %v3032_v59 = vld [vmem:[%s14097_s25 + $0x28f0] sm:$0xff] }
 0x191   : > { %v3034_v60 = vld [vmem:[%s14097_s25 + $0x2900] sm:$0xff]  ;;  %3031 = vst [vmem:[%s14102_s6 + $0x1470] sm:$0xff] %v3030_v58  ;;  %3033 = vst [vmem:[%s14102_s6 + $0x1478] sm:$0xff] %v3032_v59  ;;  %v3036_v61 = vld [vmem:[%s14097_s25 + $0x2910] sm:$0xff] }
 0x192   : > { %3035 = vst [vmem:[%s14102_s6 + $0x1480] sm:$0xff] %v3034_v60  ;;  %v3038_v62 = vld [vmem:[%s14097_s25 + $0x2920] sm:$0xff]  ;;  %v3040_v63 = vld [vmem:[%s14097_s25 + $0x2930] sm:$0xff]  ;;  %3037 = vst [vmem:[%s14102_s6 + $0x1488] sm:$0xff] %v3036_v61 }
 0x193   : > { %3039 = vst [vmem:[%s14102_s6 + $0x1490] sm:$0xff] %v3038_v62  ;;  %3041 = vst [vmem:[%s14102_s6 + $0x1498] sm:$0xff] %v3040_v63  ;;  %v3042_v0 = vld [vmem:[%s14097_s25 + $0x2940] sm:$0xff]  ;;  %v3044_v1 = vld [vmem:[%s14097_s25 + $0x2950] sm:$0xff] }
 0x194   : > { %v3046_v2 = vld [vmem:[%s14097_s25 + $0x2960] sm:$0xff]  ;;  %3043 = vst [vmem:[%s14102_s6 + $0x14a0] sm:$0xff] %v3042_v0  ;;  %3045 = vst [vmem:[%s14102_s6 + $0x14a8] sm:$0xff] %v3044_v1  ;;  %v3048_v3 = vld [vmem:[%s14097_s25 + $0x2970] sm:$0xff] }
 0x195   : > { %3047 = vst [vmem:[%s14102_s6 + $0x14b0] sm:$0xff] %v3046_v2  ;;  %v3050_v4 = vld [vmem:[%s14097_s25 + $0x2980] sm:$0xff]  ;;  %v3052_v5 = vld [vmem:[%s14097_s25 + $0x2990] sm:$0xff]  ;;  %3049 = vst [vmem:[%s14102_s6 + $0x14b8] sm:$0xff] %v3048_v3 }
 0x196   : > { %3051 = vst [vmem:[%s14102_s6 + $0x14c0] sm:$0xff] %v3050_v4  ;;  %3053 = vst [vmem:[%s14102_s6 + $0x14c8] sm:$0xff] %v3052_v5  ;;  %v3054_v6 = vld [vmem:[%s14097_s25 + $0x29a0] sm:$0xff]  ;;  %v3056_v7 = vld [vmem:[%s14097_s25 + $0x29b0] sm:$0xff] }
 0x197   : > { %v3058_v8 = vld [vmem:[%s14097_s25 + $0x29c0] sm:$0xff]  ;;  %3055 = vst [vmem:[%s14102_s6 + $0x14d0] sm:$0xff] %v3054_v6  ;;  %3057 = vst [vmem:[%s14102_s6 + $0x14d8] sm:$0xff] %v3056_v7  ;;  %v3060_v9 = vld [vmem:[%s14097_s25 + $0x29d0] sm:$0xff] }
 0x198   : > { %3059 = vst [vmem:[%s14102_s6 + $0x14e0] sm:$0xff] %v3058_v8  ;;  %v3062_v10 = vld [vmem:[%s14097_s25 + $0x29e0] sm:$0xff]  ;;  %v3064_v11 = vld [vmem:[%s14097_s25 + $0x29f0] sm:$0xff]  ;;  %3061 = vst [vmem:[%s14102_s6 + $0x14e8] sm:$0xff] %v3060_v9 }
 0x199   : > { %3063 = vst [vmem:[%s14102_s6 + $0x14f0] sm:$0xff] %v3062_v10  ;;  %3065 = vst [vmem:[%s14102_s6 + $0x14f8] sm:$0xff] %v3064_v11  ;;  %v3066_v12 = vld [vmem:[%s14097_s25 + $0x2a00] sm:$0xff]  ;;  %v3068_v13 = vld [vmem:[%s14097_s25 + $0x2a10] sm:$0xff] }
 0x19a   : > { %v3070_v14 = vld [vmem:[%s14097_s25 + $0x2a20] sm:$0xff]  ;;  %3067 = vst [vmem:[%s14102_s6 + $0x1500] sm:$0xff] %v3066_v12  ;;  %3069 = vst [vmem:[%s14102_s6 + $0x1508] sm:$0xff] %v3068_v13  ;;  %v3072_v15 = vld [vmem:[%s14097_s25 + $0x2a30] sm:$0xff] }
 0x19b   : > { %3071 = vst [vmem:[%s14102_s6 + $0x1510] sm:$0xff] %v3070_v14  ;;  %v3074_v16 = vld [vmem:[%s14097_s25 + $0x2a40] sm:$0xff]  ;;  %v3076_v17 = vld [vmem:[%s14097_s25 + $0x2a50] sm:$0xff]  ;;  %3073 = vst [vmem:[%s14102_s6 + $0x1518] sm:$0xff] %v3072_v15 }
 0x19c   : > { %3075 = vst [vmem:[%s14102_s6 + $0x1520] sm:$0xff] %v3074_v16  ;;  %3077 = vst [vmem:[%s14102_s6 + $0x1528] sm:$0xff] %v3076_v17  ;;  %v3078_v18 = vld [vmem:[%s14097_s25 + $0x2a60] sm:$0xff]  ;;  %v3080_v19 = vld [vmem:[%s14097_s25 + $0x2a70] sm:$0xff] }
 0x19d   : > { %v3082_v20 = vld [vmem:[%s14097_s25 + $0x2a80] sm:$0xff]  ;;  %3079 = vst [vmem:[%s14102_s6 + $0x1530] sm:$0xff] %v3078_v18  ;;  %3081 = vst [vmem:[%s14102_s6 + $0x1538] sm:$0xff] %v3080_v19  ;;  %v3084_v21 = vld [vmem:[%s14097_s25 + $0x2a90] sm:$0xff] }
 0x19e   : > { %3083 = vst [vmem:[%s14102_s6 + $0x1540] sm:$0xff] %v3082_v20  ;;  %v3086_v22 = vld [vmem:[%s14097_s25 + $0x2aa0] sm:$0xff]  ;;  %v3088_v23 = vld [vmem:[%s14097_s25 + $0x2ab0] sm:$0xff]  ;;  %3085 = vst [vmem:[%s14102_s6 + $0x1548] sm:$0xff] %v3084_v21 }
 0x19f   : > { %3087 = vst [vmem:[%s14102_s6 + $0x1550] sm:$0xff] %v3086_v22  ;;  %3089 = vst [vmem:[%s14102_s6 + $0x1558] sm:$0xff] %v3088_v23  ;;  %v3090_v24 = vld [vmem:[%s14097_s25 + $0x2ac0] sm:$0xff]  ;;  %v3092_v25 = vld [vmem:[%s14097_s25 + $0x2ad0] sm:$0xff] }
 0x1a0   : > { %v3094_v26 = vld [vmem:[%s14097_s25 + $0x2ae0] sm:$0xff]  ;;  %3091 = vst [vmem:[%s14102_s6 + $0x1560] sm:$0xff] %v3090_v24  ;;  %3093 = vst [vmem:[%s14102_s6 + $0x1568] sm:$0xff] %v3092_v25  ;;  %v3096_v27 = vld [vmem:[%s14097_s25 + $0x2af0] sm:$0xff] }
 0x1a1   : > { %3095 = vst [vmem:[%s14102_s6 + $0x1570] sm:$0xff] %v3094_v26  ;;  %v3098_v28 = vld [vmem:[%s14097_s25 + $0x2b00] sm:$0xff]  ;;  %v3100_v29 = vld [vmem:[%s14097_s25 + $0x2b10] sm:$0xff]  ;;  %3097 = vst [vmem:[%s14102_s6 + $0x1578] sm:$0xff] %v3096_v27 }
 0x1a2   : > { %3099 = vst [vmem:[%s14102_s6 + $0x1580] sm:$0xff] %v3098_v28  ;;  %3101 = vst [vmem:[%s14102_s6 + $0x1588] sm:$0xff] %v3100_v29  ;;  %v3102_v30 = vld [vmem:[%s14097_s25 + $0x2b20] sm:$0xff]  ;;  %v3104_v31 = vld [vmem:[%s14097_s25 + $0x2b30] sm:$0xff] }
 0x1a3   : > { %v3106_v32 = vld [vmem:[%s14097_s25 + $0x2b40] sm:$0xff]  ;;  %3103 = vst [vmem:[%s14102_s6 + $0x1590] sm:$0xff] %v3102_v30  ;;  %3105 = vst [vmem:[%s14102_s6 + $0x1598] sm:$0xff] %v3104_v31  ;;  %v3108_v33 = vld [vmem:[%s14097_s25 + $0x2b50] sm:$0xff] }
 0x1a4   : > { %3107 = vst [vmem:[%s14102_s6 + $0x15a0] sm:$0xff] %v3106_v32  ;;  %v3110_v34 = vld [vmem:[%s14097_s25 + $0x2b60] sm:$0xff]  ;;  %v3112_v35 = vld [vmem:[%s14097_s25 + $0x2b70] sm:$0xff]  ;;  %3109 = vst [vmem:[%s14102_s6 + $0x15a8] sm:$0xff] %v3108_v33 }
 0x1a5   : > { %3111 = vst [vmem:[%s14102_s6 + $0x15b0] sm:$0xff] %v3110_v34  ;;  %3113 = vst [vmem:[%s14102_s6 + $0x15b8] sm:$0xff] %v3112_v35  ;;  %v3114_v36 = vld [vmem:[%s14097_s25 + $0x2b80] sm:$0xff]  ;;  %v3116_v37 = vld [vmem:[%s14097_s25 + $0x2b90] sm:$0xff] }
 0x1a6   : > { %v3118_v38 = vld [vmem:[%s14097_s25 + $0x2ba0] sm:$0xff]  ;;  %3115 = vst [vmem:[%s14102_s6 + $0x15c0] sm:$0xff] %v3114_v36  ;;  %3117 = vst [vmem:[%s14102_s6 + $0x15c8] sm:$0xff] %v3116_v37  ;;  %v3120_v39 = vld [vmem:[%s14097_s25 + $0x2bb0] sm:$0xff] }
 0x1a7   : > { %3119 = vst [vmem:[%s14102_s6 + $0x15d0] sm:$0xff] %v3118_v38  ;;  %v3122_v40 = vld [vmem:[%s14097_s25 + $0x2bc0] sm:$0xff]  ;;  %v3124_v41 = vld [vmem:[%s14097_s25 + $0x2bd0] sm:$0xff]  ;;  %3121 = vst [vmem:[%s14102_s6 + $0x15d8] sm:$0xff] %v3120_v39 }
 0x1a8   : > { %3123 = vst [vmem:[%s14102_s6 + $0x15e0] sm:$0xff] %v3122_v40  ;;  %3125 = vst [vmem:[%s14102_s6 + $0x15e8] sm:$0xff] %v3124_v41  ;;  %v3126_v42 = vld [vmem:[%s14097_s25 + $0x2be0] sm:$0xff]  ;;  %v3128_v43 = vld [vmem:[%s14097_s25 + $0x2bf0] sm:$0xff] }
 0x1a9   : > { %3127 = vst [vmem:[%s14102_s6 + $0x15f0] sm:$0xff] %v3126_v42  ;;  %3129 = vst [vmem:[%s14102_s6 + $0x15f8] sm:$0xff] %v3128_v43 }
 0x1aa PF: > { %p11718_p0 = scmp.ge.s32.totalorder %s13868_s22, 1  ;;  %p5994_p1 = scmp.lt.s32.totalorder %s13868_s22, 9 }
 0x1ac   : > { %p5995_p2 = pnand %p11718_p0, %p5994_p1 }
 0x1ad   : > { %s6001_s0 = sand.u32 (!%p5995_p2), 1, %s13844_s16   ;;  %s6008_s5 = sand.u32 (!%p5995_p2), 1, %s13836_s14  }
 0x1ae   : > { %5998 = sbr.rel (%p5995_p2) target bundleno = 1392 (0x570), region = 99  ;;  %s6035_s28 = sand.u32 (!%p5995_p2), 1, %s13828_s12  }
 0x1af   : > { %s12569_s23 = smul.u32 (!%p5995_p2), 352, %s6001_s0  ;;  %s11719_s25 = sshll.u32 (!%p5995_p2), %s6035_s28, 4 }
 0x1b0   : > { %s12570_s7 = smul.u32 (!%p5995_p2), 5632, %s6008_s5  ;;  %s11720_s11 = sshll.u32 (!%p5995_p2), %s13856_s19, 1 }
 0x1b1   : > { %p6043_p3 = scmp.lt.s32.totalorder (!%p5995_p2), %s11720_s11, 3  ;;  %s15521_s4 = scalar_lea.vmem (!%p5995_p2), [#allocation3], %s12569_s23 }
 0x1b2   : > { %s15523_s6 = scalar_lea.vmem (!%p5995_p2), [#allocation4], %s12570_s7  ;;  %s15525_s1 = scalar_lea.vmem (!%p5995_p2), [#allocation5], %s11719_s25 }
 0x1b3   : > { %p11721_p4 = scmp.ne.s32.totalorder (!%p5995_p2), %s13852_s18, 0 }
 0x1b5   : > { %s16356_s11 = smov (!%p6043_p3, %s11720_s11), 3  ;;  %6052 = sbr.rel (%p11721_p4) target bundleno = 444 (0x1bc), region = 111 }
 0x1b6   : > { %s6045_s29 = scalar_lea.vmem %s16327_s2, %s16356_s11  ;;  %v13870_v44 = vmov (!%p11721_p4), 0.0  }
 0x1b7   : > { %6053 = vst [vmem:[#allocation2] sm:$0xff] (!%p11721_p4), %v13870_v44  ;;  %6054 = vst [vmem:[#allocation2 + $0x8] sm:$0xff] (!%p11721_p4), %v13870_v44 }
 0x1b8   : > { %6055 = vst [vmem:[#allocation2 + $0x10] sm:$0xff] (!%p11721_p4), %v13870_v44  ;;  %6056 = vst [vmem:[#allocation2 + $0x18] sm:$0xff] (!%p11721_p4), %v13870_v44 }
 0x1bc PF: > { %v12660_v45 = vld [vmem:[%s15523_s6 + $0x4] ss:$8 sps:$4 sm:$0xff]   ;;  %v12664_v47 = vld [vmem:[%s15523_s6] ss:$8 sps:$4 sm:$0xff]   ;;  %v12666_v49 = vld [vmem:[%s15523_s6 + $0x14] ss:$8 sps:$4 sm:$0xff]  }
 0x1bd   : > { %v12662_v46 = vld [vmem:[%s15523_s6 + $0xb04] ss:$8 sps:$4 sm:$0xff]   ;;  %10549 = vmatprep.subr.bf16.mxu1 %v12660_v45  ;;  %v12665_v48 = vld [vmem:[%s15523_s6 + $0xb00] ss:$8 sps:$4 sm:$0xff]   ;;  %v12668_v50 = vld [vmem:[%s15523_s6 + $0xb14] ss:$8 sps:$4 sm:$0xff]  }
 0x1be   : > { %11022 = vmatprep.subr.bf16.mxu0 %v12662_v46  ;;  %10550 = vmatpush1.bf16.msra.mxu1 %v12664_v47  ;;  %v12670_v51 = vld [vmem:[%s15523_s6 + $0x10] ss:$8 sps:$4 sm:$0xff]   ;;  %v12672_v53 = vld [vmem:[%s15523_s6 + $0x24] ss:$8 sps:$4 sm:$0xff]   ;;  %v12676_v55 = vld [vmem:[%s15523_s6 + $0x20] ss:$8 sps:$4 sm:$0xff]  }
 0x1bf   : > { %11023 = vmatpush1.bf16.msra.mxu0 %v12665_v48  ;;  %10551 = vmatprep.subr.bf16.mxu1 %v12666_v49  ;;  %v12671_v52 = vld [vmem:[%s15523_s6 + $0xb10] ss:$8 sps:$4 sm:$0xff]   ;;  %v12674_v54 = vld [vmem:[%s15523_s6 + $0xb24] ss:$8 sps:$4 sm:$0xff]   ;;  %v12677_v56 = vld [vmem:[%s15523_s6 + $0xb20] ss:$8 sps:$4 sm:$0xff]  }
 0x1c0   : > { %11024 = vmatprep.subr.bf16.mxu0 %v12668_v50  ;;  %v12678_v57 = vld [vmem:[%s15523_s6 + $0x34] ss:$8 sps:$4 sm:$0xff]   ;;  %v12682_v59 = vld [vmem:[%s15523_s6 + $0x30] ss:$8 sps:$4 sm:$0xff]   ;;  %v12684_v61 = vld [vmem:[%s15523_s6 + $0x44] ss:$8 sps:$4 sm:$0xff]  }
 0x1c1   : > { %v12680_v58 = vld [vmem:[%s15523_s6 + $0xb34] ss:$8 sps:$4 sm:$0xff]   ;;  %v12683_v60 = vld [vmem:[%s15523_s6 + $0xb30] ss:$8 sps:$4 sm:$0xff]   ;;  %v12686_v62 = vld [vmem:[%s15523_s6 + $0xb44] ss:$8 sps:$4 sm:$0xff]  }
 0x1c2   : > { %10552 = vmatpush1.bf16.msra.mxu1 %v12670_v51  ;;  %v12688_v63 = vld [vmem:[%s15523_s6 + $0x40] ss:$8 sps:$4 sm:$0xff]   ;;  %v12690_v1 = vld [vmem:[%s15523_s6 + $0x54] ss:$8 sps:$4 sm:$0xff]   ;;  %v12694_v3 = vld [vmem:[%s15523_s6 + $0x50] ss:$8 sps:$4 sm:$0xff]  }
 0x1c3   : > { %11025 = vmatpush1.bf16.msra.mxu0 %v12671_v52  ;;  %10553 = vmatprep.subr.bf16.mxu1 %v12672_v53  ;;  %v12689_v0 = vld [vmem:[%s15523_s6 + $0xb40] ss:$8 sps:$4 sm:$0xff]   ;;  %v12692_v2 = vld [vmem:[%s15523_s6 + $0xb54] ss:$8 sps:$4 sm:$0xff]   ;;  %v12695_v4 = vld [vmem:[%s15523_s6 + $0xb50] ss:$8 sps:$4 sm:$0xff]  }
 0x1c4   : > { %11026 = vmatprep.subr.bf16.mxu0 %v12674_v54  ;;  %v12696_v5 = vld [vmem:[%s15523_s6 + $0x64] ss:$8 sps:$4 sm:$0xff]   ;;  %v12700_v7 = vld [vmem:[%s15523_s6 + $0x60] ss:$8 sps:$4 sm:$0xff]   ;;  %v12702_v9 = vld [vmem:[%s15523_s6 + $0x74] ss:$8 sps:$4 sm:$0xff]  }
 0x1c5   : > { %v12698_v6 = vld [vmem:[%s15523_s6 + $0xb64] ss:$8 sps:$4 sm:$0xff]   ;;  %v12701_v8 = vld [vmem:[%s15523_s6 + $0xb60] ss:$8 sps:$4 sm:$0xff]   ;;  %v12704_v10 = vld [vmem:[%s15523_s6 + $0xb74] ss:$8 sps:$4 sm:$0xff]  }
 0x1c6   : > { %10554 = vmatpush1.bf16.msra.mxu1 %v12676_v55  ;;  %v12706_v11 = vld [vmem:[%s15523_s6 + $0x70] ss:$8 sps:$4 sm:$0xff]   ;;  %v12708_v13 = vld [vmem:[%s15523_s6 + $0x84] ss:$8 sps:$4 sm:$0xff]   ;;  %v12712_v15 = vld [vmem:[%s15523_s6 + $0x80] ss:$8 sps:$4 sm:$0xff]  }
 0x1c7   : > { %11027 = vmatpush1.bf16.msra.mxu0 %v12677_v56  ;;  %10555 = vmatprep.subr.bf16.mxu1 %v12678_v57  ;;  %v12707_v12 = vld [vmem:[%s15523_s6 + $0xb70] ss:$8 sps:$4 sm:$0xff]   ;;  %v12710_v14 = vld [vmem:[%s15523_s6 + $0xb84] ss:$8 sps:$4 sm:$0xff]   ;;  %v12713_v16 = vld [vmem:[%s15523_s6 + $0xb80] ss:$8 sps:$4 sm:$0xff]  }
 0x1c8   : > { %11028 = vmatprep.subr.bf16.mxu0 %v12680_v58  ;;  %v12714_v17 = vld [vmem:[%s15523_s6 + $0x94] ss:$8 sps:$4 sm:$0xff]   ;;  %v12718_v19 = vld [vmem:[%s15523_s6 + $0x90] ss:$8 sps:$4 sm:$0xff]   ;;  %v12720_v21 = vld [vmem:[%s15523_s6 + $0xa4] ss:$8 sps:$4 sm:$0xff]  }
 0x1c9   : > { %v12716_v18 = vld [vmem:[%s15523_s6 + $0xb94] ss:$8 sps:$4 sm:$0xff]   ;;  %v12719_v20 = vld [vmem:[%s15523_s6 + $0xb90] ss:$8 sps:$4 sm:$0xff]   ;;  %v12722_v22 = vld [vmem:[%s15523_s6 + $0xba4] ss:$8 sps:$4 sm:$0xff]  }
 0x1ca   : > { %10556 = vmatpush1.bf16.msra.mxu1 %v12682_v59  ;;  %v12724_v23 = vld [vmem:[%s15523_s6 + $0xa0] ss:$8 sps:$4 sm:$0xff]   ;;  %v12726_v25 = vld [vmem:[%s15523_s6 + $0xb4] ss:$8 sps:$4 sm:$0xff]   ;;  %v12730_v27 = vld [vmem:[%s15523_s6 + $0xb0] ss:$8 sps:$4 sm:$0xff]  }
 0x1cb   : > { %11029 = vmatpush1.bf16.msra.mxu0 %v12683_v60  ;;  %10557 = vmatprep.subr.bf16.mxu1 %v12684_v61  ;;  %v12725_v24 = vld [vmem:[%s15523_s6 + $0xba0] ss:$8 sps:$4 sm:$0xff]   ;;  %v12728_v26 = vld [vmem:[%s15523_s6 + $0xbb4] ss:$8 sps:$4 sm:$0xff]   ;;  %v12731_v28 = vld [vmem:[%s15523_s6 + $0xbb0] ss:$8 sps:$4 sm:$0xff]  }
 0x1cc   : > { %11030 = vmatprep.subr.bf16.mxu0 %v12686_v62  ;;  %v12758_v29 = vld [vmem:[%s15521_s4 + $0x4] ss:$176 sps:$4 sm:$0xff]   ;;  %v12764_v32 = vld [vmem:[%s15521_s4 + $0x5c] ss:$176 sps:$4 sm:$0xff]   ;;  %v12736_v33 = vld [vmem:[%s15523_s6 + $0xc0] ss:$8 sps:$4 sm:$0xff]  }
 0x1cd   : > { %v12732_v30 = vld [vmem:[%s15523_s6 + $0xc4] ss:$8 sps:$4 sm:$0xff]   ;;  %10581 = vmatprep.mubr.bf16.mxu1 %v12758_v29  ;;  %v12737_v34 = vld [vmem:[%s15523_s6 + $0xbc0] ss:$8 sps:$4 sm:$0xff]   ;;  %v12738_v35 = vld [vmem:[%s15523_s6 + $0xd4] ss:$8 sps:$4 sm:$0xff]   ;;  %11054 = vmatprep.mubr.bf16.mxu0 %v12764_v32 }
 0x1ce   : > { %10558 = vmatpush1.bf16.msra.mxu1 %v12688_v63  ;;  %v12734_v31 = vld [vmem:[%s15523_s6 + $0xbc4] ss:$8 sps:$4 sm:$0xff]   ;;  %v12740_v36 = vld [vmem:[%s15523_s6 + $0xbd4] ss:$8 sps:$4 sm:$0xff]   ;;  %v12742_v37 = vld [vmem:[%s15523_s6 + $0xd0] ss:$8 sps:$4 sm:$0xff]  }
 0x1cf   : > { %11031 = vmatpush1.bf16.msra.mxu0 %v12689_v0  ;;  %10559 = vmatprep.subr.bf16.mxu1 %v12690_v1  ;;  %v12743_v38 = vld [vmem:[%s15523_s6 + $0xbd0] ss:$8 sps:$4 sm:$0xff]   ;;  %v12744_v39 = vld [vmem:[%s15523_s6 + $0xe4] ss:$8 sps:$4 sm:$0xff]   ;;  %v12748_v41 = vld [vmem:[%s15523_s6 + $0xe0] ss:$8 sps:$4 sm:$0xff]  }
 0x1d0   : > { %11032 = vmatprep.subr.bf16.mxu0 %v12692_v2  ;;  %v12746_v40 = vld [vmem:[%s15523_s6 + $0xbe4] ss:$8 sps:$4 sm:$0xff]   ;;  %v12749_v42 = vld [vmem:[%s15523_s6 + $0xbe0] ss:$8 sps:$4 sm:$0xff]   ;;  %v12750_v43 = vld [vmem:[%s15523_s6 + $0xf4] ss:$8 sps:$4 sm:$0xff]  }
 0x1d1   : > { %v12752_v44 = vld [vmem:[%s15523_s6 + $0xbf4] ss:$8 sps:$4 sm:$0xff]   ;;  %v12754_v45 = vld [vmem:[%s15523_s6 + $0xf0] ss:$8 sps:$4 sm:$0xff]   ;;  %v12761_v47 = vld [vmem:[%s15523_s6 + $0x104] ss:$8 sps:$4 sm:$0xff]  }
 0x1d2   : > { %10560 = vmatpush1.bf16.msra.mxu1 %v12694_v3  ;;  %v12755_v46 = vld [vmem:[%s15523_s6 + $0xbf0] ss:$8 sps:$4 sm:$0xff]   ;;  %v12767_v48 = vld [vmem:[%s15523_s6 + $0xc04] ss:$8 sps:$4 sm:$0xff]   ;;  %v12759_v50 = vld [vmem:[%s15523_s6 + $0x100] ss:$8 sps:$4 sm:$0xff]  }
 0x1d3   : > { %11033 = vmatpush1.bf16.msra.mxu0 %v12695_v4  ;;  %10561 = vmatprep.subr.bf16.mxu1 %v12696_v5  ;;  %v12756_v49 = vld [vmem:[%s15521_s4] ss:$176 sps:$4 sm:$0xff]   ;;  %v12762_v51 = vld [vmem:[%s15521_s4 + $0x58] ss:$176 sps:$4 sm:$0xff]   ;;  %v12770_v53 = vld [vmem:[%s15523_s6 + $0x114] ss:$8 sps:$4 sm:$0xff]  }
 0x1d4   : > { %11034 = vmatprep.subr.bf16.mxu0 %v12698_v6  ;;  %v12765_v52 = vld [vmem:[%s15523_s6 + $0xc00] ss:$8 sps:$4 sm:$0xff]   ;;  %v12773_v54 = vld [vmem:[%s15523_s6 + $0xc14] ss:$8 sps:$4 sm:$0xff]   ;;  %v12768_v55 = vld [vmem:[%s15523_s6 + $0x110] ss:$8 sps:$4 sm:$0xff]  }
 0x1d5   : > { %v12771_v56 = vld [vmem:[%s15523_s6 + $0xc10] ss:$8 sps:$4 sm:$0xff]   ;;  %v12776_v57 = vld [vmem:[%s15523_s6 + $0x124] ss:$8 sps:$4 sm:$0xff]   ;;  %v12774_v59 = vld [vmem:[%s15523_s6 + $0x120] ss:$8 sps:$4 sm:$0xff]  }
 0x1d6   : > { %10562 = vmatpush1.bf16.msra.mxu1 %v12700_v7  ;;  %v12779_v58 = vld [vmem:[%s15523_s6 + $0xc24] ss:$8 sps:$4 sm:$0xff]   ;;  %v12777_v60 = vld [vmem:[%s15523_s6 + $0xc20] ss:$8 sps:$4 sm:$0xff]   ;;  %v12782_v61 = vld [vmem:[%s15523_s6 + $0x134] ss:$8 sps:$4 sm:$0xff]  }
 0x1d7   : > { %11035 = vmatpush1.bf16.msra.mxu0 %v12701_v8  ;;  %10563 = vmatprep.subr.bf16.mxu1 %v12702_v9  ;;  %v12785_v62 = vld [vmem:[%s15523_s6 + $0xc34] ss:$8 sps:$4 sm:$0xff]   ;;  %v12780_v63 = vld [vmem:[%s15523_s6 + $0x130] ss:$8 sps:$4 sm:$0xff]   ;;  %v12788_v1 = vld [vmem:[%s15523_s6 + $0x144] ss:$8 sps:$4 sm:$0xff]  }
 0x1d8   : > { %11036 = vmatprep.subr.bf16.mxu0 %v12704_v10  ;;  %v12783_v0 = vld [vmem:[%s15523_s6 + $0xc30] ss:$8 sps:$4 sm:$0xff]   ;;  %v12791_v2 = vld [vmem:[%s15523_s6 + $0xc44] ss:$8 sps:$4 sm:$0xff]   ;;  %v12786_v3 = vld [vmem:[%s15523_s6 + $0x140] ss:$8 sps:$4 sm:$0xff]  }
 0x1d9   : > { %v12789_v4 = vld [vmem:[%s15523_s6 + $0xc40] ss:$8 sps:$4 sm:$0xff]   ;;  %v12794_v5 = vld [vmem:[%s15523_s6 + $0x154] ss:$8 sps:$4 sm:$0xff]   ;;  %v12792_v7 = vld [vmem:[%s15523_s6 + $0x150] ss:$8 sps:$4 sm:$0xff]  }
 0x1da   : > { %10564 = vmatpush1.bf16.msra.mxu1 %v12706_v11  ;;  %v12797_v6 = vld [vmem:[%s15523_s6 + $0xc54] ss:$8 sps:$4 sm:$0xff]   ;;  %v12795_v8 = vld [vmem:[%s15523_s6 + $0xc50] ss:$8 sps:$4 sm:$0xff]   ;;  %v12800_v9 = vld [vmem:[%s15523_s6 + $0x164] ss:$8 sps:$4 sm:$0xff]  }
 0x1db   : > { %11037 = vmatpush1.bf16.msra.mxu0 %v12707_v12  ;;  %10565 = vmatprep.subr.bf16.mxu1 %v12708_v13  ;;  %v12803_v10 = vld [vmem:[%s15523_s6 + $0xc64] ss:$8 sps:$4 sm:$0xff]   ;;  %v12798_v11 = vld [vmem:[%s15523_s6 + $0x160] ss:$8 sps:$4 sm:$0xff]   ;;  %v12806_v13 = vld [vmem:[%s15523_s6 + $0x174] ss:$8 sps:$4 sm:$0xff]  }
 0x1dc   : > { %11038 = vmatprep.subr.bf16.mxu0 %v12710_v14  ;;  %v12801_v12 = vld [vmem:[%s15523_s6 + $0xc60] ss:$8 sps:$4 sm:$0xff]   ;;  %v12809_v14 = vld [vmem:[%s15523_s6 + $0xc74] ss:$8 sps:$4 sm:$0xff]   ;;  %p12470_p5 = scmp.ne.s32.totalorder %s13852_s18, 3 }
 0x1dd   : > { %v12822_v29 = vld [vmem:[%s15523_s6 + $0x1a0] ss:$8 sps:$4 sm:$0xff]   ;;  %v12833_v32 = vld [vmem:[%s15523_s6 + $0xcb4] ss:$8 sps:$4 sm:$0xff]  }
 0x1de   : > { %10566 = vmatpush1.bf16.msra.mxu1 %v12712_v15  ;;  %v12860_v15 = vld [vmem:[%s15521_s4 + $0xc] ss:$176 sps:$4 sm:$0xff]  }
 0x1df   : > { %11039 = vmatpush1.bf16.msra.mxu0 %v12713_v16  ;;  %10567 = vmatprep.subr.bf16.mxu1 %v12714_v17  ;;  %v12804_v16 = vld [vmem:[%s15523_s6 + $0x170] ss:$8 sps:$4 sm:$0xff]  }
 0x1e0   : > { %11040 = vmatprep.subr.bf16.mxu0 %v12716_v18  ;;  %v12807_v17 = vld [vmem:[%s15523_s6 + $0xc70] ss:$8 sps:$4 sm:$0xff]   ;;  %v12866_v18 = vld [vmem:[%s15521_s4 + $0x64] ss:$176 sps:$4 sm:$0xff]  }
 0x1e2   : > { %10568 = vmatpush1.bf16.msra.mxu1 %v12718_v19  ;;  %v12812_v19 = vld [vmem:[%s15523_s6 + $0x184] ss:$8 sps:$4 sm:$0xff]  }
 0x1e3   : > { %11041 = vmatpush1.bf16.msra.mxu0 %v12719_v20  ;;  %10569 = vmatprep.subr.bf16.mxu1 %v12720_v21  ;;  %v12815_v20 = vld [vmem:[%s15523_s6 + $0xc84] ss:$8 sps:$4 sm:$0xff]   ;;  %v12810_v21 = vld [vmem:[%s15523_s6 + $0x180] ss:$8 sps:$4 sm:$0xff]  }
 0x1e4   : > { %11042 = vmatprep.subr.bf16.mxu0 %v12722_v22  ;;  %v12813_v22 = vld [vmem:[%s15523_s6 + $0xc80] ss:$8 sps:$4 sm:$0xff]  }
 0x1e6   : > { %10570 = vmatpush1.bf16.msra.mxu1 %v12724_v23  ;;  %v12818_v23 = vld [vmem:[%s15523_s6 + $0x194] ss:$8 sps:$4 sm:$0xff]  }
 0x1e7   : > { %11043 = vmatpush1.bf16.msra.mxu0 %v12725_v24  ;;  %10571 = vmatprep.subr.bf16.mxu1 %v12726_v25  ;;  %v12821_v24 = vld [vmem:[%s15523_s6 + $0xc94] ss:$8 sps:$4 sm:$0xff]   ;;  %v12816_v25 = vld [vmem:[%s15523_s6 + $0x190] ss:$8 sps:$4 sm:$0xff]  }
 0x1e8   : > { %11044 = vmatprep.subr.bf16.mxu0 %v12728_v26  ;;  %v12819_v26 = vld [vmem:[%s15523_s6 + $0xc90] ss:$8 sps:$4 sm:$0xff]  }
 0x1ea   : > { %10572 = vmatpush1.bf16.msra.mxu1 %v12730_v27  ;;  %v12824_v27 = vld [vmem:[%s15523_s6 + $0x1a4] ss:$8 sps:$4 sm:$0xff]  }
 0x1eb   : > { %11045 = vmatpush1.bf16.msra.mxu0 %v12731_v28  ;;  %10573 = vmatprep.subr.bf16.mxu1 %v12732_v30  ;;  %v12827_v28 = vld [vmem:[%s15523_s6 + $0xca4] ss:$8 sps:$4 sm:$0xff]   ;;  %v12825_v30 = vld [vmem:[%s15523_s6 + $0xca0] ss:$8 sps:$4 sm:$0xff]  }
 0x1ec   : > { %11046 = vmatprep.subr.bf16.mxu0 %v12734_v31  ;;  %v12830_v31 = vld [vmem:[%s15523_s6 + $0x1b4] ss:$8 sps:$4 sm:$0xff]  }
 0x1ee   : > { %10574 = vmatpush1.bf16.msra.mxu1 %v12736_v33  ;;  %v12828_v33 = vld [vmem:[%s15523_s6 + $0x1b0] ss:$8 sps:$4 sm:$0xff]  }
 0x1ef   : > { %11047 = vmatpush1.bf16.msra.mxu0 %v12737_v34  ;;  %10575 = vmatprep.subr.bf16.mxu1 %v12738_v35  ;;  %v12831_v34 = vld [vmem:[%s15523_s6 + $0xcb0] ss:$8 sps:$4 sm:$0xff]   ;;  %v12836_v35 = vld [vmem:[%s15523_s6 + $0x1c4] ss:$8 sps:$4 sm:$0xff]  }
 0x1f0   : > { %11048 = vmatprep.subr.bf16.mxu0 %v12740_v36  ;;  %v12839_v36 = vld [vmem:[%s15523_s6 + $0xcc4] ss:$8 sps:$4 sm:$0xff]  }
 0x1f2   : > { %10576 = vmatpush1.bf16.msra.mxu1 %v12742_v37  ;;  %v12834_v37 = vld [vmem:[%s15523_s6 + $0x1c0] ss:$8 sps:$4 sm:$0xff]  }
 0x1f3   : > { %11049 = vmatpush1.bf16.msra.mxu0 %v12743_v38  ;;  %10577 = vmatprep.subr.bf16.mxu1 %v12744_v39  ;;  %v12837_v38 = vld [vmem:[%s15523_s6 + $0xcc0] ss:$8 sps:$4 sm:$0xff]   ;;  %v12842_v39 = vld [vmem:[%s15523_s6 + $0x1d4] ss:$8 sps:$4 sm:$0xff]  }
 0x1f4   : > { %11050 = vmatprep.subr.bf16.mxu0 %v12746_v40  ;;  %v12845_v40 = vld [vmem:[%s15523_s6 + $0xcd4] ss:$8 sps:$4 sm:$0xff]  }
 0x1f6   : > { %10578 = vmatpush1.bf16.msra.mxu1 %v12748_v41  ;;  %v12840_v41 = vld [vmem:[%s15523_s6 + $0x1d0] ss:$8 sps:$4 sm:$0xff]  }
 0x1f7   : > { %11051 = vmatpush1.bf16.msra.mxu0 %v12749_v42  ;;  %10579 = vmatprep.subr.bf16.mxu1 %v12750_v43  ;;  %v12843_v42 = vld [vmem:[%s15523_s6 + $0xcd0] ss:$8 sps:$4 sm:$0xff]   ;;  %v12848_v43 = vld [vmem:[%s15523_s6 + $0x1e4] ss:$8 sps:$4 sm:$0xff]  }
 0x1f8   : > { %11052 = vmatprep.subr.bf16.mxu0 %v12752_v44  ;;  %v12851_v44 = vld [vmem:[%s15523_s6 + $0xce4] ss:$8 sps:$4 sm:$0xff]  }
 0x1fa   : > { %10580 = vmatpush1.bf16.msra.mxu1 %v12754_v45  ;;  %v12846_v45 = vld [vmem:[%s15523_s6 + $0x1e0] ss:$8 sps:$4 sm:$0xff]  }
 0x1fb   : > { %11053 = vmatpush1.bf16.msra.mxu0 %v12755_v46  ;;  %10592 = vmatprep.subr.bf16.mxu1 %v12761_v47  ;;  %v12849_v46 = vld [vmem:[%s15523_s6 + $0xce0] ss:$8 sps:$4 sm:$0xff]   ;;  %v12854_v47 = vld [vmem:[%s15523_s6 + $0x1f4] ss:$8 sps:$4 sm:$0xff]  }
 0x1fc   : > { %11065 = vmatprep.subr.bf16.mxu0 %v12767_v48  ;;  %v12857_v48 = vld [vmem:[%s15523_s6 + $0xcf4] ss:$8 sps:$4 sm:$0xff]  }
 0x1fd   : > { %10582 = vmatmul.mubr.bf16.vlgmr.msra.gmra.mrb[0].mxu1 %v12756_v49  ;;  %v12852_v49 = vld [vmem:[%s15523_s6 + $0x1f0] ss:$8 sps:$4 sm:$0xff]  }
 0x1fe   : > { %11055 = vmatmul.mubr.bf16.vlgmr.msra.gmra.mrb[0].mxu0 %v12762_v51  ;;  %10593 = vmatpush1.bf16.msra.mxu1 %v12759_v50  ;;  %v12855_v50 = vld [vmem:[%s15523_s6 + $0xcf0] ss:$8 sps:$4 sm:$0xff]   ;;  %v12863_v51 = vld [vmem:[%s15523_s6 + $0x204] ss:$8 sps:$4 sm:$0xff]  }
 0x1ff   : > { %11066 = vmatpush1.bf16.msra.mxu0 %v12765_v52  ;;  %10594 = vmatprep.subr.bf16.mxu1 %v12770_v53  ;;  %v12869_v52 = vld [vmem:[%s15523_s6 + $0xd04] ss:$8 sps:$4 sm:$0xff]   ;;  %v12858_v53 = vld [vmem:[%s15521_s4 + $0x8] ss:$176 sps:$4 sm:$0xff]  }
 0x200   : > { %11067 = vmatprep.subr.bf16.mxu0 %v12773_v54  ;;  %10624 = vmatprep.mubr.bf16.mxu1 %v12860_v15  ;;  %v12861_v54 = vld [vmem:[%s15523_s6 + $0x200] ss:$8 sps:$4 sm:$0xff]   ;;  %v12902_v15 = vld [vmem:[%s15523_s6 + $0x264] ss:$8 sps:$4 sm:$0xff]  }
 0x201   : > { %11097 = vmatprep.mubr.bf16.mxu0 %v12866_v18  ;;  %v12903_v18 = vld [vmem:[%s15523_s6 + $0xd60] ss:$8 sps:$4 sm:$0xff]  }
 0x202   : > { %10595 = vmatpush1.bf16.msra.mxu1 %v12768_v55  ;;  %v12864_v55 = vld [vmem:[%s15521_s4 + $0x60] ss:$176 sps:$4 sm:$0xff]  }
 0x203   : > { %11068 = vmatpush1.bf16.msra.mxu0 %v12771_v56  ;;  %10596 = vmatprep.subr.bf16.mxu1 %v12776_v57  ;;  %v12867_v56 = vld [vmem:[%s15523_s6 + $0xd00] ss:$8 sps:$4 sm:$0xff]   ;;  %v12872_v57 = vld [vmem:[%s15523_s6 + $0x214] ss:$8 sps:$4 sm:$0xff]  }
 0x204   : > { %11069 = vmatprep.subr.bf16.mxu0 %v12779_v58  ;;  %v12875_v58 = vld [vmem:[%s15523_s6 + $0xd14] ss:$8 sps:$4 sm:$0xff]  }
 0x206   : > { %10597 = vmatpush1.bf16.msra.mxu1 %v12774_v59  ;;  %v12870_v59 = vld [vmem:[%s15523_s6 + $0x210] ss:$8 sps:$4 sm:$0xff]  }
 0x207   : > { %11070 = vmatpush1.bf16.msra.mxu0 %v12777_v60  ;;  %10598 = vmatprep.subr.bf16.mxu1 %v12782_v61  ;;  %v12873_v60 = vld [vmem:[%s15523_s6 + $0xd10] ss:$8 sps:$4 sm:$0xff]   ;;  %v12878_v61 = vld [vmem:[%s15523_s6 + $0x224] ss:$8 sps:$4 sm:$0xff]  }
 0x208   : > { %11071 = vmatprep.subr.bf16.mxu0 %v12785_v62  ;;  %v12881_v62 = vld [vmem:[%s15523_s6 + $0xd24] ss:$8 sps:$4 sm:$0xff]  }
 0x20a   : > { %10599 = vmatpush1.bf16.msra.mxu1 %v12780_v63  ;;  %v12876_v63 = vld [vmem:[%s15523_s6 + $0x220] ss:$8 sps:$4 sm:$0xff]  }
 0x20b   : > { %11072 = vmatpush1.bf16.msra.mxu0 %v12783_v0  ;;  %10600 = vmatprep.subr.bf16.mxu1 %v12788_v1  ;;  %v12962_v0 = vld [vmem:[%s15521_s4 + $0x14] ss:$176 sps:$4 sm:$0xff]   ;;  %v12879_v1 = vld [vmem:[%s15523_s6 + $0xd20] ss:$8 sps:$4 sm:$0xff]  }
 0x20c   : > { %11073 = vmatprep.subr.bf16.mxu0 %v12791_v2  ;;  %v12884_v2 = vld [vmem:[%s15523_s6 + $0x234] ss:$8 sps:$4 sm:$0xff]  }
 0x20e   : > { %10601 = vmatpush1.bf16.msra.mxu1 %v12786_v3  ;;  %v12887_v3 = vld [vmem:[%s15523_s6 + $0xd34] ss:$8 sps:$4 sm:$0xff]  }
 0x20f   : > { %11074 = vmatpush1.bf16.msra.mxu0 %v12789_v4  ;;  %10602 = vmatprep.subr.bf16.mxu1 %v12794_v5  ;;  %v12968_v4 = vld [vmem:[%s15521_s4 + $0x6c] ss:$176 sps:$4 sm:$0xff]   ;;  %v12882_v5 = vld [vmem:[%s15523_s6 + $0x230] ss:$8 sps:$4 sm:$0xff]  }
 0x210   : > { %11075 = vmatprep.subr.bf16.mxu0 %v12797_v6  ;;  %v12885_v6 = vld [vmem:[%s15523_s6 + $0xd30] ss:$8 sps:$4 sm:$0xff]  }
 0x212   : > { %10603 = vmatpush1.bf16.msra.mxu1 %v12792_v7  ;;  %v12890_v7 = vld [vmem:[%s15523_s6 + $0x244] ss:$8 sps:$4 sm:$0xff]  }
 0x213   : > { %11076 = vmatpush1.bf16.msra.mxu0 %v12795_v8  ;;  %10604 = vmatprep.subr.bf16.mxu1 %v12800_v9  ;;  %v12893_v8 = vld [vmem:[%s15523_s6 + $0xd44] ss:$8 sps:$4 sm:$0xff]   ;;  %v12888_v9 = vld [vmem:[%s15523_s6 + $0x240] ss:$8 sps:$4 sm:$0xff]  }
 0x214   : > { %11077 = vmatprep.subr.bf16.mxu0 %v12803_v10  ;;  %v12891_v10 = vld [vmem:[%s15523_s6 + $0xd40] ss:$8 sps:$4 sm:$0xff]  }
 0x216   : > { %10605 = vmatpush1.bf16.msra.mxu1 %v12798_v11  ;;  %v12896_v11 = vld [vmem:[%s15523_s6 + $0x254] ss:$8 sps:$4 sm:$0xff]  }
 0x217   : > { %11078 = vmatpush1.bf16.msra.mxu0 %v12801_v12  ;;  %10606 = vmatprep.subr.bf16.mxu1 %v12806_v13  ;;  %v12899_v12 = vld [vmem:[%s15523_s6 + $0xd54] ss:$8 sps:$4 sm:$0xff]   ;;  %v12894_v13 = vld [vmem:[%s15523_s6 + $0x250] ss:$8 sps:$4 sm:$0xff]  }
 0x218   : > { %11079 = vmatprep.subr.bf16.mxu0 %v12809_v14  ;;  %v12897_v14 = vld [vmem:[%s15523_s6 + $0xd50] ss:$8 sps:$4 sm:$0xff]  }
 0x21a   : > { %10607 = vmatpush1.bf16.msra.mxu1 %v12804_v16  ;;  %v12905_v16 = vld [vmem:[%s15523_s6 + $0xd64] ss:$8 sps:$4 sm:$0xff]  }
 0x21b   : > { %11080 = vmatpush1.bf16.msra.mxu0 %v12807_v17  ;;  %10608 = vmatprep.subr.bf16.mxu1 %v12812_v19  ;;  %v12900_v17 = vld [vmem:[%s15523_s6 + $0x260] ss:$8 sps:$4 sm:$0xff]   ;;  %v12908_v19 = vld [vmem:[%s15523_s6 + $0x274] ss:$8 sps:$4 sm:$0xff]  }
 0x21c   : > { %11081 = vmatprep.subr.bf16.mxu0 %v12815_v20  ;;  %v12911_v20 = vld [vmem:[%s15523_s6 + $0xd74] ss:$8 sps:$4 sm:$0xff]  }
 0x21e   : > { %10609 = vmatpush1.bf16.msra.mxu1 %v12810_v21  ;;  %v12906_v21 = vld [vmem:[%s15523_s6 + $0x270] ss:$8 sps:$4 sm:$0xff]  }
 0x21f   : > { %11082 = vmatpush1.bf16.msra.mxu0 %v12813_v22  ;;  %10610 = vmatprep.subr.bf16.mxu1 %v12818_v23  ;;  %v12909_v22 = vld [vmem:[%s15523_s6 + $0xd70] ss:$8 sps:$4 sm:$0xff]   ;;  %v12914_v23 = vld [vmem:[%s15523_s6 + $0x284] ss:$8 sps:$4 sm:$0xff]  }
 0x220   : > { %11083 = vmatprep.subr.bf16.mxu0 %v12821_v24  ;;  %v12917_v24 = vld [vmem:[%s15523_s6 + $0xd84] ss:$8 sps:$4 sm:$0xff]  }
 0x222   : > { %10611 = vmatpush1.bf16.msra.mxu1 %v12816_v25  ;;  %v12912_v25 = vld [vmem:[%s15523_s6 + $0x280] ss:$8 sps:$4 sm:$0xff]  }
 0x223   : > { %11084 = vmatpush1.bf16.msra.mxu0 %v12819_v26  ;;  %10612 = vmatprep.subr.bf16.mxu1 %v12824_v27  ;;  %v12915_v26 = vld [vmem:[%s15523_s6 + $0xd80] ss:$8 sps:$4 sm:$0xff]   ;;  %v12920_v27 = vld [vmem:[%s15523_s6 + $0x294] ss:$8 sps:$4 sm:$0xff]  }
 0x224   : > { %11085 = vmatprep.subr.bf16.mxu0 %v12827_v28  ;;  %v12923_v28 = vld [vmem:[%s15523_s6 + $0xd94] ss:$8 sps:$4 sm:$0xff]  }
 0x226   : > { %10613 = vmatpush1.bf16.msra.mxu1 %v12822_v29  ;;  %v12918_v29 = vld [vmem:[%s15523_s6 + $0x290] ss:$8 sps:$4 sm:$0xff]  }
 0x227   : > { %11086 = vmatpush1.bf16.msra.mxu0 %v12825_v30  ;;  %10614 = vmatprep.subr.bf16.mxu1 %v12830_v31  ;;  %v12921_v30 = vld [vmem:[%s15523_s6 + $0xd90] ss:$8 sps:$4 sm:$0xff]   ;;  %v12926_v31 = vld [vmem:[%s15523_s6 + $0x2a4] ss:$8 sps:$4 sm:$0xff]  }
 0x228   : > { %11087 = vmatprep.subr.bf16.mxu0 %v12833_v32  ;;  %v12929_v32 = vld [vmem:[%s15523_s6 + $0xda4] ss:$8 sps:$4 sm:$0xff]  }
 0x22a   : > { %10615 = vmatpush1.bf16.msra.mxu1 %v12828_v33  ;;  %v12924_v33 = vld [vmem:[%s15523_s6 + $0x2a0] ss:$8 sps:$4 sm:$0xff]  }
 0x22b   : > { %11088 = vmatpush1.bf16.msra.mxu0 %v12831_v34  ;;  %10616 = vmatprep.subr.bf16.mxu1 %v12836_v35  ;;  %v12927_v34 = vld [vmem:[%s15523_s6 + $0xda0] ss:$8 sps:$4 sm:$0xff]   ;;  %v12932_v35 = vld [vmem:[%s15523_s6 + $0x2b4] ss:$8 sps:$4 sm:$0xff]  }
 0x22c   : > { %11089 = vmatprep.subr.bf16.mxu0 %v12839_v36  ;;  %v12935_v36 = vld [vmem:[%s15523_s6 + $0xdb4] ss:$8 sps:$4 sm:$0xff]  }
 0x22e   : > { %10617 = vmatpush1.bf16.msra.mxu1 %v12834_v37  ;;  %v12930_v37 = vld [vmem:[%s15523_s6 + $0x2b0] ss:$8 sps:$4 sm:$0xff]  }
 0x22f   : > { %11090 = vmatpush1.bf16.msra.mxu0 %v12837_v38  ;;  %10618 = vmatprep.subr.bf16.mxu1 %v12842_v39  ;;  %v12933_v38 = vld [vmem:[%s15523_s6 + $0xdb0] ss:$8 sps:$4 sm:$0xff]   ;;  %v12938_v39 = vld [vmem:[%s15523_s6 + $0x2c4] ss:$8 sps:$4 sm:$0xff]  }
 0x230   : > { %11091 = vmatprep.subr.bf16.mxu0 %v12845_v40  ;;  %v12941_v40 = vld [vmem:[%s15523_s6 + $0xdc4] ss:$8 sps:$4 sm:$0xff]  }
 0x232   : > { %10619 = vmatpush1.bf16.msra.mxu1 %v12840_v41  ;;  %v12936_v41 = vld [vmem:[%s15523_s6 + $0x2c0] ss:$8 sps:$4 sm:$0xff]  }
 0x233   : > { %11092 = vmatpush1.bf16.msra.mxu0 %v12843_v42  ;;  %10620 = vmatprep.subr.bf16.mxu1 %v12848_v43  ;;  %v12939_v42 = vld [vmem:[%s15523_s6 + $0xdc0] ss:$8 sps:$4 sm:$0xff]   ;;  %v12944_v43 = vld [vmem:[%s15523_s6 + $0x2d4] ss:$8 sps:$4 sm:$0xff]  }
 0x234   : > { %11093 = vmatprep.subr.bf16.mxu0 %v12851_v44  ;;  %v12947_v44 = vld [vmem:[%s15523_s6 + $0xdd4] ss:$8 sps:$4 sm:$0xff]  }
 0x236   : > { %10621 = vmatpush1.bf16.msra.mxu1 %v12846_v45  ;;  %v12942_v45 = vld [vmem:[%s15523_s6 + $0x2d0] ss:$8 sps:$4 sm:$0xff]  }
 0x237   : > { %11094 = vmatpush1.bf16.msra.mxu0 %v12849_v46  ;;  %10622 = vmatprep.subr.bf16.mxu1 %v12854_v47  ;;  %v12945_v46 = vld [vmem:[%s15523_s6 + $0xdd0] ss:$8 sps:$4 sm:$0xff]   ;;  %v12950_v47 = vld [vmem:[%s15523_s6 + $0x2e4] ss:$8 sps:$4 sm:$0xff]  }
 0x238   : > { %11095 = vmatprep.subr.bf16.mxu0 %v12857_v48  ;;  %v12953_v48 = vld [vmem:[%s15523_s6 + $0xde4] ss:$8 sps:$4 sm:$0xff]  }
 0x23a   : > { %10623 = vmatpush1.bf16.msra.mxu1 %v12852_v49  ;;  %v12948_v49 = vld [vmem:[%s15523_s6 + $0x2e0] ss:$8 sps:$4 sm:$0xff]  }
 0x23b   : > { %11096 = vmatpush1.bf16.msra.mxu0 %v12855_v50  ;;  %10635 = vmatprep.subr.bf16.mxu1 %v12863_v51  ;;  %v12951_v50 = vld [vmem:[%s15523_s6 + $0xde0] ss:$8 sps:$4 sm:$0xff]   ;;  %v12956_v51 = vld [vmem:[%s15523_s6 + $0x2f4] ss:$8 sps:$4 sm:$0xff]  }
 0x23c   : > { %11108 = vmatprep.subr.bf16.mxu0 %v12869_v52  ;;  %v12959_v52 = vld [vmem:[%s15523_s6 + $0xdf4] ss:$8 sps:$4 sm:$0xff]  }
 0x23d   : > { %10625 = vmatmul.mubr.bf16.vlgmr.msra.gmra.mrb[0].mxu1 %v12858_v53  ;;  %v12954_v53 = vld [vmem:[%s15523_s6 + $0x2f0] ss:$8 sps:$4 sm:$0xff]  }
 0x23e   : > { %11098 = vmatmul.mubr.bf16.vlgmr.msra.gmra.mrb[0].mxu0 %v12864_v55  ;;  %10636 = vmatpush1.bf16.msra.mxu1 %v12861_v54  ;;  %v12957_v54 = vld [vmem:[%s15523_s6 + $0xdf0] ss:$8 sps:$4 sm:$0xff]   ;;  %v12965_v55 = vld [vmem:[%s15523_s6 + $0x304] ss:$8 sps:$4 sm:$0xff]  }
 0x23f   : > { %11109 = vmatpush1.bf16.msra.mxu0 %v12867_v56  ;;  %10637 = vmatprep.subr.bf16.mxu1 %v12872_v57  ;;  %v12971_v56 = vld [vmem:[%s15523_s6 + $0xe04] ss:$8 sps:$4 sm:$0xff]   ;;  %v12960_v57 = vld [vmem:[%s15521_s4 + $0x10] ss:$176 sps:$4 sm:$0xff]  }
 0x240   : > { %11110 = vmatprep.subr.bf16.mxu0 %v12875_v58  ;;  %10667 = vmatprep.mubr.bf16.mxu1 %v12962_v0  ;;  %v12963_v58 = vld [vmem:[%s15523_s6 + $0x300] ss:$8 sps:$4 sm:$0xff]   ;;  %v13070_v0 = vld [vmem:[%s15521_s4 + $0x74] ss:$176 sps:$4 sm:$0xff]  }
 0x241   : > { %11140 = vmatprep.mubr.bf16.mxu0 %v12968_v4  ;;  %v12983_v4 = vld [vmem:[%s15523_s6 + $0xe24] ss:$8 sps:$4 sm:$0xff]  }
 0x242   : > { %10638 = vmatpush1.bf16.msra.mxu1 %v12870_v59  ;;  %v12966_v59 = vld [vmem:[%s15521_s4 + $0x68] ss:$176 sps:$4 sm:$0xff]  }
 0x243   : > { %11111 = vmatpush1.bf16.msra.mxu0 %v12873_v60  ;;  %10639 = vmatprep.subr.bf16.mxu1 %v12878_v61  ;;  %v12969_v60 = vld [vmem:[%s15523_s6 + $0xe00] ss:$8 sps:$4 sm:$0xff]   ;;  %v12974_v61 = vld [vmem:[%s15523_s6 + $0x314] ss:$8 sps:$4 sm:$0xff]  }
 0x244   : > { %11112 = vmatprep.subr.bf16.mxu0 %v12881_v62  ;;  %v12977_v62 = vld [vmem:[%s15523_s6 + $0xe14] ss:$8 sps:$4 sm:$0xff]  }
 0x246   : > { %10640 = vmatpush1.bf16.msra.mxu1 %v12876_v63  ;;  %v13064_v63 = vld [vmem:[%s15521_s4 + $0x1c] ss:$176 sps:$4 sm:$0xff]  }
 0x247   : > { %11113 = vmatpush1.bf16.msra.mxu0 %v12879_v1  ;;  %10641 = vmatprep.subr.bf16.mxu1 %v12884_v2  ;;  %v12972_v1 = vld [vmem:[%s15523_s6 + $0x310] ss:$8 sps:$4 sm:$0xff]  }
 0x248   : > { %11114 = vmatprep.subr.bf16.mxu0 %v12887_v3  ;;  %v12975_v2 = vld [vmem:[%s15523_s6 + $0xe10] ss:$8 sps:$4 sm:$0xff]   ;;  %v12980_v3 = vld [vmem:[%s15523_s6 + $0x324] ss:$8 sps:$4 sm:$0xff]  }
 0x24a   : > { %10642 = vmatpush1.bf16.msra.mxu1 %v12882_v5  ;;  %v12978_v5 = vld [vmem:[%s15523_s6 + $0x320] ss:$8 sps:$4 sm:$0xff]  }
 0x24b   : > { %11115 = vmatpush1.bf16.msra.mxu0 %v12885_v6  ;;  %10643 = vmatprep.subr.bf16.mxu1 %v12890_v7  ;;  %v12981_v6 = vld [vmem:[%s15523_s6 + $0xe20] ss:$8 sps:$4 sm:$0xff]   ;;  %v12986_v7 = vld [vmem:[%s15523_s6 + $0x334] ss:$8 sps:$4 sm:$0xff]  }
 0x24c   : > { %11116 = vmatprep.subr.bf16.mxu0 %v12893_v8  ;;  %v12989_v8 = vld [vmem:[%s15523_s6 + $0xe34] ss:$8 sps:$4 sm:$0xff]  }
 0x24e   : > { %10644 = vmatpush1.bf16.msra.mxu1 %v12888_v9  ;;  %v12984_v9 = vld [vmem:[%s15523_s6 + $0x330] ss:$8 sps:$4 sm:$0xff]  }
 0x24f   : > { %11117 = vmatpush1.bf16.msra.mxu0 %v12891_v10  ;;  %10645 = vmatprep.subr.bf16.mxu1 %v12896_v11  ;;  %v12987_v10 = vld [vmem:[%s15523_s6 + $0xe30] ss:$8 sps:$4 sm:$0xff]   ;;  %v12992_v11 = vld [vmem:[%s15523_s6 + $0x344] ss:$8 sps:$4 sm:$0xff]  }
 0x250   : > { %11118 = vmatprep.subr.bf16.mxu0 %v12899_v12  ;;  %v12995_v12 = vld [vmem:[%s15523_s6 + $0xe44] ss:$8 sps:$4 sm:$0xff]  }
 0x252   : > { %10646 = vmatpush1.bf16.msra.mxu1 %v12894_v13  ;;  %v12990_v13 = vld [vmem:[%s15523_s6 + $0x340] ss:$8 sps:$4 sm:$0xff]  }
 0x253   : > { %11119 = vmatpush1.bf16.msra.mxu0 %v12897_v14  ;;  %10647 = vmatprep.subr.bf16.mxu1 %v12902_v15  ;;  %v12993_v14 = vld [vmem:[%s15523_s6 + $0xe40] ss:$8 sps:$4 sm:$0xff]   ;;  %v12998_v15 = vld [vmem:[%s15523_s6 + $0x354] ss:$8 sps:$4 sm:$0xff]  }
 0x254   : > { %11120 = vmatprep.subr.bf16.mxu0 %v12905_v16  ;;  %v13001_v16 = vld [vmem:[%s15523_s6 + $0xe54] ss:$8 sps:$4 sm:$0xff]  }
 0x256   : > { %10648 = vmatpush1.bf16.msra.mxu1 %v12900_v17  ;;  %v12996_v17 = vld [vmem:[%s15523_s6 + $0x350] ss:$8 sps:$4 sm:$0xff]  }
 0x257   : > { %11121 = vmatpush1.bf16.msra.mxu0 %v12903_v18  ;;  %10649 = vmatprep.subr.bf16.mxu1 %v12908_v19  ;;  %v12999_v18 = vld [vmem:[%s15523_s6 + $0xe50] ss:$8 sps:$4 sm:$0xff]   ;;  %v13004_v19 = vld [vmem:[%s15523_s6 + $0x364] ss:$8 sps:$4 sm:$0xff]  }
 0x258   : > { %11122 = vmatprep.subr.bf16.mxu0 %v12911_v20  ;;  %v13007_v20 = vld [vmem:[%s15523_s6 + $0xe64] ss:$8 sps:$4 sm:$0xff]  }
 0x25a   : > { %10650 = vmatpush1.bf16.msra.mxu1 %v12906_v21  ;;  %v13002_v21 = vld [vmem:[%s15523_s6 + $0x360] ss:$8 sps:$4 sm:$0xff]  }
 0x25b   : > { %11123 = vmatpush1.bf16.msra.mxu0 %v12909_v22  ;;  %10651 = vmatprep.subr.bf16.mxu1 %v12914_v23  ;;  %v13005_v22 = vld [vmem:[%s15523_s6 + $0xe60] ss:$8 sps:$4 sm:$0xff]   ;;  %v13010_v23 = vld [vmem:[%s15523_s6 + $0x374] ss:$8 sps:$4 sm:$0xff]  }
 0x25c   : > { %11124 = vmatprep.subr.bf16.mxu0 %v12917_v24  ;;  %v13013_v24 = vld [vmem:[%s15523_s6 + $0xe74] ss:$8 sps:$4 sm:$0xff]  }
 0x25e   : > { %10652 = vmatpush1.bf16.msra.mxu1 %v12912_v25  ;;  %v13008_v25 = vld [vmem:[%s15523_s6 + $0x370] ss:$8 sps:$4 sm:$0xff]  }
 0x25f   : > { %11125 = vmatpush1.bf16.msra.mxu0 %v12915_v26  ;;  %10653 = vmatprep.subr.bf16.mxu1 %v12920_v27  ;;  %v13011_v26 = vld [vmem:[%s15523_s6 + $0xe70] ss:$8 sps:$4 sm:$0xff]   ;;  %v13016_v27 = vld [vmem:[%s15523_s6 + $0x384] ss:$8 sps:$4 sm:$0xff]  }
 0x260   : > { %11126 = vmatprep.subr.bf16.mxu0 %v12923_v28  ;;  %v13019_v28 = vld [vmem:[%s15523_s6 + $0xe84] ss:$8 sps:$4 sm:$0xff]  }
 0x262   : > { %10654 = vmatpush1.bf16.msra.mxu1 %v12918_v29  ;;  %v13014_v29 = vld [vmem:[%s15523_s6 + $0x380] ss:$8 sps:$4 sm:$0xff]  }
 0x263   : > { %11127 = vmatpush1.bf16.msra.mxu0 %v12921_v30  ;;  %10655 = vmatprep.subr.bf16.mxu1 %v12926_v31  ;;  %v13017_v30 = vld [vmem:[%s15523_s6 + $0xe80] ss:$8 sps:$4 sm:$0xff]   ;;  %v13022_v31 = vld [vmem:[%s15523_s6 + $0x394] ss:$8 sps:$4 sm:$0xff]  }
 0x264   : > { %11128 = vmatprep.subr.bf16.mxu0 %v12929_v32  ;;  %v13025_v32 = vld [vmem:[%s15523_s6 + $0xe94] ss:$8 sps:$4 sm:$0xff]  }
 0x266   : > { %10656 = vmatpush1.bf16.msra.mxu1 %v12924_v33  ;;  %v13020_v33 = vld [vmem:[%s15523_s6 + $0x390] ss:$8 sps:$4 sm:$0xff]  }
 0x267   : > { %11129 = vmatpush1.bf16.msra.mxu0 %v12927_v34  ;;  %10657 = vmatprep.subr.bf16.mxu1 %v12932_v35  ;;  %v13023_v34 = vld [vmem:[%s15523_s6 + $0xe90] ss:$8 sps:$4 sm:$0xff]   ;;  %v13028_v35 = vld [vmem:[%s15523_s6 + $0x3a4] ss:$8 sps:$4 sm:$0xff]  }
 0x268   : > { %11130 = vmatprep.subr.bf16.mxu0 %v12935_v36  ;;  %v13031_v36 = vld [vmem:[%s15523_s6 + $0xea4] ss:$8 sps:$4 sm:$0xff]  }
 0x26a   : > { %10658 = vmatpush1.bf16.msra.mxu1 %v12930_v37  ;;  %v13026_v37 = vld [vmem:[%s15523_s6 + $0x3a0] ss:$8 sps:$4 sm:$0xff]  }
 0x26b   : > { %11131 = vmatpush1.bf16.msra.mxu0 %v12933_v38  ;;  %10659 = vmatprep.subr.bf16.mxu1 %v12938_v39  ;;  %v13029_v38 = vld [vmem:[%s15523_s6 + $0xea0] ss:$8 sps:$4 sm:$0xff]   ;;  %v13034_v39 = vld [vmem:[%s15523_s6 + $0x3b4] ss:$8 sps:$4 sm:$0xff]  }
 0x26c   : > { %11132 = vmatprep.subr.bf16.mxu0 %v12941_v40  ;;  %v13037_v40 = vld [vmem:[%s15523_s6 + $0xeb4] ss:$8 sps:$4 sm:$0xff]  }
 0x26e   : > { %10660 = vmatpush1.bf16.msra.mxu1 %v12936_v41  ;;  %v13032_v41 = vld [vmem:[%s15523_s6 + $0x3b0] ss:$8 sps:$4 sm:$0xff]  }
 0x26f   : > { %11133 = vmatpush1.bf16.msra.mxu0 %v12939_v42  ;;  %10661 = vmatprep.subr.bf16.mxu1 %v12944_v43  ;;  %v13035_v42 = vld [vmem:[%s15523_s6 + $0xeb0] ss:$8 sps:$4 sm:$0xff]   ;;  %v13040_v43 = vld [vmem:[%s15523_s6 + $0x3c4] ss:$8 sps:$4 sm:$0xff]  }
 0x270   : > { %11134 = vmatprep.subr.bf16.mxu0 %v12947_v44  ;;  %v13043_v44 = vld [vmem:[%s15523_s6 + $0xec4] ss:$8 sps:$4 sm:$0xff]  }
 0x272   : > { %10662 = vmatpush1.bf16.msra.mxu1 %v12942_v45  ;;  %v13038_v45 = vld [vmem:[%s15523_s6 + $0x3c0] ss:$8 sps:$4 sm:$0xff]  }
 0x273   : > { %11135 = vmatpush1.bf16.msra.mxu0 %v12945_v46  ;;  %10663 = vmatprep.subr.bf16.mxu1 %v12950_v47  ;;  %v13041_v46 = vld [vmem:[%s15523_s6 + $0xec0] ss:$8 sps:$4 sm:$0xff]   ;;  %v13046_v47 = vld [vmem:[%s15523_s6 + $0x3d4] ss:$8 sps:$4 sm:$0xff]  }
 0x274   : > { %11136 = vmatprep.subr.bf16.mxu0 %v12953_v48  ;;  %v13049_v48 = vld [vmem:[%s15523_s6 + $0xed4] ss:$8 sps:$4 sm:$0xff]  }
 0x276   : > { %10664 = vmatpush1.bf16.msra.mxu1 %v12948_v49  ;;  %v13044_v49 = vld [vmem:[%s15523_s6 + $0x3d0] ss:$8 sps:$4 sm:$0xff]  }
 0x277   : > { %11137 = vmatpush1.bf16.msra.mxu0 %v12951_v50  ;;  %10665 = vmatprep.subr.bf16.mxu1 %v12956_v51  ;;  %v13047_v50 = vld [vmem:[%s15523_s6 + $0xed0] ss:$8 sps:$4 sm:$0xff]   ;;  %v13052_v51 = vld [vmem:[%s15523_s6 + $0x3e4] ss:$8 sps:$4 sm:$0xff]  }
 0x278   : > { %11138 = vmatprep.subr.bf16.mxu0 %v12959_v52  ;;  %v13055_v52 = vld [vmem:[%s15523_s6 + $0xee4] ss:$8 sps:$4 sm:$0xff]  }
 0x27a   : > { %10666 = vmatpush1.bf16.msra.mxu1 %v12954_v53  ;;  %v13050_v53 = vld [vmem:[%s15523_s6 + $0x3e0] ss:$8 sps:$4 sm:$0xff]  }
 0x27b   : > { %11139 = vmatpush1.bf16.msra.mxu0 %v12957_v54  ;;  %10678 = vmatprep.subr.bf16.mxu1 %v12965_v55  ;;  %v13053_v54 = vld [vmem:[%s15523_s6 + $0xee0] ss:$8 sps:$4 sm:$0xff]   ;;  %v13058_v55 = vld [vmem:[%s15523_s6 + $0x3f4] ss:$8 sps:$4 sm:$0xff]  }
 0x27c   : > { %11151 = vmatprep.subr.bf16.mxu0 %v12971_v56  ;;  %v13061_v56 = vld [vmem:[%s15523_s6 + $0xef4] ss:$8 sps:$4 sm:$0xff]  }
 0x27d   : > { %10668 = vmatmul.mubr.bf16.vlgmr.msra.gmra.mrb[0].mxu1 %v12960_v57  ;;  %v13056_v57 = vld [vmem:[%s15523_s6 + $0x3f0] ss:$8 sps:$4 sm:$0xff]  }
 0x27e   : > { %11141 = vmatmul.mubr.bf16.vlgmr.msra.gmra.mrb[0].mxu0 %v12966_v59  ;;  %10679 = vmatpush1.bf16.msra.mxu1 %v12963_v58  ;;  %v13059_v58 = vld [vmem:[%s15523_s6 + $0xef0] ss:$8 sps:$4 sm:$0xff]   ;;  %v13067_v59 = vld [vmem:[%s15523_s6 + $0x404] ss:$8 sps:$4 sm:$0xff]  }
 0x27f   : > { %11152 = vmatpush1.bf16.msra.mxu0 %v12969_v60  ;;  %10680 = vmatprep.subr.bf16.mxu1 %v12974_v61  ;;  %v13073_v60 = vld [vmem:[%s15523_s6 + $0xf04] ss:$8 sps:$4 sm:$0xff]   ;;  %v13062_v61 = vld [vmem:[%s15521_s4 + $0x18] ss:$176 sps:$4 sm:$0xff]  }
 0x280   : > { %11153 = vmatprep.subr.bf16.mxu0 %v12977_v62  ;;  %10710 = vmatprep.mubr.bf16.mxu1 %v13064_v63  ;;  %v13065_v62 = vld [vmem:[%s15523_s6 + $0x400] ss:$8 sps:$4 sm:$0xff]  }
 0x281   : > { %11183 = vmatprep.mubr.bf16.mxu0 %v13070_v0  ;;  %v13068_v63 = vld [vmem:[%s15521_s4 + $0x70] ss:$176 sps:$4 sm:$0xff]  }
 0x282   : > { %10681 = vmatpush1.bf16.msra.mxu1 %v12972_v1  ;;  %v13071_v0 = vld [vmem:[%s15523_s6 + $0xf00] ss:$8 sps:$4 sm:$0xff]   ;;  %v13076_v1 = vld [vmem:[%s15523_s6 + $0x414] ss:$8 sps:$4 sm:$0xff]  }
 0x283   : > { %11154 = vmatpush1.bf16.msra.mxu0 %v12975_v2  ;;  %10682 = vmatprep.subr.bf16.mxu1 %v12980_v3  ;;  %v13079_v2 = vld [vmem:[%s15523_s6 + $0xf14] ss:$8 sps:$4 sm:$0xff]  }
 0x284   : > { %11155 = vmatprep.subr.bf16.mxu0 %v12983_v4  ;;  %v13166_v3 = vld [vmem:[%s15521_s4 + $0x24] ss:$176 sps:$4 sm:$0xff]   ;;  %v13172_v4 = vld [vmem:[%s15521_s4 + $0x7c] ss:$176 sps:$4 sm:$0xff]  }
 0x286   : > { %10683 = vmatpush1.bf16.msra.mxu1 %v12978_v5  ;;  %v13074_v5 = vld [vmem:[%s15523_s6 + $0x410] ss:$8 sps:$4 sm:$0xff]  }
 0x287   : > { %11156 = vmatpush1.bf16.msra.mxu0 %v12981_v6  ;;  %10684 = vmatprep.subr.bf16.mxu1 %v12986_v7  ;;  %v13077_v6 = vld [vmem:[%s15523_s6 + $0xf10] ss:$8 sps:$4 sm:$0xff]   ;;  %v13082_v7 = vld [vmem:[%s15523_s6 + $0x424] ss:$8 sps:$4 sm:$0xff]  }
 0x288   : > { %11157 = vmatprep.subr.bf16.mxu0 %v12989_v8  ;;  %v13085_v8 = vld [vmem:[%s15523_s6 + $0xf24] ss:$8 sps:$4 sm:$0xff]  }
 0x28a   : > { %10685 = vmatpush1.bf16.msra.mxu1 %v12984_v9  ;;  %v13080_v9 = vld [vmem:[%s15523_s6 + $0x420] ss:$8 sps:$4 sm:$0xff]  }
 0x28b   : > { %11158 = vmatpush1.bf16.msra.mxu0 %v12987_v10  ;;  %10686 = vmatprep.subr.bf16.mxu1 %v12992_v11  ;;  %v13083_v10 = vld [vmem:[%s15523_s6 + $0xf20] ss:$8 sps:$4 sm:$0xff]   ;;  %v13088_v11 = vld [vmem:[%s15523_s6 + $0x434] ss:$8 sps:$4 sm:$0xff]  }
 0x28c   : > { %11159 = vmatprep.subr.bf16.mxu0 %v12995_v12  ;;  %v13091_v12 = vld [vmem:[%s15523_s6 + $0xf34] ss:$8 sps:$4 sm:$0xff]  }
 0x28e   : > { %10687 = vmatpush1.bf16.msra.mxu1 %v12990_v13  ;;  %v13086_v13 = vld [vmem:[%s15523_s6 + $0x430] ss:$8 sps:$4 sm:$0xff]  }
 0x28f   : > { %11160 = vmatpush1.bf16.msra.mxu0 %v12993_v14  ;;  %10688 = vmatprep.subr.bf16.mxu1 %v12998_v15  ;;  %v13089_v14 = vld [vmem:[%s15523_s6 + $0xf30] ss:$8 sps:$4 sm:$0xff]   ;;  %v13094_v15 = vld [vmem:[%s15523_s6 + $0x444] ss:$8 sps:$4 sm:$0xff]  }
 0x290   : > { %11161 = vmatprep.subr.bf16.mxu0 %v13001_v16  ;;  %v13097_v16 = vld [vmem:[%s15523_s6 + $0xf44] ss:$8 sps:$4 sm:$0xff]  }
 0x292   : > { %10689 = vmatpush1.bf16.msra.mxu1 %v12996_v17  ;;  %v13092_v17 = vld [vmem:[%s15523_s6 + $0x440] ss:$8 sps:$4 sm:$0xff]  }
 0x293   : > { %11162 = vmatpush1.bf16.msra.mxu0 %v12999_v18  ;;  %10690 = vmatprep.subr.bf16.mxu1 %v13004_v19  ;;  %v13095_v18 = vld [vmem:[%s15523_s6 + $0xf40] ss:$8 sps:$4 sm:$0xff]   ;;  %v13100_v19 = vld [vmem:[%s15523_s6 + $0x454] ss:$8 sps:$4 sm:$0xff]  }
 0x294   : > { %11163 = vmatprep.subr.bf16.mxu0 %v13007_v20  ;;  %v13103_v20 = vld [vmem:[%s15523_s6 + $0xf54] ss:$8 sps:$4 sm:$0xff]  }
 0x296   : > { %10691 = vmatpush1.bf16.msra.mxu1 %v13002_v21  ;;  %v13098_v21 = vld [vmem:[%s15523_s6 + $0x450] ss:$8 sps:$4 sm:$0xff]  }
 0x297   : > { %11164 = vmatpush1.bf16.msra.mxu0 %v13005_v22  ;;  %10692 = vmatprep.subr.bf16.mxu1 %v13010_v23  ;;  %v13101_v22 = vld [vmem:[%s15523_s6 + $0xf50] ss:$8 sps:$4 sm:$0xff]   ;;  %v13106_v23 = vld [vmem:[%s15523_s6 + $0x464] ss:$8 sps:$4 sm:$0xff]  }
 0x298   : > { %11165 = vmatprep.subr.bf16.mxu0 %v13013_v24  ;;  %v13109_v24 = vld [vmem:[%s15523_s6 + $0xf64] ss:$8 sps:$4 sm:$0xff]  }
 0x29a   : > { %10693 = vmatpush1.bf16.msra.mxu1 %v13008_v25  ;;  %v13104_v25 = vld [vmem:[%s15523_s6 + $0x460] ss:$8 sps:$4 sm:$0xff]  }
 0x29b   : > { %11166 = vmatpush1.bf16.msra.mxu0 %v13011_v26  ;;  %10694 = vmatprep.subr.bf16.mxu1 %v13016_v27  ;;  %v13107_v26 = vld [vmem:[%s15523_s6 + $0xf60] ss:$8 sps:$4 sm:$0xff]   ;;  %v13112_v27 = vld [vmem:[%s15523_s6 + $0x474] ss:$8 sps:$4 sm:$0xff]  }
 0x29c   : > { %11167 = vmatprep.subr.bf16.mxu0 %v13019_v28  ;;  %v13115_v28 = vld [vmem:[%s15523_s6 + $0xf74] ss:$8 sps:$4 sm:$0xff]  }
 0x29e   : > { %10695 = vmatpush1.bf16.msra.mxu1 %v13014_v29  ;;  %v13110_v29 = vld [vmem:[%s15523_s6 + $0x470] ss:$8 sps:$4 sm:$0xff]  }
 0x29f   : > { %11168 = vmatpush1.bf16.msra.mxu0 %v13017_v30  ;;  %10696 = vmatprep.subr.bf16.mxu1 %v13022_v31  ;;  %v13113_v30 = vld [vmem:[%s15523_s6 + $0xf70] ss:$8 sps:$4 sm:$0xff]   ;;  %v13118_v31 = vld [vmem:[%s15523_s6 + $0x484] ss:$8 sps:$4 sm:$0xff]  }
 0x2a0   : > { %11169 = vmatprep.subr.bf16.mxu0 %v13025_v32  ;;  %v13121_v32 = vld [vmem:[%s15523_s6 + $0xf84] ss:$8 sps:$4 sm:$0xff]  }
 0x2a2   : > { %10697 = vmatpush1.bf16.msra.mxu1 %v13020_v33  ;;  %v13116_v33 = vld [vmem:[%s15523_s6 + $0x480] ss:$8 sps:$4 sm:$0xff]  }
 0x2a3   : > { %11170 = vmatpush1.bf16.msra.mxu0 %v13023_v34  ;;  %10698 = vmatprep.subr.bf16.mxu1 %v13028_v35  ;;  %v13119_v34 = vld [vmem:[%s15523_s6 + $0xf80] ss:$8 sps:$4 sm:$0xff]   ;;  %v13124_v35 = vld [vmem:[%s15523_s6 + $0x494] ss:$8 sps:$4 sm:$0xff]  }
 0x2a4   : > { %11171 = vmatprep.subr.bf16.mxu0 %v13031_v36  ;;  %v13127_v36 = vld [vmem:[%s15523_s6 + $0xf94] ss:$8 sps:$4 sm:$0xff]  }
 0x2a6   : > { %10699 = vmatpush1.bf16.msra.mxu1 %v13026_v37  ;;  %v13122_v37 = vld [vmem:[%s15523_s6 + $0x490] ss:$8 sps:$4 sm:$0xff]  }
 0x2a7   : > { %11172 = vmatpush1.bf16.msra.mxu0 %v13029_v38  ;;  %10700 = vmatprep.subr.bf16.mxu1 %v13034_v39  ;;  %v13125_v38 = vld [vmem:[%s15523_s6 + $0xf90] ss:$8 sps:$4 sm:$0xff]   ;;  %v13130_v39 = vld [vmem:[%s15523_s6 + $0x4a4] ss:$8 sps:$4 sm:$0xff]  }
 0x2a8   : > { %11173 = vmatprep.subr.bf16.mxu0 %v13037_v40  ;;  %v13133_v40 = vld [vmem:[%s15523_s6 + $0xfa4] ss:$8 sps:$4 sm:$0xff]  }
 0x2aa   : > { %10701 = vmatpush1.bf16.msra.mxu1 %v13032_v41  ;;  %v13128_v41 = vld [vmem:[%s15523_s6 + $0x4a0] ss:$8 sps:$4 sm:$0xff]  }
 0x2ab   : > { %11174 = vmatpush1.bf16.msra.mxu0 %v13035_v42  ;;  %10702 = vmatprep.subr.bf16.mxu1 %v13040_v43  ;;  %v13131_v42 = vld [vmem:[%s15523_s6 + $0xfa0] ss:$8 sps:$4 sm:$0xff]   ;;  %v13136_v43 = vld [vmem:[%s15523_s6 + $0x4b4] ss:$8 sps:$4 sm:$0xff]  }
 0x2ac   : > { %11175 = vmatprep.subr.bf16.mxu0 %v13043_v44  ;;  %v13139_v44 = vld [vmem:[%s15523_s6 + $0xfb4] ss:$8 sps:$4 sm:$0xff]  }
 0x2ae   : > { %10703 = vmatpush1.bf16.msra.mxu1 %v13038_v45  ;;  %v13134_v45 = vld [vmem:[%s15523_s6 + $0x4b0] ss:$8 sps:$4 sm:$0xff]  }
 0x2af   : > { %11176 = vmatpush1.bf16.msra.mxu0 %v13041_v46  ;;  %10704 = vmatprep.subr.bf16.mxu1 %v13046_v47  ;;  %v13137_v46 = vld [vmem:[%s15523_s6 + $0xfb0] ss:$8 sps:$4 sm:$0xff]   ;;  %v13142_v47 = vld [vmem:[%s15523_s6 + $0x4c4] ss:$8 sps:$4 sm:$0xff]  }
 0x2b0   : > { %11177 = vmatprep.subr.bf16.mxu0 %v13049_v48  ;;  %v13145_v48 = vld [vmem:[%s15523_s6 + $0xfc4] ss:$8 sps:$4 sm:$0xff]  }
 0x2b2   : > { %10705 = vmatpush1.bf16.msra.mxu1 %v13044_v49  ;;  %v13140_v49 = vld [vmem:[%s15523_s6 + $0x4c0] ss:$8 sps:$4 sm:$0xff]  }
 0x2b3   : > { %11178 = vmatpush1.bf16.msra.mxu0 %v13047_v50  ;;  %10706 = vmatprep.subr.bf16.mxu1 %v13052_v51  ;;  %v13143_v50 = vld [vmem:[%s15523_s6 + $0xfc0] ss:$8 sps:$4 sm:$0xff]   ;;  %v13148_v51 = vld [vmem:[%s15523_s6 + $0x4d4] ss:$8 sps:$4 sm:$0xff]  }
 0x2b4   : > { %11179 = vmatprep.subr.bf16.mxu0 %v13055_v52  ;;  %v13151_v52 = vld [vmem:[%s15523_s6 + $0xfd4] ss:$8 sps:$4 sm:$0xff]  }
 0x2b6   : > { %10707 = vmatpush1.bf16.msra.mxu1 %v13050_v53  ;;  %v13146_v53 = vld [vmem:[%s15523_s6 + $0x4d0] ss:$8 sps:$4 sm:$0xff]  }
 0x2b7   : > { %11180 = vmatpush1.bf16.msra.mxu0 %v13053_v54  ;;  %10708 = vmatprep.subr.bf16.mxu1 %v13058_v55  ;;  %v13149_v54 = vld [vmem:[%s15523_s6 + $0xfd0] ss:$8 sps:$4 sm:$0xff]   ;;  %v13154_v55 = vld [vmem:[%s15523_s6 + $0x4e4] ss:$8 sps:$4 sm:$0xff]  }
 0x2b8   : > { %11181 = vmatprep.subr.bf16.mxu0 %v13061_v56  ;;  %v13157_v56 = vld [vmem:[%s15523_s6 + $0xfe4] ss:$8 sps:$4 sm:$0xff]  }
 0x2ba   : > { %10709 = vmatpush1.bf16.msra.mxu1 %v13056_v57  ;;  %v13152_v57 = vld [vmem:[%s15523_s6 + $0x4e0] ss:$8 sps:$4 sm:$0xff]  }
 0x2bb   : > { %11182 = vmatpush1.bf16.msra.mxu0 %v13059_v58  ;;  %10721 = vmatprep.subr.bf16.mxu1 %v13067_v59  ;;  %v13155_v58 = vld [vmem:[%s15523_s6 + $0xfe0] ss:$8 sps:$4 sm:$0xff]   ;;  %v13160_v59 = vld [vmem:[%s15523_s6 + $0x4f4] ss:$8 sps:$4 sm:$0xff]  }
 0x2bc   : > { %11194 = vmatprep.subr.bf16.mxu0 %v13073_v60  ;;  %v13163_v60 = vld [vmem:[%s15523_s6 + $0xff4] ss:$8 sps:$4 sm:$0xff]  }
 0x2bd   : > { %10711 = vmatmul.mubr.bf16.vlgmr.msra.gmra.mrb[0].mxu1 %v13062_v61  ;;  %v13158_v61 = vld [vmem:[%s15523_s6 + $0x4f0] ss:$8 sps:$4 sm:$0xff]  }
 0x2be   : > { %11184 = vmatmul.mubr.bf16.vlgmr.msra.gmra.mrb[0].mxu0 %v13068_v63  ;;  %10722 = vmatpush1.bf16.msra.mxu1 %v13065_v62  ;;  %v13161_v62 = vld [vmem:[%s15523_s6 + $0xff0] ss:$8 sps:$4 sm:$0xff]   ;;  %v13169_v63 = vld [vmem:[%s15523_s6 + $0x504] ss:$8 sps:$4 sm:$0xff]  }
 0x2bf   : > { %11195 = vmatpush1.bf16.msra.mxu0 %v13071_v0  ;;  %10723 = vmatprep.subr.bf16.mxu1 %v13076_v1  ;;  %v13164_v0 = vld [vmem:[%s15521_s4 + $0x20] ss:$176 sps:$4 sm:$0xff]   ;;  %v13170_v1 = vld [vmem:[%s15521_s4 + $0x78] ss:$176 sps:$4 sm:$0xff]  }
 0x2c0   : > { %11196 = vmatprep.subr.bf16.mxu0 %v13079_v2  ;;  %10753 = vmatprep.mubr.bf16.mxu1 %v13166_v3  ;;  %v13175_v2 = vld [vmem:[%s15523_s6 + $0x1004] ss:$8 sps:$4 sm:$0xff]   ;;  %v13167_v3 = vld [vmem:[%s15523_s6 + $0x500] ss:$8 sps:$4 sm:$0xff]  }
 0x2c1   : > { %11226 = vmatprep.mubr.bf16.mxu0 %v13172_v4  ;;  %v13173_v4 = vld [vmem:[%s15523_s6 + $0x1000] ss:$8 sps:$4 sm:$0xff]  }
 0x2c2   : > { %10724 = vmatpush1.bf16.msra.mxu1 %v13074_v5  ;;  %v13178_v5 = vld [vmem:[%s15523_s6 + $0x514] ss:$8 sps:$4 sm:$0xff]  }
 0x2c3   : > { %11197 = vmatpush1.bf16.msra.mxu0 %v13077_v6  ;;  %10725 = vmatprep.subr.bf16.mxu1 %v13082_v7  ;;  %v13181_v6 = vld [vmem:[%s15523_s6 + $0x1014] ss:$8 sps:$4 sm:$0xff]  }
 0x2c4   : > { %11198 = vmatprep.subr.bf16.mxu0 %v13085_v8  ;;  %v13268_v7 = vld [vmem:[%s15521_s4 + $0x2c] ss:$176 sps:$4 sm:$0xff]   ;;  %v13274_v8 = vld [vmem:[%s15521_s4 + $0x84] ss:$176 sps:$4 sm:$0xff]  }
 0x2c6   : > { %10726 = vmatpush1.bf16.msra.mxu1 %v13080_v9  ;;  %v13176_v9 = vld [vmem:[%s15523_s6 + $0x510] ss:$8 sps:$4 sm:$0xff]  }
 0x2c7   : > { %11199 = vmatpush1.bf16.msra.mxu0 %v13083_v10  ;;  %10727 = vmatprep.subr.bf16.mxu1 %v13088_v11  ;;  %v13179_v10 = vld [vmem:[%s15523_s6 + $0x1010] ss:$8 sps:$4 sm:$0xff]   ;;  %v13184_v11 = vld [vmem:[%s15523_s6 + $0x524] ss:$8 sps:$4 sm:$0xff]  }
 0x2c8   : > { %11200 = vmatprep.subr.bf16.mxu0 %v13091_v12  ;;  %v13187_v12 = vld [vmem:[%s15523_s6 + $0x1024] ss:$8 sps:$4 sm:$0xff]  }
 0x2ca   : > { %10728 = vmatpush1.bf16.msra.mxu1 %v13086_v13  ;;  %v13182_v13 = vld [vmem:[%s15523_s6 + $0x520] ss:$8 sps:$4 sm:$0xff]  }
 0x2cb   : > { %11201 = vmatpush1.bf16.msra.mxu0 %v13089_v14  ;;  %10729 = vmatprep.subr.bf16.mxu1 %v13094_v15  ;;  %v13185_v14 = vld [vmem:[%s15523_s6 + $0x1020] ss:$8 sps:$4 sm:$0xff]   ;;  %v13190_v15 = vld [vmem:[%s15523_s6 + $0x534] ss:$8 sps:$4 sm:$0xff]  }
 0x2cc   : > { %11202 = vmatprep.subr.bf16.mxu0 %v13097_v16  ;;  %v13193_v16 = vld [vmem:[%s15523_s6 + $0x1034] ss:$8 sps:$4 sm:$0xff]  }
 0x2ce   : > { %10730 = vmatpush1.bf16.msra.mxu1 %v13092_v17  ;;  %v13188_v17 = vld [vmem:[%s15523_s6 + $0x530] ss:$8 sps:$4 sm:$0xff]  }
 0x2cf   : > { %11203 = vmatpush1.bf16.msra.mxu0 %v13095_v18  ;;  %10731 = vmatprep.subr.bf16.mxu1 %v13100_v19  ;;  %v13191_v18 = vld [vmem:[%s15523_s6 + $0x1030] ss:$8 sps:$4 sm:$0xff]   ;;  %v13196_v19 = vld [vmem:[%s15523_s6 + $0x544] ss:$8 sps:$4 sm:$0xff]  }
 0x2d0   : > { %11204 = vmatprep.subr.bf16.mxu0 %v13103_v20  ;;  %v13199_v20 = vld [vmem:[%s15523_s6 + $0x1044] ss:$8 sps:$4 sm:$0xff]  }
 0x2d2   : > { %10732 = vmatpush1.bf16.msra.mxu1 %v13098_v21  ;;  %v13194_v21 = vld [vmem:[%s15523_s6 + $0x540] ss:$8 sps:$4 sm:$0xff]  }
 0x2d3   : > { %11205 = vmatpush1.bf16.msra.mxu0 %v13101_v22  ;;  %10733 = vmatprep.subr.bf16.mxu1 %v13106_v23  ;;  %v13197_v22 = vld [vmem:[%s15523_s6 + $0x1040] ss:$8 sps:$4 sm:$0xff]   ;;  %v13202_v23 = vld [vmem:[%s15523_s6 + $0x554] ss:$8 sps:$4 sm:$0xff]  }
 0x2d4   : > { %11206 = vmatprep.subr.bf16.mxu0 %v13109_v24  ;;  %v13205_v24 = vld [vmem:[%s15523_s6 + $0x1054] ss:$8 sps:$4 sm:$0xff]  }
 0x2d6   : > { %10734 = vmatpush1.bf16.msra.mxu1 %v13104_v25  ;;  %v13200_v25 = vld [vmem:[%s15523_s6 + $0x550] ss:$8 sps:$4 sm:$0xff]  }
 0x2d7   : > { %11207 = vmatpush1.bf16.msra.mxu0 %v13107_v26  ;;  %10735 = vmatprep.subr.bf16.mxu1 %v13112_v27  ;;  %v13203_v26 = vld [vmem:[%s15523_s6 + $0x1050] ss:$8 sps:$4 sm:$0xff]   ;;  %v13208_v27 = vld [vmem:[%s15523_s6 + $0x564] ss:$8 sps:$4 sm:$0xff]  }
 0x2d8   : > { %11208 = vmatprep.subr.bf16.mxu0 %v13115_v28  ;;  %v13211_v28 = vld [vmem:[%s15523_s6 + $0x1064] ss:$8 sps:$4 sm:$0xff]  }
 0x2da   : > { %10736 = vmatpush1.bf16.msra.mxu1 %v13110_v29  ;;  %v13206_v29 = vld [vmem:[%s15523_s6 + $0x560] ss:$8 sps:$4 sm:$0xff]  }
 0x2db   : > { %11209 = vmatpush1.bf16.msra.mxu0 %v13113_v30  ;;  %10737 = vmatprep.subr.bf16.mxu1 %v13118_v31  ;;  %v13209_v30 = vld [vmem:[%s15523_s6 + $0x1060] ss:$8 sps:$4 sm:$0xff]   ;;  %v13214_v31 = vld [vmem:[%s15523_s6 + $0x574] ss:$8 sps:$4 sm:$0xff]  }
 0x2dc   : > { %11210 = vmatprep.subr.bf16.mxu0 %v13121_v32  ;;  %v13217_v32 = vld [vmem:[%s15523_s6 + $0x1074] ss:$8 sps:$4 sm:$0xff]  }
 0x2de   : > { %10738 = vmatpush1.bf16.msra.mxu1 %v13116_v33  ;;  %v13212_v33 = vld [vmem:[%s15523_s6 + $0x570] ss:$8 sps:$4 sm:$0xff]  }
 0x2df   : > { %11211 = vmatpush1.bf16.msra.mxu0 %v13119_v34  ;;  %10739 = vmatprep.subr.bf16.mxu1 %v13124_v35  ;;  %v13215_v34 = vld [vmem:[%s15523_s6 + $0x1070] ss:$8 sps:$4 sm:$0xff]   ;;  %v13220_v35 = vld [vmem:[%s15523_s6 + $0x584] ss:$8 sps:$4 sm:$0xff]  }
 0x2e0   : > { %11212 = vmatprep.subr.bf16.mxu0 %v13127_v36  ;;  %v13223_v36 = vld [vmem:[%s15523_s6 + $0x1084] ss:$8 sps:$4 sm:$0xff]  }
 0x2e2   : > { %10740 = vmatpush1.bf16.msra.mxu1 %v13122_v37  ;;  %v13218_v37 = vld [vmem:[%s15523_s6 + $0x580] ss:$8 sps:$4 sm:$0xff]  }
 0x2e3   : > { %11213 = vmatpush1.bf16.msra.mxu0 %v13125_v38  ;;  %10741 = vmatprep.subr.bf16.mxu1 %v13130_v39  ;;  %v13221_v38 = vld [vmem:[%s15523_s6 + $0x1080] ss:$8 sps:$4 sm:$0xff]   ;;  %v13226_v39 = vld [vmem:[%s15523_s6 + $0x594] ss:$8 sps:$4 sm:$0xff]  }
 0x2e4   : > { %11214 = vmatprep.subr.bf16.mxu0 %v13133_v40  ;;  %v13229_v40 = vld [vmem:[%s15523_s6 + $0x1094] ss:$8 sps:$4 sm:$0xff]  }
 0x2e6   : > { %10742 = vmatpush1.bf16.msra.mxu1 %v13128_v41  ;;  %v13224_v41 = vld [vmem:[%s15523_s6 + $0x590] ss:$8 sps:$4 sm:$0xff]  }
 0x2e7   : > { %11215 = vmatpush1.bf16.msra.mxu0 %v13131_v42  ;;  %10743 = vmatprep.subr.bf16.mxu1 %v13136_v43  ;;  %v13227_v42 = vld [vmem:[%s15523_s6 + $0x1090] ss:$8 sps:$4 sm:$0xff]   ;;  %v13232_v43 = vld [vmem:[%s15523_s6 + $0x5a4] ss:$8 sps:$4 sm:$0xff]  }
 0x2e8   : > { %11216 = vmatprep.subr.bf16.mxu0 %v13139_v44  ;;  %v13235_v44 = vld [vmem:[%s15523_s6 + $0x10a4] ss:$8 sps:$4 sm:$0xff]  }
 0x2ea   : > { %10744 = vmatpush1.bf16.msra.mxu1 %v13134_v45  ;;  %v13230_v45 = vld [vmem:[%s15523_s6 + $0x5a0] ss:$8 sps:$4 sm:$0xff]  }
 0x2eb   : > { %11217 = vmatpush1.bf16.msra.mxu0 %v13137_v46  ;;  %10745 = vmatprep.subr.bf16.mxu1 %v13142_v47  ;;  %v13233_v46 = vld [vmem:[%s15523_s6 + $0x10a0] ss:$8 sps:$4 sm:$0xff]   ;;  %v13238_v47 = vld [vmem:[%s15523_s6 + $0x5b4] ss:$8 sps:$4 sm:$0xff]  }
 0x2ec   : > { %11218 = vmatprep.subr.bf16.mxu0 %v13145_v48  ;;  %v13241_v48 = vld [vmem:[%s15523_s6 + $0x10b4] ss:$8 sps:$4 sm:$0xff]  }
 0x2ee   : > { %10746 = vmatpush1.bf16.msra.mxu1 %v13140_v49  ;;  %v13236_v49 = vld [vmem:[%s15523_s6 + $0x5b0] ss:$8 sps:$4 sm:$0xff]  }
 0x2ef   : > { %11219 = vmatpush1.bf16.msra.mxu0 %v13143_v50  ;;  %10747 = vmatprep.subr.bf16.mxu1 %v13148_v51  ;;  %v13239_v50 = vld [vmem:[%s15523_s6 + $0x10b0] ss:$8 sps:$4 sm:$0xff]   ;;  %v13244_v51 = vld [vmem:[%s15523_s6 + $0x5c4] ss:$8 sps:$4 sm:$0xff]  }
 0x2f0   : > { %11220 = vmatprep.subr.bf16.mxu0 %v13151_v52  ;;  %v13247_v52 = vld [vmem:[%s15523_s6 + $0x10c4] ss:$8 sps:$4 sm:$0xff]  }
 0x2f2   : > { %10748 = vmatpush1.bf16.msra.mxu1 %v13146_v53  ;;  %v13242_v53 = vld [vmem:[%s15523_s6 + $0x5c0] ss:$8 sps:$4 sm:$0xff]  }
 0x2f3   : > { %11221 = vmatpush1.bf16.msra.mxu0 %v13149_v54  ;;  %10749 = vmatprep.subr.bf16.mxu1 %v13154_v55  ;;  %v13245_v54 = vld [vmem:[%s15523_s6 + $0x10c0] ss:$8 sps:$4 sm:$0xff]   ;;  %v13250_v55 = vld [vmem:[%s15523_s6 + $0x5d4] ss:$8 sps:$4 sm:$0xff]  }
 0x2f4   : > { %11222 = vmatprep.subr.bf16.mxu0 %v13157_v56  ;;  %v13253_v56 = vld [vmem:[%s15523_s6 + $0x10d4] ss:$8 sps:$4 sm:$0xff]  }
 0x2f6   : > { %10750 = vmatpush1.bf16.msra.mxu1 %v13152_v57  ;;  %v13248_v57 = vld [vmem:[%s15523_s6 + $0x5d0] ss:$8 sps:$4 sm:$0xff]  }
 0x2f7   : > { %11223 = vmatpush1.bf16.msra.mxu0 %v13155_v58  ;;  %10751 = vmatprep.subr.bf16.mxu1 %v13160_v59  ;;  %v13251_v58 = vld [vmem:[%s15523_s6 + $0x10d0] ss:$8 sps:$4 sm:$0xff]   ;;  %v13256_v59 = vld [vmem:[%s15523_s6 + $0x5e4] ss:$8 sps:$4 sm:$0xff]  }
 0x2f8   : > { %11224 = vmatprep.subr.bf16.mxu0 %v13163_v60  ;;  %v13259_v60 = vld [vmem:[%s15523_s6 + $0x10e4] ss:$8 sps:$4 sm:$0xff]  }
 0x2fa   : > { %10752 = vmatpush1.bf16.msra.mxu1 %v13158_v61  ;;  %v13254_v61 = vld [vmem:[%s15523_s6 + $0x5e0] ss:$8 sps:$4 sm:$0xff]  }
 0x2fb   : > { %11225 = vmatpush1.bf16.msra.mxu0 %v13161_v62  ;;  %10764 = vmatprep.subr.bf16.mxu1 %v13169_v63  ;;  %v13257_v62 = vld [vmem:[%s15523_s6 + $0x10e0] ss:$8 sps:$4 sm:$0xff]   ;;  %v13262_v63 = vld [vmem:[%s15523_s6 + $0x5f4] ss:$8 sps:$4 sm:$0xff]  }
 0x2fc   : > { %11237 = vmatprep.subr.bf16.mxu0 %v13175_v2  ;;  %v13263_v2 = vld [vmem:[%s15523_s6 + $0x10f0] ss:$8 sps:$4 sm:$0xff]  }
 0x2fd   : > { %10754 = vmatmul.mubr.bf16.vlgmr.msra.gmra.mrb[0].mxu1 %v13164_v0  ;;  %v13265_v0 = vld [vmem:[%s15523_s6 + $0x10f4] ss:$8 sps:$4 sm:$0xff]  }
 0x2fe   : > { %11227 = vmatmul.mubr.bf16.vlgmr.msra.gmra.mrb[0].mxu0 %v13170_v1  ;;  %10765 = vmatpush1.bf16.msra.mxu1 %v13167_v3  ;;  %v13260_v1 = vld [vmem:[%s15523_s6 + $0x5f0] ss:$8 sps:$4 sm:$0xff]   ;;  %v13271_v3 = vld [vmem:[%s15523_s6 + $0x604] ss:$8 sps:$4 sm:$0xff]  }
 0x2ff   : > { %11238 = vmatpush1.bf16.msra.mxu0 %v13173_v4  ;;  %10766 = vmatprep.subr.bf16.mxu1 %v13178_v5  ;;  %v13266_v4 = vld [vmem:[%s15521_s4 + $0x28] ss:$176 sps:$4 sm:$0xff]   ;;  %v13272_v5 = vld [vmem:[%s15521_s4 + $0x80] ss:$176 sps:$4 sm:$0xff]  }
 0x300   : > { %11239 = vmatprep.subr.bf16.mxu0 %v13181_v6  ;;  %10796 = vmatprep.mubr.bf16.mxu1 %v13268_v7  ;;  %v13277_v6 = vld [vmem:[%s15523_s6 + $0x1104] ss:$8 sps:$4 sm:$0xff]   ;;  %v13269_v7 = vld [vmem:[%s15523_s6 + $0x600] ss:$8 sps:$4 sm:$0xff]  }
 0x301   : > { %11269 = vmatprep.mubr.bf16.mxu0 %v13274_v8  ;;  %v13275_v8 = vld [vmem:[%s15523_s6 + $0x1100] ss:$8 sps:$4 sm:$0xff]  }
 0x302   : > { %10767 = vmatpush1.bf16.msra.mxu1 %v13176_v9  ;;  %v13280_v9 = vld [vmem:[%s15523_s6 + $0x614] ss:$8 sps:$4 sm:$0xff]  }
 0x303   : > { %11240 = vmatpush1.bf16.msra.mxu0 %v13179_v10  ;;  %10768 = vmatprep.subr.bf16.mxu1 %v13184_v11  ;;  %v13283_v10 = vld [vmem:[%s15523_s6 + $0x1114] ss:$8 sps:$4 sm:$0xff]  }
 0x304   : > { %11241 = vmatprep.subr.bf16.mxu0 %v13187_v12  ;;  %v13370_v11 = vld [vmem:[%s15521_s4 + $0x34] ss:$176 sps:$4 sm:$0xff]   ;;  %v13376_v12 = vld [vmem:[%s15521_s4 + $0x8c] ss:$176 sps:$4 sm:$0xff]  }
 0x306   : > { %10769 = vmatpush1.bf16.msra.mxu1 %v13182_v13  ;;  %v13278_v13 = vld [vmem:[%s15523_s6 + $0x610] ss:$8 sps:$4 sm:$0xff]  }
 0x307   : > { %11242 = vmatpush1.bf16.msra.mxu0 %v13185_v14  ;;  %10770 = vmatprep.subr.bf16.mxu1 %v13190_v15  ;;  %v13281_v14 = vld [vmem:[%s15523_s6 + $0x1110] ss:$8 sps:$4 sm:$0xff]   ;;  %v13286_v15 = vld [vmem:[%s15523_s6 + $0x624] ss:$8 sps:$4 sm:$0xff]  }
 0x308   : > { %11243 = vmatprep.subr.bf16.mxu0 %v13193_v16  ;;  %v13289_v16 = vld [vmem:[%s15523_s6 + $0x1124] ss:$8 sps:$4 sm:$0xff]  }
 0x30a   : > { %10771 = vmatpush1.bf16.msra.mxu1 %v13188_v17  ;;  %v13284_v17 = vld [vmem:[%s15523_s6 + $0x620] ss:$8 sps:$4 sm:$0xff]  }
 0x30b   : > { %11244 = vmatpush1.bf16.msra.mxu0 %v13191_v18  ;;  %10772 = vmatprep.subr.bf16.mxu1 %v13196_v19  ;;  %v13287_v18 = vld [vmem:[%s15523_s6 + $0x1120] ss:$8 sps:$4 sm:$0xff]   ;;  %v13292_v19 = vld [vmem:[%s15523_s6 + $0x634] ss:$8 sps:$4 sm:$0xff]  }
 0x30c   : > { %11245 = vmatprep.subr.bf16.mxu0 %v13199_v20  ;;  %v13295_v20 = vld [vmem:[%s15523_s6 + $0x1134] ss:$8 sps:$4 sm:$0xff]  }
 0x30e   : > { %10773 = vmatpush1.bf16.msra.mxu1 %v13194_v21  ;;  %v13290_v21 = vld [vmem:[%s15523_s6 + $0x630] ss:$8 sps:$4 sm:$0xff]  }
 0x30f   : > { %11246 = vmatpush1.bf16.msra.mxu0 %v13197_v22  ;;  %10774 = vmatprep.subr.bf16.mxu1 %v13202_v23  ;;  %v13293_v22 = vld [vmem:[%s15523_s6 + $0x1130] ss:$8 sps:$4 sm:$0xff]   ;;  %v13298_v23 = vld [vmem:[%s15523_s6 + $0x644] ss:$8 sps:$4 sm:$0xff]  }
 0x310   : > { %11247 = vmatprep.subr.bf16.mxu0 %v13205_v24  ;;  %v13301_v24 = vld [vmem:[%s15523_s6 + $0x1144] ss:$8 sps:$4 sm:$0xff]  }
 0x312   : > { %10775 = vmatpush1.bf16.msra.mxu1 %v13200_v25  ;;  %v13296_v25 = vld [vmem:[%s15523_s6 + $0x640] ss:$8 sps:$4 sm:$0xff]  }
 0x313   : > { %11248 = vmatpush1.bf16.msra.mxu0 %v13203_v26  ;;  %10776 = vmatprep.subr.bf16.mxu1 %v13208_v27  ;;  %v13299_v26 = vld [vmem:[%s15523_s6 + $0x1140] ss:$8 sps:$4 sm:$0xff]   ;;  %v13304_v27 = vld [vmem:[%s15523_s6 + $0x654] ss:$8 sps:$4 sm:$0xff]  }
 0x314   : > { %11249 = vmatprep.subr.bf16.mxu0 %v13211_v28  ;;  %v13307_v28 = vld [vmem:[%s15523_s6 + $0x1154] ss:$8 sps:$4 sm:$0xff]  }
 0x316   : > { %10777 = vmatpush1.bf16.msra.mxu1 %v13206_v29  ;;  %v13302_v29 = vld [vmem:[%s15523_s6 + $0x650] ss:$8 sps:$4 sm:$0xff]  }
 0x317   : > { %11250 = vmatpush1.bf16.msra.mxu0 %v13209_v30  ;;  %10778 = vmatprep.subr.bf16.mxu1 %v13214_v31  ;;  %v13305_v30 = vld [vmem:[%s15523_s6 + $0x1150] ss:$8 sps:$4 sm:$0xff]   ;;  %v13310_v31 = vld [vmem:[%s15523_s6 + $0x664] ss:$8 sps:$4 sm:$0xff]  }
 0x318   : > { %11251 = vmatprep.subr.bf16.mxu0 %v13217_v32  ;;  %v13313_v32 = vld [vmem:[%s15523_s6 + $0x1164] ss:$8 sps:$4 sm:$0xff]  }
 0x31a   : > { %10779 = vmatpush1.bf16.msra.mxu1 %v13212_v33  ;;  %v13308_v33 = vld [vmem:[%s15523_s6 + $0x660] ss:$8 sps:$4 sm:$0xff]  }
 0x31b   : > { %11252 = vmatpush1.bf16.msra.mxu0 %v13215_v34  ;;  %10780 = vmatprep.subr.bf16.mxu1 %v13220_v35  ;;  %v13311_v34 = vld [vmem:[%s15523_s6 + $0x1160] ss:$8 sps:$4 sm:$0xff]   ;;  %v13316_v35 = vld [vmem:[%s15523_s6 + $0x674] ss:$8 sps:$4 sm:$0xff]  }
 0x31c   : > { %11253 = vmatprep.subr.bf16.mxu0 %v13223_v36  ;;  %v13319_v36 = vld [vmem:[%s15523_s6 + $0x1174] ss:$8 sps:$4 sm:$0xff]  }
 0x31e   : > { %10781 = vmatpush1.bf16.msra.mxu1 %v13218_v37  ;;  %v13314_v37 = vld [vmem:[%s15523_s6 + $0x670] ss:$8 sps:$4 sm:$0xff]  }
 0x31f   : > { %11254 = vmatpush1.bf16.msra.mxu0 %v13221_v38  ;;  %10782 = vmatprep.subr.bf16.mxu1 %v13226_v39  ;;  %v13317_v38 = vld [vmem:[%s15523_s6 + $0x1170] ss:$8 sps:$4 sm:$0xff]   ;;  %v13322_v39 = vld [vmem:[%s15523_s6 + $0x684] ss:$8 sps:$4 sm:$0xff]  }
 0x320   : > { %11255 = vmatprep.subr.bf16.mxu0 %v13229_v40  ;;  %v13325_v40 = vld [vmem:[%s15523_s6 + $0x1184] ss:$8 sps:$4 sm:$0xff]  }
 0x322   : > { %10783 = vmatpush1.bf16.msra.mxu1 %v13224_v41  ;;  %v13320_v41 = vld [vmem:[%s15523_s6 + $0x680] ss:$8 sps:$4 sm:$0xff]  }
 0x323   : > { %11256 = vmatpush1.bf16.msra.mxu0 %v13227_v42  ;;  %10784 = vmatprep.subr.bf16.mxu1 %v13232_v43  ;;  %v13323_v42 = vld [vmem:[%s15523_s6 + $0x1180] ss:$8 sps:$4 sm:$0xff]   ;;  %v13328_v43 = vld [vmem:[%s15523_s6 + $0x694] ss:$8 sps:$4 sm:$0xff]  }
 0x324   : > { %11257 = vmatprep.subr.bf16.mxu0 %v13235_v44  ;;  %v13331_v44 = vld [vmem:[%s15523_s6 + $0x1194] ss:$8 sps:$4 sm:$0xff]  }
 0x326   : > { %10785 = vmatpush1.bf16.msra.mxu1 %v13230_v45  ;;  %v13326_v45 = vld [vmem:[%s15523_s6 + $0x690] ss:$8 sps:$4 sm:$0xff]  }
 0x327   : > { %11258 = vmatpush1.bf16.msra.mxu0 %v13233_v46  ;;  %10786 = vmatprep.subr.bf16.mxu1 %v13238_v47  ;;  %v13329_v46 = vld [vmem:[%s15523_s6 + $0x1190] ss:$8 sps:$4 sm:$0xff]   ;;  %v13334_v47 = vld [vmem:[%s15523_s6 + $0x6a4] ss:$8 sps:$4 sm:$0xff]  }
 0x328   : > { %11259 = vmatprep.subr.bf16.mxu0 %v13241_v48  ;;  %v13337_v48 = vld [vmem:[%s15523_s6 + $0x11a4] ss:$8 sps:$4 sm:$0xff]  }
 0x32a   : > { %10787 = vmatpush1.bf16.msra.mxu1 %v13236_v49  ;;  %v13332_v49 = vld [vmem:[%s15523_s6 + $0x6a0] ss:$8 sps:$4 sm:$0xff]  }
 0x32b   : > { %11260 = vmatpush1.bf16.msra.mxu0 %v13239_v50  ;;  %10788 = vmatprep.subr.bf16.mxu1 %v13244_v51  ;;  %v13335_v50 = vld [vmem:[%s15523_s6 + $0x11a0] ss:$8 sps:$4 sm:$0xff]   ;;  %v13340_v51 = vld [vmem:[%s15523_s6 + $0x6b4] ss:$8 sps:$4 sm:$0xff]  }
 0x32c   : > { %11261 = vmatprep.subr.bf16.mxu0 %v13247_v52  ;;  %v13343_v52 = vld [vmem:[%s15523_s6 + $0x11b4] ss:$8 sps:$4 sm:$0xff]  }
 0x32e   : > { %10789 = vmatpush1.bf16.msra.mxu1 %v13242_v53  ;;  %v13338_v53 = vld [vmem:[%s15523_s6 + $0x6b0] ss:$8 sps:$4 sm:$0xff]  }
 0x32f   : > { %11262 = vmatpush1.bf16.msra.mxu0 %v13245_v54  ;;  %10790 = vmatprep.subr.bf16.mxu1 %v13250_v55  ;;  %v13341_v54 = vld [vmem:[%s15523_s6 + $0x11b0] ss:$8 sps:$4 sm:$0xff]   ;;  %v13346_v55 = vld [vmem:[%s15523_s6 + $0x6c4] ss:$8 sps:$4 sm:$0xff]  }
 0x330   : > { %11263 = vmatprep.subr.bf16.mxu0 %v13253_v56  ;;  %v13349_v56 = vld [vmem:[%s15523_s6 + $0x11c4] ss:$8 sps:$4 sm:$0xff]  }
 0x332   : > { %10791 = vmatpush1.bf16.msra.mxu1 %v13248_v57  ;;  %v13344_v57 = vld [vmem:[%s15523_s6 + $0x6c0] ss:$8 sps:$4 sm:$0xff]  }
 0x333   : > { %11264 = vmatpush1.bf16.msra.mxu0 %v13251_v58  ;;  %10792 = vmatprep.subr.bf16.mxu1 %v13256_v59  ;;  %v13347_v58 = vld [vmem:[%s15523_s6 + $0x11c0] ss:$8 sps:$4 sm:$0xff]   ;;  %v13352_v59 = vld [vmem:[%s15523_s6 + $0x6d4] ss:$8 sps:$4 sm:$0xff]  }
 0x334   : > { %11265 = vmatprep.subr.bf16.mxu0 %v13259_v60  ;;  %v13355_v60 = vld [vmem:[%s15523_s6 + $0x11d4] ss:$8 sps:$4 sm:$0xff]  }
 0x336   : > { %10793 = vmatpush1.bf16.msra.mxu1 %v13254_v61  ;;  %v13350_v61 = vld [vmem:[%s15523_s6 + $0x6d0] ss:$8 sps:$4 sm:$0xff]  }
 0x337   : > { %11266 = vmatpush1.bf16.msra.mxu0 %v13257_v62  ;;  %10794 = vmatprep.subr.bf16.mxu1 %v13262_v63  ;;  %v13353_v62 = vld [vmem:[%s15523_s6 + $0x11d0] ss:$8 sps:$4 sm:$0xff]   ;;  %v13358_v63 = vld [vmem:[%s15523_s6 + $0x6e4] ss:$8 sps:$4 sm:$0xff]  }
 0x338   : > { %11267 = vmatprep.subr.bf16.mxu0 %v13265_v0  ;;  %v13361_v0 = vld [vmem:[%s15523_s6 + $0x11e4] ss:$8 sps:$4 sm:$0xff]  }
 0x33a   : > { %10795 = vmatpush1.bf16.msra.mxu1 %v13260_v1  ;;  %v13356_v1 = vld [vmem:[%s15523_s6 + $0x6e0] ss:$8 sps:$4 sm:$0xff]  }
 0x33b   : > { %11268 = vmatpush1.bf16.msra.mxu0 %v13263_v2  ;;  %10807 = vmatprep.subr.bf16.mxu1 %v13271_v3  ;;  %v13359_v2 = vld [vmem:[%s15523_s6 + $0x11e0] ss:$8 sps:$4 sm:$0xff]   ;;  %v13364_v3 = vld [vmem:[%s15523_s6 + $0x6f4] ss:$8 sps:$4 sm:$0xff]  }
 0x33c   : > { %11280 = vmatprep.subr.bf16.mxu0 %v13277_v6  ;;  %v13365_v6 = vld [vmem:[%s15523_s6 + $0x11f0] ss:$8 sps:$4 sm:$0xff]  }
 0x33d   : > { %10797 = vmatmul.mubr.bf16.vlgmr.msra.gmra.mrb[0].mxu1 %v13266_v4  ;;  %v13367_v4 = vld [vmem:[%s15523_s6 + $0x11f4] ss:$8 sps:$4 sm:$0xff]  }
 0x33e   : > { %11270 = vmatmul.mubr.bf16.vlgmr.msra.gmra.mrb[0].mxu0 %v13272_v5  ;;  %10808 = vmatpush1.bf16.msra.mxu1 %v13269_v7  ;;  %v13362_v5 = vld [vmem:[%s15523_s6 + $0x6f0] ss:$8 sps:$4 sm:$0xff]   ;;  %v13373_v7 = vld [vmem:[%s15523_s6 + $0x704] ss:$8 sps:$4 sm:$0xff]  }
 0x33f   : > { %11281 = vmatpush1.bf16.msra.mxu0 %v13275_v8  ;;  %10809 = vmatprep.subr.bf16.mxu1 %v13280_v9  ;;  %v13368_v8 = vld [vmem:[%s15521_s4 + $0x30] ss:$176 sps:$4 sm:$0xff]   ;;  %v13374_v9 = vld [vmem:[%s15521_s4 + $0x88] ss:$176 sps:$4 sm:$0xff]  }
 0x340   : > { %11282 = vmatprep.subr.bf16.mxu0 %v13283_v10  ;;  %10839 = vmatprep.mubr.bf16.mxu1 %v13370_v11  ;;  %v13379_v10 = vld [vmem:[%s15523_s6 + $0x1204] ss:$8 sps:$4 sm:$0xff]   ;;  %v13371_v11 = vld [vmem:[%s15523_s6 + $0x700] ss:$8 sps:$4 sm:$0xff]  }
 0x341   : > { %11312 = vmatprep.mubr.bf16.mxu0 %v13376_v12  ;;  %v13377_v12 = vld [vmem:[%s15523_s6 + $0x1200] ss:$8 sps:$4 sm:$0xff]  }
 0x342   : > { %10810 = vmatpush1.bf16.msra.mxu1 %v13278_v13  ;;  %v13382_v13 = vld [vmem:[%s15523_s6 + $0x714] ss:$8 sps:$4 sm:$0xff]  }
 0x343   : > { %11283 = vmatpush1.bf16.msra.mxu0 %v13281_v14  ;;  %10811 = vmatprep.subr.bf16.mxu1 %v13286_v15  ;;  %v13385_v14 = vld [vmem:[%s15523_s6 + $0x1214] ss:$8 sps:$4 sm:$0xff]  }
 0x344   : > { %11284 = vmatprep.subr.bf16.mxu0 %v13289_v16  ;;  %v13472_v15 = vld [vmem:[%s15521_s4 + $0x3c] ss:$176 sps:$4 sm:$0xff]   ;;  %v13478_v16 = vld [vmem:[%s15521_s4 + $0x94] ss:$176 sps:$4 sm:$0xff]  }
 0x346   : > { %10812 = vmatpush1.bf16.msra.mxu1 %v13284_v17  ;;  %v13380_v17 = vld [vmem:[%s15523_s6 + $0x710] ss:$8 sps:$4 sm:$0xff]  }
 0x347   : > { %11285 = vmatpush1.bf16.msra.mxu0 %v13287_v18  ;;  %10813 = vmatprep.subr.bf16.mxu1 %v13292_v19  ;;  %v13383_v18 = vld [vmem:[%s15523_s6 + $0x1210] ss:$8 sps:$4 sm:$0xff]   ;;  %v13388_v19 = vld [vmem:[%s15523_s6 + $0x724] ss:$8 sps:$4 sm:$0xff]  }
 0x348   : > { %11286 = vmatprep.subr.bf16.mxu0 %v13295_v20  ;;  %v13391_v20 = vld [vmem:[%s15523_s6 + $0x1224] ss:$8 sps:$4 sm:$0xff]  }
 0x34a   : > { %10814 = vmatpush1.bf16.msra.mxu1 %v13290_v21  ;;  %v13386_v21 = vld [vmem:[%s15523_s6 + $0x720] ss:$8 sps:$4 sm:$0xff]  }
 0x34b   : > { %11287 = vmatpush1.bf16.msra.mxu0 %v13293_v22  ;;  %10815 = vmatprep.subr.bf16.mxu1 %v13298_v23  ;;  %v13389_v22 = vld [vmem:[%s15523_s6 + $0x1220] ss:$8 sps:$4 sm:$0xff]   ;;  %v13394_v23 = vld [vmem:[%s15523_s6 + $0x734] ss:$8 sps:$4 sm:$0xff]  }
 0x34c   : > { %11288 = vmatprep.subr.bf16.mxu0 %v13301_v24  ;;  %v13397_v24 = vld [vmem:[%s15523_s6 + $0x1234] ss:$8 sps:$4 sm:$0xff]  }
 0x34e   : > { %10816 = vmatpush1.bf16.msra.mxu1 %v13296_v25  ;;  %v13392_v25 = vld [vmem:[%s15523_s6 + $0x730] ss:$8 sps:$4 sm:$0xff]  }
 0x34f   : > { %11289 = vmatpush1.bf16.msra.mxu0 %v13299_v26  ;;  %10817 = vmatprep.subr.bf16.mxu1 %v13304_v27  ;;  %v13395_v26 = vld [vmem:[%s15523_s6 + $0x1230] ss:$8 sps:$4 sm:$0xff]   ;;  %v13400_v27 = vld [vmem:[%s15523_s6 + $0x744] ss:$8 sps:$4 sm:$0xff]  }
 0x350   : > { %11290 = vmatprep.subr.bf16.mxu0 %v13307_v28  ;;  %v13403_v28 = vld [vmem:[%s15523_s6 + $0x1244] ss:$8 sps:$4 sm:$0xff]  }
 0x352   : > { %10818 = vmatpush1.bf16.msra.mxu1 %v13302_v29  ;;  %v13398_v29 = vld [vmem:[%s15523_s6 + $0x740] ss:$8 sps:$4 sm:$0xff]  }
 0x353   : > { %11291 = vmatpush1.bf16.msra.mxu0 %v13305_v30  ;;  %10819 = vmatprep.subr.bf16.mxu1 %v13310_v31  ;;  %v13401_v30 = vld [vmem:[%s15523_s6 + $0x1240] ss:$8 sps:$4 sm:$0xff]   ;;  %v13406_v31 = vld [vmem:[%s15523_s6 + $0x754] ss:$8 sps:$4 sm:$0xff]  }
 0x354   : > { %11292 = vmatprep.subr.bf16.mxu0 %v13313_v32  ;;  %v13409_v32 = vld [vmem:[%s15523_s6 + $0x1254] ss:$8 sps:$4 sm:$0xff]  }
 0x356   : > { %10820 = vmatpush1.bf16.msra.mxu1 %v13308_v33  ;;  %v13404_v33 = vld [vmem:[%s15523_s6 + $0x750] ss:$8 sps:$4 sm:$0xff]  }
 0x357   : > { %11293 = vmatpush1.bf16.msra.mxu0 %v13311_v34  ;;  %10821 = vmatprep.subr.bf16.mxu1 %v13316_v35  ;;  %v13407_v34 = vld [vmem:[%s15523_s6 + $0x1250] ss:$8 sps:$4 sm:$0xff]   ;;  %v13412_v35 = vld [vmem:[%s15523_s6 + $0x764] ss:$8 sps:$4 sm:$0xff]  }
 0x358   : > { %11294 = vmatprep.subr.bf16.mxu0 %v13319_v36  ;;  %v13415_v36 = vld [vmem:[%s15523_s6 + $0x1264] ss:$8 sps:$4 sm:$0xff]  }
 0x35a   : > { %10822 = vmatpush1.bf16.msra.mxu1 %v13314_v37  ;;  %v13410_v37 = vld [vmem:[%s15523_s6 + $0x760] ss:$8 sps:$4 sm:$0xff]  }
 0x35b   : > { %11295 = vmatpush1.bf16.msra.mxu0 %v13317_v38  ;;  %10823 = vmatprep.subr.bf16.mxu1 %v13322_v39  ;;  %v13413_v38 = vld [vmem:[%s15523_s6 + $0x1260] ss:$8 sps:$4 sm:$0xff]   ;;  %v13418_v39 = vld [vmem:[%s15523_s6 + $0x774] ss:$8 sps:$4 sm:$0xff]  }
 0x35c   : > { %11296 = vmatprep.subr.bf16.mxu0 %v13325_v40  ;;  %v13421_v40 = vld [vmem:[%s15523_s6 + $0x1274] ss:$8 sps:$4 sm:$0xff]  }
 0x35e   : > { %10824 = vmatpush1.bf16.msra.mxu1 %v13320_v41  ;;  %v13416_v41 = vld [vmem:[%s15523_s6 + $0x770] ss:$8 sps:$4 sm:$0xff]  }
 0x35f   : > { %11297 = vmatpush1.bf16.msra.mxu0 %v13323_v42  ;;  %10825 = vmatprep.subr.bf16.mxu1 %v13328_v43  ;;  %v13419_v42 = vld [vmem:[%s15523_s6 + $0x1270] ss:$8 sps:$4 sm:$0xff]   ;;  %v13424_v43 = vld [vmem:[%s15523_s6 + $0x784] ss:$8 sps:$4 sm:$0xff]  }
 0x360   : > { %11298 = vmatprep.subr.bf16.mxu0 %v13331_v44  ;;  %v13427_v44 = vld [vmem:[%s15523_s6 + $0x1284] ss:$8 sps:$4 sm:$0xff]  }
 0x362   : > { %10826 = vmatpush1.bf16.msra.mxu1 %v13326_v45  ;;  %v13422_v45 = vld [vmem:[%s15523_s6 + $0x780] ss:$8 sps:$4 sm:$0xff]  }
 0x363   : > { %11299 = vmatpush1.bf16.msra.mxu0 %v13329_v46  ;;  %10827 = vmatprep.subr.bf16.mxu1 %v13334_v47  ;;  %v13425_v46 = vld [vmem:[%s15523_s6 + $0x1280] ss:$8 sps:$4 sm:$0xff]   ;;  %v13430_v47 = vld [vmem:[%s15523_s6 + $0x794] ss:$8 sps:$4 sm:$0xff]  }
 0x364   : > { %11300 = vmatprep.subr.bf16.mxu0 %v13337_v48  ;;  %v13433_v48 = vld [vmem:[%s15523_s6 + $0x1294] ss:$8 sps:$4 sm:$0xff]  }
 0x366   : > { %10828 = vmatpush1.bf16.msra.mxu1 %v13332_v49  ;;  %v13428_v49 = vld [vmem:[%s15523_s6 + $0x790] ss:$8 sps:$4 sm:$0xff]  }
 0x367   : > { %11301 = vmatpush1.bf16.msra.mxu0 %v13335_v50  ;;  %10829 = vmatprep.subr.bf16.mxu1 %v13340_v51  ;;  %v13431_v50 = vld [vmem:[%s15523_s6 + $0x1290] ss:$8 sps:$4 sm:$0xff]   ;;  %v13436_v51 = vld [vmem:[%s15523_s6 + $0x7a4] ss:$8 sps:$4 sm:$0xff]  }
 0x368   : > { %11302 = vmatprep.subr.bf16.mxu0 %v13343_v52  ;;  %v13439_v52 = vld [vmem:[%s15523_s6 + $0x12a4] ss:$8 sps:$4 sm:$0xff]  }
 0x36a   : > { %10830 = vmatpush1.bf16.msra.mxu1 %v13338_v53  ;;  %v13434_v53 = vld [vmem:[%s15523_s6 + $0x7a0] ss:$8 sps:$4 sm:$0xff]  }
 0x36b   : > { %11303 = vmatpush1.bf16.msra.mxu0 %v13341_v54  ;;  %10831 = vmatprep.subr.bf16.mxu1 %v13346_v55  ;;  %v13437_v54 = vld [vmem:[%s15523_s6 + $0x12a0] ss:$8 sps:$4 sm:$0xff]   ;;  %v13442_v55 = vld [vmem:[%s15523_s6 + $0x7b4] ss:$8 sps:$4 sm:$0xff]  }
 0x36c   : > { %11304 = vmatprep.subr.bf16.mxu0 %v13349_v56  ;;  %v13445_v56 = vld [vmem:[%s15523_s6 + $0x12b4] ss:$8 sps:$4 sm:$0xff]  }
 0x36e   : > { %10832 = vmatpush1.bf16.msra.mxu1 %v13344_v57  ;;  %v13440_v57 = vld [vmem:[%s15523_s6 + $0x7b0] ss:$8 sps:$4 sm:$0xff]  }
 0x36f   : > { %11305 = vmatpush1.bf16.msra.mxu0 %v13347_v58  ;;  %10833 = vmatprep.subr.bf16.mxu1 %v13352_v59  ;;  %v13443_v58 = vld [vmem:[%s15523_s6 + $0x12b0] ss:$8 sps:$4 sm:$0xff]   ;;  %v13448_v59 = vld [vmem:[%s15523_s6 + $0x7c4] ss:$8 sps:$4 sm:$0xff]  }
 0x370   : > { %11306 = vmatprep.subr.bf16.mxu0 %v13355_v60  ;;  %v13451_v60 = vld [vmem:[%s15523_s6 + $0x12c4] ss:$8 sps:$4 sm:$0xff]  }
 0x372   : > { %10834 = vmatpush1.bf16.msra.mxu1 %v13350_v61  ;;  %v13446_v61 = vld [vmem:[%s15523_s6 + $0x7c0] ss:$8 sps:$4 sm:$0xff]  }
 0x373   : > { %11307 = vmatpush1.bf16.msra.mxu0 %v13353_v62  ;;  %10835 = vmatprep.subr.bf16.mxu1 %v13358_v63  ;;  %v13449_v62 = vld [vmem:[%s15523_s6 + $0x12c0] ss:$8 sps:$4 sm:$0xff]   ;;  %v13454_v63 = vld [vmem:[%s15523_s6 + $0x7d4] ss:$8 sps:$4 sm:$0xff]  }
 0x374   : > { %11308 = vmatprep.subr.bf16.mxu0 %v13361_v0  ;;  %v13457_v0 = vld [vmem:[%s15523_s6 + $0x12d4] ss:$8 sps:$4 sm:$0xff]  }
 0x376   : > { %10836 = vmatpush1.bf16.msra.mxu1 %v13356_v1  ;;  %v13452_v1 = vld [vmem:[%s15523_s6 + $0x7d0] ss:$8 sps:$4 sm:$0xff]  }
 0x377   : > { %11309 = vmatpush1.bf16.msra.mxu0 %v13359_v2  ;;  %10837 = vmatprep.subr.bf16.mxu1 %v13364_v3  ;;  %v13455_v2 = vld [vmem:[%s15523_s6 + $0x12d0] ss:$8 sps:$4 sm:$0xff]   ;;  %v13460_v3 = vld [vmem:[%s15523_s6 + $0x7e4] ss:$8 sps:$4 sm:$0xff]  }
 0x378   : > { %11310 = vmatprep.subr.bf16.mxu0 %v13367_v4  ;;  %v13463_v4 = vld [vmem:[%s15523_s6 + $0x12e4] ss:$8 sps:$4 sm:$0xff]  }
 0x37a   : > { %10838 = vmatpush1.bf16.msra.mxu1 %v13362_v5  ;;  %v13458_v5 = vld [vmem:[%s15523_s6 + $0x7e0] ss:$8 sps:$4 sm:$0xff]  }
 0x37b   : > { %11311 = vmatpush1.bf16.msra.mxu0 %v13365_v6  ;;  %10850 = vmatprep.subr.bf16.mxu1 %v13373_v7  ;;  %v13461_v6 = vld [vmem:[%s15523_s6 + $0x12e0] ss:$8 sps:$4 sm:$0xff]   ;;  %v13466_v7 = vld [vmem:[%s15523_s6 + $0x7f4] ss:$8 sps:$4 sm:$0xff]  }
 0x37c   : > { %11323 = vmatprep.subr.bf16.mxu0 %v13379_v10  ;;  %v13467_v10 = vld [vmem:[%s15523_s6 + $0x12f0] ss:$8 sps:$4 sm:$0xff]  }
 0x37d   : > { %10840 = vmatmul.mubr.bf16.vlgmr.msra.gmra.mrb[0].mxu1 %v13368_v8  ;;  %v13469_v8 = vld [vmem:[%s15523_s6 + $0x12f4] ss:$8 sps:$4 sm:$0xff]  }
 0x37e   : > { %11313 = vmatmul.mubr.bf16.vlgmr.msra.gmra.mrb[0].mxu0 %v13374_v9  ;;  %10851 = vmatpush1.bf16.msra.mxu1 %v13371_v11  ;;  %v13464_v9 = vld [vmem:[%s15523_s6 + $0x7f0] ss:$8 sps:$4 sm:$0xff]   ;;  %v13475_v11 = vld [vmem:[%s15523_s6 + $0x804] ss:$8 sps:$4 sm:$0xff]  }
 0x37f   : > { %11324 = vmatpush1.bf16.msra.mxu0 %v13377_v12  ;;  %10852 = vmatprep.subr.bf16.mxu1 %v13382_v13  ;;  %v13481_v12 = vld [vmem:[%s15523_s6 + $0x1304] ss:$8 sps:$4 sm:$0xff]   ;;  %v13470_v13 = vld [vmem:[%s15521_s4 + $0x38] ss:$176 sps:$4 sm:$0xff]  }
 0x380   : > { %11325 = vmatprep.subr.bf16.mxu0 %v13385_v14  ;;  %10882 = vmatprep.mubr.bf16.mxu1 %v13472_v15  ;;  %v13476_v14 = vld [vmem:[%s15521_s4 + $0x90] ss:$176 sps:$4 sm:$0xff]  }
 0x381   : > { %11355 = vmatprep.mubr.bf16.mxu0 %v13478_v16  ;;  %v13473_v15 = vld [vmem:[%s15523_s6 + $0x800] ss:$8 sps:$4 sm:$0xff]  }
 0x382   : > { %10853 = vmatpush1.bf16.msra.mxu1 %v13380_v17  ;;  %v13479_v16 = vld [vmem:[%s15523_s6 + $0x1300] ss:$8 sps:$4 sm:$0xff]   ;;  %v13484_v17 = vld [vmem:[%s15523_s6 + $0x814] ss:$8 sps:$4 sm:$0xff]  }
 0x383   : > { %11326 = vmatpush1.bf16.msra.mxu0 %v13383_v18  ;;  %10854 = vmatprep.subr.bf16.mxu1 %v13388_v19  ;;  %v13487_v18 = vld [vmem:[%s15523_s6 + $0x1314] ss:$8 sps:$4 sm:$0xff]  }
 0x384   : > { %11327 = vmatprep.subr.bf16.mxu0 %v13391_v20  ;;  %v13574_v19 = vld [vmem:[%s15521_s4 + $0x44] ss:$176 sps:$4 sm:$0xff]   ;;  %v13580_v20 = vld [vmem:[%s15521_s4 + $0x9c] ss:$176 sps:$4 sm:$0xff]  }
 0x386   : > { %10855 = vmatpush1.bf16.msra.mxu1 %v13386_v21  ;;  %v13482_v21 = vld [vmem:[%s15523_s6 + $0x810] ss:$8 sps:$4 sm:$0xff]  }
 0x387   : > { %11328 = vmatpush1.bf16.msra.mxu0 %v13389_v22  ;;  %10856 = vmatprep.subr.bf16.mxu1 %v13394_v23  ;;  %v13485_v22 = vld [vmem:[%s15523_s6 + $0x1310] ss:$8 sps:$4 sm:$0xff]   ;;  %v13490_v23 = vld [vmem:[%s15523_s6 + $0x824] ss:$8 sps:$4 sm:$0xff]  }
 0x388   : > { %11329 = vmatprep.subr.bf16.mxu0 %v13397_v24  ;;  %v13493_v24 = vld [vmem:[%s15523_s6 + $0x1324] ss:$8 sps:$4 sm:$0xff]  }
 0x38a   : > { %10857 = vmatpush1.bf16.msra.mxu1 %v13392_v25  ;;  %v13488_v25 = vld [vmem:[%s15523_s6 + $0x820] ss:$8 sps:$4 sm:$0xff]  }
 0x38b   : > { %11330 = vmatpush1.bf16.msra.mxu0 %v13395_v26  ;;  %10858 = vmatprep.subr.bf16.mxu1 %v13400_v27  ;;  %v13491_v26 = vld [vmem:[%s15523_s6 + $0x1320] ss:$8 sps:$4 sm:$0xff]   ;;  %v13496_v27 = vld [vmem:[%s15523_s6 + $0x834] ss:$8 sps:$4 sm:$0xff]  }
 0x38c   : > { %11331 = vmatprep.subr.bf16.mxu0 %v13403_v28  ;;  %v13499_v28 = vld [vmem:[%s15523_s6 + $0x1334] ss:$8 sps:$4 sm:$0xff]  }
 0x38e   : > { %10859 = vmatpush1.bf16.msra.mxu1 %v13398_v29  ;;  %v13494_v29 = vld [vmem:[%s15523_s6 + $0x830] ss:$8 sps:$4 sm:$0xff]  }
 0x38f   : > { %11332 = vmatpush1.bf16.msra.mxu0 %v13401_v30  ;;  %10860 = vmatprep.subr.bf16.mxu1 %v13406_v31  ;;  %v13497_v30 = vld [vmem:[%s15523_s6 + $0x1330] ss:$8 sps:$4 sm:$0xff]   ;;  %v13502_v31 = vld [vmem:[%s15523_s6 + $0x844] ss:$8 sps:$4 sm:$0xff]  }
 0x390   : > { %11333 = vmatprep.subr.bf16.mxu0 %v13409_v32  ;;  %v13505_v32 = vld [vmem:[%s15523_s6 + $0x1344] ss:$8 sps:$4 sm:$0xff]  }
 0x392   : > { %10861 = vmatpush1.bf16.msra.mxu1 %v13404_v33  ;;  %v13500_v33 = vld [vmem:[%s15523_s6 + $0x840] ss:$8 sps:$4 sm:$0xff]  }
 0x393   : > { %11334 = vmatpush1.bf16.msra.mxu0 %v13407_v34  ;;  %10862 = vmatprep.subr.bf16.mxu1 %v13412_v35  ;;  %v13503_v34 = vld [vmem:[%s15523_s6 + $0x1340] ss:$8 sps:$4 sm:$0xff]   ;;  %v13508_v35 = vld [vmem:[%s15523_s6 + $0x854] ss:$8 sps:$4 sm:$0xff]  }
 0x394   : > { %11335 = vmatprep.subr.bf16.mxu0 %v13415_v36  ;;  %v13511_v36 = vld [vmem:[%s15523_s6 + $0x1354] ss:$8 sps:$4 sm:$0xff]  }
 0x396   : > { %10863 = vmatpush1.bf16.msra.mxu1 %v13410_v37  ;;  %v13506_v37 = vld [vmem:[%s15523_s6 + $0x850] ss:$8 sps:$4 sm:$0xff]  }
 0x397   : > { %11336 = vmatpush1.bf16.msra.mxu0 %v13413_v38  ;;  %10864 = vmatprep.subr.bf16.mxu1 %v13418_v39  ;;  %v13509_v38 = vld [vmem:[%s15523_s6 + $0x1350] ss:$8 sps:$4 sm:$0xff]   ;;  %v13514_v39 = vld [vmem:[%s15523_s6 + $0x864] ss:$8 sps:$4 sm:$0xff]  }
 0x398   : > { %11337 = vmatprep.subr.bf16.mxu0 %v13421_v40  ;;  %v13517_v40 = vld [vmem:[%s15523_s6 + $0x1364] ss:$8 sps:$4 sm:$0xff]  }
 0x39a   : > { %10865 = vmatpush1.bf16.msra.mxu1 %v13416_v41  ;;  %v13512_v41 = vld [vmem:[%s15523_s6 + $0x860] ss:$8 sps:$4 sm:$0xff]  }
 0x39b   : > { %11338 = vmatpush1.bf16.msra.mxu0 %v13419_v42  ;;  %10866 = vmatprep.subr.bf16.mxu1 %v13424_v43  ;;  %v13515_v42 = vld [vmem:[%s15523_s6 + $0x1360] ss:$8 sps:$4 sm:$0xff]   ;;  %v13520_v43 = vld [vmem:[%s15523_s6 + $0x874] ss:$8 sps:$4 sm:$0xff]  }
 0x39c   : > { %11339 = vmatprep.subr.bf16.mxu0 %v13427_v44  ;;  %v13523_v44 = vld [vmem:[%s15523_s6 + $0x1374] ss:$8 sps:$4 sm:$0xff]  }
 0x39e   : > { %10867 = vmatpush1.bf16.msra.mxu1 %v13422_v45  ;;  %v13518_v45 = vld [vmem:[%s15523_s6 + $0x870] ss:$8 sps:$4 sm:$0xff]  }
 0x39f   : > { %11340 = vmatpush1.bf16.msra.mxu0 %v13425_v46  ;;  %10868 = vmatprep.subr.bf16.mxu1 %v13430_v47  ;;  %v13521_v46 = vld [vmem:[%s15523_s6 + $0x1370] ss:$8 sps:$4 sm:$0xff]   ;;  %v13526_v47 = vld [vmem:[%s15523_s6 + $0x884] ss:$8 sps:$4 sm:$0xff]  }
 0x3a0   : > { %11341 = vmatprep.subr.bf16.mxu0 %v13433_v48  ;;  %v13529_v48 = vld [vmem:[%s15523_s6 + $0x1384] ss:$8 sps:$4 sm:$0xff]  }
 0x3a2   : > { %10869 = vmatpush1.bf16.msra.mxu1 %v13428_v49  ;;  %v13524_v49 = vld [vmem:[%s15523_s6 + $0x880] ss:$8 sps:$4 sm:$0xff]  }
 0x3a3   : > { %11342 = vmatpush1.bf16.msra.mxu0 %v13431_v50  ;;  %10870 = vmatprep.subr.bf16.mxu1 %v13436_v51  ;;  %v13527_v50 = vld [vmem:[%s15523_s6 + $0x1380] ss:$8 sps:$4 sm:$0xff]   ;;  %v13532_v51 = vld [vmem:[%s15523_s6 + $0x894] ss:$8 sps:$4 sm:$0xff]  }
 0x3a4   : > { %11343 = vmatprep.subr.bf16.mxu0 %v13439_v52  ;;  %v13535_v52 = vld [vmem:[%s15523_s6 + $0x1394] ss:$8 sps:$4 sm:$0xff]  }
 0x3a6   : > { %10871 = vmatpush1.bf16.msra.mxu1 %v13434_v53  ;;  %v13530_v53 = vld [vmem:[%s15523_s6 + $0x890] ss:$8 sps:$4 sm:$0xff]  }
 0x3a7   : > { %11344 = vmatpush1.bf16.msra.mxu0 %v13437_v54  ;;  %10872 = vmatprep.subr.bf16.mxu1 %v13442_v55  ;;  %v13533_v54 = vld [vmem:[%s15523_s6 + $0x1390] ss:$8 sps:$4 sm:$0xff]   ;;  %v13538_v55 = vld [vmem:[%s15523_s6 + $0x8a4] ss:$8 sps:$4 sm:$0xff]  }
 0x3a8   : > { %11345 = vmatprep.subr.bf16.mxu0 %v13445_v56  ;;  %v13541_v56 = vld [vmem:[%s15523_s6 + $0x13a4] ss:$8 sps:$4 sm:$0xff]  }
 0x3aa   : > { %10873 = vmatpush1.bf16.msra.mxu1 %v13440_v57  ;;  %v13536_v57 = vld [vmem:[%s15523_s6 + $0x8a0] ss:$8 sps:$4 sm:$0xff]  }
 0x3ab   : > { %11346 = vmatpush1.bf16.msra.mxu0 %v13443_v58  ;;  %10874 = vmatprep.subr.bf16.mxu1 %v13448_v59  ;;  %v13539_v58 = vld [vmem:[%s15523_s6 + $0x13a0] ss:$8 sps:$4 sm:$0xff]   ;;  %v13544_v59 = vld [vmem:[%s15523_s6 + $0x8b4] ss:$8 sps:$4 sm:$0xff]  }
 0x3ac   : > { %11347 = vmatprep.subr.bf16.mxu0 %v13451_v60  ;;  %v13547_v60 = vld [vmem:[%s15523_s6 + $0x13b4] ss:$8 sps:$4 sm:$0xff]  }
 0x3ae   : > { %10875 = vmatpush1.bf16.msra.mxu1 %v13446_v61  ;;  %v13542_v61 = vld [vmem:[%s15523_s6 + $0x8b0] ss:$8 sps:$4 sm:$0xff]  }
 0x3af   : > { %11348 = vmatpush1.bf16.msra.mxu0 %v13449_v62  ;;  %10876 = vmatprep.subr.bf16.mxu1 %v13454_v63  ;;  %v13545_v62 = vld [vmem:[%s15523_s6 + $0x13b0] ss:$8 sps:$4 sm:$0xff]   ;;  %v13550_v63 = vld [vmem:[%s15523_s6 + $0x8c4] ss:$8 sps:$4 sm:$0xff]  }
 0x3b0   : > { %11349 = vmatprep.subr.bf16.mxu0 %v13457_v0  ;;  %v13553_v0 = vld [vmem:[%s15523_s6 + $0x13c4] ss:$8 sps:$4 sm:$0xff]  }
 0x3b2   : > { %10877 = vmatpush1.bf16.msra.mxu1 %v13452_v1  ;;  %v13548_v1 = vld [vmem:[%s15523_s6 + $0x8c0] ss:$8 sps:$4 sm:$0xff]  }
 0x3b3   : > { %11350 = vmatpush1.bf16.msra.mxu0 %v13455_v2  ;;  %10878 = vmatprep.subr.bf16.mxu1 %v13460_v3  ;;  %v13551_v2 = vld [vmem:[%s15523_s6 + $0x13c0] ss:$8 sps:$4 sm:$0xff]   ;;  %v13556_v3 = vld [vmem:[%s15523_s6 + $0x8d4] ss:$8 sps:$4 sm:$0xff]  }
 0x3b4   : > { %11351 = vmatprep.subr.bf16.mxu0 %v13463_v4  ;;  %v13559_v4 = vld [vmem:[%s15523_s6 + $0x13d4] ss:$8 sps:$4 sm:$0xff]  }
 0x3b6   : > { %10879 = vmatpush1.bf16.msra.mxu1 %v13458_v5  ;;  %v13554_v5 = vld [vmem:[%s15523_s6 + $0x8d0] ss:$8 sps:$4 sm:$0xff]  }
 0x3b7   : > { %11352 = vmatpush1.bf16.msra.mxu0 %v13461_v6  ;;  %10880 = vmatprep.subr.bf16.mxu1 %v13466_v7  ;;  %v13557_v6 = vld [vmem:[%s15523_s6 + $0x13d0] ss:$8 sps:$4 sm:$0xff]   ;;  %v13562_v7 = vld [vmem:[%s15523_s6 + $0x8e4] ss:$8 sps:$4 sm:$0xff]  }
 0x3b8   : > { %11353 = vmatprep.subr.bf16.mxu0 %v13469_v8  ;;  %v13565_v8 = vld [vmem:[%s15523_s6 + $0x13e4] ss:$8 sps:$4 sm:$0xff]  }
 0x3ba   : > { %10881 = vmatpush1.bf16.msra.mxu1 %v13464_v9  ;;  %v13560_v9 = vld [vmem:[%s15523_s6 + $0x8e0] ss:$8 sps:$4 sm:$0xff]  }
 0x3bb   : > { %11354 = vmatpush1.bf16.msra.mxu0 %v13467_v10  ;;  %10893 = vmatprep.subr.bf16.mxu1 %v13475_v11  ;;  %v13563_v10 = vld [vmem:[%s15523_s6 + $0x13e0] ss:$8 sps:$4 sm:$0xff]   ;;  %v13568_v11 = vld [vmem:[%s15523_s6 + $0x8f4] ss:$8 sps:$4 sm:$0xff]  }
 0x3bc   : > { %11366 = vmatprep.subr.bf16.mxu0 %v13481_v12  ;;  %v13571_v12 = vld [vmem:[%s15523_s6 + $0x13f4] ss:$8 sps:$4 sm:$0xff]  }
 0x3bd   : > { %10883 = vmatmul.mubr.bf16.vlgmr.msra.gmra.mrb[0].mxu1 %v13470_v13  ;;  %v13566_v13 = vld [vmem:[%s15523_s6 + $0x8f0] ss:$8 sps:$4 sm:$0xff]  }
 0x3be   : > { %11356 = vmatmul.mubr.bf16.vlgmr.msra.gmra.mrb[0].mxu0 %v13476_v14  ;;  %10894 = vmatpush1.bf16.msra.mxu1 %v13473_v15  ;;  %v13569_v14 = vld [vmem:[%s15523_s6 + $0x13f0] ss:$8 sps:$4 sm:$0xff]   ;;  %v13577_v15 = vld [vmem:[%s15523_s6 + $0x904] ss:$8 sps:$4 sm:$0xff]  }
 0x3bf   : > { %11367 = vmatpush1.bf16.msra.mxu0 %v13479_v16  ;;  %10895 = vmatprep.subr.bf16.mxu1 %v13484_v17  ;;  %v13583_v16 = vld [vmem:[%s15523_s6 + $0x1404] ss:$8 sps:$4 sm:$0xff]   ;;  %v13572_v17 = vld [vmem:[%s15521_s4 + $0x40] ss:$176 sps:$4 sm:$0xff]  }
 0x3c0   : > { %11368 = vmatprep.subr.bf16.mxu0 %v13487_v18  ;;  %10925 = vmatprep.mubr.bf16.mxu1 %v13574_v19  ;;  %v13578_v18 = vld [vmem:[%s15521_s4 + $0x98] ss:$176 sps:$4 sm:$0xff]  }
 0x3c1   : > { %11398 = vmatprep.mubr.bf16.mxu0 %v13580_v20  ;;  %v13575_v19 = vld [vmem:[%s15523_s6 + $0x900] ss:$8 sps:$4 sm:$0xff]  }
 0x3c2   : > { %10896 = vmatpush1.bf16.msra.mxu1 %v13482_v21  ;;  %v13581_v20 = vld [vmem:[%s15523_s6 + $0x1400] ss:$8 sps:$4 sm:$0xff]   ;;  %v13586_v21 = vld [vmem:[%s15523_s6 + $0x914] ss:$8 sps:$4 sm:$0xff]  }
 0x3c3   : > { %11369 = vmatpush1.bf16.msra.mxu0 %v13485_v22  ;;  %10897 = vmatprep.subr.bf16.mxu1 %v13490_v23  ;;  %v13589_v22 = vld [vmem:[%s15523_s6 + $0x1414] ss:$8 sps:$4 sm:$0xff]  }
 0x3c4   : > { %11370 = vmatprep.subr.bf16.mxu0 %v13493_v24  ;;  %v13676_v23 = vld [vmem:[%s15521_s4 + $0x4c] ss:$176 sps:$4 sm:$0xff]   ;;  %v13682_v24 = vld [vmem:[%s15521_s4 + $0xa4] ss:$176 sps:$4 sm:$0xff]  }
 0x3c6   : > { %10898 = vmatpush1.bf16.msra.mxu1 %v13488_v25  ;;  %v13584_v25 = vld [vmem:[%s15523_s6 + $0x910] ss:$8 sps:$4 sm:$0xff]  }
 0x3c7   : > { %11371 = vmatpush1.bf16.msra.mxu0 %v13491_v26  ;;  %10899 = vmatprep.subr.bf16.mxu1 %v13496_v27  ;;  %v13587_v26 = vld [vmem:[%s15523_s6 + $0x1410] ss:$8 sps:$4 sm:$0xff]   ;;  %v13592_v27 = vld [vmem:[%s15523_s6 + $0x924] ss:$8 sps:$4 sm:$0xff]  }
 0x3c8   : > { %11372 = vmatprep.subr.bf16.mxu0 %v13499_v28  ;;  %v13595_v28 = vld [vmem:[%s15523_s6 + $0x1424] ss:$8 sps:$4 sm:$0xff]  }
 0x3ca   : > { %10900 = vmatpush1.bf16.msra.mxu1 %v13494_v29  ;;  %v13590_v29 = vld [vmem:[%s15523_s6 + $0x920] ss:$8 sps:$4 sm:$0xff]  }
 0x3cb   : > { %11373 = vmatpush1.bf16.msra.mxu0 %v13497_v30  ;;  %10901 = vmatprep.subr.bf16.mxu1 %v13502_v31  ;;  %v13593_v30 = vld [vmem:[%s15523_s6 + $0x1420] ss:$8 sps:$4 sm:$0xff]   ;;  %v13598_v31 = vld [vmem:[%s15523_s6 + $0x934] ss:$8 sps:$4 sm:$0xff]  }
 0x3cc   : > { %11374 = vmatprep.subr.bf16.mxu0 %v13505_v32  ;;  %v13601_v32 = vld [vmem:[%s15523_s6 + $0x1434] ss:$8 sps:$4 sm:$0xff]  }
 0x3ce   : > { %10902 = vmatpush1.bf16.msra.mxu1 %v13500_v33  ;;  %v13596_v33 = vld [vmem:[%s15523_s6 + $0x930] ss:$8 sps:$4 sm:$0xff]  }
 0x3cf   : > { %11375 = vmatpush1.bf16.msra.mxu0 %v13503_v34  ;;  %10903 = vmatprep.subr.bf16.mxu1 %v13508_v35  ;;  %v13599_v34 = vld [vmem:[%s15523_s6 + $0x1430] ss:$8 sps:$4 sm:$0xff]   ;;  %v13604_v35 = vld [vmem:[%s15523_s6 + $0x944] ss:$8 sps:$4 sm:$0xff]  }
 0x3d0   : > { %11376 = vmatprep.subr.bf16.mxu0 %v13511_v36  ;;  %v13607_v36 = vld [vmem:[%s15523_s6 + $0x1444] ss:$8 sps:$4 sm:$0xff]  }
 0x3d2   : > { %10904 = vmatpush1.bf16.msra.mxu1 %v13506_v37  ;;  %v13602_v37 = vld [vmem:[%s15523_s6 + $0x940] ss:$8 sps:$4 sm:$0xff]  }
 0x3d3   : > { %11377 = vmatpush1.bf16.msra.mxu0 %v13509_v38  ;;  %10905 = vmatprep.subr.bf16.mxu1 %v13514_v39  ;;  %v13605_v38 = vld [vmem:[%s15523_s6 + $0x1440] ss:$8 sps:$4 sm:$0xff]   ;;  %v13610_v39 = vld [vmem:[%s15523_s6 + $0x954] ss:$8 sps:$4 sm:$0xff]  }
 0x3d4   : > { %11378 = vmatprep.subr.bf16.mxu0 %v13517_v40  ;;  %v13613_v40 = vld [vmem:[%s15523_s6 + $0x1454] ss:$8 sps:$4 sm:$0xff]  }
 0x3d6   : > { %10906 = vmatpush1.bf16.msra.mxu1 %v13512_v41  ;;  %v13608_v41 = vld [vmem:[%s15523_s6 + $0x950] ss:$8 sps:$4 sm:$0xff]  }
 0x3d7   : > { %11379 = vmatpush1.bf16.msra.mxu0 %v13515_v42  ;;  %10907 = vmatprep.subr.bf16.mxu1 %v13520_v43  ;;  %v13611_v42 = vld [vmem:[%s15523_s6 + $0x1450] ss:$8 sps:$4 sm:$0xff]   ;;  %v13616_v43 = vld [vmem:[%s15523_s6 + $0x964] ss:$8 sps:$4 sm:$0xff]  }
 0x3d8   : > { %11380 = vmatprep.subr.bf16.mxu0 %v13523_v44  ;;  %v13619_v44 = vld [vmem:[%s15523_s6 + $0x1464] ss:$8 sps:$4 sm:$0xff]  }
 0x3da   : > { %10908 = vmatpush1.bf16.msra.mxu1 %v13518_v45  ;;  %v13614_v45 = vld [vmem:[%s15523_s6 + $0x960] ss:$8 sps:$4 sm:$0xff]  }
 0x3db   : > { %11381 = vmatpush1.bf16.msra.mxu0 %v13521_v46  ;;  %10909 = vmatprep.subr.bf16.mxu1 %v13526_v47  ;;  %v13617_v46 = vld [vmem:[%s15523_s6 + $0x1460] ss:$8 sps:$4 sm:$0xff]   ;;  %v13622_v47 = vld [vmem:[%s15523_s6 + $0x974] ss:$8 sps:$4 sm:$0xff]  }
 0x3dc   : > { %11382 = vmatprep.subr.bf16.mxu0 %v13529_v48  ;;  %v13625_v48 = vld [vmem:[%s15523_s6 + $0x1474] ss:$8 sps:$4 sm:$0xff]  }
 0x3de   : > { %10910 = vmatpush1.bf16.msra.mxu1 %v13524_v49  ;;  %v13620_v49 = vld [vmem:[%s15523_s6 + $0x970] ss:$8 sps:$4 sm:$0xff]  }
 0x3df   : > { %11383 = vmatpush1.bf16.msra.mxu0 %v13527_v50  ;;  %10911 = vmatprep.subr.bf16.mxu1 %v13532_v51  ;;  %v13623_v50 = vld [vmem:[%s15523_s6 + $0x1470] ss:$8 sps:$4 sm:$0xff]   ;;  %v13628_v51 = vld [vmem:[%s15523_s6 + $0x984] ss:$8 sps:$4 sm:$0xff]  }
 0x3e0   : > { %11384 = vmatprep.subr.bf16.mxu0 %v13535_v52  ;;  %v13631_v52 = vld [vmem:[%s15523_s6 + $0x1484] ss:$8 sps:$4 sm:$0xff]  }
 0x3e2   : > { %10912 = vmatpush1.bf16.msra.mxu1 %v13530_v53  ;;  %v13626_v53 = vld [vmem:[%s15523_s6 + $0x980] ss:$8 sps:$4 sm:$0xff]  }
 0x3e3   : > { %11385 = vmatpush1.bf16.msra.mxu0 %v13533_v54  ;;  %10913 = vmatprep.subr.bf16.mxu1 %v13538_v55  ;;  %v13629_v54 = vld [vmem:[%s15523_s6 + $0x1480] ss:$8 sps:$4 sm:$0xff]   ;;  %v13634_v55 = vld [vmem:[%s15523_s6 + $0x994] ss:$8 sps:$4 sm:$0xff]  }
 0x3e4   : > { %11386 = vmatprep.subr.bf16.mxu0 %v13541_v56  ;;  %v13637_v56 = vld [vmem:[%s15523_s6 + $0x1494] ss:$8 sps:$4 sm:$0xff]  }
 0x3e6   : > { %10914 = vmatpush1.bf16.msra.mxu1 %v13536_v57  ;;  %v13632_v57 = vld [vmem:[%s15523_s6 + $0x990] ss:$8 sps:$4 sm:$0xff]  }
 0x3e7   : > { %11387 = vmatpush1.bf16.msra.mxu0 %v13539_v58  ;;  %10915 = vmatprep.subr.bf16.mxu1 %v13544_v59  ;;  %v13635_v58 = vld [vmem:[%s15523_s6 + $0x1490] ss:$8 sps:$4 sm:$0xff]   ;;  %v13640_v59 = vld [vmem:[%s15523_s6 + $0x9a4] ss:$8 sps:$4 sm:$0xff]  }
 0x3e8   : > { %11388 = vmatprep.subr.bf16.mxu0 %v13547_v60  ;;  %v13643_v60 = vld [vmem:[%s15523_s6 + $0x14a4] ss:$8 sps:$4 sm:$0xff]  }
 0x3ea   : > { %10916 = vmatpush1.bf16.msra.mxu1 %v13542_v61  ;;  %v13638_v61 = vld [vmem:[%s15523_s6 + $0x9a0] ss:$8 sps:$4 sm:$0xff]  }
 0x3eb   : > { %11389 = vmatpush1.bf16.msra.mxu0 %v13545_v62  ;;  %10917 = vmatprep.subr.bf16.mxu1 %v13550_v63  ;;  %v13641_v62 = vld [vmem:[%s15523_s6 + $0x14a0] ss:$8 sps:$4 sm:$0xff]   ;;  %v13646_v63 = vld [vmem:[%s15523_s6 + $0x9b4] ss:$8 sps:$4 sm:$0xff]  }
 0x3ec   : > { %11390 = vmatprep.subr.bf16.mxu0 %v13553_v0  ;;  %v13649_v0 = vld [vmem:[%s15523_s6 + $0x14b4] ss:$8 sps:$4 sm:$0xff]  }
 0x3ee   : > { %10918 = vmatpush1.bf16.msra.mxu1 %v13548_v1  ;;  %v13644_v1 = vld [vmem:[%s15523_s6 + $0x9b0] ss:$8 sps:$4 sm:$0xff]  }
 0x3ef   : > { %11391 = vmatpush1.bf16.msra.mxu0 %v13551_v2  ;;  %10919 = vmatprep.subr.bf16.mxu1 %v13556_v3  ;;  %v13647_v2 = vld [vmem:[%s15523_s6 + $0x14b0] ss:$8 sps:$4 sm:$0xff]   ;;  %v13652_v3 = vld [vmem:[%s15523_s6 + $0x9c4] ss:$8 sps:$4 sm:$0xff]  }
 0x3f0   : > { %11392 = vmatprep.subr.bf16.mxu0 %v13559_v4  ;;  %v13655_v4 = vld [vmem:[%s15523_s6 + $0x14c4] ss:$8 sps:$4 sm:$0xff]  }
 0x3f2   : > { %10920 = vmatpush1.bf16.msra.mxu1 %v13554_v5  ;;  %v13650_v5 = vld [vmem:[%s15523_s6 + $0x9c0] ss:$8 sps:$4 sm:$0xff]  }
 0x3f3   : > { %11393 = vmatpush1.bf16.msra.mxu0 %v13557_v6  ;;  %10921 = vmatprep.subr.bf16.mxu1 %v13562_v7  ;;  %v13653_v6 = vld [vmem:[%s15523_s6 + $0x14c0] ss:$8 sps:$4 sm:$0xff]   ;;  %v13658_v7 = vld [vmem:[%s15523_s6 + $0x9d4] ss:$8 sps:$4 sm:$0xff]  }
 0x3f4   : > { %11394 = vmatprep.subr.bf16.mxu0 %v13565_v8  ;;  %v13661_v8 = vld [vmem:[%s15523_s6 + $0x14d4] ss:$8 sps:$4 sm:$0xff]  }
 0x3f6   : > { %10922 = vmatpush1.bf16.msra.mxu1 %v13560_v9  ;;  %v13656_v9 = vld [vmem:[%s15523_s6 + $0x9d0] ss:$8 sps:$4 sm:$0xff]  }
 0x3f7   : > { %11395 = vmatpush1.bf16.msra.mxu0 %v13563_v10  ;;  %10923 = vmatprep.subr.bf16.mxu1 %v13568_v11  ;;  %v13659_v10 = vld [vmem:[%s15523_s6 + $0x14d0] ss:$8 sps:$4 sm:$0xff]   ;;  %v13664_v11 = vld [vmem:[%s15523_s6 + $0x9e4] ss:$8 sps:$4 sm:$0xff]  }
 0x3f8   : > { %11396 = vmatprep.subr.bf16.mxu0 %v13571_v12  ;;  %v13667_v12 = vld [vmem:[%s15523_s6 + $0x14e4] ss:$8 sps:$4 sm:$0xff]  }
 0x3fa   : > { %10924 = vmatpush1.bf16.msra.mxu1 %v13566_v13  ;;  %v13662_v13 = vld [vmem:[%s15523_s6 + $0x9e0] ss:$8 sps:$4 sm:$0xff]  }
 0x3fb   : > { %11397 = vmatpush1.bf16.msra.mxu0 %v13569_v14  ;;  %10936 = vmatprep.subr.bf16.mxu1 %v13577_v15  ;;  %v13665_v14 = vld [vmem:[%s15523_s6 + $0x14e0] ss:$8 sps:$4 sm:$0xff]   ;;  %v13670_v15 = vld [vmem:[%s15523_s6 + $0x9f4] ss:$8 sps:$4 sm:$0xff]  }
 0x3fc   : > { %11409 = vmatprep.subr.bf16.mxu0 %v13583_v16  ;;  %v13673_v16 = vld [vmem:[%s15523_s6 + $0x14f4] ss:$8 sps:$4 sm:$0xff]  }
 0x3fd   : > { %10926 = vmatmul.mubr.bf16.vlgmr.msra.gmra.mrb[0].mxu1 %v13572_v17  ;;  %v13668_v17 = vld [vmem:[%s15523_s6 + $0x9f0] ss:$8 sps:$4 sm:$0xff]  }
 0x3fe   : > { %11399 = vmatmul.mubr.bf16.vlgmr.msra.gmra.mrb[0].mxu0 %v13578_v18  ;;  %10937 = vmatpush1.bf16.msra.mxu1 %v13575_v19  ;;  %v13671_v18 = vld [vmem:[%s15523_s6 + $0x14f0] ss:$8 sps:$4 sm:$0xff]   ;;  %v13679_v19 = vld [vmem:[%s15523_s6 + $0xa04] ss:$8 sps:$4 sm:$0xff]  }
 0x3ff   : > { %11410 = vmatpush1.bf16.msra.mxu0 %v13581_v20  ;;  %10938 = vmatprep.subr.bf16.mxu1 %v13586_v21  ;;  %v13685_v20 = vld [vmem:[%s15523_s6 + $0x1504] ss:$8 sps:$4 sm:$0xff]   ;;  %v13674_v21 = vld [vmem:[%s15521_s4 + $0x48] ss:$176 sps:$4 sm:$0xff]  }
 0x400   : > { %11411 = vmatprep.subr.bf16.mxu0 %v13589_v22  ;;  %10968 = vmatprep.mubr.bf16.mxu1 %v13676_v23  ;;  %v13680_v22 = vld [vmem:[%s15521_s4 + $0xa0] ss:$176 sps:$4 sm:$0xff]  }
 0x401   : > { %11441 = vmatprep.mubr.bf16.mxu0 %v13682_v24  ;;  %v13677_v23 = vld [vmem:[%s15523_s6 + $0xa00] ss:$8 sps:$4 sm:$0xff]  }
 0x402   : > { %10939 = vmatpush1.bf16.msra.mxu1 %v13584_v25  ;;  %v13683_v24 = vld [vmem:[%s15523_s6 + $0x1500] ss:$8 sps:$4 sm:$0xff]   ;;  %v13688_v25 = vld [vmem:[%s15523_s6 + $0xa14] ss:$8 sps:$4 sm:$0xff]  }
 0x403   : > { %11412 = vmatpush1.bf16.msra.mxu0 %v13587_v26  ;;  %10940 = vmatprep.subr.bf16.mxu1 %v13592_v27  ;;  %v13691_v26 = vld [vmem:[%s15523_s6 + $0x1514] ss:$8 sps:$4 sm:$0xff]  }
 0x404   : > { %11413 = vmatprep.subr.bf16.mxu0 %v13595_v28  ;;  %v13778_v27 = vld [vmem:[%s15521_s4 + $0x54] ss:$176 sps:$4 sm:$0xff]   ;;  %v13781_v28 = vld [vmem:[%s15521_s4 + $0xac] ss:$176 sps:$4 sm:$0xff]  }
 0x406   : > { %10941 = vmatpush1.bf16.msra.mxu1 %v13590_v29  ;;  %v13686_v29 = vld [vmem:[%s15523_s6 + $0xa10] ss:$8 sps:$4 sm:$0xff]  }
 0x407   : > { %11414 = vmatpush1.bf16.msra.mxu0 %v13593_v30  ;;  %10942 = vmatprep.subr.bf16.mxu1 %v13598_v31  ;;  %v13689_v30 = vld [vmem:[%s15523_s6 + $0x1510] ss:$8 sps:$4 sm:$0xff]   ;;  %v13694_v31 = vld [vmem:[%s15523_s6 + $0xa24] ss:$8 sps:$4 sm:$0xff]  }
 0x408   : > { %11415 = vmatprep.subr.bf16.mxu0 %v13601_v32  ;;  %v13697_v32 = vld [vmem:[%s15523_s6 + $0x1524] ss:$8 sps:$4 sm:$0xff]  }
 0x40a   : > { %10943 = vmatpush1.bf16.msra.mxu1 %v13596_v33  ;;  %v13692_v33 = vld [vmem:[%s15523_s6 + $0xa20] ss:$8 sps:$4 sm:$0xff]  }
 0x40b   : > { %11416 = vmatpush1.bf16.msra.mxu0 %v13599_v34  ;;  %10944 = vmatprep.subr.bf16.mxu1 %v13604_v35  ;;  %v13695_v34 = vld [vmem:[%s15523_s6 + $0x1520] ss:$8 sps:$4 sm:$0xff]   ;;  %v13700_v35 = vld [vmem:[%s15523_s6 + $0xa34] ss:$8 sps:$4 sm:$0xff]  }
 0x40c   : > { %11417 = vmatprep.subr.bf16.mxu0 %v13607_v36  ;;  %v13703_v36 = vld [vmem:[%s15523_s6 + $0x1534] ss:$8 sps:$4 sm:$0xff]  }
 0x40e   : > { %10945 = vmatpush1.bf16.msra.mxu1 %v13602_v37  ;;  %v13698_v37 = vld [vmem:[%s15523_s6 + $0xa30] ss:$8 sps:$4 sm:$0xff]  }
 0x40f   : > { %11418 = vmatpush1.bf16.msra.mxu0 %v13605_v38  ;;  %10946 = vmatprep.subr.bf16.mxu1 %v13610_v39  ;;  %v13701_v38 = vld [vmem:[%s15523_s6 + $0x1530] ss:$8 sps:$4 sm:$0xff]   ;;  %v13706_v39 = vld [vmem:[%s15523_s6 + $0xa44] ss:$8 sps:$4 sm:$0xff]  }
 0x410   : > { %11419 = vmatprep.subr.bf16.mxu0 %v13613_v40  ;;  %v13709_v40 = vld [vmem:[%s15523_s6 + $0x1544] ss:$8 sps:$4 sm:$0xff]  }
 0x412   : > { %10947 = vmatpush1.bf16.msra.mxu1 %v13608_v41  ;;  %v13704_v41 = vld [vmem:[%s15523_s6 + $0xa40] ss:$8 sps:$4 sm:$0xff]  }
 0x413   : > { %11420 = vmatpush1.bf16.msra.mxu0 %v13611_v42  ;;  %10948 = vmatprep.subr.bf16.mxu1 %v13616_v43  ;;  %v13707_v42 = vld [vmem:[%s15523_s6 + $0x1540] ss:$8 sps:$4 sm:$0xff]   ;;  %v13712_v43 = vld [vmem:[%s15523_s6 + $0xa54] ss:$8 sps:$4 sm:$0xff]  }
 0x414   : > { %11421 = vmatprep.subr.bf16.mxu0 %v13619_v44  ;;  %v13715_v44 = vld [vmem:[%s15523_s6 + $0x1554] ss:$8 sps:$4 sm:$0xff]  }
 0x416   : > { %10949 = vmatpush1.bf16.msra.mxu1 %v13614_v45  ;;  %v13710_v45 = vld [vmem:[%s15523_s6 + $0xa50] ss:$8 sps:$4 sm:$0xff]  }
 0x417   : > { %11422 = vmatpush1.bf16.msra.mxu0 %v13617_v46  ;;  %10950 = vmatprep.subr.bf16.mxu1 %v13622_v47  ;;  %v13713_v46 = vld [vmem:[%s15523_s6 + $0x1550] ss:$8 sps:$4 sm:$0xff]   ;;  %v13718_v47 = vld [vmem:[%s15523_s6 + $0xa64] ss:$8 sps:$4 sm:$0xff]  }
 0x418   : > { %11423 = vmatprep.subr.bf16.mxu0 %v13625_v48  ;;  %v13721_v48 = vld [vmem:[%s15523_s6 + $0x1564] ss:$8 sps:$4 sm:$0xff]  }
 0x41a   : > { %10951 = vmatpush1.bf16.msra.mxu1 %v13620_v49  ;;  %v13716_v49 = vld [vmem:[%s15523_s6 + $0xa60] ss:$8 sps:$4 sm:$0xff]  }
 0x41b   : > { %11424 = vmatpush1.bf16.msra.mxu0 %v13623_v50  ;;  %10952 = vmatprep.subr.bf16.mxu1 %v13628_v51  ;;  %v13719_v50 = vld [vmem:[%s15523_s6 + $0x1560] ss:$8 sps:$4 sm:$0xff]   ;;  %v13724_v51 = vld [vmem:[%s15523_s6 + $0xa74] ss:$8 sps:$4 sm:$0xff]  }
 0x41c   : > { %11425 = vmatprep.subr.bf16.mxu0 %v13631_v52  ;;  %v13727_v52 = vld [vmem:[%s15523_s6 + $0x1574] ss:$8 sps:$4 sm:$0xff]  }
 0x41e   : > { %10953 = vmatpush1.bf16.msra.mxu1 %v13626_v53  ;;  %v13722_v53 = vld [vmem:[%s15523_s6 + $0xa70] ss:$8 sps:$4 sm:$0xff]  }
 0x41f   : > { %11426 = vmatpush1.bf16.msra.mxu0 %v13629_v54  ;;  %10954 = vmatprep.subr.bf16.mxu1 %v13634_v55  ;;  %v13725_v54 = vld [vmem:[%s15523_s6 + $0x1570] ss:$8 sps:$4 sm:$0xff]   ;;  %v13730_v55 = vld [vmem:[%s15523_s6 + $0xa84] ss:$8 sps:$4 sm:$0xff]  }
 0x420   : > { %11427 = vmatprep.subr.bf16.mxu0 %v13637_v56  ;;  %v13733_v56 = vld [vmem:[%s15523_s6 + $0x1584] ss:$8 sps:$4 sm:$0xff]  }
 0x422   : > { %10955 = vmatpush1.bf16.msra.mxu1 %v13632_v57  ;;  %v13728_v57 = vld [vmem:[%s15523_s6 + $0xa80] ss:$8 sps:$4 sm:$0xff]  }
 0x423   : > { %11428 = vmatpush1.bf16.msra.mxu0 %v13635_v58  ;;  %10956 = vmatprep.subr.bf16.mxu1 %v13640_v59  ;;  %v13731_v58 = vld [vmem:[%s15523_s6 + $0x1580] ss:$8 sps:$4 sm:$0xff]   ;;  %v13736_v59 = vld [vmem:[%s15523_s6 + $0xa94] ss:$8 sps:$4 sm:$0xff]  }
 0x424   : > { %11429 = vmatprep.subr.bf16.mxu0 %v13643_v60  ;;  %v13739_v60 = vld [vmem:[%s15523_s6 + $0x1594] ss:$8 sps:$4 sm:$0xff]  }
 0x426   : > { %10957 = vmatpush1.bf16.msra.mxu1 %v13638_v61  ;;  %v13734_v61 = vld [vmem:[%s15523_s6 + $0xa90] ss:$8 sps:$4 sm:$0xff]  }
 0x427   : > { %11430 = vmatpush1.bf16.msra.mxu0 %v13641_v62  ;;  %10958 = vmatprep.subr.bf16.mxu1 %v13646_v63  ;;  %v13737_v62 = vld [vmem:[%s15523_s6 + $0x1590] ss:$8 sps:$4 sm:$0xff]   ;;  %v13742_v63 = vld [vmem:[%s15523_s6 + $0xaa4] ss:$8 sps:$4 sm:$0xff]  }
 0x428   : > { %11431 = vmatprep.subr.bf16.mxu0 %v13649_v0  ;;  %v13745_v0 = vld [vmem:[%s15523_s6 + $0x15a4] ss:$8 sps:$4 sm:$0xff]  }
 0x42a   : > { %10959 = vmatpush1.bf16.msra.mxu1 %v13644_v1  ;;  %v13740_v1 = vld [vmem:[%s15523_s6 + $0xaa0] ss:$8 sps:$4 sm:$0xff]  }
 0x42b   : > { %11432 = vmatpush1.bf16.msra.mxu0 %v13647_v2  ;;  %10960 = vmatprep.subr.bf16.mxu1 %v13652_v3  ;;  %v13743_v2 = vld [vmem:[%s15523_s6 + $0x15a0] ss:$8 sps:$4 sm:$0xff]   ;;  %v13748_v3 = vld [vmem:[%s15523_s6 + $0xab4] ss:$8 sps:$4 sm:$0xff]  }
 0x42c   : > { %11433 = vmatprep.subr.bf16.mxu0 %v13655_v4  ;;  %v13751_v4 = vld [vmem:[%s15523_s6 + $0x15b4] ss:$8 sps:$4 sm:$0xff]  }
 0x42e   : > { %10961 = vmatpush1.bf16.msra.mxu1 %v13650_v5  ;;  %v13746_v5 = vld [vmem:[%s15523_s6 + $0xab0] ss:$8 sps:$4 sm:$0xff]  }
 0x42f   : > { %11434 = vmatpush1.bf16.msra.mxu0 %v13653_v6  ;;  %10962 = vmatprep.subr.bf16.mxu1 %v13658_v7  ;;  %v13749_v6 = vld [vmem:[%s15523_s6 + $0x15b0] ss:$8 sps:$4 sm:$0xff]   ;;  %v13754_v7 = vld [vmem:[%s15523_s6 + $0xac4] ss:$8 sps:$4 sm:$0xff]  }
 0x430   : > { %11435 = vmatprep.subr.bf16.mxu0 %v13661_v8  ;;  %v13757_v8 = vld [vmem:[%s15523_s6 + $0x15c4] ss:$8 sps:$4 sm:$0xff]  }
 0x432   : > { %10963 = vmatpush1.bf16.msra.mxu1 %v13656_v9  ;;  %v13752_v9 = vld [vmem:[%s15523_s6 + $0xac0] ss:$8 sps:$4 sm:$0xff]  }
 0x433   : > { %11436 = vmatpush1.bf16.msra.mxu0 %v13659_v10  ;;  %10964 = vmatprep.subr.bf16.mxu1 %v13664_v11  ;;  %v13755_v10 = vld [vmem:[%s15523_s6 + $0x15c0] ss:$8 sps:$4 sm:$0xff]   ;;  %v13760_v11 = vld [vmem:[%s15523_s6 + $0xad4] ss:$8 sps:$4 sm:$0xff]  }
 0x434   : > { %11437 = vmatprep.subr.bf16.mxu0 %v13667_v12  ;;  %v13763_v12 = vld [vmem:[%s15523_s6 + $0x15d4] ss:$8 sps:$4 sm:$0xff]  }
 0x436   : > { %10965 = vmatpush1.bf16.msra.mxu1 %v13662_v13  ;;  %v13758_v13 = vld [vmem:[%s15523_s6 + $0xad0] ss:$8 sps:$4 sm:$0xff]  }
 0x437   : > { %11438 = vmatpush1.bf16.msra.mxu0 %v13665_v14  ;;  %10966 = vmatprep.subr.bf16.mxu1 %v13670_v15  ;;  %v13761_v14 = vld [vmem:[%s15523_s6 + $0x15d0] ss:$8 sps:$4 sm:$0xff]   ;;  %v13766_v15 = vld [vmem:[%s15523_s6 + $0xae4] ss:$8 sps:$4 sm:$0xff]  }
 0x438   : > { %11439 = vmatprep.subr.bf16.mxu0 %v13673_v16  ;;  %v13769_v16 = vld [vmem:[%s15523_s6 + $0x15e4] ss:$8 sps:$4 sm:$0xff]  }
 0x43a   : > { %10967 = vmatpush1.bf16.msra.mxu1 %v13668_v17  ;;  %v13764_v17 = vld [vmem:[%s15523_s6 + $0xae0] ss:$8 sps:$4 sm:$0xff]  }
 0x43b   : > { %11440 = vmatpush1.bf16.msra.mxu0 %v13671_v18  ;;  %10979 = vmatprep.subr.bf16.mxu1 %v13679_v19  ;;  %v13767_v18 = vld [vmem:[%s15523_s6 + $0x15e0] ss:$8 sps:$4 sm:$0xff]   ;;  %v13772_v19 = vld [vmem:[%s15523_s6 + $0xaf4] ss:$8 sps:$4 sm:$0xff]  }
 0x43c   : > { %11452 = vmatprep.subr.bf16.mxu0 %v13685_v20  ;;  %v13775_v20 = vld [vmem:[%s15523_s6 + $0x15f4] ss:$8 sps:$4 sm:$0xff]  }
 0x43d   : > { %10969 = vmatmul.mubr.bf16.vlgmr.msra.gmra.mrb[0].mxu1 %v13674_v21  ;;  %v13770_v21 = vld [vmem:[%s15523_s6 + $0xaf0] ss:$8 sps:$4 sm:$0xff]  }
 0x43e   : > { %11442 = vmatmul.mubr.bf16.vlgmr.msra.gmra.mrb[0].mxu0 %v13680_v22  ;;  %10980 = vmatpush1.bf16.msra.mxu1 %v13677_v23  ;;  %v13773_v22 = vld [vmem:[%s15523_s6 + $0x15f0] ss:$8 sps:$4 sm:$0xff]  }
 0x43f   : > { %11453 = vmatpush1.bf16.msra.mxu0 %v13683_v24  ;;  %10981 = vmatprep.subr.bf16.mxu1 %v13688_v25  ;;  %v13776_v23 = vld [vmem:[%s15521_s4 + $0x50] ss:$176 sps:$4 sm:$0xff]   ;;  %v13779_v24 = vld [vmem:[%s15521_s4 + $0xa8] ss:$176 sps:$4 sm:$0xff]  }
 0x440   : > { %11454 = vmatprep.subr.bf16.mxu0 %v13691_v26  ;;  %11011 = vmatprep.mubr.bf16.mxu1 %v13778_v27  ;;  %v6057_v26 = vld [vmem:[#allocation2] sm:$0xff] }
 0x441   : > { %11484 = vmatprep.mubr.bf16.mxu0 %v13781_v28 }
 0x442   : > { %10982 = vmatpush1.bf16.msra.mxu1 %v13686_v29 }
 0x443   : > { %11455 = vmatpush1.bf16.msra.mxu0 %v13689_v30  ;;  %10983 = vmatprep.subr.bf16.mxu1 %v13694_v31  ;;  %v6058_v30 = vld [vmem:[#allocation2 + $0x8] sm:$0xff] }
 0x444   : > { %11456 = vmatprep.subr.bf16.mxu0 %v13697_v32 }
 0x446   : > { %10984 = vmatpush1.bf16.msra.mxu1 %v13692_v33 }
 0x447   : > { %11457 = vmatpush1.bf16.msra.mxu0 %v13695_v34  ;;  %10985 = vmatprep.subr.bf16.mxu1 %v13700_v35  ;;  %v6059_v34 = vld [vmem:[#allocation2 + $0x10] sm:$0xff] }
 0x448   : > { %11458 = vmatprep.subr.bf16.mxu0 %v13703_v36 }
 0x44a   : > { %10986 = vmatpush1.bf16.msra.mxu1 %v13698_v37 }
 0x44b   : > { %11459 = vmatpush1.bf16.msra.mxu0 %v13701_v38  ;;  %10987 = vmatprep.subr.bf16.mxu1 %v13706_v39  ;;  %v6060_v39 = vld [vmem:[#allocation2 + $0x18] sm:$0xff] }
 0x44c   : > { %11460 = vmatprep.subr.bf16.mxu0 %v13709_v40 }
 0x44e   : > { %10988 = vmatpush1.bf16.msra.mxu1 %v13704_v41 }
 0x44f   : > { %11461 = vmatpush1.bf16.msra.mxu0 %v13707_v42  ;;  %10989 = vmatprep.subr.bf16.mxu1 %v13712_v43 }
 0x450   : > { %11462 = vmatprep.subr.bf16.mxu0 %v13715_v44 }
 0x452   : > { %10990 = vmatpush1.bf16.msra.mxu1 %v13710_v45  ;;  %v11513_v45 = vlaneseq (!%p12470_p5) }
 0x453   : > { %11463 = vmatpush1.bf16.msra.mxu0 %v13713_v46  ;;  %10991 = vmatprep.subr.bf16.mxu1 %v13718_v47  ;;  %v11511_v47 = vld [vmem:[%s6045_s29] sm:$0x3] (!%p12470_p5) }
 0x454   : > { %11464 = vmatprep.subr.bf16.mxu0 %v13721_v48  ;;  %v11514_v46 = vshrl.u32 (!%p12470_p5), %v11513_v45, 7 }
 0x456   : > { %10992 = vmatpush1.bf16.msra.mxu1 %v13716_v49  ;;  %v11515_v49 = vsub.s32 (!%p12470_p5), 0, %v11514_v46 }
 0x457   : > { %11465 = vmatpush1.bf16.msra.mxu0 %v13719_v50  ;;  %10993 = vmatprep.subr.bf16.mxu1 %v13724_v51  ;;  %v11519_v50 = vsub.s32 (!%p12470_p5), 1, %v11514_v46 }
 0x458   : > { %11466 = vmatprep.subr.bf16.mxu0 %v13727_v52 }
 0x45a   : > { %10994 = vmatpush1.bf16.msra.mxu1 %v13722_v53 }
 0x45b   : > { %11467 = vmatpush1.bf16.msra.mxu0 %v13725_v54  ;;  %10995 = vmatprep.subr.bf16.mxu1 %v13730_v55  ;;  %v11516_v54 = vrot.slane (!%p12470_p5), %v11511_v47, %v11515_v49  ;;  %v11520_v55 = vrot.slane (!%p12470_p5), %v11511_v47, %v11519_v50 }
 0x45c   : > { %11468 = vmatprep.subr.bf16.mxu0 %v13733_v56 }
 0x45e   : > { %10996 = vmatpush1.bf16.msra.mxu1 %v13728_v57 }
 0x45f   : > { %11469 = vmatpush1.bf16.msra.mxu0 %v13731_v58  ;;  %10997 = vmatprep.subr.bf16.mxu1 %v13736_v59 }
 0x460   : > { %11470 = vmatprep.subr.bf16.mxu0 %v13739_v60 }
 0x462   : > { %10998 = vmatpush1.bf16.msra.mxu1 %v13734_v61 }
 0x463   : > { %11471 = vmatpush1.bf16.msra.mxu0 %v13737_v62  ;;  %10999 = vmatprep.subr.bf16.mxu1 %v13742_v63 }
 0x464   : > { %11472 = vmatprep.subr.bf16.mxu0 %v13745_v0 }
 0x466   : > { %11000 = vmatpush1.bf16.msra.mxu1 %v13740_v1 }
 0x467   : > { %11473 = vmatpush1.bf16.msra.mxu0 %v13743_v2  ;;  %11001 = vmatprep.subr.bf16.mxu1 %v13748_v3 }
 0x468   : > { %11474 = vmatprep.subr.bf16.mxu0 %v13751_v4 }
 0x46a   : > { %11002 = vmatpush1.bf16.msra.mxu1 %v13746_v5 }
 0x46b   : > { %11475 = vmatpush1.bf16.msra.mxu0 %v13749_v6  ;;  %11003 = vmatprep.subr.bf16.mxu1 %v13754_v7 }
 0x46c   : > { %11476 = vmatprep.subr.bf16.mxu0 %v13757_v8 }
 0x46e   : > { %11004 = vmatpush1.bf16.msra.mxu1 %v13752_v9 }
 0x46f   : > { %11477 = vmatpush1.bf16.msra.mxu0 %v13755_v10  ;;  %11005 = vmatprep.subr.bf16.mxu1 %v13760_v11 }
 0x470   : > { %11478 = vmatprep.subr.bf16.mxu0 %v13763_v12 }
 0x472   : > { %11006 = vmatpush1.bf16.msra.mxu1 %v13758_v13 }
 0x473   : > { %11479 = vmatpush1.bf16.msra.mxu0 %v13761_v14  ;;  %11007 = vmatprep.subr.bf16.mxu1 %v13766_v15 }
 0x474   : > { %11480 = vmatprep.subr.bf16.mxu0 %v13769_v16 }
 0x476   : > { %11008 = vmatpush1.bf16.msra.mxu1 %v13764_v17 }
 0x477   : > { %11481 = vmatpush1.bf16.msra.mxu0 %v13767_v18  ;;  %11009 = vmatprep.subr.bf16.mxu1 %v13772_v19 }
 0x478   : > { %11482 = vmatprep.subr.bf16.mxu0 %v13775_v20 }
 0x47a   : > { %11010 = vmatpush1.bf16.msra.mxu1 %v13770_v21 }
 0x47b   : > { %11483 = vmatpush1.bf16.msra.mxu0 %v13773_v22 }
 0x47d   : > { %11012 = vmatmul.mubr.bf16.vlgmr.msra.gmra.mrb[0].mxu1 %v13776_v23 }
 0x47e   : > { %11485 = vmatmul.mubr.bf16.vlgmr.msra.gmra.mrb[0].mxu0 %v13779_v24 }
 0x550   : > { %v11013_v25 = vpop.f32.mrb[0].mxu1 }
 0x551   : > { %v11486_v27 = vpop.f32.mrb[0].mxu0  ;;  %v11015_v29 = vpop.f32.mrb[1].mxu1 }
 0x552   : > { %v12483_v28 = vadd.f32 %v11486_v27, %v11013_v25  ;;  %v11488_v31 = vpop.f32.mrb[1].mxu0  ;;  %v11017_v33 = vpop.f32.mrb[2].mxu1 }
 0x553   : > { %v12484_v32 = vadd.f32 %v11488_v31, %v11015_v29  ;;  %v11490_v35 = vpop.f32.mrb[2].mxu0  ;;  %v11019_v38 = vpop.f32.mrb[3].mxu1  ;;  %11506 = sbr.rel (%p12470_p5) target bundleno = 1384 (0x568), region = 115 }
 0x554   : > { %v11495_v36 = vadd.f32 %v12483_v28, %v6057_v26  ;;  %v12485_v37 = vadd.f32 %v11490_v35, %v11017_v33  ;;  %v11492_v40 = vpop.f32.mrb[3].mxu0 }
 0x555   : > { %v11496_v41 = vadd.f32 %v12484_v32, %v6058_v30  ;;  %v12486_v42 = vadd.f32 %v11492_v40, %v11019_v38 }
 0x556   : > { %11499 = vst [vmem:[#allocation2] sm:$0xff] %v11495_v36  ;;  %v11497_v43 = vadd.f32 %v12485_v37, %v6059_v34 }
 0x557   : > { %11500 = vst [vmem:[#allocation2 + $0x8] sm:$0xff] %v11496_v41  ;;  %v11498_v44 = vadd.f32 %v12486_v42, %v6060_v39 }
 0x558   : > { %11501 = vst [vmem:[#allocation2 + $0x10] sm:$0xff] %v11497_v43 }
 0x559   : > { %11502 = vst [vmem:[#allocation2 + $0x18] sm:$0xff] %v11498_v44 }
 0x55d   : > { %v11507_v48 = vld [vmem:[#allocation2] sm:$0xff] }
 0x55e   : > { %v11508_v51 = vld [vmem:[#allocation2 + $0x8] sm:$0xff]  ;;  %v11523_v56 = vadd.f32 %v11516_v54, %v11507_v48 }
 0x55f   : > { %v11509_v52 = vld [vmem:[#allocation2 + $0x10] sm:$0xff]  ;;  %v11524_v57 = vadd.f32 %v11520_v55, %v11508_v51 }
 0x560   : > { %v11510_v53 = vld [vmem:[#allocation2 + $0x18] sm:$0xff]  ;;  %v11525_v58 = vadd.f32 %v11516_v54, %v11509_v52  ;;  %v11527_v60 = vmax.f32 %v11523_v56, 0.0 }
 0x561   : > { %v11526_v59 = vadd.f32 %v11520_v55, %v11510_v53  ;;  %v11528_v61 = vmax.f32 %v11524_v57, 0.0 }
 0x562   : > { %v11529_v62 = vmax.f32 %v11525_v58, 0.0 }
 0x563   : > { %v11530_v63 = vmax.f32 %v11526_v59, 0.0  ;;  %v12480_v0 = vpack.c.bf16 %v11528_v61, %v11527_v60 }
 0x565   : > { %v12481_v1 = vpack.c.bf16 %v11530_v63, %v11529_v62  ;;  %11543 = vst [vmem:[%s15525_s1] sm:$0xff] %v12480_v0 }
 0x567   : > { %11544 = vst [vmem:[%s15525_s1 + $0x8] sm:$0xff] %v12481_v1 }
 0x568 PF: > { %11551 = sbr.rel (!%p13985_p12) target bundleno = 1392 (0x570), region = 119  ;;  %s12482_s16 = sshll.u32 (%p13985_p12), %s13856_s19, 3 }
 0x569   : > { %s11557_s5 = scalar_lea.vmem (%p13985_p12), %s16328_s3, %s12482_s16 }
 0x56c   : > { %v11587_v2 = vld [vmem:[%s15525_s1] sm:$0xff] (%p13985_p12) }
 0x56d   : > { %11588 = vst [vmem:[%s11557_s5] sm:$0xff] (%p13985_p12), %v11587_v2 }
 0x56e   : > { %v11589_v3 = vld [vmem:[%s15525_s1 + $0x8] sm:$0xff] (%p13985_p12) }
 0x56f   : > { %11590 = vst [vmem:[%s11557_s5 + $0x10] sm:$0xff] %v11589_v3 }
 0x570 PF: > { %s13_s22 = sadd.s32 1, %s13868_s22   ;;  %s16338_s1 = sld [smem:[#allocation6_spill]] }
 0x571   : > { %p10_p6 = scmp.ge.s32.totalorder %s13_s22, 10   ;;  %s16339_s12 = smov %s13832_s13 }
 0x572   : > { %s16340_s13 = smov %s13983_s9  ;;  %s16341_s14 = smov %s13840_s15 }
 0x573   : > { %s16342_s15 = smov %s13980_s8  ;;  %s16343_s16 = smov %s13848_s17 }
 0x574   : > { %s16344_s17 = smov %s13966_s30  ;;  %s16345_s18 = smov %s13860_s20 }
 0x575   : > { %s16346_s19 = smov %s13864_s21  ;;  %s16347_s20 = smov %s16350_s24 }
 0x576   : > { %s16348_s21 = smov %s16338_s1  ;;  %12 = sbr.rel (!%p10_p6) target bundleno = 9 (0x9), region = 205 }

</bundles_post_ra>
